<compile_context>
chip_gen: v7x
topology: tpu7x:2x2x1
jax: 0.10.0
libtpu: 0.0.40
codegen_flags: <defaults>
</compile_context>

<pallas_src>
import functools

import jax
import jax.numpy as jnp
from jax.experimental import pallas as pl
from jax.experimental.pallas import tpu as pltpu

IN_FEATURES = 28 * 28      # 784
HIDDEN_DIM = 2000
OUT_FEATURES = 10

HIDDEN_PAD = 2048          # lane-dense hidden dim (2000 -> 2048, zero padded)
OUT_PAD = 128              # lane-dense logits dim (10 -> 128, zero padded)
MAX_TM = 512               # batch tile for large B


def _round_up(n, m):
    return (n + m - 1) // m * m


def mlp_kernel(x_ref, w1_ref, b1_ref, w2_ref, b2_ref, o_ref):
    # x arrives as f32 (single HBM read); cast to bf16 on the VPU right before the MXU.
    x = x_ref[...].astype(jnp.bfloat16)                               # (TM, 784)
    # Layer 1: bf16 @ bf16 -> f32 accumulation on the MXU.
    h = jnp.dot(x, w1_ref[...], preferred_element_type=jnp.float32)   # (TM, 2048)
    h = jnp.maximum(h + b1_ref[...], 0.0)                             # bias + ReLU in f32
    # Layer 2: padded hidden columns correspond to zero rows of W2 -> contribute nothing.
    o = jnp.dot(h.astype(jnp.bfloat16), w2_ref[...],
                preferred_element_type=jnp.float32)                   # (TM, 128)
    o_ref[...] = (o + b2_ref[...]).astype(o_ref.dtype)


def _weight_specs(single_buffer_weights):
    # Constant block index: W1/b1/W2/b2 stay resident in VMEM across all grid steps.
    kw = dict(pipeline_mode=pl.Buffered(1)) if single_buffer_weights else {}
    return [
        pl.BlockSpec((IN_FEATURES, HIDDEN_PAD), lambda i: (0, 0), **kw),  # W1
        pl.BlockSpec((1, HIDDEN_PAD), lambda i: (0, 0), **kw),            # b1
        pl.BlockSpec((HIDDEN_PAD, OUT_PAD), lambda i: (0, 0), **kw),      # W2
        pl.BlockSpec((1, OUT_PAD), lambda i: (0, 0), **kw),               # b2
    ]


@functools.partial(jax.jit, static_argnames=("single_buffer_weights",))
def _forward_impl(x_nchw, w1_p, b1_p, w2_p, b2_p, *, single_buffer_weights):
    B = x_nchw.shape[0]
    x = x_nchw.reshape(B, IN_FEATURES).astype(jnp.float32)   # flatten like .view(); stays f32

    # TM multiple of 16 (clean sublane packing); tiny batches -> one grid step.
    TM = min(MAX_TM, _round_up(B, 16))
    B_pad = _round_up(B, TM)
    if B_pad != B:
        x = jnp.pad(x, ((0, B_pad - B), (0, 0)))             # only per-call op on x

    grid = (B_pad // TM,)
    flops = 2 * B_pad * IN_FEATURES * HIDDEN_PAD + 2 * B_pad * HIDDEN_PAD * OUT_PAD
    bytes_accessed = (x.size * 4 + w1_p.size * 2 + w2_p.size * 2
                      + b1_p.size * 4 + b2_p.size * 4 + B_pad * OUT_PAD * 4)

    out = pl.pallas_call(
        mlp_kernel,
        out_shape=jax.ShapeDtypeStruct((B_pad, OUT_PAD), jnp.float32),
        grid_spec=pltpu.PrefetchScalarGridSpec(
            num_scalar_prefetch=0,
            grid=grid,
            in_specs=[pl.BlockSpec((TM, IN_FEATURES), lambda i: (i, 0))]  # x tile / step
                     + _weight_specs(single_buffer_weights),
            out_specs=pl.BlockSpec((TM, OUT_PAD), lambda i: (i, 0)),
        ),
        compiler_params=pltpu.CompilerParams(
            # TODO(synk): on v7x, confirm in a profile that both TensorCores are active;
            # if one TC idles, switch the batch axis to pltpu.CORE_PARALLEL.
            dimension_semantics=("parallel",),
            vmem_limit_bytes=40 << 20,   # ~15-18 MiB used at TM=512; fits v7x 64 MiB/TC
        ),
        cost_estimate=pl.CostEstimate(
            flops=flops, transcendentals=0, bytes_accessed=bytes_accessed),
    )(x, w1_p, b1_p, w2_p, b2_p)

    return out[:B, :OUT_FEATURES]


_single_buffer_ok = None   # cached capability probe for pl.Buffered(1)


def mlp_forward(x_nchw, params):
    """x_nchw: (B, 1, 28, 28) float -> logits (B, 10) float32."""
    global _single_buffer_ok
    w1_p, b1_p, w2_p, b2_p = params
    if _single_buffer_ok is None:
        try:
            out = _forward_impl(x_nchw, w1_p, b1_p, w2_p, b2_p,
                                single_buffer_weights=True)
            jax.block_until_ready(out)
            _single_buffer_ok = True
            return out
        except Exception:
            _single_buffer_ok = False   # this JAX build rejects Buffered(1); use default
    return _forward_impl(x_nchw, w1_p, b1_p, w2_p, b2_p,
                         single_buffer_weights=_single_buffer_ok)


def init_params(key):
    # Deterministic synthetic init (PyTorch-style uniform bounds), not a checkpoint load.
    k1, k2, k3, k4 = jax.random.split(key, 4)
    bound1 = 1.0 / (IN_FEATURES ** 0.5)
    bound2 = 1.0 / (HIDDEN_DIM ** 0.5)
    w1 = jax.random.uniform(k1, (IN_FEATURES, HIDDEN_DIM), jnp.float32, -bound1, bound1)
    b1 = jax.random.uniform(k2, (HIDDEN_DIM,), jnp.float32, -bound1, bound1)
    w2 = jax.random.uniform(k3, (HIDDEN_DIM, OUT_FEATURES), jnp.float32, -bound2, bound2)
    b2 = jax.random.uniform(k4, (OUT_FEATURES,), jnp.float32, -bound2, bound2)
    return w1, b1, w2, b2


def prepare_params(w1, b1, w2, b2):
    """One-time weight preprocessing (hoisted out of the per-call path): bf16 cast +
    zero pad to lane-dense shapes.  Zero padding is mathematically inert."""
    w1_p = jnp.pad(w1.astype(jnp.bfloat16), ((0, 0), (0, HIDDEN_PAD - HIDDEN_DIM)))
    b1_p = jnp.pad(b1.astype(jnp.float32),
                   (0, HIDDEN_PAD - HIDDEN_DIM)).reshape(1, HIDDEN_PAD)
    w2_p = jnp.pad(w2.astype(jnp.bfloat16),
                   ((0, HIDDEN_PAD - HIDDEN_DIM), (0, OUT_PAD - OUT_FEATURES)))
    b2_p = jnp.pad(b2.astype(jnp.float32),
                   (0, OUT_PAD - OUT_FEATURES)).reshape(1, OUT_PAD)
    # TODO(synk): for tiny deployed batches the kernel is pure weight-DMA bound; the
    # remaining levers are cross-call weight prefetch (persistent-VMEM weights, P10)
    # and int8 (v5e/v6e) / fp8 (v7x) weight quantization -- out of scope here.
    return jax.block_until_ready(jax.device_put((w1_p, b1_p, w2_p, b2_p)))


if __name__ == "__main__":
    key = jax.random.PRNGKey(0)
    kx, kp = jax.random.split(key)
    B = 2
    x = jax.random.normal(kx, (B, 1, 28, 28), jnp.float32)     # MNIST-like NCHW input

    w1, b1, w2, b2 = init_params(kp)
    params = prepare_params(w1, b1, w2, b2)                    # one-time preprocessing

    logits = mlp_forward(x, params)
    jax.block_until_ready(logits)

    # Reference: same math with the same bf16-cast operands, f32 accumulation.
    f32 = lambda a: a.astype(jnp.bfloat16).astype(jnp.float32)
    xf = x.reshape(B, -1)
    h_ref = jnp.maximum(
        jnp.dot(f32(xf), f32(w1), preferred_element_type=jnp.float32) + b1, 0.0)
    ref = jnp.dot(f32(h_ref), f32(w2), preferred_element_type=jnp.float32) + b2

    assert logits.shape == (B, OUT_FEATURES)
    assert jnp.allclose(logits, ref, atol=1e-2, rtol=1e-2), \
        float(jnp.max(jnp.abs(logits - ref)))

    print("KERNEL_OK")
</pallas_src>

<mosaic_0001>
module attributes {stable_mosaic.version = 11 : i64} {
  func.func @mlp_kernel(%arg0: i32, %arg1: memref<16x784xf32, #tpu.memory_space<vmem>>, %arg2: memref<784x2048xbf16, #tpu.memory_space<vmem>>, %arg3: memref<1x2048xf32, #tpu.memory_space<vmem>>, %arg4: memref<2048x128xbf16, #tpu.memory_space<vmem>>, %arg5: memref<1x128xf32, #tpu.memory_space<vmem>>, %arg6: memref<16x128xf32, #tpu.memory_space<vmem>>) attributes {dimension_semantics = [#tpu.dimension_semantics<parallel>], iteration_bounds = array<i64: 1>, scalar_prefetch = 0 : i64, scratch_operands = 0 : i64, tpu.core_type = #tpu.core_type<tc>, window_params = [{transform_indices = @transform_0, window_bounds = array<i64: 16, 784>}, {pipeline_mode = #tpu.pipeline_mode<synchronous>, transform_indices = @transform_1, window_bounds = array<i64: 784, 2048>}, {pipeline_mode = #tpu.pipeline_mode<synchronous>, transform_indices = @transform_2, window_bounds = array<i64: 1, 2048>}, {pipeline_mode = #tpu.pipeline_mode<synchronous>, transform_indices = @transform_3, window_bounds = array<i64: 2048, 128>}, {pipeline_mode = #tpu.pipeline_mode<synchronous>, transform_indices = @transform_4, window_bounds = array<i64: 1, 128>}, {transform_indices = @transform_5, window_bounds = array<i64: 16, 128>}]} {
    %c0 = arith.constant 0 : index
    %c0_0 = arith.constant 0 : index
    %0 = vector.load %arg1[%c0, %c0_0] : memref<16x784xf32, #tpu.memory_space<vmem>>, vector<16x784xf32>
    %1 = arith.truncf %0 : vector<16x784xf32> to vector<16x784xbf16>
    %c0_1 = arith.constant 0 : index
    %c0_2 = arith.constant 0 : index
    %2 = vector.load %arg2[%c0_1, %c0_2] : memref<784x2048xbf16, #tpu.memory_space<vmem>>, vector<784x2048xbf16>
    %cst = arith.constant dense<0.000000e+00> : vector<16x2048xf32>
    %3 = tpu.matmul %1, %2, %cst {dimension_numbers = #tpu.dot_dimension_numbers<[1], [0], [0], [1], [0, 0, 1, 1], [], []>} : vector<16x784xbf16>, vector<784x2048xbf16>, vector<16x2048xf32> -> vector<16x2048xf32>
    %c0_3 = arith.constant 0 : index
    %c0_4 = arith.constant 0 : index
    %4 = vector.load %arg3[%c0_3, %c0_4] : memref<1x2048xf32, #tpu.memory_space<vmem>>, vector<1x2048xf32>
    %5 = vector.broadcast %4 : vector<1x2048xf32> to vector<16x2048xf32>
    %6 = arith.addf %3, %5 : vector<16x2048xf32>
    %cst_5 = arith.constant 0.000000e+00 : f32
    %7 = vector.broadcast %cst_5 : f32 to vector<16x2048xf32>
    %8 = arith.maximumf %6, %7 : vector<16x2048xf32>
    %9 = arith.truncf %8 : vector<16x2048xf32> to vector<16x2048xbf16>
    %c0_6 = arith.constant 0 : index
    %c0_7 = arith.constant 0 : index
    %10 = vector.load %arg4[%c0_6, %c0_7] : memref<2048x128xbf16, #tpu.memory_space<vmem>>, vector<2048x128xbf16>
    %cst_8 = arith.constant dense<0.000000e+00> : vector<16x128xf32>
    %11 = tpu.matmul %9, %10, %cst_8 {dimension_numbers = #tpu.dot_dimension_numbers<[1], [0], [0], [1], [0, 0, 1, 1], [], []>} : vector<16x2048xbf16>, vector<2048x128xbf16>, vector<16x128xf32> -> vector<16x128xf32>
    %c0_9 = arith.constant 0 : index
    %c0_10 = arith.constant 0 : index
    %12 = vector.load %arg5[%c0_9, %c0_10] : memref<1x128xf32, #tpu.memory_space<vmem>>, vector<1x128xf32>
    %13 = vector.broadcast %12 : vector<1x128xf32> to vector<16x128xf32>
    %14 = arith.addf %11, %13 : vector<16x128xf32>
    %c0_11 = arith.constant 0 : index
    %c0_12 = arith.constant 0 : index
    %15 = vector.load %arg6[%c0_11, %c0_12] : memref<16x128xf32, #tpu.memory_space<vmem>>, vector<16x128xf32>
    tpu.vector_store %arg6[%c0_11, %c0_12], %14 {strides = array<i32>} : memref<16x128xf32, #tpu.memory_space<vmem>>, vector<16x128xf32>,
    return
  }
  func.func @transform_0(%arg0: i32) -> (i32, i32) {
    %c0_i32 = arith.constant 0 : i32
    %c0_i32_0 = arith.constant 0 : i32
    return %arg0, %c0_i32 : i32, i32
  }
  func.func @transform_1(%arg0: i32) -> (i32, i32) {
    %c0_i32 = arith.constant 0 : i32
    %c0_i32_0 = arith.constant 0 : i32
    %c0_i32_1 = arith.constant 0 : i32
    return %c0_i32, %c0_i32_0 : i32, i32
  }
  func.func @transform_2(%arg0: i32) -> (i32, i32) {
    %c0_i32 = arith.constant 0 : i32
    %c0_i32_0 = arith.constant 0 : i32
    %c0_i32_1 = arith.constant 0 : i32
    return %c0_i32, %c0_i32_0 : i32, i32
  }
  func.func @transform_3(%arg0: i32) -> (i32, i32) {
    %c0_i32 = arith.constant 0 : i32
    %c0_i32_0 = arith.constant 0 : i32
    %c0_i32_1 = arith.constant 0 : i32
    return %c0_i32, %c0_i32_0 : i32, i32
  }
  func.func @transform_4(%arg0: i32) -> (i32, i32) {
    %c0_i32 = arith.constant 0 : i32
    %c0_i32_0 = arith.constant 0 : i32
    %c0_i32_1 = arith.constant 0 : i32
    return %c0_i32, %c0_i32_0 : i32, i32
  }
  func.func @transform_5(%arg0: i32) -> (i32, i32) {
    %c0_i32 = arith.constant 0 : i32
    %c0_i32_0 = arith.constant 0 : i32
    return %arg0, %c0_i32 : i32, i32
  }
}

module attributes {stable_mosaic.version = 11 : i64} {
  func.func @mlp_kernel(%arg0: i32, %arg1: memref<16x784xf32, #tpu.memory_space<vmem>>, %arg2: memref<784x2048xbf16, #tpu.memory_space<vmem>>, %arg3: memref<1x2048xf32, #tpu.memory_space<vmem>>, %arg4: memref<2048x128xbf16, #tpu.memory_space<vmem>>, %arg5: memref<1x128xf32, #tpu.memory_space<vmem>>, %arg6: memref<16x128xf32, #tpu.memory_space<vmem>>) attributes {dimension_semantics = [#tpu.dimension_semantics<parallel>], iteration_bounds = array<i64: 1>, scalar_prefetch = 0 : i64, scratch_operands = 0 : i64, tpu.core_type = #tpu.core_type<tc>, window_params = [{transform_indices = @transform_0, window_bounds = array<i64: 16, 784>}, {pipeline_mode = #tpu.pipeline_mode<synchronous>, transform_indices = @transform_1, window_bounds = array<i64: 784, 2048>}, {pipeline_mode = #tpu.pipeline_mode<synchronous>, transform_indices = @transform_2, window_bounds = array<i64: 1, 2048>}, {pipeline_mode = #tpu.pipeline_mode<synchronous>, transform_indices = @transform_3, window_bounds = array<i64: 2048, 128>}, {pipeline_mode = #tpu.pipeline_mode<synchronous>, transform_indices = @transform_4, window_bounds = array<i64: 1, 128>}, {transform_indices = @transform_5, window_bounds = array<i64: 16, 128>}]} {
    %c0 = arith.constant 0 : index
    %c0_0 = arith.constant 0 : index
    %0 = vector.load %arg1[%c0, %c0_0] : memref<16x784xf32, #tpu.memory_space<vmem>>, vector<16x784xf32>
    %1 = arith.truncf %0 : vector<16x784xf32> to vector<16x784xbf16>
    %c0_1 = arith.constant 0 : index
    %c0_2 = arith.constant 0 : index
    %2 = vector.load %arg2[%c0_1, %c0_2] : memref<784x2048xbf16, #tpu.memory_space<vmem>>, vector<784x2048xbf16>
    %cst = arith.constant dense<0.000000e+00> : vector<16x2048xf32>
    %3 = tpu.matmul %1, %2, %cst {dimension_numbers = #tpu.dot_dimension_numbers<[1], [0], [0], [1], [0, 0, 1, 1], [], []>} : vector<16x784xbf16>, vector<784x2048xbf16>, vector<16x2048xf32> -> vector<16x2048xf32>
    %c0_3 = arith.constant 0 : index
    %c0_4 = arith.constant 0 : index
    %4 = vector.load %arg3[%c0_3, %c0_4] : memref<1x2048xf32, #tpu.memory_space<vmem>>, vector<1x2048xf32>
    %5 = vector.broadcast %4 : vector<1x2048xf32> to vector<16x2048xf32>
    %6 = arith.addf %3, %5 : vector<16x2048xf32>
    %cst_5 = arith.constant 0.000000e+00 : f32
    %7 = vector.broadcast %cst_5 : f32 to vector<16x2048xf32>
    %8 = arith.maximumf %6, %7 : vector<16x2048xf32>
    %9 = arith.truncf %8 : vector<16x2048xf32> to vector<16x2048xbf16>
    %c0_6 = arith.constant 0 : index
    %c0_7 = arith.constant 0 : index
    %10 = vector.load %arg4[%c0_6, %c0_7] : memref<2048x128xbf16, #tpu.memory_space<vmem>>, vector<2048x128xbf16>
    %cst_8 = arith.constant dense<0.000000e+00> : vector<16x128xf32>
    %11 = tpu.matmul %9, %10, %cst_8 {dimension_numbers = #tpu.dot_dimension_numbers<[1], [0], [0], [1], [0, 0, 1, 1], [], []>} : vector<16x2048xbf16>, vector<2048x128xbf16>, vector<16x128xf32> -> vector<16x128xf32>
    %c0_9 = arith.constant 0 : index
    %c0_10 = arith.constant 0 : index
    %12 = vector.load %arg5[%c0_9, %c0_10] : memref<1x128xf32, #tpu.memory_space<vmem>>, vector<1x128xf32>
    %13 = vector.broadcast %12 : vector<1x128xf32> to vector<16x128xf32>
    %14 = arith.addf %11, %13 : vector<16x128xf32>
    %c0_11 = arith.constant 0 : index
    %c0_12 = arith.constant 0 : index
    %15 = vector.load %arg6[%c0_11, %c0_12] : memref<16x128xf32, #tpu.memory_space<vmem>>, vector<16x128xf32>
    tpu.vector_store %arg6[%c0_11, %c0_12], %14 {strides = array<i32>} : memref<16x128xf32, #tpu.memory_space<vmem>>, vector<16x128xf32>,
    return
  }
  func.func @transform_0(%arg0: i32) -> (i32, i32) {
    %c0_i32 = arith.constant 0 : i32
    %c0_i32_0 = arith.constant 0 : i32
    return %arg0, %c0_i32 : i32, i32
  }
  func.func @transform_1(%arg0: i32) -> (i32, i32) {
    %c0_i32 = arith.constant 0 : i32
    %c0_i32_0 = arith.constant 0 : i32
    %c0_i32_1 = arith.constant 0 : i32
    return %c0_i32, %c0_i32_0 : i32, i32
  }
  func.func @transform_2(%arg0: i32) -> (i32, i32) {
    %c0_i32 = arith.constant 0 : i32
    %c0_i32_0 = arith.constant 0 : i32
    %c0_i32_1 = arith.constant 0 : i32
    return %c0_i32, %c0_i32_0 : i32, i32
  }
  func.func @transform_3(%arg0: i32) -> (i32, i32) {
    %c0_i32 = arith.constant 0 : i32
    %c0_i32_0 = arith.constant 0 : i32
    %c0_i32_1 = arith.constant 0 : i32
    return %c0_i32, %c0_i32_0 : i32, i32
  }
  func.func @transform_4(%arg0: i32) -> (i32, i32) {
    %c0_i32 = arith.constant 0 : i32
    %c0_i32_0 = arith.constant 0 : i32
    %c0_i32_1 = arith.constant 0 : i32
    return %c0_i32, %c0_i32_0 : i32, i32
  }
  func.func @transform_5(%arg0: i32) -> (i32, i32) {
    %c0_i32 = arith.constant 0 : i32
    %c0_i32_0 = arith.constant 0 : i32
    return %arg0, %c0_i32 : i32, i32
  }
}

</mosaic_0001>

<bundles_post_ra>
// kernel: _forward_impl.1
= control target key start
LH: loop header
LB: loop body
LE: loop exit
PB: predicated region body
PF: predicated region fallthrough
CT: control target
= control target key end

     0   :  { %10 = vsyncpa [#allocation3], 0  ;;  %s9448_s0 = inlined_call_operand.vmem [shape: f32[16,784], index: 0, kind: input, shape index: {}]   ;;  %s9449_s1 = inlined_call_operand.hbm [shape: bf16[784,2048], index: 1, kind: input, shape index: {}]   ;;  %s9450_s2 = inlined_call_operand.hbm [shape: f32[1,2048], index: 2, kind: input, shape index: {}]   ;;  %s9451_s3 = inlined_call_operand.hbm [shape: bf16[2048,128], index: 3, kind: input, shape index: {}]   ;;  %s9452_s4 = inlined_call_operand.hbm [shape: f32[1,128], index: 4, kind: input, shape index: {}]   ;;  %s9453_s5 = inlined_call_operand.vmem [shape: f32[16,128], index: 5, kind: output, shape index: {}]  }
   0x1   :  { %11 = vsyncpa [#allocation5], 0 }
   0x2   :  { %12 = vsyncpa [#allocation8], 0  ;;  %s9133_s18 = smov [#allocation4]   ;;  %s9134_s20 = smov [#allocation2]  }
   0x3   :  { %s33_s19 = sshll.u32 %s9133_s18, 4  ;;  %s20_s21 = sshll.u32 %s9134_s20, 4  ;;  %s34_s19 = int_to_ptr.vmem [resolvable:$true] %s33_s19  ;;  %s9171_s21 = int_to_ptr.vmem [resolvable:$true] %s20_s21 }
   0x4   :  { %s9039_s24 = scalar_lea.hbm %s9450_s2, 256 }
   0x5   :  { %p9040_p0 = scmp.ne.s32.totalorder %s9450_s2, %s9039_s24  ;;  %p9043_p1 = scmp.lt.u32.totalorder %s9039_s24, %s9450_s2 }
   0x7   :  { %p9045_p2 = pnand %p9043_p1, %p9040_p0 }
   0x9   :  { %9048 = shalt.err (!%p9045_p2)
}
   0xa   :  { %s9049_s29 = scalar_lea.vmem %s34_s19, 256  ;;  %p9054_p4 = scmp.lt.s32.totalorder %s34_s19, %s34_s19 }
   0xb   :  { %p9050_p3 = scmp.ne.s32.totalorder %s34_s19, %s9049_s29  ;;  %p9055_p5 = scmp.lt.s32.totalorder %s9049_s29, %s9049_s29 }
   0xd   :  { %p9056_p6 = por %p9055_p5, %p9054_p4 }
   0xf   :  { %p9057_p7 = pnand %p9056_p6, %p9050_p3 }
  0x11   :  { %9060 = shalt.err (!%p9057_p7)
}
  0x12   :  { %36 = dma.hbm_to_vmem [thread:$0]  %s9450_s2, 256, %s34_s19, [#allocation5]  }
  0x13   :  { %s9061_s9 = scalar_lea.hbm %s9449_s1, 100352 }
  0x14   :  { %p9062_p8 = scmp.ne.s32.totalorder %s9449_s1, %s9061_s9  ;;  %p9065_p9 = scmp.lt.u32.totalorder %s9061_s9, %s9449_s1 }
  0x16   :  { %p9067_p10 = pnand %p9065_p9, %p9062_p8 }
  0x18   :  { %9070 = shalt.err (!%p9067_p10)
}
  0x19   :  { %s9071_s14 = scalar_lea.vmem %s9171_s21, 100352  ;;  %p9076_p12 = scmp.lt.s32.totalorder %s9171_s21, %s9171_s21 }
  0x1a   :  { %p9072_p11 = scmp.ne.s32.totalorder %s9171_s21, %s9071_s14  ;;  %p9077_p13 = scmp.lt.s32.totalorder %s9071_s14, %s9071_s14 }
  0x1c   :  { %p9078_p0 = por %p9077_p13, %p9076_p12 }
  0x1e   :  { %p9079_p1 = pnand %p9078_p0, %p9072_p11 }
  0x20   :  { %9082 = shalt.err (!%p9079_p1)
}
  0x21   :  { %s9135_s2 = smov 1024   ;;  %s9136_s15 = smov 64  }
  0x22   :  { %26 = dma.hbm_to_vmem [thread:$0]  %s9449_s1, 100352, %s9171_s21, [#allocation3], %s9135_s2, %s9135_s2, %s9136_s15  }
  0x23   :  { %s9137_s18 = smov [#allocation6]   ;;  %s9138_s20 = smov [#allocation7]  }
  0x24   :  { %s42_s19 = sshll.u32 %s9137_s18, 4  ;;  %s55_s22 = sshll.u32 %s9138_s20, 4  ;;  %s43_s19 = int_to_ptr.vmem [resolvable:$true] %s42_s19  ;;  %s56_s22 = int_to_ptr.vmem [resolvable:$true] %s55_s22 }
  0x25   :  { %s9083_s25 = scalar_lea.hbm %s9451_s3, 16384 }
  0x26   :  { %p9084_p2 = scmp.ne.s32.totalorder %s9451_s3, %s9083_s25  ;;  %p9087_p3 = scmp.lt.u32.totalorder %s9083_s25, %s9451_s3 }
  0x28   :  { %p9089_p4 = pnand %p9087_p3, %p9084_p2 }
  0x2a   :  { %9092 = shalt.err (!%p9089_p4)
}
  0x2b   :  { %s9093_s1 = scalar_lea.vmem %s43_s19, 16384  ;;  %p9098_p6 = scmp.lt.s32.totalorder %s43_s19, %s43_s19 }
  0x2c   :  { %p9094_p5 = scmp.ne.s32.totalorder %s43_s19, %s9093_s1  ;;  %p9099_p7 = scmp.lt.s32.totalorder %s9093_s1, %s9093_s1 }
  0x2e   :  { %p9100_p8 = por %p9099_p7, %p9098_p6 }
  0x30   :  { %p9101_p9 = pnand %p9100_p8, %p9094_p5 }
  0x32   :  { %9104 = shalt.err (!%p9101_p9)
}
  0x33   :  { %s9139_s21 = smov 4   ;;  %s9105_s9 = scalar_lea.hbm %s9452_s4, 16 }
  0x34   :  { %48 = dma.hbm_to_vmem [thread:$0]  %s9451_s3, 16384, %s43_s19, [#allocation5], %s9136_s15, %s9136_s15, %s9139_s21  }
  0x35   :  { %p9106_p10 = scmp.ne.s32.totalorder %s9452_s4, %s9105_s9  ;;  %p9109_p11 = scmp.lt.u32.totalorder %s9105_s9, %s9452_s4 }
  0x37   :  { %p9111_p12 = pnand %p9109_p11, %p9106_p10 }
  0x39   :  { %9114 = shalt.err (!%p9111_p12)
}
  0x3a   :  { %s9115_s14 = scalar_lea.vmem %s56_s22, 16  ;;  %s9119_s2 = scalar_lea.vmem %s56_s22, 32 }
  0x3b   :  { %p9116_p13 = scmp.ne.s32.totalorder %s56_s22, %s9115_s14  ;;  %p9120_p0 = scmp.lt.s32.totalorder %s56_s22, %s56_s22 }
  0x3c   :  { %p9121_p1 = scmp.lt.s32.totalorder %s9119_s2, %s9115_s14 }
  0x3e   :  { %p9122_p2 = por %p9121_p1, %p9120_p0 }
  0x40   :  { %p9123_p3 = pnand %p9122_p2, %p9116_p13 }
  0x42   :  { %9126 = shalt.err (!%p9123_p3)
}
  0x43   :  { %58 = dma.hbm_to_vmem [thread:$0]  %s9452_s4, 16, %s56_s22, [#allocation8]  }
  0x44   :  { %9127 = dma.done.wait [#allocation3], 100352  }
  0x45   :  { %9128 = vsyncadd [#allocation3], 4294866944 }
  0x46   :  { %9129 = dma.done.wait [#allocation5], 16640  }
  0x47   :  { %9130 = vsyncadd [#allocation5], 4294950656 }
  0x48   :  { %9131 = dma.done.wait [#allocation8], 16  }
  0x49   :  { %9132 = vsyncadd [#allocation8], 4294967280  ;;  %v93_v0 = vld [vmem:[#allocation2] sm:$0xff]  ;;  %v94_v2 = vld [vmem:[#allocation2 + $0x8] sm:$0xff]  ;;  %vm4881_vm0 = vcmask 130048  }
  0x4a   :  { %v101_v1 = vld [vmem:[#allocation2 + $0x40] sm:$0xff]  ;;  %v102_v4 = vld [vmem:[#allocation2 + $0x48] sm:$0xff] }
  0x4b   :  { %v7678_v3 = vcombine.high %v93_v0, %v101_v1  ;;  %v7677_v5 = vcombine.low %v93_v0, %v101_v1  ;;  %v109_v6 = vld [vmem:[#allocation2 + $0x80] sm:$0xff]  ;;  %v7680_v8 = vcombine.high %v94_v2, %v102_v4  ;;  %v7679_v9 = vcombine.low %v94_v2, %v102_v4  ;;  %v110_v11 = vld [vmem:[#allocation2 + $0x88] sm:$0xff] }
  0x4c   :  { %v117_v7 = vld [vmem:[#allocation2 + $0xc0] sm:$0xff]  ;;  %v118_v12 = vld [vmem:[#allocation2 + $0xc8] sm:$0xff] }
  0x4d   :  { %v7694_v10 = vcombine.high %v109_v6, %v117_v7  ;;  %v125_v13 = vld [vmem:[#allocation2 + $0x100] sm:$0xff]  ;;  %4885 = vmatprep.subr.bf16.mxu0 %v7678_v3  ;;  %v7696_v14 = vcombine.high %v110_v11, %v118_v12  ;;  %v126_v16 = vld [vmem:[#allocation2 + $0x108] sm:$0xff]  ;;  %5057 = vmatprep.subr.bf16.mxu1 %v7680_v8  ;;  %v7693_v18 = vcombine.low %v109_v6, %v117_v7 }
  0x4e   :  { %v133_v15 = vld [vmem:[#allocation2 + $0x140] sm:$0xff]  ;;  %v134_v17 = vld [vmem:[#allocation2 + $0x148] sm:$0xff]  ;;  %4886 = vmatpush1.bf16.msra.mxu0 %v7677_v5  ;;  %5058 = vmatpush1.bf16.msra.mxu1 %v7679_v9  ;;  %v7695_v19 = vcombine.low %v110_v11, %v118_v12 }
  0x4f   :  { %4887 = vmatprep.subr.bf16.mxu0 %v7694_v10  ;;  %v7710_v20 = vcombine.high %v125_v13, %v133_v15  ;;  %5059 = vmatprep.subr.bf16.mxu1 %v7696_v14  ;;  %v7712_v21 = vcombine.high %v126_v16, %v134_v17  ;;  %v141_v22 = vld [vmem:[#allocation2 + $0x180] sm:$0xff]  ;;  %v142_v24 = vld [vmem:[#allocation2 + $0x188] sm:$0xff]  ;;  %v7709_v26 = vcombine.low %v125_v13, %v133_v15 }
  0x50   :  { %v149_v23 = vld [vmem:[#allocation2 + $0x1c0] sm:$0xff]  ;;  %v150_v25 = vld [vmem:[#allocation2 + $0x1c8] sm:$0xff]  ;;  %v7711_v27 = vcombine.low %v126_v16, %v134_v17 }
  0x51   :  { %v7726_v28 = vcombine.high %v141_v22, %v149_v23  ;;  %v7728_v29 = vcombine.high %v142_v24, %v150_v25  ;;  %v157_v30 = vld [vmem:[#allocation2 + $0x200] sm:$0xff]  ;;  %v158_v32 = vld [vmem:[#allocation2 + $0x208] sm:$0xff]  ;;  %v7725_v34 = vcombine.low %v141_v22, %v149_v23  ;;  %v7727_v35 = vcombine.low %v142_v24, %v150_v25 }
  0x52   :  { %4888 = vmatpush1.bf16.msra.mxu0 %v7693_v18  ;;  %5060 = vmatpush1.bf16.msra.mxu1 %v7695_v19  ;;  %v165_v31 = vld [vmem:[#allocation2 + $0x240] sm:$0xff]  ;;  %v166_v33 = vld [vmem:[#allocation2 + $0x248] sm:$0xff] }
  0x53   :  { %4889 = vmatprep.subr.bf16.mxu0 %v7710_v20  ;;  %5061 = vmatprep.subr.bf16.mxu1 %v7712_v21  ;;  %v7742_v36 = vcombine.high %v157_v30, %v165_v31  ;;  %v7744_v37 = vcombine.high %v158_v32, %v166_v33  ;;  %v173_v38 = vld [vmem:[#allocation2 + $0x280] sm:$0xff]  ;;  %v174_v40 = vld [vmem:[#allocation2 + $0x288] sm:$0xff]  ;;  %v7741_v42 = vcombine.low %v157_v30, %v165_v31 }
  0x54   :  { %v181_v39 = vld [vmem:[#allocation2 + $0x2c0] sm:$0xff]  ;;  %v182_v41 = vld [vmem:[#allocation2 + $0x2c8] sm:$0xff]  ;;  %v7743_v43 = vcombine.low %v158_v32, %v166_v33 }
  0x55   :  { %v7758_v44 = vcombine.high %v173_v38, %v181_v39  ;;  %v7760_v45 = vcombine.high %v174_v40, %v182_v41  ;;  %v189_v46 = vld [vmem:[#allocation2 + $0x300] sm:$0xff]  ;;  %v190_v48 = vld [vmem:[#allocation2 + $0x308] sm:$0xff]  ;;  %v7757_v50 = vcombine.low %v173_v38, %v181_v39  ;;  %v7759_v51 = vcombine.low %v174_v40, %v182_v41 }
  0x56   :  { %4890 = vmatpush1.bf16.msra.mxu0 %v7709_v26  ;;  %5062 = vmatpush1.bf16.msra.mxu1 %v7711_v27  ;;  %v197_v47 = vld [vmem:[#allocation2 + $0x340] sm:$0xff]  ;;  %v198_v49 = vld [vmem:[#allocation2 + $0x348] sm:$0xff] }
  0x57   :  { %4891 = vmatprep.subr.bf16.mxu0 %v7726_v28  ;;  %5063 = vmatprep.subr.bf16.mxu1 %v7728_v29  ;;  %v7774_v52 = vcombine.high %v189_v46, %v197_v47  ;;  %v73_v53 = vld [vmem:[%s9448_s0 + $0x8] sm:$0xff]  ;;  %v80_v54 = vld [vmem:[%s9448_s0 + $0x40] sm:$0xff]  ;;  %v7776_v55 = vcombine.high %v190_v48, %v198_v49  ;;  %v7773_v61 = vcombine.low %v189_v46, %v197_v47 }
  0x58   :  { %v205_v56 = vld [vmem:[#allocation2 + $0x380] sm:$0xff]  ;;  %v9232_v58 = vpack.c.bf16 %v80_v54, %v73_v53  ;;  %v206_v59 = vld [vmem:[#allocation2 + $0x388] sm:$0xff]  ;;  %v7775_v62 = vcombine.low %v190_v48, %v198_v49 }
  0x59   :  { %v213_v57 = vld [vmem:[#allocation2 + $0x3c0] sm:$0xff]  ;;  %v214_v60 = vld [vmem:[#allocation2 + $0x3c8] sm:$0xff] }
  0x5a   :  { %4892 = vmatpush1.bf16.msra.mxu0 %v7725_v34  ;;  %5064 = vmatpush1.bf16.msra.mxu1 %v7727_v35  ;;  %v7790_v63 = vcombine.high %v205_v56, %v213_v57  ;;  %v7792_v0 = vcombine.high %v206_v59, %v214_v60  ;;  %v221_v1 = vld [vmem:[#allocation2 + $0x400] sm:$0xff]  ;;  %v222_v3 = vld [vmem:[#allocation2 + $0x408] sm:$0xff]  ;;  %v7789_v5 = vcombine.low %v205_v56, %v213_v57 }
  0x5b   :  { %4893 = vmatprep.subr.bf16.mxu0 %v7742_v36  ;;  %5065 = vmatprep.subr.bf16.mxu1 %v7744_v37  ;;  %v229_v2 = vld [vmem:[#allocation2 + $0x440] sm:$0xff]  ;;  %v230_v4 = vld [vmem:[#allocation2 + $0x448] sm:$0xff]  ;;  %v7791_v6 = vcombine.low %v206_v59, %v214_v60 }
  0x5c   :  { %4917 = vmatprep.mubr.bf16.mxu0 %v9232_v58  ;;  %5089 = vmatprep.mubr.bf16.mxu1 %v9232_v58  ;;  %v7806_v7 = vcombine.high %v221_v1, %v229_v2  ;;  %v7808_v8 = vcombine.high %v222_v3, %v230_v4  ;;  %v237_v9 = vld [vmem:[#allocation2 + $0x480] sm:$0xff]  ;;  %v238_v11 = vld [vmem:[#allocation2 + $0x488] sm:$0xff]  ;;  %v7805_v13 = vcombine.low %v221_v1, %v229_v2 }
  0x5d   :  { %v245_v10 = vld [vmem:[#allocation2 + $0x4c0] sm:$0xff]  ;;  %v246_v12 = vld [vmem:[#allocation2 + $0x4c8] sm:$0xff]  ;;  %v7807_v14 = vcombine.low %v222_v3, %v230_v4 }
  0x5e   :  { %4894 = vmatpush1.bf16.msra.mxu0 %v7741_v42  ;;  %5066 = vmatpush1.bf16.msra.mxu1 %v7743_v43  ;;  %v7822_v15 = vcombine.high %v237_v9, %v245_v10  ;;  %v7824_v16 = vcombine.high %v238_v11, %v246_v12  ;;  %v253_v17 = vld [vmem:[#allocation2 + $0x500] sm:$0xff]  ;;  %v254_v19 = vld [vmem:[#allocation2 + $0x508] sm:$0xff]  ;;  %v7821_v21 = vcombine.low %v237_v9, %v245_v10 }
  0x5f   :  { %4895 = vmatprep.subr.bf16.mxu0 %v7758_v44  ;;  %5067 = vmatprep.subr.bf16.mxu1 %v7760_v45  ;;  %v261_v18 = vld [vmem:[#allocation2 + $0x540] sm:$0xff]  ;;  %v262_v20 = vld [vmem:[#allocation2 + $0x548] sm:$0xff]  ;;  %v7823_v22 = vcombine.low %v238_v11, %v246_v12 }
  0x60   :  { %v7838_v23 = vcombine.high %v253_v17, %v261_v18  ;;  %v7840_v24 = vcombine.high %v254_v19, %v262_v20  ;;  %v269_v25 = vld [vmem:[#allocation2 + $0x580] sm:$0xff]  ;;  %v270_v27 = vld [vmem:[#allocation2 + $0x588] sm:$0xff]  ;;  %v7837_v29 = vcombine.low %v253_v17, %v261_v18  ;;  %v7839_v30 = vcombine.low %v254_v19, %v262_v20  ;;  %v75_v17 = vld [vmem:[%s9448_s0 + $0x18] sm:$0xff] }
  0x61   :  { %v277_v26 = vld [vmem:[#allocation2 + $0x5c0] sm:$0xff]  ;;  %v278_v28 = vld [vmem:[#allocation2 + $0x5c8] sm:$0xff]  ;;  %v82_v18 = vld [vmem:[%s9448_s0 + $0x50] sm:$0xff] }
  0x62   :  { %4896 = vmatpush1.bf16.msra.mxu0 %v7757_v50  ;;  %5068 = vmatpush1.bf16.msra.mxu1 %v7759_v51  ;;  %v7854_v31 = vcombine.high %v269_v25, %v277_v26  ;;  %v7856_v32 = vcombine.high %v270_v27, %v278_v28  ;;  %v285_v33 = vld [vmem:[#allocation2 + $0x600] sm:$0xff]  ;;  %v286_v35 = vld [vmem:[#allocation2 + $0x608] sm:$0xff]  ;;  %v7853_v37 = vcombine.low %v269_v25, %v277_v26 }
  0x63   :  { %4897 = vmatprep.subr.bf16.mxu0 %v7774_v52  ;;  %5069 = vmatprep.subr.bf16.mxu1 %v7776_v55  ;;  %v293_v34 = vld [vmem:[#allocation2 + $0x640] sm:$0xff]  ;;  %v294_v36 = vld [vmem:[#allocation2 + $0x648] sm:$0xff]  ;;  %v7855_v38 = vcombine.low %v270_v27, %v278_v28  ;;  %v9250_v25 = vpack.c.bf16 %v82_v18, %v75_v17 }
  0x64   :  { %v7870_v39 = vcombine.high %v285_v33, %v293_v34  ;;  %v7872_v40 = vcombine.high %v286_v35, %v294_v36  ;;  %v301_v41 = vld [vmem:[#allocation2 + $0x680] sm:$0xff]  ;;  %v302_v43 = vld [vmem:[#allocation2 + $0x688] sm:$0xff]  ;;  %v7869_v45 = vcombine.low %v285_v33, %v293_v34  ;;  %v7871_v46 = vcombine.low %v286_v35, %v294_v36 }
  0x65   :  { %v309_v42 = vld [vmem:[#allocation2 + $0x6c0] sm:$0xff]  ;;  %v310_v44 = vld [vmem:[#allocation2 + $0x6c8] sm:$0xff] }
  0x66   :  { %4898 = vmatpush1.bf16.msra.mxu0 %v7773_v61  ;;  %5070 = vmatpush1.bf16.msra.mxu1 %v7775_v62  ;;  %v7886_v47 = vcombine.high %v301_v41, %v309_v42  ;;  %v7888_v48 = vcombine.high %v302_v43, %v310_v44  ;;  %v317_v49 = vld [vmem:[#allocation2 + $0x700] sm:$0xff]  ;;  %v318_v51 = vld [vmem:[#allocation2 + $0x708] sm:$0xff]  ;;  %v7885_v53 = vcombine.low %v301_v41, %v309_v42 }
  0x67   :  { %4899 = vmatprep.subr.bf16.mxu0 %v7790_v63  ;;  %5071 = vmatprep.subr.bf16.mxu1 %v7792_v0  ;;  %v325_v50 = vld [vmem:[#allocation2 + $0x740] sm:$0xff]  ;;  %v326_v52 = vld [vmem:[#allocation2 + $0x748] sm:$0xff]  ;;  %v7887_v54 = vcombine.low %v302_v43, %v310_v44 }
  0x68   :  { %v7902_v55 = vcombine.high %v317_v49, %v325_v50  ;;  %v7904_v56 = vcombine.high %v318_v51, %v326_v52  ;;  %v333_v57 = vld [vmem:[#allocation2 + $0x780] sm:$0xff]  ;;  %v334_v60 = vld [vmem:[#allocation2 + $0x788] sm:$0xff]  ;;  %v7901_v62 = vcombine.low %v317_v49, %v325_v50  ;;  %v7903_v63 = vcombine.low %v318_v51, %v326_v52 }
  0x69   :  { %v341_v59 = vld [vmem:[#allocation2 + $0x7c0] sm:$0xff]  ;;  %v342_v61 = vld [vmem:[#allocation2 + $0x7c8] sm:$0xff] }
  0x6a   :  { %4900 = vmatpush1.bf16.msra.mxu0 %v7789_v5  ;;  %5072 = vmatpush1.bf16.msra.mxu1 %v7791_v6  ;;  %v7918_v0 = vcombine.high %v333_v57, %v341_v59  ;;  %v7920_v1 = vcombine.high %v334_v60, %v342_v61  ;;  %v349_v2 = vld [vmem:[#allocation2 + $0x800] sm:$0xff]  ;;  %v350_v4 = vld [vmem:[#allocation2 + $0x808] sm:$0xff]  ;;  %v7917_v6 = vcombine.low %v333_v57, %v341_v59 }
  0x6b   :  { %4901 = vmatprep.subr.bf16.mxu0 %v7806_v7  ;;  %5073 = vmatprep.subr.bf16.mxu1 %v7808_v8  ;;  %v357_v3 = vld [vmem:[#allocation2 + $0x840] sm:$0xff]  ;;  %v358_v5 = vld [vmem:[#allocation2 + $0x848] sm:$0xff]  ;;  %v79_v8 = vld [vmem:[%s9448_s0 + $0x38] sm:$0xff]  ;;  %v7919_v9 = vcombine.low %v334_v60, %v342_v61 }
  0x6c   :  { %v72_v7 = vld [vmem:[%s9448_s0] sm:$0xff]  ;;  %v7934_v10 = vcombine.high %v349_v2, %v357_v3  ;;  %v7936_v11 = vcombine.high %v350_v4, %v358_v5  ;;  %v7933_v19 = vcombine.low %v349_v2, %v357_v3  ;;  %v7935_v20 = vcombine.low %v350_v4, %v358_v5  ;;  %v382_v26 = vld [vmem:[#allocation2 + $0x908] sm:$0xff] }
  0x6d   :  { %v365_v12 = vld [vmem:[#allocation2 + $0x880] sm:$0xff]  ;;  %v390_v27 = vld [vmem:[#allocation2 + $0x948] sm:$0xff] }
  0x6e   :  { %4902 = vmatpush1.bf16.msra.mxu0 %v7805_v13  ;;  %5074 = vmatpush1.bf16.msra.mxu1 %v7807_v14  ;;  %v373_v13 = vld [vmem:[#allocation2 + $0x8c0] sm:$0xff]  ;;  %v366_v14 = vld [vmem:[#allocation2 + $0x888] sm:$0xff] }
  0x6f   :  { %4903 = vmatprep.subr.bf16.mxu0 %v7822_v15  ;;  %5075 = vmatprep.subr.bf16.mxu1 %v7824_v16  ;;  %v9242_v15 = vpack.c.bf16 %v79_v8, %v72_v7  ;;  %v374_v16 = vld [vmem:[#allocation2 + $0x8c8] sm:$0xff]  ;;  %v7949_v28 = vcombine.low %v365_v12, %v373_v13  ;;  %v405_v33 = vld [vmem:[#allocation2 + $0x9c0] sm:$0xff] }
  0x70   :  { %v398_v34 = vld [vmem:[#allocation2 + $0x988] sm:$0xff]  ;;  %v477_v8 = vld [vmem:[#allocation2 + $0xc00] sm:$0xff] }
  0x71   :  { %v406_v35 = vld [vmem:[#allocation2 + $0x9c8] sm:$0xff]  ;;  %v493_v17 = vld [vmem:[#allocation2 + $0xc80] sm:$0xff] }
  0x72   :  { %4904 = vmatpush1.bf16.msra.mxu0 %v7821_v21  ;;  %5076 = vmatpush1.bf16.msra.mxu1 %v7823_v22  ;;  %v7950_v21 = vcombine.high %v365_v12, %v373_v13  ;;  %v7952_v22 = vcombine.high %v366_v14, %v374_v16  ;;  %v414_v41 = vld [vmem:[#allocation2 + $0xa08] sm:$0xff]  ;;  %v7984_v43 = vcombine.high %v398_v34, %v406_v35  ;;  %v501_v18 = vld [vmem:[#allocation2 + $0xcc0] sm:$0xff] }
  0x73   :  { %4905 = vmatprep.subr.bf16.mxu0 %v7838_v23  ;;  %5077 = vmatprep.subr.bf16.mxu1 %v7840_v24  ;;  %v381_v23 = vld [vmem:[#allocation2 + $0x900] sm:$0xff]  ;;  %v422_v42 = vld [vmem:[#allocation2 + $0xa48] sm:$0xff] }
  0x74   :  { %v389_v24 = vld [vmem:[#allocation2 + $0x940] sm:$0xff]  ;;  %v430_v49 = vld [vmem:[#allocation2 + $0xa88] sm:$0xff]  ;;  %v8000_v51 = vcombine.high %v414_v41, %v422_v42 }
  0x75   :  { %v7965_v36 = vcombine.low %v381_v23, %v389_v24  ;;  %v438_v50 = vld [vmem:[#allocation2 + $0xac8] sm:$0xff] }
  0x76   :  { %4906 = vmatpush1.bf16.msra.mxu0 %v7837_v29  ;;  %5078 = vmatpush1.bf16.msra.mxu1 %v7839_v30  ;;  %v7951_v29 = vcombine.low %v366_v14, %v374_v16  ;;  %v7966_v30 = vcombine.high %v381_v23, %v389_v24  ;;  %v446_v57 = vld [vmem:[#allocation2 + $0xb08] sm:$0xff]  ;;  %v8016_v59 = vcombine.high %v430_v49, %v438_v50 }
  0x77   :  { %4907 = vmatprep.subr.bf16.mxu0 %v7854_v31  ;;  %5079 = vmatprep.subr.bf16.mxu1 %v7856_v32  ;;  %v7968_v31 = vcombine.high %v382_v26, %v390_v27  ;;  %v397_v32 = vld [vmem:[#allocation2 + $0x980] sm:$0xff]  ;;  %v454_v60 = vld [vmem:[#allocation2 + $0xb48] sm:$0xff]  ;;  %v8078_v24 = vcombine.high %v493_v17, %v501_v18 }
  0x78   :  { %v7981_v44 = vcombine.low %v397_v32, %v405_v33  ;;  %v462_v2 = vld [vmem:[#allocation2 + $0xb88] sm:$0xff]  ;;  %v8032_v3 = vcombine.high %v446_v57, %v454_v60 }
  0x79   :  { %v470_v4 = vld [vmem:[#allocation2 + $0xbc8] sm:$0xff] }
  0x7a   :  { %4908 = vmatpush1.bf16.msra.mxu0 %v7853_v37  ;;  %5080 = vmatpush1.bf16.msra.mxu1 %v7855_v38  ;;  %v413_v37 = vld [vmem:[#allocation2 + $0xa00] sm:$0xff]  ;;  %v486_v12 = vld [vmem:[#allocation2 + $0xc48] sm:$0xff]  ;;  %v8047_v14 = vcombine.low %v462_v2, %v470_v4 }
  0x7b   :  { %4909 = vmatprep.subr.bf16.mxu0 %v7870_v39  ;;  %5081 = vmatprep.subr.bf16.mxu1 %v7872_v40  ;;  %v421_v38 = vld [vmem:[#allocation2 + $0xa40] sm:$0xff]  ;;  %v7967_v39 = vcombine.low %v382_v26, %v390_v27  ;;  %v7982_v40 = vcombine.high %v397_v32, %v405_v33 }
  0x7c   :  { %v7997_v52 = vcombine.low %v413_v37, %v421_v38  ;;  %v509_v26 = vld [vmem:[#allocation2 + $0xd00] sm:$0xff] }
  0x7d   :  { %v517_v27 = vld [vmem:[#allocation2 + $0xd40] sm:$0xff] }
  0x7e   :  { %4910 = vmatpush1.bf16.msra.mxu0 %v7869_v45  ;;  %5082 = vmatpush1.bf16.msra.mxu1 %v7871_v46  ;;  %v429_v45 = vld [vmem:[#allocation2 + $0xa80] sm:$0xff]  ;;  %v8094_v33 = vcombine.high %v509_v26, %v517_v27 }
  0x7f   :  { %4911 = vmatprep.subr.bf16.mxu0 %v7886_v47  ;;  %5083 = vmatprep.subr.bf16.mxu1 %v7888_v48  ;;  %v437_v46 = vld [vmem:[#allocation2 + $0xac0] sm:$0xff]  ;;  %v7983_v47 = vcombine.low %v398_v34, %v406_v35  ;;  %v7998_v48 = vcombine.high %v413_v37, %v421_v38  ;;  %v534_v38 = vld [vmem:[#allocation2 + $0xdc8] sm:$0xff] }
  0x80   :  { %v8013_v61 = vcombine.low %v429_v45, %v437_v46  ;;  %v525_v34 = vld [vmem:[#allocation2 + $0xd80] sm:$0xff] }
  0x81   :  { %v533_v35 = vld [vmem:[#allocation2 + $0xdc0] sm:$0xff] }
  0x82   :  { %4912 = vmatpush1.bf16.msra.mxu0 %v7885_v53  ;;  %5084 = vmatpush1.bf16.msra.mxu1 %v7887_v54  ;;  %v7999_v53 = vcombine.low %v414_v41, %v422_v42  ;;  %v8014_v54 = vcombine.high %v429_v45, %v437_v46  ;;  %v8110_v41 = vcombine.high %v525_v34, %v533_v35  ;;  %v541_v42 = vld [vmem:[#allocation2 + $0xe00] sm:$0xff]  ;;  %v550_v46 = vld [vmem:[#allocation2 + $0xe48] sm:$0xff] }
  0x83   :  { %4913 = vmatprep.subr.bf16.mxu0 %v7902_v55  ;;  %5085 = vmatprep.subr.bf16.mxu1 %v7904_v56  ;;  %v445_v55 = vld [vmem:[#allocation2 + $0xb00] sm:$0xff] }
  0x84   :  { %v453_v56 = vld [vmem:[#allocation2 + $0xb40] sm:$0xff] }
  0x85   :  { %v8029_v5 = vcombine.low %v445_v55, %v453_v56 }
  0x86   :  { %4914 = vmatpush1.bf16.msra.mxu0 %v7901_v62  ;;  %5086 = vmatpush1.bf16.msra.mxu1 %v7903_v63  ;;  %v8015_v62 = vcombine.low %v430_v49, %v438_v50  ;;  %v8030_v63 = vcombine.high %v445_v55, %v453_v56  ;;  %v557_v50 = vld [vmem:[#allocation2 + $0xe80] sm:$0xff] }
  0x87   :  { %4915 = vmatprep.subr.bf16.mxu0 %v7918_v0  ;;  %5087 = vmatprep.subr.bf16.mxu1 %v7920_v1  ;;  %v461_v0 = vld [vmem:[#allocation2 + $0xb80] sm:$0xff] }
  0x88   :  { %v469_v1 = vld [vmem:[#allocation2 + $0xbc0] sm:$0xff] }
  0x89   :  { %v8046_v7 = vcombine.high %v461_v0, %v469_v1  ;;  %v8045_v13 = vcombine.low %v461_v0, %v469_v1 }
  0x8a   :  { %4916 = vmatpush1.bf16.msra.mxu0 %v7917_v6  ;;  %5088 = vmatpush1.bf16.msra.mxu1 %v7919_v9  ;;  %v8031_v6 = vcombine.low %v446_v57, %v454_v60  ;;  %v485_v9 = vld [vmem:[#allocation2 + $0xc40] sm:$0xff] }
  0x8b   :  { %4928 = vmatprep.subr.bf16.mxu0 %v7934_v10  ;;  %5100 = vmatprep.subr.bf16.mxu1 %v7936_v11  ;;  %v478_v10 = vld [vmem:[#allocation2 + $0xc08] sm:$0xff]  ;;  %v8048_v11 = vcombine.high %v462_v2, %v470_v4  ;;  %v8062_v16 = vcombine.high %v477_v8, %v485_v9  ;;  %v581_v60 = vld [vmem:[#allocation2 + $0xf40] sm:$0xff] }
  0x8c   :  { %v8063_v23 = vcombine.low %v478_v10, %v486_v12  ;;  %v597_v4 = vld [vmem:[#allocation2 + $0xfc0] sm:$0xff] }
  0x8d   :  { %4918 = vmatmul.mubr.bf16.vlgmr.msra.gmra.mrb[0].mxu0 %v9242_v15  ;;  %5090 = vmatmul.mubr.bf16.vlgmr.msra.gmra.mrb[0].mxu1 %v9242_v15 }
  0x8e   :  { %4929 = vmatpush1.bf16.msra.mxu0 %v7933_v19  ;;  %5101 = vmatpush1.bf16.msra.mxu1 %v7935_v20  ;;  %v494_v19 = vld [vmem:[#allocation2 + $0xc88] sm:$0xff]  ;;  %v8064_v20 = vcombine.high %v478_v10, %v486_v12  ;;  %v613_v12 = vld [vmem:[#allocation2 + $0x1040] sm:$0xff] }
  0x8f   :  { %4930 = vmatprep.subr.bf16.mxu0 %v7950_v21  ;;  %5102 = vmatprep.subr.bf16.mxu1 %v7952_v22  ;;  %v502_v21 = vld [vmem:[#allocation2 + $0xcc8] sm:$0xff]  ;;  %v8061_v22 = vcombine.low %v477_v8, %v485_v9  ;;  %v605_v9 = vld [vmem:[#allocation2 + $0x1000] sm:$0xff] }
  0x90   :  { %4960 = vmatprep.mubr.bf16.mxu0 %v9250_v25  ;;  %5132 = vmatprep.mubr.bf16.mxu1 %v9250_v25  ;;  %v8079_v32 = vcombine.low %v494_v19, %v502_v21 }
  0x92   :  { %4931 = vmatpush1.bf16.msra.mxu0 %v7949_v28  ;;  %5103 = vmatpush1.bf16.msra.mxu1 %v7951_v29  ;;  %v510_v28 = vld [vmem:[#allocation2 + $0xd08] sm:$0xff]  ;;  %v8080_v29 = vcombine.high %v494_v19, %v502_v21  ;;  %v629_v21 = vld [vmem:[#allocation2 + $0x10c0] sm:$0xff] }
  0x93   :  { %4932 = vmatprep.subr.bf16.mxu0 %v7966_v30  ;;  %5104 = vmatprep.subr.bf16.mxu1 %v7968_v31  ;;  %v518_v30 = vld [vmem:[#allocation2 + $0xd48] sm:$0xff]  ;;  %v8077_v31 = vcombine.low %v493_v17, %v501_v18  ;;  %v74_v17 = vld [vmem:[%s9448_s0 + $0x10] sm:$0xff] }
  0x94   :  { %v8096_v37 = vcombine.high %v510_v28, %v518_v30  ;;  %v81_v18 = vld [vmem:[%s9448_s0 + $0x48] sm:$0xff] }
  0x96   :  { %4933 = vmatpush1.bf16.msra.mxu0 %v7965_v36  ;;  %5105 = vmatpush1.bf16.msra.mxu1 %v7967_v39  ;;  %v526_v36 = vld [vmem:[#allocation2 + $0xd88] sm:$0xff]  ;;  %v8093_v39 = vcombine.low %v509_v26, %v517_v27 }
  0x97   :  { %4934 = vmatprep.subr.bf16.mxu0 %v7982_v40  ;;  %5106 = vmatprep.subr.bf16.mxu1 %v7984_v43  ;;  %v8095_v40 = vcombine.low %v510_v28, %v518_v30  ;;  %v549_v43 = vld [vmem:[#allocation2 + $0xe40] sm:$0xff]  ;;  %v8112_v45 = vcombine.high %v526_v36, %v534_v38  ;;  %v630_v26 = vld [vmem:[#allocation2 + $0x10c8] sm:$0xff]  ;;  %v9268_v30 = vpack.c.bf16 %v81_v18, %v74_v17 }
  0x98   :  { %v8126_v49 = vcombine.high %v541_v42, %v549_v43  ;;  %v8125_v55 = vcombine.low %v541_v42, %v549_v43  ;;  %v77_v27 = vld [vmem:[%s9448_s0 + $0x28] sm:$0xff]  ;;  %v653_v43 = vld [vmem:[#allocation2 + $0x1180] sm:$0xff] }
  0x99   :  { %v726_v17 = vld [vmem:[#allocation2 + $0x13c8] sm:$0xff] }
  0x9a   :  { %4935 = vmatpush1.bf16.msra.mxu0 %v7981_v44  ;;  %5107 = vmatpush1.bf16.msra.mxu1 %v7983_v47  ;;  %v542_v44 = vld [vmem:[#allocation2 + $0xe08] sm:$0xff]  ;;  %v8109_v47 = vcombine.low %v525_v34, %v533_v35  ;;  %v637_v34 = vld [vmem:[#allocation2 + $0x1100] sm:$0xff] }
  0x9b   :  { %4936 = vmatprep.subr.bf16.mxu0 %v7998_v48  ;;  %5108 = vmatprep.subr.bf16.mxu1 %v8000_v51  ;;  %v8111_v48 = vcombine.low %v526_v36, %v534_v38  ;;  %v565_v51 = vld [vmem:[#allocation2 + $0xec0] sm:$0xff]  ;;  %v8127_v56 = vcombine.low %v542_v44, %v550_v46  ;;  %v638_v36 = vld [vmem:[#allocation2 + $0x1108] sm:$0xff] }
  0x9c   :  { %v8142_v57 = vcombine.high %v557_v50, %v565_v51  ;;  %v8141_v0 = vcombine.low %v557_v50, %v565_v51  ;;  %v645_v35 = vld [vmem:[#allocation2 + $0x1140] sm:$0xff]  ;;  %v646_v38 = vld [vmem:[#allocation2 + $0x1148] sm:$0xff] }
  0x9d   :  { %v8222_v42 = vcombine.high %v637_v34, %v645_v35  ;;  %v669_v51 = vld [vmem:[#allocation2 + $0x1200] sm:$0xff] }
  0x9e   :  { %4937 = vmatpush1.bf16.msra.mxu0 %v7997_v52  ;;  %5109 = vmatpush1.bf16.msra.mxu1 %v7999_v53  ;;  %v558_v52 = vld [vmem:[#allocation2 + $0xe88] sm:$0xff]  ;;  %v8128_v53 = vcombine.high %v542_v44, %v550_v46  ;;  %v661_v44 = vld [vmem:[#allocation2 + $0x11c0] sm:$0xff]  ;;  %v8224_v46 = vcombine.high %v638_v36, %v646_v38 }
  0x9f   :  { %4938 = vmatprep.subr.bf16.mxu0 %v8014_v54  ;;  %5110 = vmatprep.subr.bf16.mxu1 %v8016_v59  ;;  %v566_v54 = vld [vmem:[#allocation2 + $0xec8] sm:$0xff]  ;;  %v573_v59 = vld [vmem:[#allocation2 + $0xf00] sm:$0xff]  ;;  %v8238_v50 = vcombine.high %v653_v43, %v661_v44 }
  0xa0   :  { %v8143_v1 = vcombine.low %v558_v52, %v566_v54  ;;  %v8158_v2 = vcombine.high %v573_v59, %v581_v60  ;;  %v8157_v8 = vcombine.low %v573_v59, %v581_v60  ;;  %v685_v60 = vld [vmem:[#allocation2 + $0x1280] sm:$0xff] }
  0xa2   :  { %4939 = vmatpush1.bf16.msra.mxu0 %v8013_v61  ;;  %5111 = vmatpush1.bf16.msra.mxu1 %v8015_v62  ;;  %v574_v61 = vld [vmem:[#allocation2 + $0xf08] sm:$0xff]  ;;  %v8144_v62 = vcombine.high %v558_v52, %v566_v54  ;;  %v677_v52 = vld [vmem:[#allocation2 + $0x1240] sm:$0xff] }
  0xa3   :  { %4940 = vmatprep.subr.bf16.mxu0 %v8030_v63  ;;  %5112 = vmatprep.subr.bf16.mxu1 %v8032_v3  ;;  %v582_v63 = vld [vmem:[#allocation2 + $0xf48] sm:$0xff]  ;;  %v589_v3 = vld [vmem:[#allocation2 + $0xf80] sm:$0xff]  ;;  %v8254_v59 = vcombine.high %v669_v51, %v677_v52 }
  0xa4   :  { %v8159_v10 = vcombine.low %v574_v61, %v582_v63  ;;  %v8173_v19 = vcombine.low %v589_v3, %v597_v4 }
  0xa6   :  { %4941 = vmatpush1.bf16.msra.mxu0 %v8029_v5  ;;  %5113 = vmatpush1.bf16.msra.mxu1 %v8031_v6  ;;  %v590_v5 = vld [vmem:[#allocation2 + $0xf88] sm:$0xff]  ;;  %v8160_v6 = vcombine.high %v574_v61, %v582_v63  ;;  %v693_v61 = vld [vmem:[#allocation2 + $0x12c0] sm:$0xff] }
  0xa7   :  { %4942 = vmatprep.subr.bf16.mxu0 %v8046_v7  ;;  %5114 = vmatprep.subr.bf16.mxu1 %v8048_v11  ;;  %v598_v7 = vld [vmem:[#allocation2 + $0xfc8] sm:$0xff]  ;;  %v8174_v11 = vcombine.high %v589_v3, %v597_v4  ;;  %v8270_v3 = vcombine.high %v685_v60, %v693_v61  ;;  %v701_v4 = vld [vmem:[#allocation2 + $0x1300] sm:$0xff] }
  0xaa   :  { %4943 = vmatpush1.bf16.msra.mxu0 %v8045_v13  ;;  %5115 = vmatpush1.bf16.msra.mxu1 %v8047_v14  ;;  %v606_v13 = vld [vmem:[#allocation2 + $0x1008] sm:$0xff] }
  0xab   :  { %4944 = vmatprep.subr.bf16.mxu0 %v8062_v16  ;;  %5116 = vmatprep.subr.bf16.mxu1 %v8064_v20  ;;  %v614_v14 = vld [vmem:[#allocation2 + $0x1048] sm:$0xff]  ;;  %v8176_v16 = vcombine.high %v590_v5, %v598_v7  ;;  %v621_v20 = vld [vmem:[#allocation2 + $0x1080] sm:$0xff] }
  0xac   :  { %v8192_v28 = vcombine.high %v606_v13, %v614_v14 }
  0xae   :  { %4945 = vmatpush1.bf16.msra.mxu0 %v8061_v22  ;;  %5117 = vmatpush1.bf16.msra.mxu1 %v8063_v23  ;;  %v8175_v22 = vcombine.low %v590_v5, %v598_v7  ;;  %v8190_v23 = vcombine.high %v605_v9, %v613_v12  ;;  %v709_v5 = vld [vmem:[#allocation2 + $0x1340] sm:$0xff] }
  0xaf   :  { %4946 = vmatprep.subr.bf16.mxu0 %v8078_v24  ;;  %5118 = vmatprep.subr.bf16.mxu1 %v8080_v29  ;;  %v622_v24 = vld [vmem:[#allocation2 + $0x1088] sm:$0xff]  ;;  %v84_v29 = vld [vmem:[%s9448_s0 + $0x60] sm:$0xff]  ;;  %v8285_v18 = vcombine.low %v701_v4, %v709_v5 }
  0xb2   :  { %4947 = vmatpush1.bf16.msra.mxu0 %v8077_v31  ;;  %5119 = vmatpush1.bf16.msra.mxu1 %v8079_v32  ;;  %v8189_v31 = vcombine.low %v605_v9, %v613_v12  ;;  %v8191_v32 = vcombine.low %v606_v13, %v614_v14  ;;  %v8269_v9 = vcombine.low %v685_v60, %v693_v61  ;;  %v717_v12 = vld [vmem:[#allocation2 + $0x1380] sm:$0xff]  ;;  %v718_v14 = vld [vmem:[#allocation2 + $0x1388] sm:$0xff] }
  0xb3   :  { %4948 = vmatprep.subr.bf16.mxu0 %v8094_v33  ;;  %5120 = vmatprep.subr.bf16.mxu1 %v8096_v37  ;;  %v8206_v33 = vcombine.high %v621_v20, %v629_v21  ;;  %v8208_v37 = vcombine.high %v622_v24, %v630_v26  ;;  %v725_v13 = vld [vmem:[#allocation2 + $0x13c0] sm:$0xff]  ;;  %v806_v61 = vld [vmem:[#allocation2 + $0x1648] sm:$0xff] }
  0xb6   :  { %4949 = vmatpush1.bf16.msra.mxu0 %v8093_v39  ;;  %5121 = vmatpush1.bf16.msra.mxu1 %v8095_v40  ;;  %v9270_v39 = vpack.c.bf16 %v84_v29, %v77_v27  ;;  %v8205_v40 = vcombine.low %v621_v20, %v629_v21  ;;  %v8302_v20 = vcombine.high %v717_v12, %v725_v13  ;;  %v733_v21 = vld [vmem:[#allocation2 + $0x1400] sm:$0xff] }
  0xb7   :  { %4950 = vmatprep.subr.bf16.mxu0 %v8110_v41  ;;  %5122 = vmatprep.subr.bf16.mxu1 %v8112_v45  ;;  %v8207_v41 = vcombine.low %v622_v24, %v630_v26  ;;  %v654_v45 = vld [vmem:[#allocation2 + $0x1188] sm:$0xff]  ;;  %v8304_v24 = vcombine.high %v718_v14, %v726_v17  ;;  %v8301_v27 = vcombine.low %v717_v12, %v725_v13 }
  0xb8   :  { %v742_v26 = vld [vmem:[#allocation2 + $0x1448] sm:$0xff] }
  0xb9   :  { %v838_v13 = vld [vmem:[#allocation2 + $0x1748] sm:$0xff] }
  0xba   :  { %4951 = vmatpush1.bf16.msra.mxu0 %v8109_v47  ;;  %5123 = vmatpush1.bf16.msra.mxu1 %v8111_v48  ;;  %v662_v47 = vld [vmem:[#allocation2 + $0x11c8] sm:$0xff]  ;;  %v8221_v48 = vcombine.low %v637_v34, %v645_v35 }
  0xbb   :  { %4952 = vmatprep.subr.bf16.mxu0 %v8126_v49  ;;  %5124 = vmatprep.subr.bf16.mxu1 %v8128_v53  ;;  %v8223_v49 = vcombine.low %v638_v36, %v646_v38  ;;  %v670_v53 = vld [vmem:[#allocation2 + $0x1208] sm:$0xff]  ;;  %v8240_v54 = vcombine.high %v654_v45, %v662_v47 }
  0xbc   :  { %v758_v35 = vld [vmem:[#allocation2 + $0x14c8] sm:$0xff] }
  0xbe   :  { %4953 = vmatpush1.bf16.msra.mxu0 %v8125_v55  ;;  %5125 = vmatpush1.bf16.msra.mxu1 %v8127_v56  ;;  %v678_v55 = vld [vmem:[#allocation2 + $0x1248] sm:$0xff]  ;;  %v8237_v56 = vcombine.low %v653_v43, %v661_v44 }
  0xbf   :  { %4954 = vmatprep.subr.bf16.mxu0 %v8142_v57  ;;  %5126 = vmatprep.subr.bf16.mxu1 %v8144_v62  ;;  %v8239_v57 = vcombine.low %v654_v45, %v662_v47  ;;  %v686_v62 = vld [vmem:[#allocation2 + $0x1288] sm:$0xff]  ;;  %v8256_v63 = vcombine.high %v670_v53, %v678_v55 }
  0xc0   :  { %v774_v44 = vld [vmem:[#allocation2 + $0x1548] sm:$0xff] }
  0xc2   :  { %4955 = vmatpush1.bf16.msra.mxu0 %v8141_v0  ;;  %5127 = vmatpush1.bf16.msra.mxu1 %v8143_v1  ;;  %v694_v0 = vld [vmem:[#allocation2 + $0x12c8] sm:$0xff]  ;;  %v8253_v1 = vcombine.low %v669_v51, %v677_v52 }
  0xc3   :  { %4956 = vmatprep.subr.bf16.mxu0 %v8158_v2  ;;  %5128 = vmatprep.subr.bf16.mxu1 %v8160_v6  ;;  %v8255_v2 = vcombine.low %v670_v53, %v678_v55  ;;  %v702_v6 = vld [vmem:[#allocation2 + $0x1308] sm:$0xff]  ;;  %v8272_v7 = vcombine.high %v686_v62, %v694_v0 }
  0xc4   :  { %v790_v52 = vld [vmem:[#allocation2 + $0x15c8] sm:$0xff] }
  0xc6   :  { %4957 = vmatpush1.bf16.msra.mxu0 %v8157_v8  ;;  %5129 = vmatpush1.bf16.msra.mxu1 %v8159_v10  ;;  %v710_v8 = vld [vmem:[#allocation2 + $0x1348] sm:$0xff]  ;;  %v8271_v10 = vcombine.low %v686_v62, %v694_v0 }
  0xc7   :  { %4958 = vmatprep.subr.bf16.mxu0 %v8174_v11  ;;  %5130 = vmatprep.subr.bf16.mxu1 %v8176_v16  ;;  %v8286_v11 = vcombine.high %v701_v4, %v709_v5  ;;  %v8288_v16 = vcombine.high %v702_v6, %v710_v8  ;;  %v822_v5 = vld [vmem:[#allocation2 + $0x16c8] sm:$0xff] }
  0xca   :  { %4959 = vmatpush1.bf16.msra.mxu0 %v8173_v19  ;;  %5131 = vmatpush1.bf16.msra.mxu1 %v8175_v22  ;;  %v8287_v19 = vcombine.low %v702_v6, %v710_v8  ;;  %v741_v22 = vld [vmem:[#allocation2 + $0x1440] sm:$0xff] }
  0xcb   :  { %4971 = vmatprep.subr.bf16.mxu0 %v8190_v23  ;;  %5143 = vmatprep.subr.bf16.mxu1 %v8192_v28  ;;  %v734_v23 = vld [vmem:[#allocation2 + $0x1408] sm:$0xff]  ;;  %v8303_v28 = vcombine.low %v718_v14, %v726_v17  ;;  %v8318_v29 = vcombine.high %v733_v21, %v741_v22  ;;  %v8317_v36 = vcombine.low %v733_v21, %v741_v22 }
  0xcc   :  { %v8320_v34 = vcombine.high %v734_v23, %v742_v26  ;;  %v854_v22 = vld [vmem:[#allocation2 + $0x17c8] sm:$0xff] }
  0xcd   :  { %4961 = vmatmul.mubr.bf16.vlgmr.msra.gmra.mrb[0].mxu0 %v9268_v30  ;;  %5133 = vmatmul.mubr.bf16.vlgmr.msra.gmra.mrb[0].mxu1 %v9268_v30 }
  0xce   :  { %4972 = vmatpush1.bf16.msra.mxu0 %v8189_v31  ;;  %5144 = vmatpush1.bf16.msra.mxu1 %v8191_v32  ;;  %v749_v31 = vld [vmem:[#allocation2 + $0x1480] sm:$0xff] }
  0xcf   :  { %4973 = vmatprep.subr.bf16.mxu0 %v8206_v33  ;;  %5145 = vmatprep.subr.bf16.mxu1 %v8208_v37  ;;  %v757_v32 = vld [vmem:[#allocation2 + $0x14c0] sm:$0xff]  ;;  %v750_v33 = vld [vmem:[#allocation2 + $0x1488] sm:$0xff]  ;;  %v8319_v37 = vcombine.low %v734_v23, %v742_v26 }
  0xd0   :  { %5003 = vmatprep.mubr.bf16.mxu0 %v9270_v39  ;;  %5175 = vmatprep.mubr.bf16.mxu1 %v9270_v39  ;;  %v8334_v38 = vcombine.high %v749_v31, %v757_v32  ;;  %v8336_v43 = vcombine.high %v750_v33, %v758_v35  ;;  %v8333_v45 = vcombine.low %v749_v31, %v757_v32  ;;  %v76_v32 = vld [vmem:[%s9448_s0 + $0x20] sm:$0xff] }
  0xd2   :  { %4974 = vmatpush1.bf16.msra.mxu0 %v8205_v40  ;;  %5146 = vmatpush1.bf16.msra.mxu1 %v8207_v41  ;;  %v765_v40 = vld [vmem:[#allocation2 + $0x1500] sm:$0xff] }
  0xd3   :  { %4975 = vmatprep.subr.bf16.mxu0 %v8222_v42  ;;  %5147 = vmatprep.subr.bf16.mxu1 %v8224_v46  ;;  %v773_v41 = vld [vmem:[#allocation2 + $0x1540] sm:$0xff]  ;;  %v766_v42 = vld [vmem:[#allocation2 + $0x1508] sm:$0xff]  ;;  %v8335_v46 = vcombine.low %v750_v33, %v758_v35  ;;  %v83_v33 = vld [vmem:[%s9448_s0 + $0x58] sm:$0xff] }
  0xd4   :  { %v8350_v47 = vcombine.high %v765_v40, %v773_v41  ;;  %v8352_v51 = vcombine.high %v766_v42, %v774_v44  ;;  %v8349_v53 = vcombine.low %v765_v40, %v773_v41  ;;  %v103_v40 = vld [vmem:[#allocation2 + $0x50] sm:$0xff] }
  0xd6   :  { %4976 = vmatpush1.bf16.msra.mxu0 %v8221_v48  ;;  %5148 = vmatpush1.bf16.msra.mxu1 %v8223_v49  ;;  %v781_v48 = vld [vmem:[#allocation2 + $0x1580] sm:$0xff] }
  0xd7   :  { %4977 = vmatprep.subr.bf16.mxu0 %v8238_v50  ;;  %5149 = vmatprep.subr.bf16.mxu1 %v8240_v54  ;;  %v789_v49 = vld [vmem:[#allocation2 + $0x15c0] sm:$0xff]  ;;  %v782_v50 = vld [vmem:[#allocation2 + $0x1588] sm:$0xff]  ;;  %v8351_v54 = vcombine.low %v766_v42, %v774_v44  ;;  %v96_v42 = vld [vmem:[#allocation2 + $0x18] sm:$0xff]  ;;  %v9282_v44 = vpack.c.bf16 %v83_v33, %v76_v32 }
  0xd8   :  { %v8366_v55 = vcombine.high %v781_v48, %v789_v49  ;;  %v8368_v60 = vcombine.high %v782_v50, %v790_v52  ;;  %v8365_v62 = vcombine.low %v781_v48, %v789_v49  ;;  %v9140_v49 = vmov 0   ;;  %v191_v33 = vld [vmem:[#allocation2 + $0x310] sm:$0xff] }
  0xda   :  { %4978 = vmatpush1.bf16.msra.mxu0 %v8237_v56  ;;  %5150 = vmatpush1.bf16.msra.mxu1 %v8239_v57  ;;  %v797_v56 = vld [vmem:[#allocation2 + $0x1600] sm:$0xff] }
  0xdb   :  { %4979 = vmatprep.subr.bf16.mxu0 %v8254_v59  ;;  %5151 = vmatprep.subr.bf16.mxu1 %v8256_v63  ;;  %v805_v57 = vld [vmem:[#allocation2 + $0x1640] sm:$0xff]  ;;  %v798_v59 = vld [vmem:[#allocation2 + $0x1608] sm:$0xff]  ;;  %v8367_v63 = vcombine.low %v782_v50, %v790_v52  ;;  %v78_v50 = vld [vmem:[%s9448_s0 + $0x30] sm:$0xff] }
  0xdc   :  { %v8382_v0 = vcombine.high %v797_v56, %v805_v57  ;;  %v8384_v4 = vcombine.high %v798_v59, %v806_v61  ;;  %v8381_v6 = vcombine.low %v797_v56, %v805_v57  ;;  %v111_v52 = vld [vmem:[#allocation2 + $0x90] sm:$0xff]  ;;  %v120_v56 = vld [vmem:[#allocation2 + $0xd8] sm:$0xff] }
  0xde   :  { %4980 = vmatpush1.bf16.msra.mxu0 %v8253_v1  ;;  %5152 = vmatpush1.bf16.msra.mxu1 %v8255_v2  ;;  %v813_v1 = vld [vmem:[#allocation2 + $0x1680] sm:$0xff] }
  0xdf   :  { %4981 = vmatprep.subr.bf16.mxu0 %v8270_v3  ;;  %5153 = vmatprep.subr.bf16.mxu1 %v8272_v7  ;;  %v821_v2 = vld [vmem:[#allocation2 + $0x16c0] sm:$0xff]  ;;  %v814_v3 = vld [vmem:[#allocation2 + $0x1688] sm:$0xff]  ;;  %v8383_v7 = vcombine.low %v798_v59, %v806_v61 }
  0xe0   :  { %v8398_v8 = vcombine.high %v813_v1, %v821_v2  ;;  %v8400_v12 = vcombine.high %v814_v3, %v822_v5  ;;  %v8397_v14 = vcombine.low %v813_v1, %v821_v2  ;;  %v136_v1 = vld [vmem:[#allocation2 + $0x158] sm:$0xff] }
  0xe2   :  { %4982 = vmatpush1.bf16.msra.mxu0 %v8269_v9  ;;  %5154 = vmatpush1.bf16.msra.mxu1 %v8271_v10  ;;  %v829_v9 = vld [vmem:[#allocation2 + $0x1700] sm:$0xff] }
  0xe3   :  { %4983 = vmatprep.subr.bf16.mxu0 %v8286_v11  ;;  %5155 = vmatprep.subr.bf16.mxu1 %v8288_v16  ;;  %v837_v10 = vld [vmem:[#allocation2 + $0x1740] sm:$0xff]  ;;  %v830_v11 = vld [vmem:[#allocation2 + $0x1708] sm:$0xff]  ;;  %v8399_v16 = vcombine.low %v814_v3, %v822_v5 }
  0xe4   :  { %v8414_v17 = vcombine.high %v829_v9, %v837_v10  ;;  %v8416_v21 = vcombine.high %v830_v11, %v838_v13  ;;  %v8413_v23 = vcombine.low %v829_v9, %v837_v10  ;;  %v152_v9 = vld [vmem:[#allocation2 + $0x1d8] sm:$0xff] }
  0xe6   :  { %4984 = vmatpush1.bf16.msra.mxu0 %v8285_v18  ;;  %5156 = vmatpush1.bf16.msra.mxu1 %v8287_v19  ;;  %v845_v18 = vld [vmem:[#allocation2 + $0x1780] sm:$0xff] }
  0xe7   :  { %4985 = vmatprep.subr.bf16.mxu0 %v8302_v20  ;;  %5157 = vmatprep.subr.bf16.mxu1 %v8304_v24  ;;  %v853_v19 = vld [vmem:[#allocation2 + $0x17c0] sm:$0xff]  ;;  %v846_v20 = vld [vmem:[#allocation2 + $0x1788] sm:$0xff]  ;;  %v8415_v24 = vcombine.low %v830_v11, %v838_v13 }
  0xe8   :  { %v8430_v26 = vcombine.high %v845_v18, %v853_v19  ;;  %v8432_v31 = vcombine.high %v846_v20, %v854_v22  ;;  %v8429_v35 = vcombine.low %v845_v18, %v853_v19  ;;  %v168_v18 = vld [vmem:[#allocation2 + $0x258] sm:$0xff] }
  0xea   :  { %4986 = vmatpush1.bf16.msra.mxu0 %v8301_v27  ;;  %5158 = vmatpush1.bf16.msra.mxu1 %v8303_v28  ;;  %v861_v27 = vld [vmem:[#allocation2 + $0x1800] sm:$0xff] }
  0xeb   :  { %4987 = vmatprep.subr.bf16.mxu0 %v8318_v29  ;;  %5159 = vmatprep.subr.bf16.mxu1 %v8320_v34  ;;  %v869_v28 = vld [vmem:[#allocation2 + $0x1840] sm:$0xff]  ;;  %v862_v29 = vld [vmem:[#allocation2 + $0x1808] sm:$0xff] }
  0xec   :  { %v870_v34 = vld [vmem:[#allocation2 + $0x1848] sm:$0xff] }
  0xed   :  { %v8448_v41 = vcombine.high %v862_v29, %v870_v34 }
  0xee   :  { %4988 = vmatpush1.bf16.msra.mxu0 %v8317_v36  ;;  %5160 = vmatpush1.bf16.msra.mxu1 %v8319_v37  ;;  %v8431_v36 = vcombine.low %v846_v20, %v854_v22  ;;  %v8446_v37 = vcombine.high %v861_v27, %v869_v28 }
  0xef   :  { %4989 = vmatprep.subr.bf16.mxu0 %v8334_v38  ;;  %5161 = vmatprep.subr.bf16.mxu1 %v8336_v43  ;;  %v95_v38 = vld [vmem:[#allocation2 + $0x10] sm:$0xff]  ;;  %v104_v43 = vld [vmem:[#allocation2 + $0x58] sm:$0xff] }
  0xf0   :  { %v7684_v48 = vcombine.high %v96_v42, %v104_v43  ;;  %v7681_v57 = vcombine.low %v95_v38, %v103_v40  ;;  %v7683_v59 = vcombine.low %v96_v42, %v104_v43  ;;  %v207_v42 = vld [vmem:[#allocation2 + $0x390] sm:$0xff] }
  0xf1   :  { %v215_v43 = vld [vmem:[#allocation2 + $0x3d0] sm:$0xff] }
  0xf2   :  { %4990 = vmatpush1.bf16.msra.mxu0 %v8333_v45  ;;  %5162 = vmatpush1.bf16.msra.mxu1 %v8335_v46  ;;  %v8445_v45 = vcombine.low %v861_v27, %v869_v28  ;;  %v8447_v46 = vcombine.low %v862_v29, %v870_v34  ;;  %v184_v27 = vld [vmem:[#allocation2 + $0x2d8] sm:$0xff]  ;;  %v199_v34 = vld [vmem:[#allocation2 + $0x350] sm:$0xff] }
  0xf3   :  { %4991 = vmatprep.subr.bf16.mxu0 %v8350_v47  ;;  %5163 = vmatprep.subr.bf16.mxu1 %v8352_v51  ;;  %v7682_v47 = vcombine.high %v95_v38, %v103_v40  ;;  %v85_v51 = vld [vmem:[%s9448_s0 + $0x68] sm:$0xff]  ;;  %v7778_v40 = vcombine.high %v191_v33, %v199_v34 }
  0xf6   :  { %4992 = vmatpush1.bf16.msra.mxu0 %v8349_v53  ;;  %5164 = vmatpush1.bf16.msra.mxu1 %v8351_v54  ;;  %v119_v53 = vld [vmem:[#allocation2 + $0xd0] sm:$0xff]  ;;  %v9294_v54 = vpack.c.bf16 %v85_v51, %v78_v50  ;;  %v7794_v50 = vcombine.high %v207_v42, %v215_v43 }
  0xf7   :  { %4993 = vmatprep.subr.bf16.mxu0 %v8366_v55  ;;  %5165 = vmatprep.subr.bf16.mxu1 %v8368_v60  ;;  %v112_v55 = vld [vmem:[#allocation2 + $0x98] sm:$0xff]  ;;  %v7698_v60 = vcombine.high %v111_v52, %v119_v53  ;;  %v7697_v2 = vcombine.low %v111_v52, %v119_v53  ;;  %v223_v52 = vld [vmem:[#allocation2 + $0x410] sm:$0xff] }
  0xf8   :  { %v7700_v61 = vcombine.high %v112_v55, %v120_v56  ;;  %v7699_v3 = vcombine.low %v112_v55, %v120_v56  ;;  %v231_v53 = vld [vmem:[#allocation2 + $0x450] sm:$0xff]  ;;  %v224_v55 = vld [vmem:[#allocation2 + $0x418] sm:$0xff] }
  0xf9   :  { %v232_v56 = vld [vmem:[#allocation2 + $0x458] sm:$0xff] }
  0xfa   :  { %4994 = vmatpush1.bf16.msra.mxu0 %v8365_v62  ;;  %5166 = vmatpush1.bf16.msra.mxu1 %v8367_v63  ;;  %v127_v62 = vld [vmem:[#allocation2 + $0x110] sm:$0xff] }
  0xfb   :  { %4995 = vmatprep.subr.bf16.mxu0 %v8382_v0  ;;  %5167 = vmatprep.subr.bf16.mxu1 %v8384_v4  ;;  %v135_v63 = vld [vmem:[#allocation2 + $0x150] sm:$0xff]  ;;  %v128_v0 = vld [vmem:[#allocation2 + $0x118] sm:$0xff] }
  0xfc   :  { %v7714_v4 = vcombine.high %v127_v62, %v135_v63  ;;  %v7716_v5 = vcombine.high %v128_v0, %v136_v1  ;;  %v7713_v10 = vcombine.low %v127_v62, %v135_v63  ;;  %v7715_v11 = vcombine.low %v128_v0, %v136_v1  ;;  %v239_v62 = vld [vmem:[#allocation2 + $0x490] sm:$0xff]  ;;  %v240_v0 = vld [vmem:[#allocation2 + $0x498] sm:$0xff] }
  0xfd   :  { %v247_v63 = vld [vmem:[#allocation2 + $0x4d0] sm:$0xff]  ;;  %v248_v1 = vld [vmem:[#allocation2 + $0x4d8] sm:$0xff] }
  0xfe   :  { %4996 = vmatpush1.bf16.msra.mxu0 %v8381_v6  ;;  %5168 = vmatpush1.bf16.msra.mxu1 %v8383_v7  ;;  %v143_v6 = vld [vmem:[#allocation2 + $0x190] sm:$0xff] }
  0xff   :  { %4997 = vmatprep.subr.bf16.mxu0 %v8398_v8  ;;  %5169 = vmatprep.subr.bf16.mxu1 %v8400_v12  ;;  %v151_v7 = vld [vmem:[#allocation2 + $0x1d0] sm:$0xff]  ;;  %v144_v8 = vld [vmem:[#allocation2 + $0x198] sm:$0xff] }
 0x100   :  { %v7730_v12 = vcombine.high %v143_v6, %v151_v7  ;;  %v7732_v13 = vcombine.high %v144_v8, %v152_v9  ;;  %v7729_v19 = vcombine.low %v143_v6, %v151_v7  ;;  %v7731_v20 = vcombine.low %v144_v8, %v152_v9  ;;  %v255_v6 = vld [vmem:[#allocation2 + $0x510] sm:$0xff]  ;;  %v256_v8 = vld [vmem:[#allocation2 + $0x518] sm:$0xff] }
 0x101   :  { %v263_v7 = vld [vmem:[#allocation2 + $0x550] sm:$0xff]  ;;  %v264_v9 = vld [vmem:[#allocation2 + $0x558] sm:$0xff] }
 0x102   :  { %4998 = vmatpush1.bf16.msra.mxu0 %v8397_v14  ;;  %5170 = vmatpush1.bf16.msra.mxu1 %v8399_v16  ;;  %v159_v14 = vld [vmem:[#allocation2 + $0x210] sm:$0xff] }
 0x103   :  { %4999 = vmatprep.subr.bf16.mxu0 %v8414_v17  ;;  %5171 = vmatprep.subr.bf16.mxu1 %v8416_v21  ;;  %v167_v16 = vld [vmem:[#allocation2 + $0x250] sm:$0xff]  ;;  %v160_v17 = vld [vmem:[#allocation2 + $0x218] sm:$0xff] }
 0x104   :  { %v7746_v21 = vcombine.high %v159_v14, %v167_v16  ;;  %v7748_v22 = vcombine.high %v160_v17, %v168_v18  ;;  %v7745_v28 = vcombine.low %v159_v14, %v167_v16  ;;  %v7747_v29 = vcombine.low %v160_v17, %v168_v18  ;;  %v271_v14 = vld [vmem:[#allocation2 + $0x590] sm:$0xff]  ;;  %v272_v17 = vld [vmem:[#allocation2 + $0x598] sm:$0xff] }
 0x105   :  { %v279_v16 = vld [vmem:[#allocation2 + $0x5d0] sm:$0xff]  ;;  %v280_v18 = vld [vmem:[#allocation2 + $0x5d8] sm:$0xff] }
 0x106   :  { %5000 = vmatpush1.bf16.msra.mxu0 %v8413_v23  ;;  %5172 = vmatpush1.bf16.msra.mxu1 %v8415_v24  ;;  %v175_v23 = vld [vmem:[#allocation2 + $0x290] sm:$0xff] }
 0x107   :  { %5001 = vmatprep.subr.bf16.mxu0 %v8430_v26  ;;  %5173 = vmatprep.subr.bf16.mxu1 %v8432_v31  ;;  %v183_v24 = vld [vmem:[#allocation2 + $0x2d0] sm:$0xff]  ;;  %v176_v26 = vld [vmem:[#allocation2 + $0x298] sm:$0xff] }
 0x108   :  { %v7762_v31 = vcombine.high %v175_v23, %v183_v24  ;;  %v7764_v32 = vcombine.high %v176_v26, %v184_v27  ;;  %v7763_v38 = vcombine.low %v176_v26, %v184_v27  ;;  %v288_v26 = vld [vmem:[#allocation2 + $0x618] sm:$0xff] }
 0x109   :  { %v296_v27 = vld [vmem:[#allocation2 + $0x658] sm:$0xff] }
 0x10a   :  { %5002 = vmatpush1.bf16.msra.mxu0 %v8429_v35  ;;  %5174 = vmatpush1.bf16.msra.mxu1 %v8431_v36  ;;  %v192_v35 = vld [vmem:[#allocation2 + $0x318] sm:$0xff] }
 0x10b   :  { %5014 = vmatprep.subr.bf16.mxu0 %v8446_v37  ;;  %5186 = vmatprep.subr.bf16.mxu1 %v8448_v41  ;;  %v200_v36 = vld [vmem:[#allocation2 + $0x358] sm:$0xff]  ;;  %v7761_v37 = vcombine.low %v175_v23, %v183_v24  ;;  %v287_v23 = vld [vmem:[#allocation2 + $0x610] sm:$0xff] }
 0x10c   :  { %v7780_v41 = vcombine.high %v192_v35, %v200_v36  ;;  %v295_v24 = vld [vmem:[#allocation2 + $0x650] sm:$0xff] }
 0x10d   :  { %5004 = vmatmul.mubr.bf16.vlgmr.msra.gmra.mrb[0].mxu0 %v9282_v44  ;;  %5176 = vmatmul.mubr.bf16.vlgmr.msra.gmra.mrb[0].mxu1 %v9282_v44 }
 0x10e   :  { %5015 = vmatpush1.bf16.msra.mxu0 %v8445_v45  ;;  %5187 = vmatpush1.bf16.msra.mxu1 %v8447_v46  ;;  %v208_v45 = vld [vmem:[#allocation2 + $0x398] sm:$0xff] }
 0x10f   :  { %5046 = vmatprep.mubr.bf16.mxu0 %v9140_v49  ;;  %5218 = vmatprep.mubr.bf16.mxu1 %v9140_v49  ;;  %v216_v46 = vld [vmem:[#allocation2 + $0x3d8] sm:$0xff] }
 0x110   :  { %5229 = vmatprep.subr.bf16.mxu0 %v7682_v47  ;;  %5401 = vmatprep.subr.bf16.mxu1 %v7684_v48  ;;  %v7777_v47 = vcombine.low %v191_v33, %v199_v34  ;;  %v7779_v48 = vcombine.low %v192_v35, %v200_v36  ;;  %v7796_v51 = vcombine.high %v208_v45, %v216_v46  ;;  %v303_v33 = vld [vmem:[#allocation2 + $0x690] sm:$0xff]  ;;  %v304_v35 = vld [vmem:[#allocation2 + $0x698] sm:$0xff] }
 0x111   :  { %v311_v34 = vld [vmem:[#allocation2 + $0x6d0] sm:$0xff]  ;;  %v312_v36 = vld [vmem:[#allocation2 + $0x6d8] sm:$0xff] }
 0x119   :  { %8461 = vmatmul.mubr.msk.bf16.vlgmr.msra.gmra.mrb[0].mxu0 %vm4881_vm0, %v9294_v54  ;;  %8462 = vmatmul.mubr.msk.bf16.vlgmr.msra.gmra.mrb[0].mxu1 %vm4881_vm0, %v9294_v54 }
 0x11a   :  { %5230 = vmatpush1.bf16.msra.mxu0 %v7681_v57  ;;  %5402 = vmatpush1.bf16.msra.mxu1 %v7683_v59  ;;  %v7793_v57 = vcombine.low %v207_v42, %v215_v43  ;;  %v7795_v59 = vcombine.low %v208_v45, %v216_v46  ;;  %v319_v42 = vld [vmem:[#allocation2 + $0x710] sm:$0xff]  ;;  %v320_v45 = vld [vmem:[#allocation2 + $0x718] sm:$0xff] }
 0x11b   :  { %5231 = vmatprep.subr.bf16.mxu0 %v7698_v60  ;;  %5403 = vmatprep.subr.bf16.mxu1 %v7700_v61  ;;  %v7810_v60 = vcombine.high %v223_v52, %v231_v53  ;;  %v7812_v61 = vcombine.high %v224_v55, %v232_v56  ;;  %v327_v43 = vld [vmem:[#allocation2 + $0x750] sm:$0xff]  ;;  %v328_v46 = vld [vmem:[#allocation2 + $0x758] sm:$0xff] }
 0x11c   :  { %5261 = vmatprep.mubr.bf16.mxu0 %v9232_v58  ;;  %5433 = vmatprep.mubr.bf16.mxu1 %v9232_v58 }
 0x11e   :  { %5232 = vmatpush1.bf16.msra.mxu0 %v7697_v2  ;;  %5404 = vmatpush1.bf16.msra.mxu1 %v7699_v3  ;;  %v7809_v2 = vcombine.low %v223_v52, %v231_v53  ;;  %v7811_v3 = vcombine.low %v224_v55, %v232_v56  ;;  %v335_v52 = vld [vmem:[#allocation2 + $0x790] sm:$0xff]  ;;  %v336_v55 = vld [vmem:[#allocation2 + $0x798] sm:$0xff] }
 0x11f   :  { %5233 = vmatprep.subr.bf16.mxu0 %v7714_v4  ;;  %5405 = vmatprep.subr.bf16.mxu1 %v7716_v5  ;;  %v7826_v4 = vcombine.high %v239_v62, %v247_v63  ;;  %v7828_v5 = vcombine.high %v240_v0, %v248_v1  ;;  %v343_v53 = vld [vmem:[#allocation2 + $0x7d0] sm:$0xff]  ;;  %v344_v56 = vld [vmem:[#allocation2 + $0x7d8] sm:$0xff] }
 0x122   :  { %5234 = vmatpush1.bf16.msra.mxu0 %v7713_v10  ;;  %5406 = vmatpush1.bf16.msra.mxu1 %v7715_v11  ;;  %v7825_v10 = vcombine.low %v239_v62, %v247_v63  ;;  %v7827_v11 = vcombine.low %v240_v0, %v248_v1  ;;  %v351_v62 = vld [vmem:[#allocation2 + $0x810] sm:$0xff]  ;;  %v352_v0 = vld [vmem:[#allocation2 + $0x818] sm:$0xff] }
 0x123   :  { %5235 = vmatprep.subr.bf16.mxu0 %v7730_v12  ;;  %5407 = vmatprep.subr.bf16.mxu1 %v7732_v13  ;;  %v7842_v12 = vcombine.high %v255_v6, %v263_v7  ;;  %v7844_v13 = vcombine.high %v256_v8, %v264_v9  ;;  %v359_v63 = vld [vmem:[#allocation2 + $0x850] sm:$0xff]  ;;  %v360_v1 = vld [vmem:[#allocation2 + $0x858] sm:$0xff] }
 0x126   :  { %5236 = vmatpush1.bf16.msra.mxu0 %v7729_v19  ;;  %5408 = vmatpush1.bf16.msra.mxu1 %v7731_v20  ;;  %v7841_v19 = vcombine.low %v255_v6, %v263_v7  ;;  %v7843_v20 = vcombine.low %v256_v8, %v264_v9  ;;  %v367_v6 = vld [vmem:[#allocation2 + $0x890] sm:$0xff]  ;;  %v368_v8 = vld [vmem:[#allocation2 + $0x898] sm:$0xff] }
 0x127   :  { %5237 = vmatprep.subr.bf16.mxu0 %v7746_v21  ;;  %5409 = vmatprep.subr.bf16.mxu1 %v7748_v22  ;;  %v7858_v21 = vcombine.high %v271_v14, %v279_v16  ;;  %v7860_v22 = vcombine.high %v272_v17, %v280_v18  ;;  %v375_v7 = vld [vmem:[#allocation2 + $0x8d0] sm:$0xff]  ;;  %v376_v9 = vld [vmem:[#allocation2 + $0x8d8] sm:$0xff] }
 0x12a   :  { %5238 = vmatpush1.bf16.msra.mxu0 %v7745_v28  ;;  %5410 = vmatpush1.bf16.msra.mxu1 %v7747_v29  ;;  %v7857_v28 = vcombine.low %v271_v14, %v279_v16  ;;  %v7859_v29 = vcombine.low %v272_v17, %v280_v18  ;;  %v383_v14 = vld [vmem:[#allocation2 + $0x910] sm:$0xff]  ;;  %v384_v17 = vld [vmem:[#allocation2 + $0x918] sm:$0xff] }
 0x12b   :  { %5239 = vmatprep.subr.bf16.mxu0 %v7762_v31  ;;  %5411 = vmatprep.subr.bf16.mxu1 %v7764_v32  ;;  %v7874_v31 = vcombine.high %v287_v23, %v295_v24  ;;  %v7876_v32 = vcombine.high %v288_v26, %v296_v27  ;;  %v391_v16 = vld [vmem:[#allocation2 + $0x950] sm:$0xff]  ;;  %v392_v18 = vld [vmem:[#allocation2 + $0x958] sm:$0xff] }
 0x12e   :  { %5240 = vmatpush1.bf16.msra.mxu0 %v7761_v37  ;;  %5412 = vmatpush1.bf16.msra.mxu1 %v7763_v38  ;;  %v7873_v37 = vcombine.low %v287_v23, %v295_v24  ;;  %v7875_v38 = vcombine.low %v288_v26, %v296_v27  ;;  %v399_v23 = vld [vmem:[#allocation2 + $0x990] sm:$0xff]  ;;  %v400_v26 = vld [vmem:[#allocation2 + $0x998] sm:$0xff] }
 0x12f   :  { %5241 = vmatprep.subr.bf16.mxu0 %v7778_v40  ;;  %5413 = vmatprep.subr.bf16.mxu1 %v7780_v41  ;;  %v7890_v40 = vcombine.high %v303_v33, %v311_v34  ;;  %v7892_v41 = vcombine.high %v304_v35, %v312_v36  ;;  %v407_v24 = vld [vmem:[#allocation2 + $0x9d0] sm:$0xff]  ;;  %v408_v27 = vld [vmem:[#allocation2 + $0x9d8] sm:$0xff] }
 0x132   :  { %5242 = vmatpush1.bf16.msra.mxu0 %v7777_v47  ;;  %5414 = vmatpush1.bf16.msra.mxu1 %v7779_v48  ;;  %v7889_v47 = vcombine.low %v303_v33, %v311_v34  ;;  %v7891_v48 = vcombine.low %v304_v35, %v312_v36  ;;  %v415_v33 = vld [vmem:[#allocation2 + $0xa10] sm:$0xff]  ;;  %v416_v35 = vld [vmem:[#allocation2 + $0xa18] sm:$0xff] }
 0x133   :  { %5243 = vmatprep.subr.bf16.mxu0 %v7794_v50  ;;  %5415 = vmatprep.subr.bf16.mxu1 %v7796_v51  ;;  %v7906_v50 = vcombine.high %v319_v42, %v327_v43  ;;  %v7908_v51 = vcombine.high %v320_v45, %v328_v46  ;;  %v423_v34 = vld [vmem:[#allocation2 + $0xa50] sm:$0xff]  ;;  %v424_v36 = vld [vmem:[#allocation2 + $0xa58] sm:$0xff] }
 0x136   :  { %5244 = vmatpush1.bf16.msra.mxu0 %v7793_v57  ;;  %5416 = vmatpush1.bf16.msra.mxu1 %v7795_v59  ;;  %v7905_v57 = vcombine.low %v319_v42, %v327_v43  ;;  %v7907_v59 = vcombine.low %v320_v45, %v328_v46  ;;  %v431_v42 = vld [vmem:[#allocation2 + $0xa90] sm:$0xff]  ;;  %v432_v45 = vld [vmem:[#allocation2 + $0xa98] sm:$0xff] }
 0x137   :  { %5245 = vmatprep.subr.bf16.mxu0 %v7810_v60  ;;  %5417 = vmatprep.subr.bf16.mxu1 %v7812_v61  ;;  %v7922_v60 = vcombine.high %v335_v52, %v343_v53  ;;  %v7924_v61 = vcombine.high %v336_v55, %v344_v56  ;;  %v439_v43 = vld [vmem:[#allocation2 + $0xad0] sm:$0xff]  ;;  %v440_v46 = vld [vmem:[#allocation2 + $0xad8] sm:$0xff] }
 0x13a   :  { %5246 = vmatpush1.bf16.msra.mxu0 %v7809_v2  ;;  %5418 = vmatpush1.bf16.msra.mxu1 %v7811_v3  ;;  %v7921_v2 = vcombine.low %v335_v52, %v343_v53  ;;  %v7923_v3 = vcombine.low %v336_v55, %v344_v56  ;;  %v447_v52 = vld [vmem:[#allocation2 + $0xb10] sm:$0xff]  ;;  %v448_v55 = vld [vmem:[#allocation2 + $0xb18] sm:$0xff] }
 0x13b   :  { %5247 = vmatprep.subr.bf16.mxu0 %v7826_v4  ;;  %5419 = vmatprep.subr.bf16.mxu1 %v7828_v5  ;;  %v7938_v4 = vcombine.high %v351_v62, %v359_v63  ;;  %v7940_v5 = vcombine.high %v352_v0, %v360_v1  ;;  %v455_v53 = vld [vmem:[#allocation2 + $0xb50] sm:$0xff]  ;;  %v456_v56 = vld [vmem:[#allocation2 + $0xb58] sm:$0xff] }
 0x13e   :  { %5248 = vmatpush1.bf16.msra.mxu0 %v7825_v10  ;;  %5420 = vmatpush1.bf16.msra.mxu1 %v7827_v11  ;;  %v7937_v10 = vcombine.low %v351_v62, %v359_v63  ;;  %v7939_v11 = vcombine.low %v352_v0, %v360_v1  ;;  %v463_v62 = vld [vmem:[#allocation2 + $0xb90] sm:$0xff]  ;;  %v464_v0 = vld [vmem:[#allocation2 + $0xb98] sm:$0xff] }
 0x13f   :  { %5249 = vmatprep.subr.bf16.mxu0 %v7842_v12  ;;  %5421 = vmatprep.subr.bf16.mxu1 %v7844_v13  ;;  %v7954_v12 = vcombine.high %v367_v6, %v375_v7  ;;  %v7956_v13 = vcombine.high %v368_v8, %v376_v9  ;;  %v471_v63 = vld [vmem:[#allocation2 + $0xbd0] sm:$0xff]  ;;  %v472_v1 = vld [vmem:[#allocation2 + $0xbd8] sm:$0xff] }
 0x142   :  { %5250 = vmatpush1.bf16.msra.mxu0 %v7841_v19  ;;  %5422 = vmatpush1.bf16.msra.mxu1 %v7843_v20  ;;  %v7953_v19 = vcombine.low %v367_v6, %v375_v7  ;;  %v7955_v20 = vcombine.low %v368_v8, %v376_v9  ;;  %v479_v6 = vld [vmem:[#allocation2 + $0xc10] sm:$0xff]  ;;  %v480_v8 = vld [vmem:[#allocation2 + $0xc18] sm:$0xff] }
 0x143   :  { %5251 = vmatprep.subr.bf16.mxu0 %v7858_v21  ;;  %5423 = vmatprep.subr.bf16.mxu1 %v7860_v22  ;;  %v7970_v21 = vcombine.high %v383_v14, %v391_v16  ;;  %v7972_v22 = vcombine.high %v384_v17, %v392_v18  ;;  %v487_v7 = vld [vmem:[#allocation2 + $0xc50] sm:$0xff]  ;;  %v488_v9 = vld [vmem:[#allocation2 + $0xc58] sm:$0xff] }
 0x146   :  { %5252 = vmatpush1.bf16.msra.mxu0 %v7857_v28  ;;  %5424 = vmatpush1.bf16.msra.mxu1 %v7859_v29  ;;  %v7969_v28 = vcombine.low %v383_v14, %v391_v16  ;;  %v7971_v29 = vcombine.low %v384_v17, %v392_v18  ;;  %v495_v14 = vld [vmem:[#allocation2 + $0xc90] sm:$0xff]  ;;  %v496_v17 = vld [vmem:[#allocation2 + $0xc98] sm:$0xff] }
 0x147   :  { %5253 = vmatprep.subr.bf16.mxu0 %v7874_v31  ;;  %5425 = vmatprep.subr.bf16.mxu1 %v7876_v32  ;;  %v7986_v31 = vcombine.high %v399_v23, %v407_v24  ;;  %v7988_v32 = vcombine.high %v400_v26, %v408_v27  ;;  %v503_v16 = vld [vmem:[#allocation2 + $0xcd0] sm:$0xff]  ;;  %v504_v18 = vld [vmem:[#allocation2 + $0xcd8] sm:$0xff] }
 0x14a   :  { %5254 = vmatpush1.bf16.msra.mxu0 %v7873_v37  ;;  %5426 = vmatpush1.bf16.msra.mxu1 %v7875_v38  ;;  %v7985_v37 = vcombine.low %v399_v23, %v407_v24  ;;  %v7987_v38 = vcombine.low %v400_v26, %v408_v27  ;;  %v511_v23 = vld [vmem:[#allocation2 + $0xd10] sm:$0xff]  ;;  %v512_v26 = vld [vmem:[#allocation2 + $0xd18] sm:$0xff] }
 0x14b   :  { %5255 = vmatprep.subr.bf16.mxu0 %v7890_v40  ;;  %5427 = vmatprep.subr.bf16.mxu1 %v7892_v41  ;;  %v8002_v40 = vcombine.high %v415_v33, %v423_v34  ;;  %v8004_v41 = vcombine.high %v416_v35, %v424_v36  ;;  %v519_v24 = vld [vmem:[#allocation2 + $0xd50] sm:$0xff]  ;;  %v520_v27 = vld [vmem:[#allocation2 + $0xd58] sm:$0xff] }
 0x14e   :  { %5256 = vmatpush1.bf16.msra.mxu0 %v7889_v47  ;;  %5428 = vmatpush1.bf16.msra.mxu1 %v7891_v48  ;;  %v8001_v47 = vcombine.low %v415_v33, %v423_v34  ;;  %v8003_v48 = vcombine.low %v416_v35, %v424_v36  ;;  %v527_v33 = vld [vmem:[#allocation2 + $0xd90] sm:$0xff]  ;;  %v528_v35 = vld [vmem:[#allocation2 + $0xd98] sm:$0xff] }
 0x14f   :  { %5257 = vmatprep.subr.bf16.mxu0 %v7906_v50  ;;  %5429 = vmatprep.subr.bf16.mxu1 %v7908_v51  ;;  %v8018_v50 = vcombine.high %v431_v42, %v439_v43  ;;  %v8020_v51 = vcombine.high %v432_v45, %v440_v46  ;;  %v535_v34 = vld [vmem:[#allocation2 + $0xdd0] sm:$0xff]  ;;  %v536_v36 = vld [vmem:[#allocation2 + $0xdd8] sm:$0xff] }
 0x152   :  { %5258 = vmatpush1.bf16.msra.mxu0 %v7905_v57  ;;  %5430 = vmatpush1.bf16.msra.mxu1 %v7907_v59  ;;  %v8017_v57 = vcombine.low %v431_v42, %v439_v43  ;;  %v8019_v59 = vcombine.low %v432_v45, %v440_v46  ;;  %v543_v42 = vld [vmem:[#allocation2 + $0xe10] sm:$0xff]  ;;  %v544_v45 = vld [vmem:[#allocation2 + $0xe18] sm:$0xff] }
 0x153   :  { %5259 = vmatprep.subr.bf16.mxu0 %v7922_v60  ;;  %5431 = vmatprep.subr.bf16.mxu1 %v7924_v61  ;;  %v8034_v60 = vcombine.high %v447_v52, %v455_v53  ;;  %v8036_v61 = vcombine.high %v448_v55, %v456_v56  ;;  %v551_v43 = vld [vmem:[#allocation2 + $0xe50] sm:$0xff]  ;;  %v552_v46 = vld [vmem:[#allocation2 + $0xe58] sm:$0xff] }
 0x156   :  { %5260 = vmatpush1.bf16.msra.mxu0 %v7921_v2  ;;  %5432 = vmatpush1.bf16.msra.mxu1 %v7923_v3  ;;  %v8033_v2 = vcombine.low %v447_v52, %v455_v53  ;;  %v8035_v3 = vcombine.low %v448_v55, %v456_v56  ;;  %v559_v52 = vld [vmem:[#allocation2 + $0xe90] sm:$0xff]  ;;  %v560_v55 = vld [vmem:[#allocation2 + $0xe98] sm:$0xff] }
 0x157   :  { %5272 = vmatprep.subr.bf16.mxu0 %v7938_v4  ;;  %5444 = vmatprep.subr.bf16.mxu1 %v7940_v5  ;;  %v8050_v4 = vcombine.high %v463_v62, %v471_v63  ;;  %v8052_v5 = vcombine.high %v464_v0, %v472_v1  ;;  %v567_v53 = vld [vmem:[#allocation2 + $0xed0] sm:$0xff]  ;;  %v568_v56 = vld [vmem:[#allocation2 + $0xed8] sm:$0xff] }
 0x159   :  { %5262 = vmatmul.mubr.bf16.vlgmr.msra.gmra.mrb[4].mxu0 %v9242_v15  ;;  %5434 = vmatmul.mubr.bf16.vlgmr.msra.gmra.mrb[4].mxu1 %v9242_v15 }
 0x15a   :  { %5273 = vmatpush1.bf16.msra.mxu0 %v7937_v10  ;;  %5445 = vmatpush1.bf16.msra.mxu1 %v7939_v11  ;;  %v8049_v10 = vcombine.low %v463_v62, %v471_v63  ;;  %v8051_v11 = vcombine.low %v464_v0, %v472_v1  ;;  %v575_v62 = vld [vmem:[#allocation2 + $0xf10] sm:$0xff]  ;;  %v576_v0 = vld [vmem:[#allocation2 + $0xf18] sm:$0xff] }
 0x15b   :  { %5274 = vmatprep.subr.bf16.mxu0 %v7954_v12  ;;  %5446 = vmatprep.subr.bf16.mxu1 %v7956_v13  ;;  %v8066_v12 = vcombine.high %v479_v6, %v487_v7  ;;  %v8068_v13 = vcombine.high %v480_v8, %v488_v9  ;;  %v583_v63 = vld [vmem:[#allocation2 + $0xf50] sm:$0xff]  ;;  %v584_v1 = vld [vmem:[#allocation2 + $0xf58] sm:$0xff] }
 0x15c   :  { %5304 = vmatprep.mubr.bf16.mxu0 %v9250_v25  ;;  %5476 = vmatprep.mubr.bf16.mxu1 %v9250_v25 }
 0x15e   :  { %5275 = vmatpush1.bf16.msra.mxu0 %v7953_v19  ;;  %5447 = vmatpush1.bf16.msra.mxu1 %v7955_v20  ;;  %v8065_v19 = vcombine.low %v479_v6, %v487_v7  ;;  %v8067_v20 = vcombine.low %v480_v8, %v488_v9  ;;  %v591_v6 = vld [vmem:[#allocation2 + $0xf90] sm:$0xff]  ;;  %v592_v8 = vld [vmem:[#allocation2 + $0xf98] sm:$0xff] }
 0x15f   :  { %5276 = vmatprep.subr.bf16.mxu0 %v7970_v21  ;;  %5448 = vmatprep.subr.bf16.mxu1 %v7972_v22  ;;  %v8082_v21 = vcombine.high %v495_v14, %v503_v16  ;;  %v8084_v22 = vcombine.high %v496_v17, %v504_v18  ;;  %v599_v7 = vld [vmem:[#allocation2 + $0xfd0] sm:$0xff]  ;;  %v600_v9 = vld [vmem:[#allocation2 + $0xfd8] sm:$0xff] }
 0x162   :  { %5277 = vmatpush1.bf16.msra.mxu0 %v7969_v28  ;;  %5449 = vmatpush1.bf16.msra.mxu1 %v7971_v29  ;;  %v8081_v28 = vcombine.low %v495_v14, %v503_v16  ;;  %v8083_v29 = vcombine.low %v496_v17, %v504_v18  ;;  %v607_v14 = vld [vmem:[#allocation2 + $0x1010] sm:$0xff]  ;;  %v608_v17 = vld [vmem:[#allocation2 + $0x1018] sm:$0xff] }
 0x163   :  { %5278 = vmatprep.subr.bf16.mxu0 %v7986_v31  ;;  %5450 = vmatprep.subr.bf16.mxu1 %v7988_v32  ;;  %v8098_v31 = vcombine.high %v511_v23, %v519_v24  ;;  %v8100_v32 = vcombine.high %v512_v26, %v520_v27  ;;  %v615_v16 = vld [vmem:[#allocation2 + $0x1050] sm:$0xff]  ;;  %v616_v18 = vld [vmem:[#allocation2 + $0x1058] sm:$0xff] }
 0x166   :  { %5279 = vmatpush1.bf16.msra.mxu0 %v7985_v37  ;;  %5451 = vmatpush1.bf16.msra.mxu1 %v7987_v38  ;;  %v8097_v37 = vcombine.low %v511_v23, %v519_v24  ;;  %v8099_v38 = vcombine.low %v512_v26, %v520_v27  ;;  %v623_v23 = vld [vmem:[#allocation2 + $0x1090] sm:$0xff]  ;;  %v624_v26 = vld [vmem:[#allocation2 + $0x1098] sm:$0xff] }
 0x167   :  { %5280 = vmatprep.subr.bf16.mxu0 %v8002_v40  ;;  %5452 = vmatprep.subr.bf16.mxu1 %v8004_v41  ;;  %v8114_v40 = vcombine.high %v527_v33, %v535_v34  ;;  %v8116_v41 = vcombine.high %v528_v35, %v536_v36  ;;  %v631_v24 = vld [vmem:[#allocation2 + $0x10d0] sm:$0xff]  ;;  %v632_v27 = vld [vmem:[#allocation2 + $0x10d8] sm:$0xff] }
 0x16a   :  { %5281 = vmatpush1.bf16.msra.mxu0 %v8001_v47  ;;  %5453 = vmatpush1.bf16.msra.mxu1 %v8003_v48  ;;  %v8113_v47 = vcombine.low %v527_v33, %v535_v34  ;;  %v8115_v48 = vcombine.low %v528_v35, %v536_v36  ;;  %v639_v33 = vld [vmem:[#allocation2 + $0x1110] sm:$0xff]  ;;  %v640_v35 = vld [vmem:[#allocation2 + $0x1118] sm:$0xff] }
 0x16b   :  { %5282 = vmatprep.subr.bf16.mxu0 %v8018_v50  ;;  %5454 = vmatprep.subr.bf16.mxu1 %v8020_v51  ;;  %v8130_v50 = vcombine.high %v543_v42, %v551_v43  ;;  %v8132_v51 = vcombine.high %v544_v45, %v552_v46  ;;  %v647_v34 = vld [vmem:[#allocation2 + $0x1150] sm:$0xff]  ;;  %v648_v36 = vld [vmem:[#allocation2 + $0x1158] sm:$0xff] }
 0x16e   :  { %5283 = vmatpush1.bf16.msra.mxu0 %v8017_v57  ;;  %5455 = vmatpush1.bf16.msra.mxu1 %v8019_v59  ;;  %v8129_v57 = vcombine.low %v543_v42, %v551_v43  ;;  %v8131_v59 = vcombine.low %v544_v45, %v552_v46  ;;  %v655_v42 = vld [vmem:[#allocation2 + $0x1190] sm:$0xff]  ;;  %v656_v45 = vld [vmem:[#allocation2 + $0x1198] sm:$0xff] }
 0x16f   :  { %5284 = vmatprep.subr.bf16.mxu0 %v8034_v60  ;;  %5456 = vmatprep.subr.bf16.mxu1 %v8036_v61  ;;  %v8146_v60 = vcombine.high %v559_v52, %v567_v53  ;;  %v8148_v61 = vcombine.high %v560_v55, %v568_v56  ;;  %v663_v43 = vld [vmem:[#allocation2 + $0x11d0] sm:$0xff]  ;;  %v664_v46 = vld [vmem:[#allocation2 + $0x11d8] sm:$0xff] }
 0x172   :  { %5285 = vmatpush1.bf16.msra.mxu0 %v8033_v2  ;;  %5457 = vmatpush1.bf16.msra.mxu1 %v8035_v3  ;;  %v8145_v2 = vcombine.low %v559_v52, %v567_v53  ;;  %v8147_v3 = vcombine.low %v560_v55, %v568_v56  ;;  %v671_v52 = vld [vmem:[#allocation2 + $0x1210] sm:$0xff]  ;;  %v672_v55 = vld [vmem:[#allocation2 + $0x1218] sm:$0xff] }
 0x173   :  { %5286 = vmatprep.subr.bf16.mxu0 %v8050_v4  ;;  %5458 = vmatprep.subr.bf16.mxu1 %v8052_v5  ;;  %v8162_v4 = vcombine.high %v575_v62, %v583_v63  ;;  %v8164_v5 = vcombine.high %v576_v0, %v584_v1  ;;  %v679_v53 = vld [vmem:[#allocation2 + $0x1250] sm:$0xff]  ;;  %v680_v56 = vld [vmem:[#allocation2 + $0x1258] sm:$0xff] }
 0x176   :  { %5287 = vmatpush1.bf16.msra.mxu0 %v8049_v10  ;;  %5459 = vmatpush1.bf16.msra.mxu1 %v8051_v11  ;;  %v8161_v10 = vcombine.low %v575_v62, %v583_v63  ;;  %v8163_v11 = vcombine.low %v576_v0, %v584_v1  ;;  %v687_v62 = vld [vmem:[#allocation2 + $0x1290] sm:$0xff]  ;;  %v688_v0 = vld [vmem:[#allocation2 + $0x1298] sm:$0xff] }
 0x177   :  { %5288 = vmatprep.subr.bf16.mxu0 %v8066_v12  ;;  %5460 = vmatprep.subr.bf16.mxu1 %v8068_v13  ;;  %v8178_v12 = vcombine.high %v591_v6, %v599_v7  ;;  %v8180_v13 = vcombine.high %v592_v8, %v600_v9  ;;  %v695_v63 = vld [vmem:[#allocation2 + $0x12d0] sm:$0xff]  ;;  %v696_v1 = vld [vmem:[#allocation2 + $0x12d8] sm:$0xff] }
 0x17a   :  { %5289 = vmatpush1.bf16.msra.mxu0 %v8065_v19  ;;  %5461 = vmatpush1.bf16.msra.mxu1 %v8067_v20  ;;  %v8177_v19 = vcombine.low %v591_v6, %v599_v7  ;;  %v8179_v20 = vcombine.low %v592_v8, %v600_v9  ;;  %v703_v6 = vld [vmem:[#allocation2 + $0x1310] sm:$0xff]  ;;  %v704_v8 = vld [vmem:[#allocation2 + $0x1318] sm:$0xff] }
 0x17b   :  { %5290 = vmatprep.subr.bf16.mxu0 %v8082_v21  ;;  %5462 = vmatprep.subr.bf16.mxu1 %v8084_v22  ;;  %v8194_v21 = vcombine.high %v607_v14, %v615_v16  ;;  %v8196_v22 = vcombine.high %v608_v17, %v616_v18  ;;  %v711_v7 = vld [vmem:[#allocation2 + $0x1350] sm:$0xff]  ;;  %v712_v9 = vld [vmem:[#allocation2 + $0x1358] sm:$0xff] }
 0x17e   :  { %5291 = vmatpush1.bf16.msra.mxu0 %v8081_v28  ;;  %5463 = vmatpush1.bf16.msra.mxu1 %v8083_v29  ;;  %v8193_v28 = vcombine.low %v607_v14, %v615_v16  ;;  %v8195_v29 = vcombine.low %v608_v17, %v616_v18  ;;  %v719_v14 = vld [vmem:[#allocation2 + $0x1390] sm:$0xff]  ;;  %v720_v17 = vld [vmem:[#allocation2 + $0x1398] sm:$0xff] }
 0x17f   :  { %5292 = vmatprep.subr.bf16.mxu0 %v8098_v31  ;;  %5464 = vmatprep.subr.bf16.mxu1 %v8100_v32  ;;  %v8210_v31 = vcombine.high %v623_v23, %v631_v24  ;;  %v8212_v32 = vcombine.high %v624_v26, %v632_v27  ;;  %v727_v16 = vld [vmem:[#allocation2 + $0x13d0] sm:$0xff]  ;;  %v728_v18 = vld [vmem:[#allocation2 + $0x13d8] sm:$0xff] }
 0x182   :  { %5293 = vmatpush1.bf16.msra.mxu0 %v8097_v37  ;;  %5465 = vmatpush1.bf16.msra.mxu1 %v8099_v38  ;;  %v8209_v37 = vcombine.low %v623_v23, %v631_v24  ;;  %v8211_v38 = vcombine.low %v624_v26, %v632_v27  ;;  %v735_v23 = vld [vmem:[#allocation2 + $0x1410] sm:$0xff]  ;;  %v736_v26 = vld [vmem:[#allocation2 + $0x1418] sm:$0xff] }
 0x183   :  { %5294 = vmatprep.subr.bf16.mxu0 %v8114_v40  ;;  %5466 = vmatprep.subr.bf16.mxu1 %v8116_v41  ;;  %v8226_v40 = vcombine.high %v639_v33, %v647_v34  ;;  %v8228_v41 = vcombine.high %v640_v35, %v648_v36  ;;  %v743_v24 = vld [vmem:[#allocation2 + $0x1450] sm:$0xff]  ;;  %v744_v27 = vld [vmem:[#allocation2 + $0x1458] sm:$0xff] }
 0x186   :  { %5295 = vmatpush1.bf16.msra.mxu0 %v8113_v47  ;;  %5467 = vmatpush1.bf16.msra.mxu1 %v8115_v48  ;;  %v8225_v47 = vcombine.low %v639_v33, %v647_v34  ;;  %v8227_v48 = vcombine.low %v640_v35, %v648_v36  ;;  %v751_v33 = vld [vmem:[#allocation2 + $0x1490] sm:$0xff]  ;;  %v752_v35 = vld [vmem:[#allocation2 + $0x1498] sm:$0xff] }
 0x187   :  { %5296 = vmatprep.subr.bf16.mxu0 %v8130_v50  ;;  %5468 = vmatprep.subr.bf16.mxu1 %v8132_v51  ;;  %v8242_v50 = vcombine.high %v655_v42, %v663_v43  ;;  %v8244_v51 = vcombine.high %v656_v45, %v664_v46  ;;  %v759_v34 = vld [vmem:[#allocation2 + $0x14d0] sm:$0xff]  ;;  %v760_v36 = vld [vmem:[#allocation2 + $0x14d8] sm:$0xff] }
 0x18a   :  { %5297 = vmatpush1.bf16.msra.mxu0 %v8129_v57  ;;  %5469 = vmatpush1.bf16.msra.mxu1 %v8131_v59  ;;  %v8241_v57 = vcombine.low %v655_v42, %v663_v43  ;;  %v8243_v59 = vcombine.low %v656_v45, %v664_v46  ;;  %v767_v42 = vld [vmem:[#allocation2 + $0x1510] sm:$0xff]  ;;  %v768_v45 = vld [vmem:[#allocation2 + $0x1518] sm:$0xff] }
 0x18b   :  { %5298 = vmatprep.subr.bf16.mxu0 %v8146_v60  ;;  %5470 = vmatprep.subr.bf16.mxu1 %v8148_v61  ;;  %v8258_v60 = vcombine.high %v671_v52, %v679_v53  ;;  %v8260_v61 = vcombine.high %v672_v55, %v680_v56  ;;  %v775_v43 = vld [vmem:[#allocation2 + $0x1550] sm:$0xff]  ;;  %v776_v46 = vld [vmem:[#allocation2 + $0x1558] sm:$0xff] }
 0x18e   :  { %5299 = vmatpush1.bf16.msra.mxu0 %v8145_v2  ;;  %5471 = vmatpush1.bf16.msra.mxu1 %v8147_v3  ;;  %v8257_v2 = vcombine.low %v671_v52, %v679_v53  ;;  %v8259_v3 = vcombine.low %v672_v55, %v680_v56  ;;  %v783_v52 = vld [vmem:[#allocation2 + $0x1590] sm:$0xff]  ;;  %v784_v55 = vld [vmem:[#allocation2 + $0x1598] sm:$0xff] }
 0x18f   :  { %5300 = vmatprep.subr.bf16.mxu0 %v8162_v4  ;;  %5472 = vmatprep.subr.bf16.mxu1 %v8164_v5  ;;  %v8274_v4 = vcombine.high %v687_v62, %v695_v63  ;;  %v8276_v5 = vcombine.high %v688_v0, %v696_v1  ;;  %v791_v53 = vld [vmem:[#allocation2 + $0x15d0] sm:$0xff]  ;;  %v792_v56 = vld [vmem:[#allocation2 + $0x15d8] sm:$0xff] }
 0x192   :  { %5301 = vmatpush1.bf16.msra.mxu0 %v8161_v10  ;;  %5473 = vmatpush1.bf16.msra.mxu1 %v8163_v11  ;;  %v8273_v10 = vcombine.low %v687_v62, %v695_v63  ;;  %v8275_v11 = vcombine.low %v688_v0, %v696_v1  ;;  %v799_v62 = vld [vmem:[#allocation2 + $0x1610] sm:$0xff]  ;;  %v800_v0 = vld [vmem:[#allocation2 + $0x1618] sm:$0xff] }
 0x193   :  { %5302 = vmatprep.subr.bf16.mxu0 %v8178_v12  ;;  %5474 = vmatprep.subr.bf16.mxu1 %v8180_v13  ;;  %v8290_v12 = vcombine.high %v703_v6, %v711_v7  ;;  %v8292_v13 = vcombine.high %v704_v8, %v712_v9  ;;  %v807_v63 = vld [vmem:[#allocation2 + $0x1650] sm:$0xff]  ;;  %v808_v1 = vld [vmem:[#allocation2 + $0x1658] sm:$0xff] }
 0x196   :  { %5303 = vmatpush1.bf16.msra.mxu0 %v8177_v19  ;;  %5475 = vmatpush1.bf16.msra.mxu1 %v8179_v20  ;;  %v8289_v19 = vcombine.low %v703_v6, %v711_v7  ;;  %v8291_v20 = vcombine.low %v704_v8, %v712_v9  ;;  %v815_v6 = vld [vmem:[#allocation2 + $0x1690] sm:$0xff]  ;;  %v816_v8 = vld [vmem:[#allocation2 + $0x1698] sm:$0xff] }
 0x197   :  { %5315 = vmatprep.subr.bf16.mxu0 %v8194_v21  ;;  %5487 = vmatprep.subr.bf16.mxu1 %v8196_v22  ;;  %v8306_v21 = vcombine.high %v719_v14, %v727_v16  ;;  %v8308_v22 = vcombine.high %v720_v17, %v728_v18  ;;  %v823_v7 = vld [vmem:[#allocation2 + $0x16d0] sm:$0xff]  ;;  %v824_v9 = vld [vmem:[#allocation2 + $0x16d8] sm:$0xff] }
 0x199   :  { %5305 = vmatmul.mubr.bf16.vlgmr.msra.gmra.mrb[4].mxu0 %v9268_v30  ;;  %5477 = vmatmul.mubr.bf16.vlgmr.msra.gmra.mrb[4].mxu1 %v9268_v30 }
 0x19a   :  { %5316 = vmatpush1.bf16.msra.mxu0 %v8193_v28  ;;  %5488 = vmatpush1.bf16.msra.mxu1 %v8195_v29  ;;  %v8305_v28 = vcombine.low %v719_v14, %v727_v16  ;;  %v8307_v29 = vcombine.low %v720_v17, %v728_v18  ;;  %v831_v14 = vld [vmem:[#allocation2 + $0x1710] sm:$0xff]  ;;  %v832_v17 = vld [vmem:[#allocation2 + $0x1718] sm:$0xff] }
 0x19b   :  { %5317 = vmatprep.subr.bf16.mxu0 %v8210_v31  ;;  %5489 = vmatprep.subr.bf16.mxu1 %v8212_v32  ;;  %v8322_v31 = vcombine.high %v735_v23, %v743_v24  ;;  %v8324_v32 = vcombine.high %v736_v26, %v744_v27  ;;  %v839_v16 = vld [vmem:[#allocation2 + $0x1750] sm:$0xff]  ;;  %v840_v18 = vld [vmem:[#allocation2 + $0x1758] sm:$0xff] }
 0x19c   :  { %5347 = vmatprep.mubr.bf16.mxu0 %v9270_v39  ;;  %5519 = vmatprep.mubr.bf16.mxu1 %v9270_v39 }
 0x19e   :  { %5318 = vmatpush1.bf16.msra.mxu0 %v8209_v37  ;;  %5490 = vmatpush1.bf16.msra.mxu1 %v8211_v38  ;;  %v8321_v37 = vcombine.low %v735_v23, %v743_v24  ;;  %v8323_v38 = vcombine.low %v736_v26, %v744_v27  ;;  %v847_v23 = vld [vmem:[#allocation2 + $0x1790] sm:$0xff]  ;;  %v848_v26 = vld [vmem:[#allocation2 + $0x1798] sm:$0xff] }
 0x19f   :  { %5319 = vmatprep.subr.bf16.mxu0 %v8226_v40  ;;  %5491 = vmatprep.subr.bf16.mxu1 %v8228_v41  ;;  %v8338_v40 = vcombine.high %v751_v33, %v759_v34  ;;  %v8340_v41 = vcombine.high %v752_v35, %v760_v36  ;;  %v855_v24 = vld [vmem:[#allocation2 + $0x17d0] sm:$0xff]  ;;  %v856_v27 = vld [vmem:[#allocation2 + $0x17d8] sm:$0xff] }
 0x1a2   :  { %5320 = vmatpush1.bf16.msra.mxu0 %v8225_v47  ;;  %5492 = vmatpush1.bf16.msra.mxu1 %v8227_v48  ;;  %v8337_v47 = vcombine.low %v751_v33, %v759_v34  ;;  %v8339_v48 = vcombine.low %v752_v35, %v760_v36  ;;  %v863_v33 = vld [vmem:[#allocation2 + $0x1810] sm:$0xff]  ;;  %v864_v35 = vld [vmem:[#allocation2 + $0x1818] sm:$0xff] }
 0x1a3   :  { %5321 = vmatprep.subr.bf16.mxu0 %v8242_v50  ;;  %5493 = vmatprep.subr.bf16.mxu1 %v8244_v51  ;;  %v8354_v50 = vcombine.high %v767_v42, %v775_v43  ;;  %v8356_v51 = vcombine.high %v768_v45, %v776_v46  ;;  %v871_v34 = vld [vmem:[#allocation2 + $0x1850] sm:$0xff]  ;;  %v872_v36 = vld [vmem:[#allocation2 + $0x1858] sm:$0xff] }
 0x1a6   :  { %5322 = vmatpush1.bf16.msra.mxu0 %v8241_v57  ;;  %5494 = vmatpush1.bf16.msra.mxu1 %v8243_v59  ;;  %v8353_v57 = vcombine.low %v767_v42, %v775_v43  ;;  %v8355_v59 = vcombine.low %v768_v45, %v776_v46  ;;  %v97_v42 = vld [vmem:[#allocation2 + $0x20] sm:$0xff]  ;;  %v8449_v45 = vcombine.low %v863_v33, %v871_v34  ;;  %v98_v46 = vld [vmem:[#allocation2 + $0x28] sm:$0xff] }
 0x1a7   :  { %5323 = vmatprep.subr.bf16.mxu0 %v8258_v60  ;;  %5495 = vmatprep.subr.bf16.mxu1 %v8260_v61  ;;  %v8370_v60 = vcombine.high %v783_v52, %v791_v53  ;;  %v8372_v61 = vcombine.high %v784_v55, %v792_v56  ;;  %v105_v43 = vld [vmem:[#allocation2 + $0x60] sm:$0xff] }
 0x1aa   :  { %5324 = vmatpush1.bf16.msra.mxu0 %v8257_v2  ;;  %5496 = vmatpush1.bf16.msra.mxu1 %v8259_v3  ;;  %v8369_v2 = vcombine.low %v783_v52, %v791_v53  ;;  %v8371_v3 = vcombine.low %v784_v55, %v792_v56  ;;  %v881_v52 = vlaneseq  ;;  %v113_v53 = vld [vmem:[#allocation2 + $0xa0] sm:$0xff]  ;;  %v114_v56 = vld [vmem:[#allocation2 + $0xa8] sm:$0xff] }
 0x1ab   :  { %5325 = vmatprep.subr.bf16.mxu0 %v8274_v4  ;;  %5497 = vmatprep.subr.bf16.mxu1 %v8276_v5  ;;  %v8386_v4 = vcombine.high %v799_v62, %v807_v63  ;;  %v8388_v5 = vcombine.high %v800_v0, %v808_v1  ;;  %v121_v55 = vld [vmem:[#allocation2 + $0xe0] sm:$0xff] }
 0x1ae   :  { %5326 = vmatpush1.bf16.msra.mxu0 %v8273_v10  ;;  %5498 = vmatpush1.bf16.msra.mxu1 %v8275_v11  ;;  %v8385_v10 = vcombine.low %v799_v62, %v807_v63  ;;  %v8387_v11 = vcombine.low %v800_v0, %v808_v1  ;;  %v7702_v62 = vcombine.high %v113_v53, %v121_v55  ;;  %v129_v0 = vld [vmem:[#allocation2 + $0x120] sm:$0xff] }
 0x1af   :  { %5327 = vmatprep.subr.bf16.mxu0 %v8290_v12  ;;  %5499 = vmatprep.subr.bf16.mxu1 %v8292_v13  ;;  %v8402_v12 = vcombine.high %v815_v6, %v823_v7  ;;  %v8404_v13 = vcombine.high %v816_v8, %v824_v9  ;;  %v137_v1 = vld [vmem:[#allocation2 + $0x160] sm:$0xff] }
 0x1b2   :  { %5328 = vmatpush1.bf16.msra.mxu0 %v8289_v19  ;;  %5500 = vmatpush1.bf16.msra.mxu1 %v8291_v20  ;;  %v8401_v19 = vcombine.low %v815_v6, %v823_v7  ;;  %v8403_v20 = vcombine.low %v816_v8, %v824_v9  ;;  %v877_v6 = vld [vmem:[#allocation4] sm:$0xff] }
 0x1b3   :  { %5329 = vmatprep.subr.bf16.mxu0 %v8306_v21  ;;  %5501 = vmatprep.subr.bf16.mxu1 %v8308_v22  ;;  %v8418_v21 = vcombine.high %v831_v14, %v839_v16  ;;  %v8420_v22 = vcombine.high %v832_v17, %v840_v18 }
 0x1b6   :  { %5330 = vmatpush1.bf16.msra.mxu0 %v8305_v28  ;;  %5502 = vmatpush1.bf16.msra.mxu1 %v8307_v29  ;;  %v8417_v28 = vcombine.low %v831_v14, %v839_v16  ;;  %v8419_v29 = vcombine.low %v832_v17, %v840_v18  ;;  %v153_v14 = vld [vmem:[#allocation2 + $0x1e0] sm:$0xff]  ;;  %v146_v17 = vld [vmem:[#allocation2 + $0x1a8] sm:$0xff] }
 0x1b7   :  { %5331 = vmatprep.subr.bf16.mxu0 %v8322_v31  ;;  %5503 = vmatprep.subr.bf16.mxu1 %v8324_v32  ;;  %v8434_v31 = vcombine.high %v847_v23, %v855_v24  ;;  %v8436_v32 = vcombine.high %v848_v26, %v856_v27  ;;  %v154_v18 = vld [vmem:[#allocation2 + $0x1e8] sm:$0xff] }
 0x1ba   :  { %5332 = vmatpush1.bf16.msra.mxu0 %v8321_v37  ;;  %5504 = vmatpush1.bf16.msra.mxu1 %v8323_v38  ;;  %v8433_v37 = vcombine.low %v847_v23, %v855_v24  ;;  %v8435_v38 = vcombine.low %v848_v26, %v856_v27  ;;  %v7736_v27 = vcombine.high %v146_v17, %v154_v18 }
 0x1bb   :  { %5333 = vmatprep.subr.bf16.mxu0 %v8338_v40  ;;  %5505 = vmatprep.subr.bf16.mxu1 %v8340_v41  ;;  %v8450_v40 = vcombine.high %v863_v33, %v871_v34  ;;  %v8452_v41 = vcombine.high %v864_v35, %v872_v36  ;;  %v162_v34 = vld [vmem:[#allocation2 + $0x228] sm:$0xff] }
 0x1be   :  { %5334 = vmatpush1.bf16.msra.mxu0 %v8337_v47  ;;  %5506 = vmatpush1.bf16.msra.mxu1 %v8339_v48  ;;  %v106_v47 = vld [vmem:[#allocation2 + $0x68] sm:$0xff]  ;;  %v8451_v48 = vcombine.low %v864_v35, %v872_v36 }
 0x1bf   :  { %5335 = vmatprep.subr.bf16.mxu0 %v8354_v50  ;;  %5507 = vmatprep.subr.bf16.mxu1 %v8356_v51  ;;  %v7686_v50 = vcombine.high %v97_v42, %v105_v43  ;;  %v7688_v51 = vcombine.high %v98_v46, %v106_v47  ;;  %v170_v35 = vld [vmem:[#allocation2 + $0x268] sm:$0xff] }
 0x1c2   :  { %5336 = vmatpush1.bf16.msra.mxu0 %v8353_v57  ;;  %5508 = vmatpush1.bf16.msra.mxu1 %v8355_v59  ;;  %v122_v57 = vld [vmem:[#allocation2 + $0xe8] sm:$0xff]  ;;  %v9314_v59 = vshrl.u32 %v881_v52, 7 }
 0x1c3   :  { %5337 = vmatprep.subr.bf16.mxu0 %v8370_v60  ;;  %5509 = vmatprep.subr.bf16.mxu1 %v8372_v61  ;;  %v7685_v60 = vcombine.low %v97_v42, %v105_v43  ;;  %v7687_v61 = vcombine.low %v98_v46, %v106_v47  ;;  %v7704_v63 = vcombine.high %v114_v56, %v122_v57 }
 0x1c4   :  { %v891_v7 = vsub.s32 2, %v9314_v59  ;;  %v887_v8 = vsub.s32 1, %v9314_v59  ;;  %v7703_v9 = vcombine.low %v114_v56, %v122_v57  ;;  %v7735_v42 = vcombine.low %v146_v17, %v154_v18  ;;  %v177_v56 = vld [vmem:[#allocation2 + $0x2a0] sm:$0xff] }
 0x1c5   :  { %v185_v57 = vld [vmem:[#allocation2 + $0x2e0] sm:$0xff] }
 0x1c6   :  { %5338 = vmatpush1.bf16.msra.mxu0 %v8369_v2  ;;  %5510 = vmatpush1.bf16.msra.mxu1 %v8371_v3  ;;  %v130_v2 = vld [vmem:[#allocation2 + $0x128] sm:$0xff]  ;;  %v193_v18 = vld [vmem:[#allocation2 + $0x320] sm:$0xff] }
 0x1c7   :  { %5339 = vmatprep.subr.bf16.mxu0 %v8386_v4  ;;  %5511 = vmatprep.subr.bf16.mxu1 %v8388_v5  ;;  %v138_v3 = vld [vmem:[#allocation2 + $0x168] sm:$0xff]  ;;  %v883_v4 = vsub.s32 0, %v9314_v59  ;;  %v7701_v5 = vcombine.low %v113_v53, %v121_v55  ;;  %v7752_v55 = vcombine.high %v162_v34, %v170_v35 }
 0x1c9   :  { %v884_v16 = vrot.slane %v877_v6, %v883_v4 }
 0x1ca   :  { %5340 = vmatpush1.bf16.msra.mxu0 %v8385_v10  ;;  %5512 = vmatpush1.bf16.msra.mxu1 %v8387_v11  ;;  %v7718_v10 = vcombine.high %v129_v0, %v137_v1  ;;  %v895_v11 = vsub.s32 3, %v9314_v59 }
 0x1cb   :  { %5341 = vmatprep.subr.bf16.mxu0 %v8402_v12  ;;  %5513 = vmatprep.subr.bf16.mxu1 %v8404_v13  ;;  %v7720_v12 = vcombine.high %v130_v2, %v138_v3  ;;  %v145_v13 = vld [vmem:[#allocation2 + $0x1a0] sm:$0xff] }
 0x1cc   :  { %v896_v23 = vrot.slane %v877_v6, %v895_v11  ;;  %v7734_v24 = vcombine.high %v145_v13, %v153_v14 }
 0x1ce   :  { %5342 = vmatpush1.bf16.msra.mxu0 %v8401_v19  ;;  %5514 = vmatpush1.bf16.msra.mxu1 %v8403_v20  ;;  %v7717_v19 = vcombine.low %v129_v0, %v137_v1  ;;  %v892_v20 = vrot.slane %v877_v6, %v891_v7  ;;  %v178_v0 = vld [vmem:[#allocation2 + $0x2a8] sm:$0xff] }
 0x1cf   :  { %5343 = vmatprep.subr.bf16.mxu0 %v8418_v21  ;;  %5515 = vmatprep.subr.bf16.mxu1 %v8420_v22  ;;  %v888_v21 = vrot.slane %v877_v6, %v887_v8  ;;  %v7719_v22 = vcombine.low %v130_v2, %v138_v3  ;;  %v186_v1 = vld [vmem:[#allocation2 + $0x2e8] sm:$0xff] }
 0x1d0   :  { %v7768_v17 = vcombine.high %v178_v0, %v186_v1 }
 0x1d2   :  { %5344 = vmatpush1.bf16.msra.mxu0 %v8417_v28  ;;  %5516 = vmatpush1.bf16.msra.mxu1 %v8419_v29  ;;  %v161_v28 = vld [vmem:[#allocation2 + $0x220] sm:$0xff] }
 0x1d3   :  { %5345 = vmatprep.subr.bf16.mxu0 %v8434_v31  ;;  %5517 = vmatprep.subr.bf16.mxu1 %v8436_v32  ;;  %v169_v29 = vld [vmem:[#allocation2 + $0x260] sm:$0xff] }
 0x1d4   :  { %v7749_v53 = vcombine.low %v161_v28, %v169_v29 }
 0x1d6   :  { %5346 = vmatpush1.bf16.msra.mxu0 %v8433_v37  ;;  %5518 = vmatpush1.bf16.msra.mxu1 %v8435_v38 }
 0x1d7   :  { %5358 = vmatprep.subr.bf16.mxu0 %v8450_v40  ;;  %5530 = vmatprep.subr.bf16.mxu1 %v8452_v41  ;;  %v7733_v41 = vcombine.low %v145_v13, %v153_v14  ;;  %v7766_v13 = vcombine.high %v177_v56, %v185_v57 }
 0x1d9   :  { %5348 = vmatmul.mubr.bf16.vlgmr.msra.gmra.mrb[4].mxu0 %v9282_v44  ;;  %5520 = vmatmul.mubr.bf16.vlgmr.msra.gmra.mrb[4].mxu1 %v9282_v44 }
 0x1da   :  { %5359 = vmatpush1.bf16.msra.mxu0 %v8449_v45  ;;  %5531 = vmatpush1.bf16.msra.mxu1 %v8451_v48  ;;  %v7750_v48 = vcombine.high %v161_v28, %v169_v29  ;;  %v209_v28 = vld [vmem:[#allocation2 + $0x3a0] sm:$0xff] }
 0x1db   :  { %5390 = vmatprep.mubr.bf16.mxu0 %v9140_v49  ;;  %5562 = vmatprep.mubr.bf16.mxu1 %v9140_v49  ;;  %v217_v29 = vld [vmem:[#allocation2 + $0x3e0] sm:$0xff] }
 0x1dc   :  { %5573 = vmatprep.subr.bf16.mxu0 %v7686_v50  ;;  %5745 = vmatprep.subr.bf16.mxu1 %v7688_v51 }
 0x1e5   :  { %8463 = vmatmul.mubr.msk.bf16.vlgmr.msra.gmra.mrb[4].mxu0 %vm4881_vm0, %v9294_v54  ;;  %8464 = vmatmul.mubr.msk.bf16.vlgmr.msra.gmra.mrb[4].mxu1 %vm4881_vm0, %v9294_v54 }
 0x1e6   :  { %5574 = vmatpush1.bf16.msra.mxu0 %v7685_v60  ;;  %5746 = vmatpush1.bf16.msra.mxu1 %v7687_v61 }
 0x1e7   :  { %5575 = vmatprep.subr.bf16.mxu0 %v7702_v62  ;;  %5747 = vmatprep.subr.bf16.mxu1 %v7704_v63  ;;  %v7751_v63 = vcombine.low %v162_v34, %v170_v35  ;;  %v7798_v35 = vcombine.high %v209_v28, %v217_v29 }
 0x1e8   :  { %5605 = vmatprep.mubr.bf16.mxu0 %v9232_v58  ;;  %5777 = vmatprep.mubr.bf16.mxu1 %v9232_v58 }
 0x1ea   :  { %5576 = vmatpush1.bf16.msra.mxu0 %v7701_v5  ;;  %5748 = vmatpush1.bf16.msra.mxu1 %v7703_v9 }
 0x1eb   :  { %5577 = vmatprep.subr.bf16.mxu0 %v7718_v10  ;;  %5749 = vmatprep.subr.bf16.mxu1 %v7720_v12 }
 0x1ec   :  { %v5048_v26 = vpop.f32.mrb[0].mxu0  ;;  %v5220_v32 = vpop.f32.mrb[0].mxu1 }
 0x1ed   :  { %v8774_v31 = vadd.f32 %v5048_v26, %v884_v16  ;;  %v5050_v33 = vpop.f32.mrb[1].mxu0  ;;  %v8778_v36 = vadd.f32 %v5220_v32, %v892_v20  ;;  %v5222_v38 = vpop.f32.mrb[1].mxu1  ;;  %v218_v32 = vld [vmem:[#allocation2 + $0x3e8] sm:$0xff] }
 0x1ee   :  { %5578 = vmatpush1.bf16.msra.mxu0 %v7717_v19  ;;  %v8775_v37 = vadd.f32 %v5050_v33, %v888_v21  ;;  %v5052_v40 = vpop.f32.mrb[2].mxu0  ;;  %5750 = vmatpush1.bf16.msra.mxu1 %v7719_v22  ;;  %v8779_v43 = vadd.f32 %v5222_v38, %v896_v23  ;;  %v5224_v46 = vpop.f32.mrb[2].mxu1  ;;  %v201_v19 = vld [vmem:[#allocation2 + $0x360] sm:$0xff]  ;;  %v202_v22 = vld [vmem:[#allocation2 + $0x368] sm:$0xff] }
 0x1ef   :  { %v8776_v45 = vadd.f32 %v5052_v40, %v884_v16  ;;  %v5054_v47 = vpop.f32.mrb[3].mxu0  ;;  %5579 = vmatprep.subr.bf16.mxu0 %v7734_v24  ;;  %v8780_v50 = vadd.f32 %v5224_v46, %v892_v20  ;;  %v5226_v52 = vpop.f32.mrb[3].mxu1  ;;  %5751 = vmatprep.subr.bf16.mxu1 %v7736_v27  ;;  %v6261_v60 = vmax.f32 %v8774_v31, 0.0  ;;  %v6263_v2 = vmax.f32 %v8778_v36, 0.0  ;;  %v210_v31 = vld [vmem:[#allocation2 + $0x3a8] sm:$0xff]  ;;  %v233_v38 = vld [vmem:[#allocation2 + $0x460] sm:$0xff] }
 0x1f0   :  { %v8777_v51 = vadd.f32 %v5054_v47, %v888_v21  ;;  %v8781_v62 = vadd.f32 %v5226_v52, %v896_v23  ;;  %v6262_v3 = vmax.f32 %v8775_v37, 0.0  ;;  %v6264_v9 = vmax.f32 %v8779_v43, 0.0  ;;  %v194_v21 = vld [vmem:[#allocation2 + $0x328] sm:$0xff]  ;;  %v225_v37 = vld [vmem:[#allocation2 + $0x420] sm:$0xff] }
 0x1f1   :  { %v6277_v61 = vmax.f32 %v8776_v45, 0.0  ;;  %v6279_v5 = vmax.f32 %v8780_v50, 0.0  ;;  %v7765_v23 = vcombine.low %v177_v56, %v185_v57  ;;  %v7767_v24 = vcombine.low %v178_v0, %v186_v1  ;;  %v226_v40 = vld [vmem:[#allocation2 + $0x428] sm:$0xff]  ;;  %v241_v47 = vld [vmem:[#allocation2 + $0x4a0] sm:$0xff] }
 0x1f2   :  { %v6278_v6 = vmax.f32 %v8777_v51, 0.0  ;;  %5580 = vmatpush1.bf16.msra.mxu0 %v7733_v41  ;;  %v6280_v12 = vmax.f32 %v8781_v62, 0.0  ;;  %5752 = vmatpush1.bf16.msra.mxu1 %v7735_v42  ;;  %v7782_v26 = vcombine.high %v193_v18, %v201_v19  ;;  %v7784_v27 = vcombine.high %v194_v21, %v202_v22  ;;  %v234_v41 = vld [vmem:[#allocation2 + $0x468] sm:$0xff]  ;;  %v257_v57 = vld [vmem:[#allocation2 + $0x520] sm:$0xff] }
 0x1f3   :  { %v9334_v10 = vpack.c.bf16 %v6277_v61, %v6261_v60  ;;  %5581 = vmatprep.subr.bf16.mxu0 %v7750_v48  ;;  %v9336_v14 = vpack.c.bf16 %v6279_v5, %v6263_v2  ;;  %5753 = vmatprep.subr.bf16.mxu1 %v7752_v55  ;;  %v7781_v33 = vcombine.low %v193_v18, %v201_v19  ;;  %v249_v48 = vld [vmem:[#allocation2 + $0x4e0] sm:$0xff]  ;;  %v242_v50 = vld [vmem:[#allocation2 + $0x4a8] sm:$0xff] }
 0x1f4   :  { %v9338_v16 = vpack.c.bf16 %v6278_v6, %v6262_v3  ;;  %v9340_v20 = vpack.c.bf16 %v6280_v12, %v6264_v9  ;;  %v7783_v34 = vcombine.low %v194_v21, %v202_v22  ;;  %v7800_v36 = vcombine.high %v210_v31, %v218_v32  ;;  %v250_v51 = vld [vmem:[#allocation2 + $0x4e8] sm:$0xff]  ;;  %v265_v60 = vld [vmem:[#allocation2 + $0x560] sm:$0xff] }
 0x1f5   :  { %v7797_v42 = vcombine.low %v209_v28, %v217_v29  ;;  %v7799_v43 = vcombine.low %v210_v31, %v218_v32  ;;  %v7814_v45 = vcombine.high %v225_v37, %v233_v38  ;;  %v7816_v46 = vcombine.high %v226_v40, %v234_v41  ;;  %v258_v61 = vld [vmem:[#allocation2 + $0x528] sm:$0xff]  ;;  %v273_v3 = vld [vmem:[#allocation2 + $0x5a0] sm:$0xff] }
 0x1f6   :  { %5582 = vmatpush1.bf16.msra.mxu0 %v7749_v53  ;;  %5754 = vmatpush1.bf16.msra.mxu1 %v7751_v63  ;;  %v7813_v52 = vcombine.low %v225_v37, %v233_v38  ;;  %v7815_v53 = vcombine.low %v226_v40, %v234_v41  ;;  %v7830_v55 = vcombine.high %v241_v47, %v249_v48  ;;  %v266_v62 = vld [vmem:[#allocation2 + $0x568] sm:$0xff]  ;;  %v281_v5 = vld [vmem:[#allocation2 + $0x5e0] sm:$0xff] }
 0x1f7   :  { %5583 = vmatprep.subr.bf16.mxu0 %v7766_v13  ;;  %5755 = vmatprep.subr.bf16.mxu1 %v7768_v17  ;;  %v7832_v56 = vcombine.high %v242_v50, %v250_v51  ;;  %v7829_v63 = vcombine.low %v241_v47, %v249_v48  ;;  %v7831_v0 = vcombine.low %v242_v50, %v250_v51  ;;  %v274_v6 = vld [vmem:[#allocation2 + $0x5a8] sm:$0xff]  ;;  %v289_v19 = vld [vmem:[#allocation2 + $0x620] sm:$0xff] }
 0x1f8   :  { %v7846_v1 = vcombine.high %v257_v57, %v265_v60  ;;  %v7848_v2 = vcombine.high %v258_v61, %v266_v62  ;;  %v282_v9 = vld [vmem:[#allocation2 + $0x5e8] sm:$0xff]  ;;  %v7845_v12 = vcombine.low %v257_v57, %v265_v60  ;;  %v7847_v13 = vcombine.low %v258_v61, %v266_v62  ;;  %v297_v21 = vld [vmem:[#allocation2 + $0x660] sm:$0xff] }
 0x1f9   :  { %v7862_v17 = vcombine.high %v273_v3, %v281_v5  ;;  %v7864_v18 = vcombine.high %v274_v6, %v282_v9  ;;  %v290_v22 = vld [vmem:[#allocation2 + $0x628] sm:$0xff]  ;;  %v305_v29 = vld [vmem:[#allocation2 + $0x6a0] sm:$0xff] }
 0x1fa   :  { %5584 = vmatpush1.bf16.msra.mxu0 %v7765_v23  ;;  %5756 = vmatpush1.bf16.msra.mxu1 %v7767_v24  ;;  %v298_v23 = vld [vmem:[#allocation2 + $0x668] sm:$0xff]  ;;  %v7861_v24 = vcombine.low %v273_v3, %v281_v5  ;;  %v313_v31 = vld [vmem:[#allocation2 + $0x6e0] sm:$0xff] }
 0x1fb   :  { %5585 = vmatprep.subr.bf16.mxu0 %v7782_v26  ;;  %5757 = vmatprep.subr.bf16.mxu1 %v7784_v27  ;;  %v7863_v26 = vcombine.low %v274_v6, %v282_v9  ;;  %v7878_v27 = vcombine.high %v289_v19, %v297_v21  ;;  %v7880_v28 = vcombine.high %v290_v22, %v298_v23  ;;  %v306_v32 = vld [vmem:[#allocation2 + $0x6a8] sm:$0xff]  ;;  %v321_v38 = vld [vmem:[#allocation2 + $0x720] sm:$0xff] }
 0x1fc   :  { %v329_v40 = vld [vmem:[#allocation2 + $0x760] sm:$0xff]  ;;  %v322_v41 = vld [vmem:[#allocation2 + $0x728] sm:$0xff] }
 0x1fd   :  { %v337_v48 = vld [vmem:[#allocation2 + $0x7a0] sm:$0xff]  ;;  %v338_v51 = vld [vmem:[#allocation2 + $0x7a8] sm:$0xff] }
 0x1fe   :  { %5586 = vmatpush1.bf16.msra.mxu0 %v7781_v33  ;;  %5758 = vmatpush1.bf16.msra.mxu1 %v7783_v34  ;;  %v314_v33 = vld [vmem:[#allocation2 + $0x6e8] sm:$0xff]  ;;  %v7877_v34 = vcombine.low %v289_v19, %v297_v21  ;;  %v345_v50 = vld [vmem:[#allocation2 + $0x7e0] sm:$0xff] }
 0x1ff   :  { %5587 = vmatprep.subr.bf16.mxu0 %v7798_v35  ;;  %5759 = vmatprep.subr.bf16.mxu1 %v7800_v36  ;;  %v7879_v35 = vcombine.low %v290_v22, %v298_v23  ;;  %v7894_v36 = vcombine.high %v305_v29, %v313_v31  ;;  %v7896_v37 = vcombine.high %v306_v32, %v314_v33  ;;  %v353_v60 = vld [vmem:[#allocation2 + $0x820] sm:$0xff]  ;;  %v354_v62 = vld [vmem:[#allocation2 + $0x828] sm:$0xff] }
 0x200   :  { %v361_v61 = vld [vmem:[#allocation2 + $0x860] sm:$0xff]  ;;  %v370_v9 = vld [vmem:[#allocation2 + $0x8a8] sm:$0xff] }
 0x201   :  { %v369_v5 = vld [vmem:[#allocation2 + $0x8a0] sm:$0xff]  ;;  %v386_v23 = vld [vmem:[#allocation2 + $0x928] sm:$0xff] }
 0x202   :  { %5588 = vmatpush1.bf16.msra.mxu0 %v7797_v42  ;;  %5760 = vmatpush1.bf16.msra.mxu1 %v7799_v43  ;;  %v330_v42 = vld [vmem:[#allocation2 + $0x768] sm:$0xff]  ;;  %v7893_v43 = vcombine.low %v305_v29, %v313_v31  ;;  %v377_v6 = vld [vmem:[#allocation2 + $0x8e0] sm:$0xff] }
 0x203   :  { %5589 = vmatprep.subr.bf16.mxu0 %v7814_v45  ;;  %5761 = vmatprep.subr.bf16.mxu1 %v7816_v46  ;;  %v7895_v45 = vcombine.low %v306_v32, %v314_v33  ;;  %v7910_v46 = vcombine.high %v321_v38, %v329_v40  ;;  %v7912_v47 = vcombine.high %v322_v41, %v330_v42  ;;  %v385_v21 = vld [vmem:[#allocation2 + $0x920] sm:$0xff]  ;;  %v402_v33 = vld [vmem:[#allocation2 + $0x9a8] sm:$0xff] }
 0x204   :  { %v393_v22 = vld [vmem:[#allocation2 + $0x960] sm:$0xff] }
 0x205   :  { %v401_v31 = vld [vmem:[#allocation2 + $0x9a0] sm:$0xff] }
 0x206   :  { %5590 = vmatpush1.bf16.msra.mxu0 %v7813_v52  ;;  %5762 = vmatpush1.bf16.msra.mxu1 %v7815_v53  ;;  %v346_v52 = vld [vmem:[#allocation2 + $0x7e8] sm:$0xff]  ;;  %v7909_v53 = vcombine.low %v321_v38, %v329_v40  ;;  %v409_v32 = vld [vmem:[#allocation2 + $0x9e0] sm:$0xff] }
 0x207   :  { %5591 = vmatprep.subr.bf16.mxu0 %v7830_v55  ;;  %5763 = vmatprep.subr.bf16.mxu1 %v7832_v56  ;;  %v7911_v55 = vcombine.low %v322_v41, %v330_v42  ;;  %v7926_v56 = vcombine.high %v337_v48, %v345_v50  ;;  %v7928_v57 = vcombine.high %v338_v51, %v346_v52  ;;  %v417_v40 = vld [vmem:[#allocation2 + $0xa20] sm:$0xff]  ;;  %v418_v42 = vld [vmem:[#allocation2 + $0xa28] sm:$0xff] }
 0x208   :  { %v425_v41 = vld [vmem:[#allocation2 + $0xa60] sm:$0xff] }
 0x20a   :  { %5592 = vmatpush1.bf16.msra.mxu0 %v7829_v63  ;;  %5764 = vmatpush1.bf16.msra.mxu1 %v7831_v0  ;;  %v362_v63 = vld [vmem:[#allocation2 + $0x868] sm:$0xff]  ;;  %v7925_v0 = vcombine.low %v337_v48, %v345_v50  ;;  %v433_v50 = vld [vmem:[#allocation2 + $0xaa0] sm:$0xff] }
 0x20b   :  { %5593 = vmatprep.subr.bf16.mxu0 %v7846_v1  ;;  %5765 = vmatprep.subr.bf16.mxu1 %v7848_v2  ;;  %v7927_v1 = vcombine.low %v338_v51, %v346_v52  ;;  %v7942_v2 = vcombine.high %v353_v60, %v361_v61  ;;  %v7944_v3 = vcombine.high %v354_v62, %v362_v63  ;;  %v441_v51 = vld [vmem:[#allocation2 + $0xae0] sm:$0xff]  ;;  %v434_v52 = vld [vmem:[#allocation2 + $0xaa8] sm:$0xff] }
 0x20e   :  { %5594 = vmatpush1.bf16.msra.mxu0 %v7845_v12  ;;  %5766 = vmatpush1.bf16.msra.mxu1 %v7847_v13  ;;  %v378_v12 = vld [vmem:[#allocation2 + $0x8e8] sm:$0xff]  ;;  %v7941_v13 = vcombine.low %v353_v60, %v361_v61  ;;  %v449_v61 = vld [vmem:[#allocation2 + $0xb20] sm:$0xff] }
 0x20f   :  { %5595 = vmatprep.subr.bf16.mxu0 %v7862_v17  ;;  %5767 = vmatprep.subr.bf16.mxu1 %v7864_v18  ;;  %v7943_v17 = vcombine.low %v354_v62, %v362_v63  ;;  %v7958_v18 = vcombine.high %v369_v5, %v377_v6  ;;  %v7960_v19 = vcombine.high %v370_v9, %v378_v12  ;;  %v457_v62 = vld [vmem:[#allocation2 + $0xb60] sm:$0xff]  ;;  %v450_v63 = vld [vmem:[#allocation2 + $0xb28] sm:$0xff] }
 0x212   :  { %5596 = vmatpush1.bf16.msra.mxu0 %v7861_v24  ;;  %5768 = vmatpush1.bf16.msra.mxu1 %v7863_v26  ;;  %v394_v24 = vld [vmem:[#allocation2 + $0x968] sm:$0xff]  ;;  %v7957_v26 = vcombine.low %v369_v5, %v377_v6  ;;  %v465_v6 = vld [vmem:[#allocation2 + $0xba0] sm:$0xff] }
 0x213   :  { %5597 = vmatprep.subr.bf16.mxu0 %v7878_v27  ;;  %5769 = vmatprep.subr.bf16.mxu1 %v7880_v28  ;;  %v7959_v27 = vcombine.low %v370_v9, %v378_v12  ;;  %v7974_v28 = vcombine.high %v385_v21, %v393_v22  ;;  %v7976_v29 = vcombine.high %v386_v23, %v394_v24  ;;  %v473_v9 = vld [vmem:[#allocation2 + $0xbe0] sm:$0xff]  ;;  %v466_v12 = vld [vmem:[#allocation2 + $0xba8] sm:$0xff] }
 0x216   :  { %5598 = vmatpush1.bf16.msra.mxu0 %v7877_v34  ;;  %5770 = vmatpush1.bf16.msra.mxu1 %v7879_v35  ;;  %v410_v34 = vld [vmem:[#allocation2 + $0x9e8] sm:$0xff]  ;;  %v7973_v35 = vcombine.low %v385_v21, %v393_v22  ;;  %v481_v22 = vld [vmem:[#allocation2 + $0xc20] sm:$0xff] }
 0x217   :  { %5599 = vmatprep.subr.bf16.mxu0 %v7894_v36  ;;  %5771 = vmatprep.subr.bf16.mxu1 %v7896_v37  ;;  %v7975_v36 = vcombine.low %v386_v23, %v394_v24  ;;  %v7990_v37 = vcombine.high %v401_v31, %v409_v32  ;;  %v7992_v38 = vcombine.high %v402_v33, %v410_v34  ;;  %v489_v23 = vld [vmem:[#allocation2 + $0xc60] sm:$0xff]  ;;  %v482_v24 = vld [vmem:[#allocation2 + $0xc28] sm:$0xff] }
 0x21a   :  { %5600 = vmatpush1.bf16.msra.mxu0 %v7893_v43  ;;  %5772 = vmatpush1.bf16.msra.mxu1 %v7895_v45  ;;  %v426_v43 = vld [vmem:[#allocation2 + $0xa68] sm:$0xff]  ;;  %v7989_v45 = vcombine.low %v401_v31, %v409_v32  ;;  %v497_v32 = vld [vmem:[#allocation2 + $0xca0] sm:$0xff] }
 0x21b   :  { %5601 = vmatprep.subr.bf16.mxu0 %v7910_v46  ;;  %5773 = vmatprep.subr.bf16.mxu1 %v7912_v47  ;;  %v7991_v46 = vcombine.low %v402_v33, %v410_v34  ;;  %v8006_v47 = vcombine.high %v417_v40, %v425_v41  ;;  %v8008_v48 = vcombine.high %v418_v42, %v426_v43  ;;  %v505_v33 = vld [vmem:[#allocation2 + $0xce0] sm:$0xff]  ;;  %v498_v34 = vld [vmem:[#allocation2 + $0xca8] sm:$0xff] }
 0x21e   :  { %5602 = vmatpush1.bf16.msra.mxu0 %v7909_v53  ;;  %5774 = vmatpush1.bf16.msra.mxu1 %v7911_v55  ;;  %v442_v53 = vld [vmem:[#allocation2 + $0xae8] sm:$0xff]  ;;  %v8005_v55 = vcombine.low %v417_v40, %v425_v41  ;;  %v513_v41 = vld [vmem:[#allocation2 + $0xd20] sm:$0xff] }
 0x21f   :  { %5603 = vmatprep.subr.bf16.mxu0 %v7926_v56  ;;  %5775 = vmatprep.subr.bf16.mxu1 %v7928_v57  ;;  %v8007_v56 = vcombine.low %v418_v42, %v426_v43  ;;  %v8022_v57 = vcombine.high %v433_v50, %v441_v51  ;;  %v8024_v60 = vcombine.high %v434_v52, %v442_v53  ;;  %v521_v42 = vld [vmem:[#allocation2 + $0xd60] sm:$0xff]  ;;  %v514_v43 = vld [vmem:[#allocation2 + $0xd28] sm:$0xff] }
 0x222   :  { %5604 = vmatpush1.bf16.msra.mxu0 %v7925_v0  ;;  %5776 = vmatpush1.bf16.msra.mxu1 %v7927_v1  ;;  %v458_v0 = vld [vmem:[#allocation2 + $0xb68] sm:$0xff]  ;;  %v8021_v1 = vcombine.low %v433_v50, %v441_v51  ;;  %v529_v51 = vld [vmem:[#allocation2 + $0xda0] sm:$0xff] }
 0x223   :  { %5616 = vmatprep.subr.bf16.mxu0 %v7942_v2  ;;  %5788 = vmatprep.subr.bf16.mxu1 %v7944_v3  ;;  %v8023_v2 = vcombine.low %v434_v52, %v442_v53  ;;  %v8038_v3 = vcombine.high %v449_v61, %v457_v62  ;;  %v8040_v5 = vcombine.high %v450_v63, %v458_v0  ;;  %v537_v52 = vld [vmem:[#allocation2 + $0xde0] sm:$0xff]  ;;  %v530_v53 = vld [vmem:[#allocation2 + $0xda8] sm:$0xff] }
 0x225   :  { %5606 = vmatmul.mubr.bf16.vlgmr.msra.gmra.mrb[8].mxu0 %v9242_v15  ;;  %5778 = vmatmul.mubr.bf16.vlgmr.msra.gmra.mrb[8].mxu1 %v9242_v15 }
 0x226   :  { %5617 = vmatpush1.bf16.msra.mxu0 %v7941_v13  ;;  %5789 = vmatpush1.bf16.msra.mxu1 %v7943_v17  ;;  %v474_v13 = vld [vmem:[#allocation2 + $0xbe8] sm:$0xff]  ;;  %v8037_v17 = vcombine.low %v449_v61, %v457_v62  ;;  %v545_v62 = vld [vmem:[#allocation2 + $0xe20] sm:$0xff] }
 0x227   :  { %5618 = vmatprep.subr.bf16.mxu0 %v7958_v18  ;;  %5790 = vmatprep.subr.bf16.mxu1 %v7960_v19  ;;  %v8039_v18 = vcombine.low %v450_v63, %v458_v0  ;;  %v8054_v19 = vcombine.high %v465_v6, %v473_v9  ;;  %v8056_v21 = vcombine.high %v466_v12, %v474_v13  ;;  %v553_v63 = vld [vmem:[#allocation2 + $0xe60] sm:$0xff]  ;;  %v546_v0 = vld [vmem:[#allocation2 + $0xe28] sm:$0xff] }
 0x228   :  { %5648 = vmatprep.mubr.bf16.mxu0 %v9250_v25  ;;  %5820 = vmatprep.mubr.bf16.mxu1 %v9250_v25 }
 0x22a   :  { %5619 = vmatpush1.bf16.msra.mxu0 %v7957_v26  ;;  %5791 = vmatpush1.bf16.msra.mxu1 %v7959_v27  ;;  %v490_v26 = vld [vmem:[#allocation2 + $0xc68] sm:$0xff]  ;;  %v8053_v27 = vcombine.low %v465_v6, %v473_v9  ;;  %v561_v9 = vld [vmem:[#allocation2 + $0xea0] sm:$0xff] }
 0x22b   :  { %5620 = vmatprep.subr.bf16.mxu0 %v7974_v28  ;;  %5792 = vmatprep.subr.bf16.mxu1 %v7976_v29  ;;  %v8055_v28 = vcombine.low %v466_v12, %v474_v13  ;;  %v8070_v29 = vcombine.high %v481_v22, %v489_v23  ;;  %v8072_v31 = vcombine.high %v482_v24, %v490_v26  ;;  %v569_v12 = vld [vmem:[#allocation2 + $0xee0] sm:$0xff]  ;;  %v562_v13 = vld [vmem:[#allocation2 + $0xea8] sm:$0xff] }
 0x22e   :  { %5621 = vmatpush1.bf16.msra.mxu0 %v7973_v35  ;;  %5793 = vmatpush1.bf16.msra.mxu1 %v7975_v36  ;;  %v506_v35 = vld [vmem:[#allocation2 + $0xce8] sm:$0xff]  ;;  %v8069_v36 = vcombine.low %v481_v22, %v489_v23  ;;  %v577_v23 = vld [vmem:[#allocation2 + $0xf20] sm:$0xff] }
 0x22f   :  { %5622 = vmatprep.subr.bf16.mxu0 %v7990_v37  ;;  %5794 = vmatprep.subr.bf16.mxu1 %v7992_v38  ;;  %v8071_v37 = vcombine.low %v482_v24, %v490_v26  ;;  %v8086_v38 = vcombine.high %v497_v32, %v505_v33  ;;  %v8088_v40 = vcombine.high %v498_v34, %v506_v35  ;;  %v585_v24 = vld [vmem:[#allocation2 + $0xf60] sm:$0xff]  ;;  %v578_v26 = vld [vmem:[#allocation2 + $0xf28] sm:$0xff] }
 0x232   :  { %5623 = vmatpush1.bf16.msra.mxu0 %v7989_v45  ;;  %5795 = vmatpush1.bf16.msra.mxu1 %v7991_v46  ;;  %v522_v45 = vld [vmem:[#allocation2 + $0xd68] sm:$0xff]  ;;  %v8085_v46 = vcombine.low %v497_v32, %v505_v33  ;;  %v593_v33 = vld [vmem:[#allocation2 + $0xfa0] sm:$0xff] }
 0x233   :  { %5624 = vmatprep.subr.bf16.mxu0 %v8006_v47  ;;  %5796 = vmatprep.subr.bf16.mxu1 %v8008_v48  ;;  %v8087_v47 = vcombine.low %v498_v34, %v506_v35  ;;  %v8102_v48 = vcombine.high %v513_v41, %v521_v42  ;;  %v8104_v50 = vcombine.high %v514_v43, %v522_v45  ;;  %v601_v34 = vld [vmem:[#allocation2 + $0xfe0] sm:$0xff]  ;;  %v594_v35 = vld [vmem:[#allocation2 + $0xfa8] sm:$0xff] }
 0x236   :  { %5625 = vmatpush1.bf16.msra.mxu0 %v8005_v55  ;;  %5797 = vmatpush1.bf16.msra.mxu1 %v8007_v56  ;;  %v538_v55 = vld [vmem:[#allocation2 + $0xde8] sm:$0xff]  ;;  %v8101_v56 = vcombine.low %v513_v41, %v521_v42  ;;  %v609_v42 = vld [vmem:[#allocation2 + $0x1020] sm:$0xff] }
 0x237   :  { %5626 = vmatprep.subr.bf16.mxu0 %v8022_v57  ;;  %5798 = vmatprep.subr.bf16.mxu1 %v8024_v60  ;;  %v8103_v57 = vcombine.low %v514_v43, %v522_v45  ;;  %v8118_v60 = vcombine.high %v529_v51, %v537_v52  ;;  %v8120_v61 = vcombine.high %v530_v53, %v538_v55  ;;  %v617_v43 = vld [vmem:[#allocation2 + $0x1060] sm:$0xff]  ;;  %v610_v45 = vld [vmem:[#allocation2 + $0x1028] sm:$0xff] }
 0x23a   :  { %5627 = vmatpush1.bf16.msra.mxu0 %v8021_v1  ;;  %5799 = vmatpush1.bf16.msra.mxu1 %v8023_v2  ;;  %v554_v1 = vld [vmem:[#allocation2 + $0xe68] sm:$0xff]  ;;  %v8117_v2 = vcombine.low %v529_v51, %v537_v52  ;;  %v625_v52 = vld [vmem:[#allocation2 + $0x10a0] sm:$0xff] }
 0x23b   :  { %5628 = vmatprep.subr.bf16.mxu0 %v8038_v3  ;;  %5800 = vmatprep.subr.bf16.mxu1 %v8040_v5  ;;  %v8119_v3 = vcombine.low %v530_v53, %v538_v55  ;;  %v8134_v5 = vcombine.high %v545_v62, %v553_v63  ;;  %v8136_v6 = vcombine.high %v546_v0, %v554_v1  ;;  %v633_v53 = vld [vmem:[#allocation2 + $0x10e0] sm:$0xff]  ;;  %v626_v55 = vld [vmem:[#allocation2 + $0x10a8] sm:$0xff] }
 0x23e   :  { %5629 = vmatpush1.bf16.msra.mxu0 %v8037_v17  ;;  %5801 = vmatpush1.bf16.msra.mxu1 %v8039_v18  ;;  %v570_v17 = vld [vmem:[#allocation2 + $0xee8] sm:$0xff]  ;;  %v8133_v18 = vcombine.low %v545_v62, %v553_v63  ;;  %v641_v63 = vld [vmem:[#allocation2 + $0x1120] sm:$0xff] }
 0x23f   :  { %5630 = vmatprep.subr.bf16.mxu0 %v8054_v19  ;;  %5802 = vmatprep.subr.bf16.mxu1 %v8056_v21  ;;  %v8135_v19 = vcombine.low %v546_v0, %v554_v1  ;;  %v8150_v21 = vcombine.high %v561_v9, %v569_v12  ;;  %v8152_v22 = vcombine.high %v562_v13, %v570_v17  ;;  %v649_v0 = vld [vmem:[#allocation2 + $0x1160] sm:$0xff]  ;;  %v642_v1 = vld [vmem:[#allocation2 + $0x1128] sm:$0xff] }
 0x242   :  { %5631 = vmatpush1.bf16.msra.mxu0 %v8053_v27  ;;  %5803 = vmatpush1.bf16.msra.mxu1 %v8055_v28  ;;  %v586_v27 = vld [vmem:[#allocation2 + $0xf68] sm:$0xff]  ;;  %v8149_v28 = vcombine.low %v561_v9, %v569_v12  ;;  %v657_v12 = vld [vmem:[#allocation2 + $0x11a0] sm:$0xff] }
 0x243   :  { %5632 = vmatprep.subr.bf16.mxu0 %v8070_v29  ;;  %5804 = vmatprep.subr.bf16.mxu1 %v8072_v31  ;;  %v8151_v29 = vcombine.low %v562_v13, %v570_v17  ;;  %v8166_v31 = vcombine.high %v577_v23, %v585_v24  ;;  %v8168_v32 = vcombine.high %v578_v26, %v586_v27  ;;  %v665_v13 = vld [vmem:[#allocation2 + $0x11e0] sm:$0xff]  ;;  %v658_v17 = vld [vmem:[#allocation2 + $0x11a8] sm:$0xff] }
 0x246   :  { %5633 = vmatpush1.bf16.msra.mxu0 %v8069_v36  ;;  %5805 = vmatpush1.bf16.msra.mxu1 %v8071_v37  ;;  %v602_v36 = vld [vmem:[#allocation2 + $0xfe8] sm:$0xff]  ;;  %v8165_v37 = vcombine.low %v577_v23, %v585_v24  ;;  %v673_v24 = vld [vmem:[#allocation2 + $0x1220] sm:$0xff] }
 0x247   :  { %5634 = vmatprep.subr.bf16.mxu0 %v8086_v38  ;;  %5806 = vmatprep.subr.bf16.mxu1 %v8088_v40  ;;  %v8167_v38 = vcombine.low %v578_v26, %v586_v27  ;;  %v8182_v40 = vcombine.high %v593_v33, %v601_v34  ;;  %v8184_v41 = vcombine.high %v594_v35, %v602_v36  ;;  %v681_v26 = vld [vmem:[#allocation2 + $0x1260] sm:$0xff]  ;;  %v674_v27 = vld [vmem:[#allocation2 + $0x1228] sm:$0xff] }
 0x24a   :  { %5635 = vmatpush1.bf16.msra.mxu0 %v8085_v46  ;;  %5807 = vmatpush1.bf16.msra.mxu1 %v8087_v47  ;;  %v618_v46 = vld [vmem:[#allocation2 + $0x1068] sm:$0xff]  ;;  %v8181_v47 = vcombine.low %v593_v33, %v601_v34  ;;  %v689_v34 = vld [vmem:[#allocation2 + $0x12a0] sm:$0xff] }
 0x24b   :  { %5636 = vmatprep.subr.bf16.mxu0 %v8102_v48  ;;  %5808 = vmatprep.subr.bf16.mxu1 %v8104_v50  ;;  %v8183_v48 = vcombine.low %v594_v35, %v602_v36  ;;  %v8198_v50 = vcombine.high %v609_v42, %v617_v43  ;;  %v8200_v51 = vcombine.high %v610_v45, %v618_v46  ;;  %v697_v35 = vld [vmem:[#allocation2 + $0x12e0] sm:$0xff]  ;;  %v690_v36 = vld [vmem:[#allocation2 + $0x12a8] sm:$0xff] }
 0x24e   :  { %5637 = vmatpush1.bf16.msra.mxu0 %v8101_v56  ;;  %5809 = vmatpush1.bf16.msra.mxu1 %v8103_v57  ;;  %v634_v56 = vld [vmem:[#allocation2 + $0x10e8] sm:$0xff]  ;;  %v8197_v57 = vcombine.low %v609_v42, %v617_v43  ;;  %v705_v43 = vld [vmem:[#allocation2 + $0x1320] sm:$0xff] }
 0x24f   :  { %5638 = vmatprep.subr.bf16.mxu0 %v8118_v60  ;;  %5810 = vmatprep.subr.bf16.mxu1 %v8120_v61  ;;  %v8199_v60 = vcombine.low %v610_v45, %v618_v46  ;;  %v8214_v61 = vcombine.high %v625_v52, %v633_v53  ;;  %v8216_v62 = vcombine.high %v626_v55, %v634_v56  ;;  %v713_v45 = vld [vmem:[#allocation2 + $0x1360] sm:$0xff]  ;;  %v706_v46 = vld [vmem:[#allocation2 + $0x1328] sm:$0xff] }
 0x252   :  { %5639 = vmatpush1.bf16.msra.mxu0 %v8117_v2  ;;  %5811 = vmatpush1.bf16.msra.mxu1 %v8119_v3  ;;  %v650_v2 = vld [vmem:[#allocation2 + $0x1168] sm:$0xff]  ;;  %v8213_v3 = vcombine.low %v625_v52, %v633_v53  ;;  %v721_v53 = vld [vmem:[#allocation2 + $0x13a0] sm:$0xff] }
 0x253   :  { %5640 = vmatprep.subr.bf16.mxu0 %v8134_v5  ;;  %5812 = vmatprep.subr.bf16.mxu1 %v8136_v6  ;;  %v8215_v5 = vcombine.low %v626_v55, %v634_v56  ;;  %v8230_v6 = vcombine.high %v641_v63, %v649_v0  ;;  %v8232_v9 = vcombine.high %v642_v1, %v650_v2  ;;  %v729_v55 = vld [vmem:[#allocation2 + $0x13e0] sm:$0xff]  ;;  %v722_v56 = vld [vmem:[#allocation2 + $0x13a8] sm:$0xff] }
 0x256   :  { %5641 = vmatpush1.bf16.msra.mxu0 %v8133_v18  ;;  %5813 = vmatpush1.bf16.msra.mxu1 %v8135_v19  ;;  %v666_v18 = vld [vmem:[#allocation2 + $0x11e8] sm:$0xff]  ;;  %v8229_v19 = vcombine.low %v641_v63, %v649_v0  ;;  %v737_v0 = vld [vmem:[#allocation2 + $0x1420] sm:$0xff] }
 0x257   :  { %5642 = vmatprep.subr.bf16.mxu0 %v8150_v21  ;;  %5814 = vmatprep.subr.bf16.mxu1 %v8152_v22  ;;  %v8231_v21 = vcombine.low %v642_v1, %v650_v2  ;;  %v8246_v22 = vcombine.high %v657_v12, %v665_v13  ;;  %v8248_v23 = vcombine.high %v658_v17, %v666_v18  ;;  %v745_v1 = vld [vmem:[#allocation2 + $0x1460] sm:$0xff]  ;;  %v738_v2 = vld [vmem:[#allocation2 + $0x1428] sm:$0xff] }
 0x25a   :  { %5643 = vmatpush1.bf16.msra.mxu0 %v8149_v28  ;;  %5815 = vmatpush1.bf16.msra.mxu1 %v8151_v29  ;;  %v682_v28 = vld [vmem:[#allocation2 + $0x1268] sm:$0xff]  ;;  %v8245_v29 = vcombine.low %v657_v12, %v665_v13  ;;  %v753_v13 = vld [vmem:[#allocation2 + $0x14a0] sm:$0xff] }
 0x25b   :  { %5644 = vmatprep.subr.bf16.mxu0 %v8166_v31  ;;  %5816 = vmatprep.subr.bf16.mxu1 %v8168_v32  ;;  %v8247_v31 = vcombine.low %v658_v17, %v666_v18  ;;  %v8262_v32 = vcombine.high %v673_v24, %v681_v26  ;;  %v8264_v33 = vcombine.high %v674_v27, %v682_v28  ;;  %v761_v17 = vld [vmem:[#allocation2 + $0x14e0] sm:$0xff]  ;;  %v754_v18 = vld [vmem:[#allocation2 + $0x14a8] sm:$0xff] }
 0x25e   :  { %5645 = vmatpush1.bf16.msra.mxu0 %v8165_v37  ;;  %5817 = vmatpush1.bf16.msra.mxu1 %v8167_v38  ;;  %v698_v37 = vld [vmem:[#allocation2 + $0x12e8] sm:$0xff]  ;;  %v8261_v38 = vcombine.low %v673_v24, %v681_v26  ;;  %v769_v26 = vld [vmem:[#allocation2 + $0x1520] sm:$0xff] }
 0x25f   :  { %5646 = vmatprep.subr.bf16.mxu0 %v8182_v40  ;;  %5818 = vmatprep.subr.bf16.mxu1 %v8184_v41  ;;  %v8263_v40 = vcombine.low %v674_v27, %v682_v28  ;;  %v8278_v41 = vcombine.high %v689_v34, %v697_v35  ;;  %v8280_v42 = vcombine.high %v690_v36, %v698_v37  ;;  %v777_v27 = vld [vmem:[#allocation2 + $0x1560] sm:$0xff]  ;;  %v770_v28 = vld [vmem:[#allocation2 + $0x1528] sm:$0xff] }
 0x262   :  { %5647 = vmatpush1.bf16.msra.mxu0 %v8181_v47  ;;  %5819 = vmatpush1.bf16.msra.mxu1 %v8183_v48  ;;  %v714_v47 = vld [vmem:[#allocation2 + $0x1368] sm:$0xff]  ;;  %v8277_v48 = vcombine.low %v689_v34, %v697_v35  ;;  %v785_v35 = vld [vmem:[#allocation2 + $0x15a0] sm:$0xff] }
 0x263   :  { %5659 = vmatprep.subr.bf16.mxu0 %v8198_v50  ;;  %5831 = vmatprep.subr.bf16.mxu1 %v8200_v51  ;;  %v8279_v50 = vcombine.low %v690_v36, %v698_v37  ;;  %v8294_v51 = vcombine.high %v705_v43, %v713_v45  ;;  %v8296_v52 = vcombine.high %v706_v46, %v714_v47  ;;  %v793_v36 = vld [vmem:[#allocation2 + $0x15e0] sm:$0xff]  ;;  %v786_v37 = vld [vmem:[#allocation2 + $0x15a8] sm:$0xff] }
 0x265   :  { %5649 = vmatmul.mubr.bf16.vlgmr.msra.gmra.mrb[8].mxu0 %v9268_v30  ;;  %5821 = vmatmul.mubr.bf16.vlgmr.msra.gmra.mrb[8].mxu1 %v9268_v30 }
 0x266   :  { %5660 = vmatpush1.bf16.msra.mxu0 %v8197_v57  ;;  %5832 = vmatpush1.bf16.msra.mxu1 %v8199_v60  ;;  %v730_v57 = vld [vmem:[#allocation2 + $0x13e8] sm:$0xff]  ;;  %v8293_v60 = vcombine.low %v705_v43, %v713_v45  ;;  %v801_v45 = vld [vmem:[#allocation2 + $0x1620] sm:$0xff] }
 0x267   :  { %5661 = vmatprep.subr.bf16.mxu0 %v8214_v61  ;;  %5833 = vmatprep.subr.bf16.mxu1 %v8216_v62  ;;  %v8295_v61 = vcombine.low %v706_v46, %v714_v47  ;;  %v8310_v62 = vcombine.high %v721_v53, %v729_v55  ;;  %v8312_v63 = vcombine.high %v722_v56, %v730_v57  ;;  %v809_v46 = vld [vmem:[#allocation2 + $0x1660] sm:$0xff]  ;;  %v802_v47 = vld [vmem:[#allocation2 + $0x1628] sm:$0xff] }
 0x268   :  { %5691 = vmatprep.mubr.bf16.mxu0 %v9270_v39  ;;  %5863 = vmatprep.mubr.bf16.mxu1 %v9270_v39 }
 0x26a   :  { %5662 = vmatpush1.bf16.msra.mxu0 %v8213_v3  ;;  %5834 = vmatpush1.bf16.msra.mxu1 %v8215_v5  ;;  %v746_v3 = vld [vmem:[#allocation2 + $0x1468] sm:$0xff]  ;;  %v8309_v5 = vcombine.low %v721_v53, %v729_v55  ;;  %v817_v55 = vld [vmem:[#allocation2 + $0x16a0] sm:$0xff] }
 0x26b   :  { %5663 = vmatprep.subr.bf16.mxu0 %v8230_v6  ;;  %5835 = vmatprep.subr.bf16.mxu1 %v8232_v9  ;;  %v8311_v6 = vcombine.low %v722_v56, %v730_v57  ;;  %v8326_v9 = vcombine.high %v737_v0, %v745_v1  ;;  %v8328_v12 = vcombine.high %v738_v2, %v746_v3  ;;  %v825_v56 = vld [vmem:[#allocation2 + $0x16e0] sm:$0xff]  ;;  %v818_v57 = vld [vmem:[#allocation2 + $0x16a8] sm:$0xff] }
 0x26e   :  { %5664 = vmatpush1.bf16.msra.mxu0 %v8229_v19  ;;  %5836 = vmatpush1.bf16.msra.mxu1 %v8231_v21  ;;  %v762_v19 = vld [vmem:[#allocation2 + $0x14e8] sm:$0xff]  ;;  %v8325_v21 = vcombine.low %v737_v0, %v745_v1  ;;  %v833_v1 = vld [vmem:[#allocation2 + $0x1720] sm:$0xff] }
 0x26f   :  { %5665 = vmatprep.subr.bf16.mxu0 %v8246_v22  ;;  %5837 = vmatprep.subr.bf16.mxu1 %v8248_v23  ;;  %v8327_v22 = vcombine.low %v738_v2, %v746_v3  ;;  %v8342_v23 = vcombine.high %v753_v13, %v761_v17  ;;  %v8344_v24 = vcombine.high %v754_v18, %v762_v19  ;;  %v841_v2 = vld [vmem:[#allocation2 + $0x1760] sm:$0xff]  ;;  %v834_v3 = vld [vmem:[#allocation2 + $0x1728] sm:$0xff] }
 0x272   :  { %5666 = vmatpush1.bf16.msra.mxu0 %v8245_v29  ;;  %5838 = vmatpush1.bf16.msra.mxu1 %v8247_v31  ;;  %v778_v29 = vld [vmem:[#allocation2 + $0x1568] sm:$0xff]  ;;  %v8341_v31 = vcombine.low %v753_v13, %v761_v17  ;;  %v849_v17 = vld [vmem:[#allocation2 + $0x17a0] sm:$0xff] }
 0x273   :  { %5667 = vmatprep.subr.bf16.mxu0 %v8262_v32  ;;  %5839 = vmatprep.subr.bf16.mxu1 %v8264_v33  ;;  %v8343_v32 = vcombine.low %v754_v18, %v762_v19  ;;  %v8358_v33 = vcombine.high %v769_v26, %v777_v27  ;;  %v8360_v34 = vcombine.high %v770_v28, %v778_v29  ;;  %v857_v18 = vld [vmem:[#allocation2 + $0x17e0] sm:$0xff]  ;;  %v850_v19 = vld [vmem:[#allocation2 + $0x17a8] sm:$0xff] }
 0x276   :  { %5668 = vmatpush1.bf16.msra.mxu0 %v8261_v38  ;;  %5840 = vmatpush1.bf16.msra.mxu1 %v8263_v40  ;;  %v794_v38 = vld [vmem:[#allocation2 + $0x15e8] sm:$0xff]  ;;  %v8357_v40 = vcombine.low %v769_v26, %v777_v27  ;;  %v865_v27 = vld [vmem:[#allocation2 + $0x1820] sm:$0xff] }
 0x277   :  { %5669 = vmatprep.subr.bf16.mxu0 %v8278_v41  ;;  %5841 = vmatprep.subr.bf16.mxu1 %v8280_v42  ;;  %v8359_v41 = vcombine.low %v770_v28, %v778_v29  ;;  %v8374_v42 = vcombine.high %v785_v35, %v793_v36  ;;  %v8376_v43 = vcombine.high %v786_v37, %v794_v38  ;;  %v873_v28 = vld [vmem:[#allocation2 + $0x1860] sm:$0xff]  ;;  %v866_v29 = vld [vmem:[#allocation2 + $0x1828] sm:$0xff] }
 0x27a   :  { %5670 = vmatpush1.bf16.msra.mxu0 %v8277_v48  ;;  %5842 = vmatpush1.bf16.msra.mxu1 %v8279_v50  ;;  %v810_v48 = vld [vmem:[#allocation2 + $0x1668] sm:$0xff]  ;;  %v8373_v50 = vcombine.low %v785_v35, %v793_v36  ;;  %v99_v36 = vld [vmem:[#allocation2 + $0x30] sm:$0xff] }
 0x27b   :  { %5671 = vmatprep.subr.bf16.mxu0 %v8294_v51  ;;  %5843 = vmatprep.subr.bf16.mxu1 %v8296_v52  ;;  %v8375_v51 = vcombine.low %v786_v37, %v794_v38  ;;  %v8390_v52 = vcombine.high %v801_v45, %v809_v46  ;;  %v8392_v53 = vcombine.high %v802_v47, %v810_v48  ;;  %v107_v37 = vld [vmem:[#allocation2 + $0x70] sm:$0xff] }
 0x27c   :  { %v8453_v38 = vcombine.low %v865_v27, %v873_v28 }
 0x27e   :  { %5672 = vmatpush1.bf16.msra.mxu0 %v8293_v60  ;;  %5844 = vmatpush1.bf16.msra.mxu1 %v8295_v61  ;;  %v826_v60 = vld [vmem:[#allocation2 + $0x16e8] sm:$0xff]  ;;  %v8389_v61 = vcombine.low %v801_v45, %v809_v46  ;;  %v115_v46 = vld [vmem:[#allocation2 + $0xb0] sm:$0xff] }
 0x27f   :  { %5673 = vmatprep.subr.bf16.mxu0 %v8310_v62  ;;  %5845 = vmatprep.subr.bf16.mxu1 %v8312_v63  ;;  %v8391_v62 = vcombine.low %v802_v47, %v810_v48  ;;  %v8406_v63 = vcombine.high %v817_v55, %v825_v56  ;;  %v8408_v0 = vcombine.high %v818_v57, %v826_v60  ;;  %v123_v47 = vld [vmem:[#allocation2 + $0xf0] sm:$0xff]  ;;  %v116_v48 = vld [vmem:[#allocation2 + $0xb8] sm:$0xff] }
 0x282   :  { %5674 = vmatpush1.bf16.msra.mxu0 %v8309_v5  ;;  %5846 = vmatpush1.bf16.msra.mxu1 %v8311_v6  ;;  %v842_v5 = vld [vmem:[#allocation2 + $0x1768] sm:$0xff]  ;;  %v8405_v6 = vcombine.low %v817_v55, %v825_v56  ;;  %v131_v56 = vld [vmem:[#allocation2 + $0x130] sm:$0xff] }
 0x283   :  { %5675 = vmatprep.subr.bf16.mxu0 %v8326_v9  ;;  %5847 = vmatprep.subr.bf16.mxu1 %v8328_v12  ;;  %v8407_v9 = vcombine.low %v818_v57, %v826_v60  ;;  %v8422_v12 = vcombine.high %v833_v1, %v841_v2  ;;  %v8424_v13 = vcombine.high %v834_v3, %v842_v5  ;;  %v139_v57 = vld [vmem:[#allocation2 + $0x170] sm:$0xff]  ;;  %v132_v60 = vld [vmem:[#allocation2 + $0x138] sm:$0xff] }
 0x286   :  { %5676 = vmatpush1.bf16.msra.mxu0 %v8325_v21  ;;  %5848 = vmatpush1.bf16.msra.mxu1 %v8327_v22  ;;  %v858_v21 = vld [vmem:[#allocation2 + $0x17e8] sm:$0xff]  ;;  %v8421_v22 = vcombine.low %v833_v1, %v841_v2  ;;  %v903_v1 = vsub.s32 5, %v9314_v59 }
 0x287   :  { %5677 = vmatprep.subr.bf16.mxu0 %v8342_v23  ;;  %5849 = vmatprep.subr.bf16.mxu1 %v8344_v24  ;;  %v8423_v23 = vcombine.low %v834_v3, %v842_v5  ;;  %v8438_v24 = vcombine.high %v849_v17, %v857_v18  ;;  %v8440_v26 = vcombine.high %v850_v19, %v858_v21  ;;  %v911_v5 = vsub.s32 7, %v9314_v59 }
 0x288   :  { %v7722_v3 = vcombine.high %v131_v56, %v139_v57 }
 0x28a   :  { %5678 = vmatpush1.bf16.msra.mxu0 %v8341_v31  ;;  %5850 = vmatpush1.bf16.msra.mxu1 %v8343_v32  ;;  %v874_v31 = vld [vmem:[#allocation2 + $0x1868] sm:$0xff]  ;;  %v8437_v32 = vcombine.low %v849_v17, %v857_v18  ;;  %v148_v18 = vld [vmem:[#allocation2 + $0x1b8] sm:$0xff] }
 0x28b   :  { %5679 = vmatprep.subr.bf16.mxu0 %v8358_v33  ;;  %5851 = vmatprep.subr.bf16.mxu1 %v8360_v34  ;;  %v8439_v33 = vcombine.low %v850_v19, %v858_v21  ;;  %v8454_v34 = vcombine.high %v865_v27, %v873_v28  ;;  %v8456_v35 = vcombine.high %v866_v29, %v874_v31  ;;  %v156_v19 = vld [vmem:[#allocation2 + $0x1f8] sm:$0xff] }
 0x28c   :  { %v7721_v21 = vcombine.low %v131_v56, %v139_v57  ;;  %v179_v57 = vld [vmem:[#allocation2 + $0x2b0] sm:$0xff] }
 0x28e   :  { %5680 = vmatpush1.bf16.msra.mxu0 %v8357_v40  ;;  %5852 = vmatpush1.bf16.msra.mxu1 %v8359_v41  ;;  %v100_v40 = vld [vmem:[#allocation2 + $0x38] sm:$0xff] }
 0x28f   :  { %5681 = vmatprep.subr.bf16.mxu0 %v8374_v42  ;;  %5853 = vmatprep.subr.bf16.mxu1 %v8376_v43  ;;  %v108_v41 = vld [vmem:[#allocation2 + $0x78] sm:$0xff]  ;;  %v8455_v42 = vcombine.low %v866_v29, %v874_v31  ;;  %v7690_v43 = vcombine.high %v99_v36, %v107_v37  ;;  %v7740_v29 = vcombine.high %v148_v18, %v156_v19  ;;  %v163_v31 = vld [vmem:[#allocation2 + $0x230] sm:$0xff] }
 0x290   :  { %v7692_v45 = vcombine.high %v100_v40, %v108_v41 }
 0x292   :  { %5682 = vmatpush1.bf16.msra.mxu0 %v8373_v50  ;;  %5854 = vmatpush1.bf16.msra.mxu1 %v8375_v51  ;;  %v124_v50 = vld [vmem:[#allocation2 + $0xf8] sm:$0xff]  ;;  %v7689_v51 = vcombine.low %v99_v36, %v107_v37 }
 0x293   :  { %5683 = vmatprep.subr.bf16.mxu0 %v8390_v52  ;;  %5855 = vmatprep.subr.bf16.mxu1 %v8392_v53  ;;  %v7691_v52 = vcombine.low %v100_v40, %v108_v41  ;;  %v7706_v53 = vcombine.high %v115_v46, %v123_v47  ;;  %v7708_v55 = vcombine.high %v116_v48, %v124_v50  ;;  %v172_v36 = vld [vmem:[#allocation2 + $0x278] sm:$0xff] }
 0x294   :  { %v7707_v2 = vcombine.low %v116_v48, %v124_v50 }
 0x296   :  { %5684 = vmatpush1.bf16.msra.mxu0 %v8389_v61  ;;  %5856 = vmatpush1.bf16.msra.mxu1 %v8391_v62  ;;  %v140_v61 = vld [vmem:[#allocation2 + $0x178] sm:$0xff]  ;;  %v899_v62 = vsub.s32 4, %v9314_v59 }
 0x297   :  { %5685 = vmatprep.subr.bf16.mxu0 %v8406_v63  ;;  %5857 = vmatprep.subr.bf16.mxu1 %v8408_v0  ;;  %v7705_v63 = vcombine.low %v115_v46, %v123_v47  ;;  %v907_v0 = vsub.s32 6, %v9314_v59 }
 0x29a   :  { %5686 = vmatpush1.bf16.msra.mxu0 %v8405_v6  ;;  %5858 = vmatpush1.bf16.msra.mxu1 %v8407_v9  ;;  %v7724_v6 = vcombine.high %v132_v60, %v140_v61  ;;  %v147_v9 = vld [vmem:[#allocation2 + $0x1b0] sm:$0xff] }
 0x29b   :  { %5687 = vmatprep.subr.bf16.mxu0 %v8422_v12  ;;  %5859 = vmatprep.subr.bf16.mxu1 %v8424_v13  ;;  %v155_v12 = vld [vmem:[#allocation2 + $0x1f0] sm:$0xff]  ;;  %v9038_v13 = vld [vmem:[#allocation4] sm:$0xff] }
 0x29c   :  { %v900_v17 = vrot.slane %v9038_v13, %v899_v62  ;;  %v7738_v27 = vcombine.high %v147_v9, %v155_v12 }
 0x29e   :  { %5688 = vmatpush1.bf16.msra.mxu0 %v8421_v22  ;;  %5860 = vmatpush1.bf16.msra.mxu1 %v8423_v23  ;;  %v908_v22 = vrot.slane %v9038_v13, %v907_v0  ;;  %v904_v23 = vrot.slane %v9038_v13, %v903_v1 }
 0x29f   :  { %5689 = vmatprep.subr.bf16.mxu0 %v8438_v24  ;;  %5861 = vmatprep.subr.bf16.mxu1 %v8440_v26  ;;  %v7723_v24 = vcombine.low %v132_v60, %v140_v61  ;;  %v912_v26 = vrot.slane %v9038_v13, %v911_v5  ;;  %v187_v60 = vld [vmem:[#allocation2 + $0x2f0] sm:$0xff] }
 0x2a2   :  { %5690 = vmatpush1.bf16.msra.mxu0 %v8437_v32  ;;  %5862 = vmatpush1.bf16.msra.mxu1 %v8439_v33 }
 0x2a3   :  { %5702 = vmatprep.subr.bf16.mxu0 %v8454_v34  ;;  %5874 = vmatprep.subr.bf16.mxu1 %v8456_v35  ;;  %v164_v35 = vld [vmem:[#allocation2 + $0x238] sm:$0xff] }
 0x2a4   :  { %v7756_v56 = vcombine.high %v164_v35, %v172_v36 }
 0x2a5   :  { %5692 = vmatmul.mubr.bf16.vlgmr.msra.gmra.mrb[8].mxu0 %v9282_v44  ;;  %5864 = vmatmul.mubr.bf16.vlgmr.msra.gmra.mrb[8].mxu1 %v9282_v44 }
 0x2a6   :  { %5703 = vmatpush1.bf16.msra.mxu0 %v8453_v38  ;;  %5875 = vmatpush1.bf16.msra.mxu1 %v8455_v42  ;;  %v7737_v42 = vcombine.low %v147_v9, %v155_v12  ;;  %v188_v9 = vld [vmem:[#allocation2 + $0x2f8] sm:$0xff] }
 0x2a7   :  { %5734 = vmatprep.mubr.bf16.mxu0 %v9140_v49  ;;  %5906 = vmatprep.mubr.bf16.mxu1 %v9140_v49 }
 0x2a8   :  { %5917 = vmatprep.subr.bf16.mxu0 %v7690_v43  ;;  %6089 = vmatprep.subr.bf16.mxu1 %v7692_v45  ;;  %v7739_v43 = vcombine.low %v148_v18, %v156_v19 }
 0x2b1   :  { %8465 = vmatmul.mubr.msk.bf16.vlgmr.msra.gmra.mrb[8].mxu0 %vm4881_vm0, %v9294_v54  ;;  %8466 = vmatmul.mubr.msk.bf16.vlgmr.msra.gmra.mrb[8].mxu1 %vm4881_vm0, %v9294_v54 }
 0x2b2   :  { %5918 = vmatpush1.bf16.msra.mxu0 %v7689_v51  ;;  %6090 = vmatpush1.bf16.msra.mxu1 %v7691_v52 }
 0x2b3   :  { %5919 = vmatprep.subr.bf16.mxu0 %v7706_v53  ;;  %6091 = vmatprep.subr.bf16.mxu1 %v7708_v55 }
 0x2b4   :  { %5949 = vmatprep.mubr.bf16.mxu0 %v9232_v58  ;;  %6121 = vmatprep.mubr.bf16.mxu1 %v9232_v58  ;;  %v171_v58 = vld [vmem:[#allocation2 + $0x270] sm:$0xff] }
 0x2b5   :  { %v7754_v50 = vcombine.high %v163_v31, %v171_v58  ;;  %v7753_v55 = vcombine.low %v163_v31, %v171_v58  ;;  %v196_v58 = vld [vmem:[#allocation2 + $0x338] sm:$0xff] }
 0x2b6   :  { %5920 = vmatpush1.bf16.msra.mxu0 %v7705_v63  ;;  %6092 = vmatpush1.bf16.msra.mxu1 %v7707_v2 }
 0x2b7   :  { %5921 = vmatprep.subr.bf16.mxu0 %v7722_v3  ;;  %6093 = vmatprep.subr.bf16.mxu1 %v7724_v6  ;;  %v7755_v3 = vcombine.low %v164_v35, %v172_v36  ;;  %v180_v6 = vld [vmem:[#allocation2 + $0x2b8] sm:$0xff] }
 0x2b8   :  { %v5392_v28 = vpop.f32.mrb[4].mxu0  ;;  %v5564_v33 = vpop.f32.mrb[4].mxu1 }
 0x2b9   :  { %v8782_v32 = vadd.f32 %v5392_v28, %v900_v17  ;;  %v5394_v34 = vpop.f32.mrb[5].mxu0  ;;  %v8786_v37 = vadd.f32 %v5564_v33, %v908_v22  ;;  %v5566_v40 = vpop.f32.mrb[5].mxu1  ;;  %v195_v28 = vld [vmem:[#allocation2 + $0x330] sm:$0xff]  ;;  %v7769_v33 = vcombine.low %v179_v57, %v187_v60 }
 0x2ba   :  { %5922 = vmatpush1.bf16.msra.mxu0 %v7721_v21  ;;  %v8783_v38 = vadd.f32 %v5394_v34, %v904_v23  ;;  %v5396_v41 = vpop.f32.mrb[6].mxu0  ;;  %6094 = vmatpush1.bf16.msra.mxu1 %v7723_v24  ;;  %v8787_v45 = vadd.f32 %v5566_v40, %v912_v26  ;;  %v5568_v47 = vpop.f32.mrb[6].mxu1  ;;  %v7771_v34 = vcombine.low %v180_v6, %v188_v9  ;;  %v212_v40 = vld [vmem:[#allocation2 + $0x3b8] sm:$0xff] }
 0x2bb   :  { %v8784_v46 = vadd.f32 %v5396_v41, %v900_v17  ;;  %v5398_v48 = vpop.f32.mrb[7].mxu0  ;;  %5923 = vmatprep.subr.bf16.mxu0 %v7738_v27  ;;  %v8788_v51 = vadd.f32 %v5568_v47, %v908_v22  ;;  %v5570_v53 = vpop.f32.mrb[7].mxu1  ;;  %6095 = vmatprep.subr.bf16.mxu1 %v7740_v29  ;;  %v6265_v61 = vmax.f32 %v8782_v32, 0.0  ;;  %v6267_v12 = vmax.f32 %v8786_v37, 0.0  ;;  %v203_v29 = vld [vmem:[#allocation2 + $0x370] sm:$0xff]  ;;  %v204_v32 = vld [vmem:[#allocation2 + $0x378] sm:$0xff] }
 0x2bc   :  { %v8785_v52 = vadd.f32 %v5398_v48, %v904_v23  ;;  %v8789_v2 = vadd.f32 %v5570_v53, %v912_v26  ;;  %v6266_v13 = vmax.f32 %v8783_v38, 0.0  ;;  %v6268_v19 = vmax.f32 %v8787_v45, 0.0  ;;  %v211_v37 = vld [vmem:[#allocation2 + $0x3b0] sm:$0xff]  ;;  %v220_v41 = vld [vmem:[#allocation2 + $0x3f8] sm:$0xff] }
 0x2bd   :  { %v6281_v63 = vmax.f32 %v8784_v46, 0.0  ;;  %v6283_v17 = vmax.f32 %v8788_v51, 0.0  ;;  %v7770_v23 = vcombine.high %v179_v57, %v187_v60  ;;  %v7772_v26 = vcombine.high %v180_v6, %v188_v9  ;;  %v219_v38 = vld [vmem:[#allocation2 + $0x3f0] sm:$0xff]  ;;  %v236_v51 = vld [vmem:[#allocation2 + $0x478] sm:$0xff] }
 0x2be   :  { %v6282_v18 = vmax.f32 %v8785_v52, 0.0  ;;  %5924 = vmatpush1.bf16.msra.mxu0 %v7737_v42  ;;  %v6284_v22 = vmax.f32 %v8789_v2, 0.0  ;;  %6096 = vmatpush1.bf16.msra.mxu1 %v7739_v43  ;;  %v7786_v35 = vcombine.high %v195_v28, %v203_v29  ;;  %v7788_v36 = vcombine.high %v196_v58, %v204_v32  ;;  %v227_v47 = vld [vmem:[#allocation2 + $0x430] sm:$0xff] }
 0x2bf   :  { %v9372_v21 = vpack.c.bf16 %v6281_v63, %v6265_v61  ;;  %5925 = vmatprep.subr.bf16.mxu0 %v7754_v50  ;;  %v9374_v24 = vpack.c.bf16 %v6283_v17, %v6267_v12  ;;  %6097 = vmatprep.subr.bf16.mxu1 %v7756_v56  ;;  %v7785_v42 = vcombine.low %v195_v28, %v203_v29  ;;  %v235_v48 = vld [vmem:[#allocation2 + $0x470] sm:$0xff]  ;;  %v228_v50 = vld [vmem:[#allocation2 + $0x438] sm:$0xff] }
 0x2c0   :  { %v9376_v27 = vpack.c.bf16 %v6282_v18, %v6266_v13  ;;  %v9378_v31 = vpack.c.bf16 %v6284_v22, %v6268_v19  ;;  %v7787_v43 = vcombine.low %v196_v58, %v204_v32  ;;  %v7802_v45 = vcombine.high %v211_v37, %v219_v38  ;;  %v243_v57 = vld [vmem:[#allocation2 + $0x4b0] sm:$0xff]  ;;  %v244_v61 = vld [vmem:[#allocation2 + $0x4b8] sm:$0xff] }
 0x2c1   :  { %v7804_v46 = vcombine.high %v212_v40, %v220_v41  ;;  %v7801_v52 = vcombine.low %v211_v37, %v219_v38  ;;  %v7803_v53 = vcombine.low %v212_v40, %v220_v41  ;;  %v7820_v56 = vcombine.high %v228_v50, %v236_v51  ;;  %v251_v60 = vld [vmem:[#allocation2 + $0x4f0] sm:$0xff]  ;;  %v252_v63 = vld [vmem:[#allocation2 + $0x4f8] sm:$0xff] }
 0x2c2   :  { %5926 = vmatpush1.bf16.msra.mxu0 %v7753_v55  ;;  %6098 = vmatpush1.bf16.msra.mxu1 %v7755_v3  ;;  %v7818_v55 = vcombine.high %v227_v47, %v235_v48  ;;  %v7817_v2 = vcombine.low %v227_v47, %v235_v48  ;;  %v7819_v3 = vcombine.low %v228_v50, %v236_v51  ;;  %v259_v12 = vld [vmem:[#allocation2 + $0x530] sm:$0xff]  ;;  %v260_v17 = vld [vmem:[#allocation2 + $0x538] sm:$0xff] }
 0x2c3   :  { %5927 = vmatprep.subr.bf16.mxu0 %v7770_v23  ;;  %6099 = vmatprep.subr.bf16.mxu1 %v7772_v26  ;;  %v7834_v6 = vcombine.high %v243_v57, %v251_v60  ;;  %v7836_v9 = vcombine.high %v244_v61, %v252_v63  ;;  %v267_v13 = vld [vmem:[#allocation2 + $0x570] sm:$0xff]  ;;  %v268_v18 = vld [vmem:[#allocation2 + $0x578] sm:$0xff]  ;;  %v7833_v19 = vcombine.low %v243_v57, %v251_v60 }
 0x2c4   :  { %v7835_v22 = vcombine.low %v244_v61, %v252_v63  ;;  %v7850_v23 = vcombine.high %v259_v12, %v267_v13  ;;  %v7852_v26 = vcombine.high %v260_v17, %v268_v18  ;;  %v275_v28 = vld [vmem:[#allocation2 + $0x5b0] sm:$0xff]  ;;  %v276_v58 = vld [vmem:[#allocation2 + $0x5b8] sm:$0xff] }
 0x2c5   :  { %v283_v29 = vld [vmem:[#allocation2 + $0x5f0] sm:$0xff]  ;;  %v284_v32 = vld [vmem:[#allocation2 + $0x5f8] sm:$0xff] }
 0x2c6   :  { %5928 = vmatpush1.bf16.msra.mxu0 %v7769_v33  ;;  %6100 = vmatpush1.bf16.msra.mxu1 %v7771_v34  ;;  %v7849_v33 = vcombine.low %v259_v12, %v267_v13  ;;  %v7851_v34 = vcombine.low %v260_v17, %v268_v18  ;;  %v291_v37 = vld [vmem:[#allocation2 + $0x630] sm:$0xff]  ;;  %v292_v40 = vld [vmem:[#allocation2 + $0x638] sm:$0xff] }
 0x2c7   :  { %5929 = vmatprep.subr.bf16.mxu0 %v7786_v35  ;;  %6101 = vmatprep.subr.bf16.mxu1 %v7788_v36  ;;  %v7866_v35 = vcombine.high %v275_v28, %v283_v29  ;;  %v7868_v36 = vcombine.high %v276_v58, %v284_v32  ;;  %v299_v38 = vld [vmem:[#allocation2 + $0x670] sm:$0xff]  ;;  %v300_v41 = vld [vmem:[#allocation2 + $0x678] sm:$0xff] }
 0x2c8   :  { %v307_v47 = vld [vmem:[#allocation2 + $0x6b0] sm:$0xff]  ;;  %v308_v50 = vld [vmem:[#allocation2 + $0x6b8] sm:$0xff] }
 0x2c9   :  { %v315_v48 = vld [vmem:[#allocation2 + $0x6f0] sm:$0xff]  ;;  %v316_v51 = vld [vmem:[#allocation2 + $0x6f8] sm:$0xff] }
 0x2ca   :  { %5930 = vmatpush1.bf16.msra.mxu0 %v7785_v42  ;;  %6102 = vmatpush1.bf16.msra.mxu1 %v7787_v43  ;;  %v7865_v42 = vcombine.low %v275_v28, %v283_v29  ;;  %v7867_v43 = vcombine.low %v276_v58, %v284_v32  ;;  %v323_v57 = vld [vmem:[#allocation2 + $0x730] sm:$0xff]  ;;  %v324_v61 = vld [vmem:[#allocation2 + $0x738] sm:$0xff] }
 0x2cb   :  { %5931 = vmatprep.subr.bf16.mxu0 %v7802_v45  ;;  %6103 = vmatprep.subr.bf16.mxu1 %v7804_v46  ;;  %v7882_v45 = vcombine.high %v291_v37, %v299_v38  ;;  %v7884_v46 = vcombine.high %v292_v40, %v300_v41  ;;  %v331_v60 = vld [vmem:[#allocation2 + $0x770] sm:$0xff]  ;;  %v332_v63 = vld [vmem:[#allocation2 + $0x778] sm:$0xff] }
 0x2cc   :  { %v339_v12 = vld [vmem:[#allocation2 + $0x7b0] sm:$0xff]  ;;  %v340_v17 = vld [vmem:[#allocation2 + $0x7b8] sm:$0xff] }
 0x2cd   :  { %v347_v13 = vld [vmem:[#allocation2 + $0x7f0] sm:$0xff]  ;;  %v348_v18 = vld [vmem:[#allocation2 + $0x7f8] sm:$0xff] }
 0x2ce   :  { %5932 = vmatpush1.bf16.msra.mxu0 %v7801_v52  ;;  %6104 = vmatpush1.bf16.msra.mxu1 %v7803_v53  ;;  %v7881_v52 = vcombine.low %v291_v37, %v299_v38  ;;  %v7883_v53 = vcombine.low %v292_v40, %v300_v41  ;;  %v355_v28 = vld [vmem:[#allocation2 + $0x830] sm:$0xff]  ;;  %v356_v58 = vld [vmem:[#allocation2 + $0x838] sm:$0xff] }
 0x2cf   :  { %5933 = vmatprep.subr.bf16.mxu0 %v7818_v55  ;;  %6105 = vmatprep.subr.bf16.mxu1 %v7820_v56  ;;  %v7898_v55 = vcombine.high %v307_v47, %v315_v48  ;;  %v7900_v56 = vcombine.high %v308_v50, %v316_v51  ;;  %v363_v29 = vld [vmem:[#allocation2 + $0x870] sm:$0xff]  ;;  %v364_v32 = vld [vmem:[#allocation2 + $0x878] sm:$0xff] }
 0x2d0   :  { %v371_v37 = vld [vmem:[#allocation2 + $0x8b0] sm:$0xff]  ;;  %v372_v40 = vld [vmem:[#allocation2 + $0x8b8] sm:$0xff] }
 0x2d1   :  { %v379_v38 = vld [vmem:[#allocation2 + $0x8f0] sm:$0xff]  ;;  %v380_v41 = vld [vmem:[#allocation2 + $0x8f8] sm:$0xff] }
 0x2d2   :  { %5934 = vmatpush1.bf16.msra.mxu0 %v7817_v2  ;;  %6106 = vmatpush1.bf16.msra.mxu1 %v7819_v3  ;;  %v7897_v2 = vcombine.low %v307_v47, %v315_v48  ;;  %v7899_v3 = vcombine.low %v308_v50, %v316_v51  ;;  %v387_v47 = vld [vmem:[#allocation2 + $0x930] sm:$0xff]  ;;  %v388_v50 = vld [vmem:[#allocation2 + $0x938] sm:$0xff] }
 0x2d3   :  { %5935 = vmatprep.subr.bf16.mxu0 %v7834_v6  ;;  %6107 = vmatprep.subr.bf16.mxu1 %v7836_v9  ;;  %v7914_v6 = vcombine.high %v323_v57, %v331_v60  ;;  %v7916_v9 = vcombine.high %v324_v61, %v332_v63  ;;  %v395_v48 = vld [vmem:[#allocation2 + $0x970] sm:$0xff]  ;;  %v396_v51 = vld [vmem:[#allocation2 + $0x978] sm:$0xff] }
 0x2d6   :  { %5936 = vmatpush1.bf16.msra.mxu0 %v7833_v19  ;;  %6108 = vmatpush1.bf16.msra.mxu1 %v7835_v22  ;;  %v7913_v19 = vcombine.low %v323_v57, %v331_v60  ;;  %v7915_v22 = vcombine.low %v324_v61, %v332_v63  ;;  %v403_v57 = vld [vmem:[#allocation2 + $0x9b0] sm:$0xff]  ;;  %v404_v61 = vld [vmem:[#allocation2 + $0x9b8] sm:$0xff] }
 0x2d7   :  { %5937 = vmatprep.subr.bf16.mxu0 %v7850_v23  ;;  %6109 = vmatprep.subr.bf16.mxu1 %v7852_v26  ;;  %v7930_v23 = vcombine.high %v339_v12, %v347_v13  ;;  %v7932_v26 = vcombine.high %v340_v17, %v348_v18  ;;  %v411_v60 = vld [vmem:[#allocation2 + $0x9f0] sm:$0xff]  ;;  %v412_v63 = vld [vmem:[#allocation2 + $0x9f8] sm:$0xff] }
 0x2da   :  { %5938 = vmatpush1.bf16.msra.mxu0 %v7849_v33  ;;  %6110 = vmatpush1.bf16.msra.mxu1 %v7851_v34  ;;  %v7929_v33 = vcombine.low %v339_v12, %v347_v13  ;;  %v7931_v34 = vcombine.low %v340_v17, %v348_v18  ;;  %v427_v12 = vld [vmem:[#allocation2 + $0xa70] sm:$0xff]  ;;  %v420_v13 = vld [vmem:[#allocation2 + $0xa38] sm:$0xff]  ;;  %v7993_v18 = vcombine.low %v403_v57, %v411_v60 }
 0x2db   :  { %5939 = vmatprep.subr.bf16.mxu0 %v7866_v35  ;;  %6111 = vmatprep.subr.bf16.mxu1 %v7868_v36  ;;  %v7946_v35 = vcombine.high %v355_v28, %v363_v29  ;;  %v7948_v36 = vcombine.high %v356_v58, %v364_v32  ;;  %v428_v17 = vld [vmem:[#allocation2 + $0xa78] sm:$0xff] }
 0x2de   :  { %5940 = vmatpush1.bf16.msra.mxu0 %v7865_v42  ;;  %6112 = vmatpush1.bf16.msra.mxu1 %v7867_v43  ;;  %v7945_v42 = vcombine.low %v355_v28, %v363_v29  ;;  %v7947_v43 = vcombine.low %v356_v58, %v364_v32  ;;  %v436_v28 = vld [vmem:[#allocation2 + $0xab8] sm:$0xff]  ;;  %v8011_v32 = vcombine.low %v420_v13, %v428_v17 }
 0x2df   :  { %5941 = vmatprep.subr.bf16.mxu0 %v7882_v45  ;;  %6113 = vmatprep.subr.bf16.mxu1 %v7884_v46  ;;  %v7962_v45 = vcombine.high %v371_v37, %v379_v38  ;;  %v7964_v46 = vcombine.high %v372_v40, %v380_v41  ;;  %v444_v29 = vld [vmem:[#allocation2 + $0xaf8] sm:$0xff] }
 0x2e2   :  { %5942 = vmatpush1.bf16.msra.mxu0 %v7881_v52  ;;  %6114 = vmatpush1.bf16.msra.mxu1 %v7883_v53  ;;  %v7961_v52 = vcombine.low %v371_v37, %v379_v38  ;;  %v7963_v53 = vcombine.low %v372_v40, %v380_v41  ;;  %v452_v37 = vld [vmem:[#allocation2 + $0xb38] sm:$0xff]  ;;  %v8027_v41 = vcombine.low %v436_v28, %v444_v29 }
 0x2e3   :  { %5943 = vmatprep.subr.bf16.mxu0 %v7898_v55  ;;  %6115 = vmatprep.subr.bf16.mxu1 %v7900_v56  ;;  %v7978_v55 = vcombine.high %v387_v47, %v395_v48  ;;  %v7980_v56 = vcombine.high %v388_v50, %v396_v51  ;;  %v460_v38 = vld [vmem:[#allocation2 + $0xb78] sm:$0xff] }
 0x2e6   :  { %5944 = vmatpush1.bf16.msra.mxu0 %v7897_v2  ;;  %6116 = vmatpush1.bf16.msra.mxu1 %v7899_v3  ;;  %v7977_v2 = vcombine.low %v387_v47, %v395_v48  ;;  %v7994_v3 = vcombine.high %v403_v57, %v411_v60  ;;  %v468_v47 = vld [vmem:[#allocation2 + $0xbb8] sm:$0xff] }
 0x2e7   :  { %5945 = vmatprep.subr.bf16.mxu0 %v7914_v6  ;;  %6117 = vmatprep.subr.bf16.mxu1 %v7916_v9  ;;  %v7996_v6 = vcombine.high %v404_v61, %v412_v63  ;;  %v419_v9 = vld [vmem:[#allocation2 + $0xa30] sm:$0xff]  ;;  %v476_v48 = vld [vmem:[#allocation2 + $0xbf8] sm:$0xff] }
 0x2e8   :  { %v8009_v58 = vcombine.low %v419_v9, %v427_v12  ;;  %v484_v57 = vld [vmem:[#allocation2 + $0xc38] sm:$0xff] }
 0x2e9   :  { %v492_v60 = vld [vmem:[#allocation2 + $0xc78] sm:$0xff] }
 0x2ea   :  { %5946 = vmatpush1.bf16.msra.mxu0 %v7913_v19  ;;  %6118 = vmatpush1.bf16.msra.mxu1 %v7915_v22  ;;  %v7995_v19 = vcombine.low %v404_v61, %v412_v63  ;;  %v8010_v22 = vcombine.high %v419_v9, %v427_v12  ;;  %v8059_v63 = vcombine.low %v468_v47, %v476_v48  ;;  %v500_v9 = vld [vmem:[#allocation2 + $0xcb8] sm:$0xff] }
 0x2eb   :  { %5947 = vmatprep.subr.bf16.mxu0 %v7930_v23  ;;  %6119 = vmatprep.subr.bf16.mxu1 %v7932_v26  ;;  %v435_v23 = vld [vmem:[#allocation2 + $0xab0] sm:$0xff]  ;;  %v508_v12 = vld [vmem:[#allocation2 + $0xcf8] sm:$0xff] }
 0x2ec   :  { %v443_v26 = vld [vmem:[#allocation2 + $0xaf0] sm:$0xff] }
 0x2ed   :  { %v8025_v40 = vcombine.low %v435_v23, %v443_v26 }
 0x2ee   :  { %5948 = vmatpush1.bf16.msra.mxu0 %v7929_v33  ;;  %6120 = vmatpush1.bf16.msra.mxu1 %v7931_v34  ;;  %v8026_v33 = vcombine.high %v435_v23, %v443_v26  ;;  %v8028_v34 = vcombine.high %v436_v28, %v444_v29  ;;  %v516_v23 = vld [vmem:[#allocation2 + $0xd38] sm:$0xff]  ;;  %v8091_v29 = vcombine.low %v500_v9, %v508_v12 }
 0x2ef   :  { %5960 = vmatprep.subr.bf16.mxu0 %v7946_v35  ;;  %6132 = vmatprep.subr.bf16.mxu1 %v7948_v36  ;;  %v451_v35 = vld [vmem:[#allocation2 + $0xb30] sm:$0xff]  ;;  %v524_v26 = vld [vmem:[#allocation2 + $0xd78] sm:$0xff] }
 0x2f0   :  { %v459_v36 = vld [vmem:[#allocation2 + $0xb70] sm:$0xff] }
 0x2f1   :  { %5950 = vmatmul.mubr.bf16.vlgmr.msra.gmra.mrb[12].mxu0 %v9242_v15  ;;  %6122 = vmatmul.mubr.bf16.vlgmr.msra.gmra.mrb[12].mxu1 %v9242_v15  ;;  %v7979_v15 = vcombine.low %v388_v50, %v396_v51  ;;  %v8041_v50 = vcombine.low %v451_v35, %v459_v36  ;;  %v8043_v51 = vcombine.low %v452_v37, %v460_v38 }
 0x2f2   :  { %5961 = vmatpush1.bf16.msra.mxu0 %v7945_v42  ;;  %6133 = vmatpush1.bf16.msra.mxu1 %v7947_v43  ;;  %v8042_v42 = vcombine.high %v451_v35, %v459_v36  ;;  %v8044_v43 = vcombine.high %v452_v37, %v460_v38  ;;  %v532_v35 = vld [vmem:[#allocation2 + $0xdb8] sm:$0xff]  ;;  %v8107_v38 = vcombine.low %v516_v23, %v524_v26 }
 0x2f3   :  { %5962 = vmatprep.subr.bf16.mxu0 %v7962_v45  ;;  %6134 = vmatprep.subr.bf16.mxu1 %v7964_v46  ;;  %v467_v45 = vld [vmem:[#allocation2 + $0xbb0] sm:$0xff]  ;;  %v540_v36 = vld [vmem:[#allocation2 + $0xdf8] sm:$0xff] }
 0x2f4   :  { %5992 = vmatprep.mubr.bf16.mxu0 %v9250_v25  ;;  %6164 = vmatprep.mubr.bf16.mxu1 %v9250_v25  ;;  %v8012_v25 = vcombine.high %v420_v13, %v428_v17  ;;  %v475_v46 = vld [vmem:[#allocation2 + $0xbf0] sm:$0xff]  ;;  %v8075_v17 = vcombine.low %v484_v57, %v492_v60 }
 0x2f5   :  { %v8057_v61 = vcombine.low %v467_v45, %v475_v46 }
 0x2f6   :  { %5963 = vmatpush1.bf16.msra.mxu0 %v7961_v52  ;;  %6135 = vmatpush1.bf16.msra.mxu1 %v7963_v53  ;;  %v8058_v52 = vcombine.high %v467_v45, %v475_v46  ;;  %v8060_v53 = vcombine.high %v468_v47, %v476_v48  ;;  %v548_v45 = vld [vmem:[#allocation2 + $0xe38] sm:$0xff]  ;;  %v8123_v48 = vcombine.low %v532_v35, %v540_v36 }
 0x2f7   :  { %5964 = vmatprep.subr.bf16.mxu0 %v7978_v55  ;;  %6136 = vmatprep.subr.bf16.mxu1 %v7980_v56  ;;  %v483_v55 = vld [vmem:[#allocation2 + $0xc30] sm:$0xff]  ;;  %v556_v46 = vld [vmem:[#allocation2 + $0xe78] sm:$0xff] }
 0x2f8   :  { %v491_v56 = vld [vmem:[#allocation2 + $0xc70] sm:$0xff] }
 0x2f9   :  { %v8073_v13 = vcombine.low %v483_v55, %v491_v56 }
 0x2fa   :  { %5965 = vmatpush1.bf16.msra.mxu0 %v7977_v2  ;;  %6137 = vmatpush1.bf16.msra.mxu1 %v7979_v15  ;;  %v8074_v2 = vcombine.high %v483_v55, %v491_v56  ;;  %v8076_v15 = vcombine.high %v484_v57, %v492_v60  ;;  %v564_v55 = vld [vmem:[#allocation2 + $0xeb8] sm:$0xff]  ;;  %v8139_v60 = vcombine.low %v548_v45, %v556_v46 }
 0x2fb   :  { %5966 = vmatprep.subr.bf16.mxu0 %v7994_v3  ;;  %6138 = vmatprep.subr.bf16.mxu1 %v7996_v6  ;;  %v499_v3 = vld [vmem:[#allocation2 + $0xcb0] sm:$0xff]  ;;  %v572_v56 = vld [vmem:[#allocation2 + $0xef8] sm:$0xff] }
 0x2fc   :  { %v507_v6 = vld [vmem:[#allocation2 + $0xcf0] sm:$0xff] }
 0x2fd   :  { %v8089_v28 = vcombine.low %v499_v3, %v507_v6 }
 0x2fe   :  { %5967 = vmatpush1.bf16.msra.mxu0 %v7993_v18  ;;  %6139 = vmatpush1.bf16.msra.mxu1 %v7995_v19  ;;  %v8090_v18 = vcombine.high %v499_v3, %v507_v6  ;;  %v8092_v19 = vcombine.high %v500_v9, %v508_v12  ;;  %v580_v3 = vld [vmem:[#allocation2 + $0xf38] sm:$0xff]  ;;  %v8155_v12 = vcombine.low %v564_v55, %v572_v56 }
 0x2ff   :  { %5968 = vmatprep.subr.bf16.mxu0 %v8010_v22  ;;  %6140 = vmatprep.subr.bf16.mxu1 %v8012_v25  ;;  %v515_v22 = vld [vmem:[#allocation2 + $0xd30] sm:$0xff]  ;;  %v588_v6 = vld [vmem:[#allocation2 + $0xf78] sm:$0xff] }
 0x300   :  { %v523_v25 = vld [vmem:[#allocation2 + $0xd70] sm:$0xff] }
 0x301   :  { %v8105_v37 = vcombine.low %v515_v22, %v523_v25 }
 0x302   :  { %5969 = vmatpush1.bf16.msra.mxu0 %v8009_v58  ;;  %6141 = vmatpush1.bf16.msra.mxu1 %v8011_v32  ;;  %v8106_v58 = vcombine.high %v515_v22, %v523_v25  ;;  %v8108_v32 = vcombine.high %v516_v23, %v524_v26  ;;  %v596_v22 = vld [vmem:[#allocation2 + $0xfb8] sm:$0xff]  ;;  %v8171_v26 = vcombine.low %v580_v3, %v588_v6 }
 0x303   :  { %5970 = vmatprep.subr.bf16.mxu0 %v8026_v33  ;;  %6142 = vmatprep.subr.bf16.mxu1 %v8028_v34  ;;  %v531_v33 = vld [vmem:[#allocation2 + $0xdb0] sm:$0xff]  ;;  %v604_v25 = vld [vmem:[#allocation2 + $0xff8] sm:$0xff] }
 0x304   :  { %v539_v34 = vld [vmem:[#allocation2 + $0xdf0] sm:$0xff] }
 0x305   :  { %v8121_v47 = vcombine.low %v531_v33, %v539_v34 }
 0x306   :  { %5971 = vmatpush1.bf16.msra.mxu0 %v8025_v40  ;;  %6143 = vmatpush1.bf16.msra.mxu1 %v8027_v41  ;;  %v8122_v40 = vcombine.high %v531_v33, %v539_v34  ;;  %v8124_v41 = vcombine.high %v532_v35, %v540_v36  ;;  %v612_v33 = vld [vmem:[#allocation2 + $0x1038] sm:$0xff]  ;;  %v8187_v36 = vcombine.low %v596_v22, %v604_v25 }
 0x307   :  { %5972 = vmatprep.subr.bf16.mxu0 %v8042_v42  ;;  %6144 = vmatprep.subr.bf16.mxu1 %v8044_v43  ;;  %v547_v42 = vld [vmem:[#allocation2 + $0xe30] sm:$0xff]  ;;  %v620_v34 = vld [vmem:[#allocation2 + $0x1078] sm:$0xff] }
 0x308   :  { %v555_v43 = vld [vmem:[#allocation2 + $0xe70] sm:$0xff] }
 0x309   :  { %v8137_v57 = vcombine.low %v547_v42, %v555_v43 }
 0x30a   :  { %5973 = vmatpush1.bf16.msra.mxu0 %v8041_v50  ;;  %6145 = vmatpush1.bf16.msra.mxu1 %v8043_v51  ;;  %v8138_v50 = vcombine.high %v547_v42, %v555_v43  ;;  %v8140_v51 = vcombine.high %v548_v45, %v556_v46  ;;  %v628_v42 = vld [vmem:[#allocation2 + $0x10b8] sm:$0xff]  ;;  %v8203_v46 = vcombine.low %v612_v33, %v620_v34 }
 0x30b   :  { %5974 = vmatprep.subr.bf16.mxu0 %v8058_v52  ;;  %6146 = vmatprep.subr.bf16.mxu1 %v8060_v53  ;;  %v563_v52 = vld [vmem:[#allocation2 + $0xeb0] sm:$0xff]  ;;  %v636_v43 = vld [vmem:[#allocation2 + $0x10f8] sm:$0xff] }
 0x30c   :  { %v571_v53 = vld [vmem:[#allocation2 + $0xef0] sm:$0xff] }
 0x30d   :  { %v8153_v9 = vcombine.low %v563_v52, %v571_v53 }
 0x30e   :  { %5975 = vmatpush1.bf16.msra.mxu0 %v8057_v61  ;;  %6147 = vmatpush1.bf16.msra.mxu1 %v8059_v63  ;;  %v8154_v61 = vcombine.high %v563_v52, %v571_v53  ;;  %v8156_v63 = vcombine.high %v564_v55, %v572_v56  ;;  %v644_v52 = vld [vmem:[#allocation2 + $0x1138] sm:$0xff]  ;;  %v8219_v56 = vcombine.low %v628_v42, %v636_v43 }
 0x30f   :  { %5976 = vmatprep.subr.bf16.mxu0 %v8074_v2  ;;  %6148 = vmatprep.subr.bf16.mxu1 %v8076_v15  ;;  %v579_v2 = vld [vmem:[#allocation2 + $0xf30] sm:$0xff]  ;;  %v652_v53 = vld [vmem:[#allocation2 + $0x1178] sm:$0xff] }
 0x310   :  { %v587_v15 = vld [vmem:[#allocation2 + $0xf70] sm:$0xff] }
 0x311   :  { %v8169_v23 = vcombine.low %v579_v2, %v587_v15 }
 0x312   :  { %5977 = vmatpush1.bf16.msra.mxu0 %v8073_v13  ;;  %6149 = vmatpush1.bf16.msra.mxu1 %v8075_v17  ;;  %v8170_v13 = vcombine.high %v579_v2, %v587_v15  ;;  %v8172_v17 = vcombine.high %v580_v3, %v588_v6  ;;  %v660_v2 = vld [vmem:[#allocation2 + $0x11b8] sm:$0xff] }
 0x313   :  { %5978 = vmatprep.subr.bf16.mxu0 %v8090_v18  ;;  %6150 = vmatprep.subr.bf16.mxu1 %v8092_v19  ;;  %v595_v18 = vld [vmem:[#allocation2 + $0xfb0] sm:$0xff]  ;;  %v668_v15 = vld [vmem:[#allocation2 + $0x11f8] sm:$0xff] }
 0x314   :  { %v603_v19 = vld [vmem:[#allocation2 + $0xff0] sm:$0xff] }
 0x315   :  { %v8185_v35 = vcombine.low %v595_v18, %v603_v19 }
 0x316   :  { %5979 = vmatpush1.bf16.msra.mxu0 %v8089_v28  ;;  %6151 = vmatpush1.bf16.msra.mxu1 %v8091_v29  ;;  %v8186_v28 = vcombine.high %v595_v18, %v603_v19  ;;  %v8188_v29 = vcombine.high %v596_v22, %v604_v25  ;;  %v684_v18 = vld [vmem:[#allocation2 + $0x1278] sm:$0xff]  ;;  %v8251_v22 = vcombine.low %v660_v2, %v668_v15 }
 0x317   :  { %5980 = vmatprep.subr.bf16.mxu0 %v8106_v58  ;;  %6152 = vmatprep.subr.bf16.mxu1 %v8108_v32  ;;  %v611_v58 = vld [vmem:[#allocation2 + $0x1030] sm:$0xff] }
 0x318   :  { %v619_v32 = vld [vmem:[#allocation2 + $0x1070] sm:$0xff] }
 0x319   :  { %v8201_v45 = vcombine.low %v611_v58, %v619_v32 }
 0x31a   :  { %5981 = vmatpush1.bf16.msra.mxu0 %v8105_v37  ;;  %6153 = vmatpush1.bf16.msra.mxu1 %v8107_v38  ;;  %v8202_v37 = vcombine.high %v611_v58, %v619_v32  ;;  %v8204_v38 = vcombine.high %v612_v33, %v620_v34 }
 0x31b   :  { %5982 = vmatprep.subr.bf16.mxu0 %v8122_v40  ;;  %6154 = vmatprep.subr.bf16.mxu1 %v8124_v41  ;;  %v627_v40 = vld [vmem:[#allocation2 + $0x10b0] sm:$0xff] }
 0x31c   :  { %v635_v41 = vld [vmem:[#allocation2 + $0x10f0] sm:$0xff] }
 0x31d   :  { %v8217_v55 = vcombine.low %v627_v40, %v635_v41 }
 0x31e   :  { %5983 = vmatpush1.bf16.msra.mxu0 %v8121_v47  ;;  %6155 = vmatpush1.bf16.msra.mxu1 %v8123_v48  ;;  %v8218_v47 = vcombine.high %v627_v40, %v635_v41  ;;  %v8220_v48 = vcombine.high %v628_v42, %v636_v43 }
 0x31f   :  { %5984 = vmatprep.subr.bf16.mxu0 %v8138_v50  ;;  %6156 = vmatprep.subr.bf16.mxu1 %v8140_v51  ;;  %v643_v50 = vld [vmem:[#allocation2 + $0x1130] sm:$0xff] }
 0x320   :  { %v651_v51 = vld [vmem:[#allocation2 + $0x1170] sm:$0xff] }
 0x321   :  { %v8233_v3 = vcombine.low %v643_v50, %v651_v51 }
 0x322   :  { %5985 = vmatpush1.bf16.msra.mxu0 %v8137_v57  ;;  %6157 = vmatpush1.bf16.msra.mxu1 %v8139_v60  ;;  %v8234_v57 = vcombine.high %v643_v50, %v651_v51  ;;  %v8236_v60 = vcombine.high %v644_v52, %v652_v53 }
 0x323   :  { %5986 = vmatprep.subr.bf16.mxu0 %v8154_v61  ;;  %6158 = vmatprep.subr.bf16.mxu1 %v8156_v63  ;;  %v659_v61 = vld [vmem:[#allocation2 + $0x11b0] sm:$0xff] }
 0x324   :  { %v667_v63 = vld [vmem:[#allocation2 + $0x11f0] sm:$0xff] }
 0x325   :  { %v8250_v6 = vcombine.high %v659_v61, %v667_v63  ;;  %v8249_v19 = vcombine.low %v659_v61, %v667_v63 }
 0x326   :  { %5987 = vmatpush1.bf16.msra.mxu0 %v8153_v9  ;;  %6159 = vmatpush1.bf16.msra.mxu1 %v8155_v12  ;;  %v8252_v9 = vcombine.high %v660_v2, %v668_v15  ;;  %v675_v12 = vld [vmem:[#allocation2 + $0x1230] sm:$0xff] }
 0x327   :  { %5988 = vmatprep.subr.bf16.mxu0 %v8170_v13  ;;  %6160 = vmatprep.subr.bf16.mxu1 %v8172_v17  ;;  %v683_v13 = vld [vmem:[#allocation2 + $0x1270] sm:$0xff]  ;;  %v676_v17 = vld [vmem:[#allocation2 + $0x1238] sm:$0xff] }
 0x328   :  { %v8266_v25 = vcombine.high %v675_v12, %v683_v13  ;;  %v8265_v58 = vcombine.low %v675_v12, %v683_v13  ;;  %v8267_v32 = vcombine.low %v676_v17, %v684_v18 }
 0x32a   :  { %5989 = vmatpush1.bf16.msra.mxu0 %v8169_v23  ;;  %6161 = vmatpush1.bf16.msra.mxu1 %v8171_v26  ;;  %v691_v23 = vld [vmem:[#allocation2 + $0x12b0] sm:$0xff] }
 0x32b   :  { %5990 = vmatprep.subr.bf16.mxu0 %v8186_v28  ;;  %6162 = vmatprep.subr.bf16.mxu1 %v8188_v29  ;;  %v699_v26 = vld [vmem:[#allocation2 + $0x12f0] sm:$0xff]  ;;  %v692_v28 = vld [vmem:[#allocation2 + $0x12b8] sm:$0xff] }
 0x32c   :  { %v700_v29 = vld [vmem:[#allocation2 + $0x12f8] sm:$0xff]  ;;  %v8282_v33 = vcombine.high %v691_v23, %v699_v26  ;;  %v8281_v40 = vcombine.low %v691_v23, %v699_v26 }
 0x32d   :  { %v8284_v34 = vcombine.high %v692_v28, %v700_v29  ;;  %v8283_v41 = vcombine.low %v692_v28, %v700_v29 }
 0x32e   :  { %5991 = vmatpush1.bf16.msra.mxu0 %v8185_v35  ;;  %6163 = vmatpush1.bf16.msra.mxu1 %v8187_v36  ;;  %v707_v35 = vld [vmem:[#allocation2 + $0x1330] sm:$0xff] }
 0x32f   :  { %6003 = vmatprep.subr.bf16.mxu0 %v8202_v37  ;;  %6175 = vmatprep.subr.bf16.mxu1 %v8204_v38  ;;  %v715_v36 = vld [vmem:[#allocation2 + $0x1370] sm:$0xff]  ;;  %v708_v37 = vld [vmem:[#allocation2 + $0x1338] sm:$0xff] }
 0x330   :  { %v716_v38 = vld [vmem:[#allocation2 + $0x1378] sm:$0xff]  ;;  %v8298_v42 = vcombine.high %v707_v35, %v715_v36  ;;  %v8297_v50 = vcombine.low %v707_v35, %v715_v36 }
 0x331   :  { %5993 = vmatmul.mubr.bf16.vlgmr.msra.gmra.mrb[12].mxu0 %v9268_v30  ;;  %6165 = vmatmul.mubr.bf16.vlgmr.msra.gmra.mrb[12].mxu1 %v9268_v30  ;;  %v8235_v30 = vcombine.low %v644_v52, %v652_v53  ;;  %v8300_v43 = vcombine.high %v708_v37, %v716_v38  ;;  %v8299_v51 = vcombine.low %v708_v37, %v716_v38 }
 0x332   :  { %6004 = vmatpush1.bf16.msra.mxu0 %v8201_v45  ;;  %6176 = vmatpush1.bf16.msra.mxu1 %v8203_v46  ;;  %v723_v45 = vld [vmem:[#allocation2 + $0x13b0] sm:$0xff] }
 0x333   :  { %6005 = vmatprep.subr.bf16.mxu0 %v8218_v47  ;;  %6177 = vmatprep.subr.bf16.mxu1 %v8220_v48  ;;  %v731_v46 = vld [vmem:[#allocation2 + $0x13f0] sm:$0xff]  ;;  %v724_v47 = vld [vmem:[#allocation2 + $0x13b8] sm:$0xff] }
 0x334   :  { %6035 = vmatprep.mubr.bf16.mxu0 %v9270_v39  ;;  %6207 = vmatprep.mubr.bf16.mxu1 %v9270_v39  ;;  %v8268_v39 = vcombine.high %v676_v17, %v684_v18  ;;  %v732_v48 = vld [vmem:[#allocation2 + $0x13f8] sm:$0xff]  ;;  %v8314_v52 = vcombine.high %v723_v45, %v731_v46  ;;  %v8313_v61 = vcombine.low %v723_v45, %v731_v46 }
 0x335   :  { %v8316_v53 = vcombine.high %v724_v47, %v732_v48  ;;  %v8315_v63 = vcombine.low %v724_v47, %v732_v48 }
 0x336   :  { %6006 = vmatpush1.bf16.msra.mxu0 %v8217_v55  ;;  %6178 = vmatpush1.bf16.msra.mxu1 %v8219_v56  ;;  %v739_v55 = vld [vmem:[#allocation2 + $0x1430] sm:$0xff] }
 0x337   :  { %6007 = vmatprep.subr.bf16.mxu0 %v8234_v57  ;;  %6179 = vmatprep.subr.bf16.mxu1 %v8236_v60  ;;  %v747_v56 = vld [vmem:[#allocation2 + $0x1470] sm:$0xff]  ;;  %v740_v57 = vld [vmem:[#allocation2 + $0x1438] sm:$0xff] }
 0x338   :  { %v748_v60 = vld [vmem:[#allocation2 + $0x1478] sm:$0xff]  ;;  %v8330_v2 = vcombine.high %v739_v55, %v747_v56  ;;  %v8329_v12 = vcombine.low %v739_v55, %v747_v56 }
 0x339   :  { %v8332_v15 = vcombine.high %v740_v57, %v748_v60  ;;  %v8331_v13 = vcombine.low %v740_v57, %v748_v60 }
 0x33a   :  { %6008 = vmatpush1.bf16.msra.mxu0 %v8233_v3  ;;  %6180 = vmatpush1.bf16.msra.mxu1 %v8235_v30  ;;  %v755_v3 = vld [vmem:[#allocation2 + $0x14b0] sm:$0xff] }
 0x33b   :  { %6009 = vmatprep.subr.bf16.mxu0 %v8250_v6  ;;  %6181 = vmatprep.subr.bf16.mxu1 %v8252_v9  ;;  %v763_v30 = vld [vmem:[#allocation2 + $0x14f0] sm:$0xff]  ;;  %v756_v6 = vld [vmem:[#allocation2 + $0x14b8] sm:$0xff] }
 0x33c   :  { %v764_v9 = vld [vmem:[#allocation2 + $0x14f8] sm:$0xff]  ;;  %v8346_v17 = vcombine.high %v755_v3, %v763_v30  ;;  %v8345_v23 = vcombine.low %v755_v3, %v763_v30 }
 0x33d   :  { %v8348_v18 = vcombine.high %v756_v6, %v764_v9  ;;  %v8347_v26 = vcombine.low %v756_v6, %v764_v9 }
 0x33e   :  { %6010 = vmatpush1.bf16.msra.mxu0 %v8249_v19  ;;  %6182 = vmatpush1.bf16.msra.mxu1 %v8251_v22  ;;  %v771_v19 = vld [vmem:[#allocation2 + $0x1530] sm:$0xff] }
 0x33f   :  { %6011 = vmatprep.subr.bf16.mxu0 %v8266_v25  ;;  %6183 = vmatprep.subr.bf16.mxu1 %v8268_v39  ;;  %v779_v22 = vld [vmem:[#allocation2 + $0x1570] sm:$0xff]  ;;  %v772_v25 = vld [vmem:[#allocation2 + $0x1538] sm:$0xff] }
 0x340   :  { %v780_v39 = vld [vmem:[#allocation2 + $0x1578] sm:$0xff]  ;;  %v8362_v28 = vcombine.high %v771_v19, %v779_v22  ;;  %v8361_v35 = vcombine.low %v771_v19, %v779_v22 }
 0x341   :  { %v8364_v29 = vcombine.high %v772_v25, %v780_v39  ;;  %v8363_v36 = vcombine.low %v772_v25, %v780_v39 }
 0x342   :  { %6012 = vmatpush1.bf16.msra.mxu0 %v8265_v58  ;;  %6184 = vmatpush1.bf16.msra.mxu1 %v8267_v32  ;;  %v787_v58 = vld [vmem:[#allocation2 + $0x15b0] sm:$0xff] }
 0x343   :  { %6013 = vmatprep.subr.bf16.mxu0 %v8282_v33  ;;  %6185 = vmatprep.subr.bf16.mxu1 %v8284_v34  ;;  %v795_v32 = vld [vmem:[#allocation2 + $0x15f0] sm:$0xff]  ;;  %v788_v33 = vld [vmem:[#allocation2 + $0x15b8] sm:$0xff] }
 0x344   :  { %v796_v34 = vld [vmem:[#allocation2 + $0x15f8] sm:$0xff]  ;;  %v8378_v37 = vcombine.high %v787_v58, %v795_v32  ;;  %v8377_v45 = vcombine.low %v787_v58, %v795_v32 }
 0x345   :  { %v8380_v38 = vcombine.high %v788_v33, %v796_v34  ;;  %v8379_v46 = vcombine.low %v788_v33, %v796_v34 }
 0x346   :  { %6014 = vmatpush1.bf16.msra.mxu0 %v8281_v40  ;;  %6186 = vmatpush1.bf16.msra.mxu1 %v8283_v41  ;;  %v803_v40 = vld [vmem:[#allocation2 + $0x1630] sm:$0xff] }
 0x347   :  { %6015 = vmatprep.subr.bf16.mxu0 %v8298_v42  ;;  %6187 = vmatprep.subr.bf16.mxu1 %v8300_v43  ;;  %v811_v41 = vld [vmem:[#allocation2 + $0x1670] sm:$0xff]  ;;  %v804_v42 = vld [vmem:[#allocation2 + $0x1638] sm:$0xff] }
 0x348   :  { %v812_v43 = vld [vmem:[#allocation2 + $0x1678] sm:$0xff]  ;;  %v8394_v47 = vcombine.high %v803_v40, %v811_v41  ;;  %v8393_v55 = vcombine.low %v803_v40, %v811_v41  ;;  %v8912_v40 = vld [vmem:[#allocation6] sm:$0xff]  }
 0x349   :  { %v8396_v48 = vcombine.high %v804_v42, %v812_v43  ;;  %v8395_v56 = vcombine.low %v804_v42, %v812_v43  ;;  %v8913_v41 = vld [vmem:[#allocation6 + $0x80] sm:$0xff]   ;;  %v8914_v42 = vld [vmem:[#allocation6 + $0x48] sm:$0xff]  }
 0x34a   :  { %6016 = vmatpush1.bf16.msra.mxu0 %v8297_v50  ;;  %6188 = vmatpush1.bf16.msra.mxu1 %v8299_v51  ;;  %v819_v50 = vld [vmem:[#allocation2 + $0x16b0] sm:$0xff]  ;;  %v8915_v43 = vld [vmem:[#allocation6 + $0xc8] sm:$0xff]  }
 0x34b   :  { %6017 = vmatprep.subr.bf16.mxu0 %v8314_v52  ;;  %6189 = vmatprep.subr.bf16.mxu1 %v8316_v53  ;;  %v827_v51 = vld [vmem:[#allocation2 + $0x16f0] sm:$0xff]  ;;  %v820_v52 = vld [vmem:[#allocation2 + $0x16b8] sm:$0xff] }
 0x34c   :  { %v828_v53 = vld [vmem:[#allocation2 + $0x16f8] sm:$0xff]  ;;  %v8410_v57 = vcombine.high %v819_v50, %v827_v51  ;;  %v8409_v3 = vcombine.low %v819_v50, %v827_v51  ;;  %v8920_v50 = vld [vmem:[#allocation6 + $0x10] sm:$0xff]  }
 0x34d   :  { %v8412_v60 = vcombine.high %v820_v52, %v828_v53  ;;  %v8411_v30 = vcombine.low %v820_v52, %v828_v53  ;;  %v8922_v52 = vld [vmem:[#allocation6 + $0x58] sm:$0xff]  }
 0x34e   :  { %6018 = vmatpush1.bf16.msra.mxu0 %v8313_v61  ;;  %6190 = vmatpush1.bf16.msra.mxu1 %v8315_v63  ;;  %v835_v61 = vld [vmem:[#allocation2 + $0x1730] sm:$0xff]  ;;  %v8923_v53 = vld [vmem:[#allocation6 + $0xd8] sm:$0xff]  }
 0x34f   :  { %6019 = vmatprep.subr.bf16.mxu0 %v8330_v2  ;;  %6191 = vmatprep.subr.bf16.mxu1 %v8332_v15  ;;  %v843_v63 = vld [vmem:[#allocation2 + $0x1770] sm:$0xff]  ;;  %v836_v2 = vld [vmem:[#allocation2 + $0x1738] sm:$0xff] }
 0x350   :  { %v844_v15 = vld [vmem:[#allocation2 + $0x1778] sm:$0xff]  ;;  %v8426_v6 = vcombine.high %v835_v61, %v843_v63  ;;  %v8425_v19 = vcombine.low %v835_v61, %v843_v63 }
 0x351   :  { %v8428_v9 = vcombine.high %v836_v2, %v844_v15  ;;  %v8427_v22 = vcombine.low %v836_v2, %v844_v15 }
 0x352   :  { %6020 = vmatpush1.bf16.msra.mxu0 %v8329_v12  ;;  %6192 = vmatpush1.bf16.msra.mxu1 %v8331_v13  ;;  %v851_v12 = vld [vmem:[#allocation2 + $0x17b0] sm:$0xff] }
 0x353   :  { %6021 = vmatprep.subr.bf16.mxu0 %v8346_v17  ;;  %6193 = vmatprep.subr.bf16.mxu1 %v8348_v18  ;;  %v859_v13 = vld [vmem:[#allocation2 + $0x17f0] sm:$0xff]  ;;  %v852_v17 = vld [vmem:[#allocation2 + $0x17b8] sm:$0xff] }
 0x354   :  { %v860_v18 = vld [vmem:[#allocation2 + $0x17f8] sm:$0xff]  ;;  %v8442_v25 = vcombine.high %v851_v12, %v859_v13  ;;  %v8441_v58 = vcombine.low %v851_v12, %v859_v13 }
 0x355   :  { %v8444_v39 = vcombine.high %v852_v17, %v860_v18  ;;  %v8443_v32 = vcombine.low %v852_v17, %v860_v18  ;;  %v8927_v17 = vld [vmem:[#allocation6 + $0xe0] sm:$0xff]  }
 0x356   :  { %6022 = vmatpush1.bf16.msra.mxu0 %v8345_v23  ;;  %6194 = vmatpush1.bf16.msra.mxu1 %v8347_v26  ;;  %v867_v23 = vld [vmem:[#allocation2 + $0x1830] sm:$0xff] }
 0x357   :  { %6023 = vmatprep.subr.bf16.mxu0 %v8362_v28  ;;  %6195 = vmatprep.subr.bf16.mxu1 %v8364_v29  ;;  %v875_v26 = vld [vmem:[#allocation2 + $0x1870] sm:$0xff]  ;;  %v868_v28 = vld [vmem:[#allocation2 + $0x1838] sm:$0xff] }
 0x358   :  { %v876_v29 = vld [vmem:[#allocation2 + $0x1878] sm:$0xff]  ;;  %v8458_v33 = vcombine.high %v867_v23, %v875_v26 }
 0x359   :  { %v8460_v34 = vcombine.high %v868_v28, %v876_v29 }
 0x35a   :  { %6024 = vmatpush1.bf16.msra.mxu0 %v8361_v35  ;;  %6196 = vmatpush1.bf16.msra.mxu1 %v8363_v36  ;;  %v8457_v35 = vcombine.low %v867_v23, %v875_v26  ;;  %v8459_v36 = vcombine.low %v868_v28, %v876_v29  ;;  %v8928_v28 = vld [vmem:[#allocation6 + $0x20] sm:$0xff]  }
 0x35b   :  { %6025 = vmatprep.subr.bf16.mxu0 %v8378_v37  ;;  %6197 = vmatprep.subr.bf16.mxu1 %v8380_v38  ;;  %v8910_v37 = vld [vmem:[#allocation6 + $0x40] sm:$0xff]  }
 0x35c   :  { %v8911_v38 = vld [vmem:[#allocation6 + $0xc0] sm:$0xff]  }
 0x35e   :  { %6026 = vmatpush1.bf16.msra.mxu0 %v8377_v45  ;;  %6198 = vmatpush1.bf16.msra.mxu1 %v8379_v46  ;;  %v9396_v45 = vld [vmem:[#allocation4 + $0x8] sm:$0xff]  ;;  %v8918_v46 = vld [vmem:[#allocation6 + $0x50] sm:$0xff]  }
 0x35f   :  { %6027 = vmatprep.subr.bf16.mxu0 %v8394_v47  ;;  %6199 = vmatprep.subr.bf16.mxu1 %v8396_v48  ;;  %v8919_v47 = vld [vmem:[#allocation6 + $0xd0] sm:$0xff]   ;;  %v916_v48 = vrot.slane %v9396_v45, %v883_v4  ;;  %v928_v51 = vrot.slane %v9396_v45, %v895_v11  ;;  %v8925_v11 = vld [vmem:[#allocation6 + $0x98] sm:$0xff]  }
 0x362   :  { %6028 = vmatpush1.bf16.msra.mxu0 %v8393_v55  ;;  %6200 = vmatpush1.bf16.msra.mxu1 %v8395_v56 }
 0x363   :  { %6029 = vmatprep.subr.bf16.mxu0 %v8410_v57  ;;  %6201 = vmatprep.subr.bf16.mxu1 %v8412_v60 }
 0x366   :  { %6030 = vmatpush1.bf16.msra.mxu0 %v8409_v3  ;;  %6202 = vmatpush1.bf16.msra.mxu1 %v8411_v30 }
 0x367   :  { %6031 = vmatprep.subr.bf16.mxu0 %v8426_v6  ;;  %6203 = vmatprep.subr.bf16.mxu1 %v8428_v9  ;;  %v8926_v6 = vld [vmem:[#allocation6 + $0x60] sm:$0xff]  }
 0x36a   :  { %6032 = vmatpush1.bf16.msra.mxu0 %v8425_v19  ;;  %6204 = vmatpush1.bf16.msra.mxu1 %v8427_v22 }
 0x36b   :  { %6033 = vmatprep.subr.bf16.mxu0 %v8442_v25  ;;  %6205 = vmatprep.subr.bf16.mxu1 %v8444_v39 }
 0x36e   :  { %6034 = vmatpush1.bf16.msra.mxu0 %v8441_v58  ;;  %6206 = vmatpush1.bf16.msra.mxu1 %v8443_v32 }
 0x36f   :  { %6046 = vmatprep.subr.bf16.mxu0 %v8458_v33  ;;  %6218 = vmatprep.subr.bf16.mxu1 %v8460_v34  ;;  %v8929_v33 = vld [vmem:[#allocation6 + $0xa0] sm:$0xff]   ;;  %v8930_v34 = vld [vmem:[#allocation6 + $0x68] sm:$0xff]  }
 0x371   :  { %6036 = vmatmul.mubr.bf16.vlgmr.msra.gmra.mrb[12].mxu0 %v9282_v44  ;;  %6208 = vmatmul.mubr.bf16.vlgmr.msra.gmra.mrb[12].mxu1 %v9282_v44  ;;  %v8916_v44 = vld [vmem:[#allocation6 + $0x8] sm:$0xff]  }
 0x372   :  { %6047 = vmatpush1.bf16.msra.mxu0 %v8457_v35  ;;  %6219 = vmatpush1.bf16.msra.mxu1 %v8459_v36 }
 0x373   :  { %6078 = vmatprep.mubr.bf16.mxu0 %v9140_v49  ;;  %6250 = vmatprep.mubr.bf16.mxu1 %v9140_v49  ;;  %v8917_v49 = vld [vmem:[#allocation6 + $0x88] sm:$0xff]  }
 0x374   :  { %8598 = vmatprep.subr.bf16.mxu0 %v8910_v37  ;;  %8620 = vmatprep.subr.bf16.mxu1 %v8911_v38  ;;  %v8931_v37 = vld [vmem:[#allocation6 + $0xe8] sm:$0xff]  }
 0x37d   :  { %8467 = vmatmul.mubr.msk.bf16.vlgmr.msra.gmra.mrb[12].mxu0 %vm4881_vm0, %v9294_v54  ;;  %8468 = vmatmul.mubr.msk.bf16.vlgmr.msra.gmra.mrb[12].mxu1 %vm4881_vm0, %v9294_v54  ;;  %v924_v54 = vrot.slane %v9396_v45, %v891_v7 }
 0x37e   :  { %8599 = vmatpush3.bf16.msra.mxu0 %v8912_v40  ;;  %8621 = vmatpush3.bf16.msra.mxu1 %v8913_v41  ;;  %v8932_v40 = vld [vmem:[#allocation6 + $0x28] sm:$0xff]  }
 0x37f   :  { %7372 = vmatprep.mubr.bf16.mxu0 %v9338_v16  ;;  %7413 = vmatprep.mubr.bf16.mxu1 %v9340_v20  ;;  %v920_v16 = vrot.slane %v9396_v45, %v887_v8  ;;  %v8921_v20 = vld [vmem:[#allocation6 + $0x90] sm:$0xff]   ;;  %v8924_v8 = vld [vmem:[#allocation6 + $0x18] sm:$0xff]   ;;  %v8933_v41 = vld [vmem:[#allocation6 + $0xa8] sm:$0xff]  }
 0x380   :  { %8600 = vmatprep.subr.bf16.mxu0 %v8914_v42  ;;  %8622 = vmatprep.subr.bf16.mxu1 %v8915_v43  ;;  %v8934_v42 = vld [vmem:[#allocation6 + $0x70] sm:$0xff]  }
 0x381   :  { %v8935_v43 = vld [vmem:[#allocation6 + $0xf0] sm:$0xff]  }
 0x382   :  { %8601 = vmatpush3.bf16.msra.mxu0 %v8916_v44  ;;  %8623 = vmatpush3.bf16.msra.mxu1 %v8917_v49  ;;  %v8936_v44 = vld [vmem:[#allocation6 + $0x30] sm:$0xff]  }
 0x383   :  { %8602 = vmatprep.subr.bf16.mxu0 %v8918_v46  ;;  %8624 = vmatprep.subr.bf16.mxu1 %v8919_v47  ;;  %v8937_v49 = vld [vmem:[#allocation6 + $0xb0] sm:$0xff]   ;;  %v8938_v46 = vld [vmem:[#allocation6 + $0x78] sm:$0xff]  }
 0x384   :  { %v5736_v4 = vpop.f32.mrb[8].mxu0  ;;  %v5908_v56 = vpop.f32.mrb[8].mxu1  ;;  %v8939_v47 = vld [vmem:[#allocation6 + $0xf8] sm:$0xff]  }
 0x385   :  { %v8790_v55 = vadd.f32 %v5736_v4, %v916_v48  ;;  %v5738_v57 = vpop.f32.mrb[9].mxu0  ;;  %v8794_v7 = vadd.f32 %v5908_v56, %v924_v54  ;;  %v5910_v61 = vpop.f32.mrb[9].mxu1  ;;  %v8947_v4 = vld [vmem:[#allocation6 + $0x1c8] sm:$0xff]   ;;  %v8950_v56 = vld [vmem:[#allocation6 + $0x150] sm:$0xff]  }
 0x386   :  { %8603 = vmatpush3.bf16.msra.mxu0 %v8920_v50  ;;  %v8791_v60 = vadd.f32 %v5738_v57, %v920_v16  ;;  %v5740_v63 = vpop.f32.mrb[10].mxu0  ;;  %8625 = vmatpush3.bf16.msra.mxu1 %v8921_v20  ;;  %v8795_v2 = vadd.f32 %v5910_v61, %v928_v51  ;;  %v5912_v3 = vpop.f32.mrb[10].mxu1  ;;  %v8942_v50 = vld [vmem:[#allocation6 + $0x140] sm:$0xff]   ;;  %v8951_v57 = vld [vmem:[#allocation6 + $0x1d0] sm:$0xff]   ;;  %v8956_v61 = vld [vmem:[#allocation6 + $0x118] sm:$0xff]  }
 0x387   :  { %v8792_v15 = vadd.f32 %v5740_v63, %v916_v48  ;;  %v5742_v30 = vpop.f32.mrb[11].mxu0  ;;  %8604 = vmatprep.subr.bf16.mxu0 %v8922_v52  ;;  %v8796_v9 = vadd.f32 %v5912_v3, %v924_v54  ;;  %v5914_v13 = vpop.f32.mrb[11].mxu1  ;;  %8626 = vmatprep.subr.bf16.mxu1 %v8923_v53  ;;  %v6269_v18 = vmax.f32 %v8790_v55, 0.0  ;;  %v6271_v25 = vmax.f32 %v8794_v7, 0.0  ;;  %v8940_v48 = vld [vmem:[#allocation6 + $0x38] sm:$0xff]   ;;  %v8944_v20 = vld [vmem:[#allocation6 + $0x100] sm:$0xff]  }
 0x388   :  { %v8793_v12 = vadd.f32 %v5742_v30, %v920_v16  ;;  %v8797_v22 = vadd.f32 %v5914_v13, %v928_v51  ;;  %v6270_v39 = vmax.f32 %v8791_v60, 0.0  ;;  %v6272_v29 = vmax.f32 %v8795_v2, 0.0  ;;  %v8941_v54 = vld [vmem:[#allocation6 + $0xb8] sm:$0xff]   ;;  %v8943_v16 = vld [vmem:[#allocation6 + $0x1c0] sm:$0xff]   ;;  %v8946_v52 = vld [vmem:[#allocation6 + $0x148] sm:$0xff]  }
 0x389   :  { %v6285_v19 = vmax.f32 %v8792_v15, 0.0  ;;  %v6287_v23 = vmax.f32 %v8796_v9, 0.0  ;;  %v8945_v51 = vld [vmem:[#allocation6 + $0x180] sm:$0xff]   ;;  %v8948_v53 = vld [vmem:[#allocation6 + $0x108] sm:$0xff]   ;;  %v8952_v7 = vld [vmem:[#allocation6 + $0x110] sm:$0xff]  }
 0x38a   :  { %v6286_v26 = vmax.f32 %v8793_v12, 0.0  ;;  %8605 = vmatpush3.bf16.msra.mxu0 %v8924_v8  ;;  %v6288_v32 = vmax.f32 %v8797_v22, 0.0  ;;  %8627 = vmatpush3.bf16.msra.mxu1 %v8925_v11  ;;  %v8949_v55 = vld [vmem:[#allocation6 + $0x188] sm:$0xff]   ;;  %v8954_v60 = vld [vmem:[#allocation6 + $0x158] sm:$0xff]   ;;  %v8958_v63 = vld [vmem:[#allocation6 + $0x160] sm:$0xff]  }
 0x38b   :  { %v9412_v58 = vpack.c.bf16 %v6285_v19, %v6269_v18  ;;  %8606 = vmatprep.subr.bf16.mxu0 %v8926_v6  ;;  %v9414_v35 = vpack.c.bf16 %v6287_v23, %v6271_v25  ;;  %8628 = vmatprep.subr.bf16.mxu1 %v8927_v17  ;;  %v8959_v8 = vld [vmem:[#allocation6 + $0x1e0] sm:$0xff]   ;;  %v8962_v15 = vld [vmem:[#allocation6 + $0x168] sm:$0xff]   ;;  %v8966_v6 = vld [vmem:[#allocation6 + $0x170] sm:$0xff]  }
 0x38c   :  { %v9416_v36 = vpack.c.bf16 %v6286_v26, %v6270_v39  ;;  %v9418_v38 = vpack.c.bf16 %v6288_v32, %v6272_v29  ;;  %v8961_v2 = vld [vmem:[#allocation6 + $0x1a0] sm:$0xff]   ;;  %v8963_v3 = vld [vmem:[#allocation6 + $0x1e8] sm:$0xff]   ;;  %v8967_v9 = vld [vmem:[#allocation6 + $0x1f0] sm:$0xff]  }
 0x38d   :  { %v8964_v30 = vld [vmem:[#allocation6 + $0x128] sm:$0xff]   ;;  %v8968_v12 = vld [vmem:[#allocation6 + $0x130] sm:$0xff]   ;;  %v8970_v17 = vld [vmem:[#allocation6 + $0x178] sm:$0xff]  }
 0x38e   :  { %8607 = vmatpush3.bf16.msra.mxu0 %v8928_v28  ;;  %8629 = vmatpush3.bf16.msra.mxu1 %v8929_v33  ;;  %v8965_v11 = vld [vmem:[#allocation6 + $0x1a8] sm:$0xff]   ;;  %v8969_v13 = vld [vmem:[#allocation6 + $0x1b0] sm:$0xff]   ;;  %v8971_v18 = vld [vmem:[#allocation6 + $0x1f8] sm:$0xff]  }
 0x38f   :  { %8608 = vmatprep.subr.bf16.mxu0 %v8930_v34  ;;  %8630 = vmatprep.subr.bf16.mxu1 %v8931_v37  ;;  %v8972_v19 = vld [vmem:[#allocation6 + $0x138] sm:$0xff]   ;;  %v8974_v25 = vld [vmem:[#allocation6 + $0x240] sm:$0xff]   ;;  %v8978_v28 = vld [vmem:[#allocation6 + $0x248] sm:$0xff]  }
 0x390   :  { %v8973_v22 = vld [vmem:[#allocation6 + $0x1b8] sm:$0xff]   ;;  %v8975_v39 = vld [vmem:[#allocation6 + $0x2c0] sm:$0xff]   ;;  %v8979_v29 = vld [vmem:[#allocation6 + $0x2c8] sm:$0xff]  }
 0x391   :  { %v8976_v23 = vld [vmem:[#allocation6 + $0x200] sm:$0xff]   ;;  %v8980_v32 = vld [vmem:[#allocation6 + $0x208] sm:$0xff]   ;;  %v8982_v34 = vld [vmem:[#allocation6 + $0x250] sm:$0xff]  }
 0x392   :  { %8609 = vmatpush3.bf16.msra.mxu0 %v8932_v40  ;;  %8631 = vmatpush3.bf16.msra.mxu1 %v8933_v41  ;;  %v8977_v26 = vld [vmem:[#allocation6 + $0x280] sm:$0xff]   ;;  %v8981_v33 = vld [vmem:[#allocation6 + $0x288] sm:$0xff]   ;;  %v8983_v37 = vld [vmem:[#allocation6 + $0x2d0] sm:$0xff]  }
 0x393   :  { %8610 = vmatprep.subr.bf16.mxu0 %v8934_v42  ;;  %8632 = vmatprep.subr.bf16.mxu1 %v8935_v43  ;;  %v8984_v40 = vld [vmem:[#allocation6 + $0x210] sm:$0xff]   ;;  %v8986_v41 = vld [vmem:[#allocation6 + $0x258] sm:$0xff]   ;;  %v8990_v43 = vld [vmem:[#allocation6 + $0x260] sm:$0xff]  }
 0x394   :  { %v8988_v42 = vld [vmem:[#allocation6 + $0x218] sm:$0xff]  }
 0x396   :  { %8611 = vmatpush3.bf16.msra.mxu0 %v8936_v44  ;;  %8633 = vmatpush3.bf16.msra.mxu1 %v8937_v49  ;;  %v8991_v44 = vld [vmem:[#allocation6 + $0x2e0] sm:$0xff]  }
 0x397   :  { %8612 = vmatprep.subr.bf16.mxu0 %v8938_v46  ;;  %8634 = vmatprep.subr.bf16.mxu1 %v8939_v47  ;;  %v8993_v49 = vld [vmem:[#allocation6 + $0x2a0] sm:$0xff]   ;;  %v8994_v46 = vld [vmem:[#allocation6 + $0x268] sm:$0xff]  }
 0x398   :  { %v8995_v47 = vld [vmem:[#allocation6 + $0x2e8] sm:$0xff]  }
 0x39a   :  { %8613 = vmatpush3.bf16.msra.mxu0 %v8940_v48  ;;  %8635 = vmatpush3.bf16.msra.mxu1 %v8941_v54  ;;  %v8996_v48 = vld [vmem:[#allocation6 + $0x228] sm:$0xff]  }
 0x39b   :  { %8642 = vmatprep.subr.bf16.mxu0 %v8942_v50  ;;  %8664 = vmatprep.subr.bf16.mxu1 %v8943_v16  ;;  %v8997_v54 = vld [vmem:[#allocation6 + $0x2a8] sm:$0xff]   ;;  %v8998_v50 = vld [vmem:[#allocation6 + $0x270] sm:$0xff]  }
 0x39c   :  { %v8999_v16 = vld [vmem:[#allocation6 + $0x2f0] sm:$0xff]  }
 0x39d   :  { %7373 = vmatmul.mubr.bf16.vlgmr.msra.gmra.mrb[16].mxu0 %v9334_v10  ;;  %7414 = vmatmul.mubr.bf16.vlgmr.msra.gmra.mrb[16].mxu1 %v9336_v14  ;;  %v8953_v10 = vld [vmem:[#allocation6 + $0x190] sm:$0xff]   ;;  %v8955_v14 = vld [vmem:[#allocation6 + $0x1d8] sm:$0xff]  }
 0x39e   :  { %8643 = vmatpush3.bf16.msra.mxu0 %v8944_v20  ;;  %7454 = vmatprep.mubr.bf16.mxu0 %v9376_v27  ;;  %v8957_v27 = vld [vmem:[#allocation6 + $0x198] sm:$0xff]   ;;  %v9000_v20 = vld [vmem:[#allocation6 + $0x230] sm:$0xff]  }
 0x39f   :  { %8665 = vmatpush3.bf16.msra.mxu1 %v8945_v51  ;;  %7495 = vmatprep.mubr.bf16.mxu1 %v9378_v31  ;;  %v8960_v31 = vld [vmem:[#allocation6 + $0x120] sm:$0xff]   ;;  %v9001_v51 = vld [vmem:[#allocation6 + $0x2b0] sm:$0xff]  }
 0x3a0   :  { %8644 = vmatprep.subr.bf16.mxu0 %v8946_v52  ;;  %8666 = vmatprep.subr.bf16.mxu1 %v8947_v4  ;;  %v9002_v52 = vld [vmem:[#allocation6 + $0x278] sm:$0xff]  }
 0x3a1   :  { %v9003_v4 = vld [vmem:[#allocation6 + $0x2f8] sm:$0xff]  }
 0x3a2   :  { %8645 = vmatpush3.bf16.msra.mxu0 %v8948_v53  ;;  %v9004_v53 = vld [vmem:[#allocation6 + $0x238] sm:$0xff]  }
 0x3a3   :  { %8667 = vmatpush3.bf16.msra.mxu1 %v8949_v55  ;;  %8646 = vmatprep.subr.bf16.mxu0 %v8950_v56  ;;  %v9005_v55 = vld [vmem:[#allocation6 + $0x2b8] sm:$0xff]   ;;  %v9006_v56 = vld [vmem:[#allocation6 + $0x340] sm:$0xff]  }
 0x3a4   :  { %8668 = vmatprep.subr.bf16.mxu1 %v8951_v57  ;;  %v9007_v57 = vld [vmem:[#allocation6 + $0x3c0] sm:$0xff]  }
 0x3a6   :  { %8647 = vmatpush3.bf16.msra.mxu0 %v8952_v7  ;;  %v9008_v7 = vld [vmem:[#allocation6 + $0x300] sm:$0xff]  }
 0x3a7   :  { %8669 = vmatpush3.bf16.msra.mxu1 %v8953_v10  ;;  %8648 = vmatprep.subr.bf16.mxu0 %v8954_v60  ;;  %v9009_v10 = vld [vmem:[#allocation6 + $0x380] sm:$0xff]   ;;  %v9010_v60 = vld [vmem:[#allocation6 + $0x348] sm:$0xff]  }
 0x3a8   :  { %8670 = vmatprep.subr.bf16.mxu1 %v8955_v14  ;;  %v9011_v14 = vld [vmem:[#allocation6 + $0x3c8] sm:$0xff]  }
 0x3aa   :  { %8649 = vmatpush3.bf16.msra.mxu0 %v8956_v61  ;;  %v9012_v61 = vld [vmem:[#allocation6 + $0x308] sm:$0xff]  }
 0x3ab   :  { %8671 = vmatpush3.bf16.msra.mxu1 %v8957_v27  ;;  %8650 = vmatprep.subr.bf16.mxu0 %v8958_v63  ;;  %v9013_v27 = vld [vmem:[#allocation6 + $0x388] sm:$0xff]   ;;  %v9014_v63 = vld [vmem:[#allocation6 + $0x350] sm:$0xff]  }
 0x3ac   :  { %8672 = vmatprep.subr.bf16.mxu1 %v8959_v8  ;;  %v9015_v8 = vld [vmem:[#allocation6 + $0x3d0] sm:$0xff]  }
 0x3ae   :  { %8651 = vmatpush3.bf16.msra.mxu0 %v8960_v31  ;;  %v9016_v31 = vld [vmem:[#allocation6 + $0x310] sm:$0xff]  }
 0x3af   :  { %8673 = vmatpush3.bf16.msra.mxu1 %v8961_v2  ;;  %8652 = vmatprep.subr.bf16.mxu0 %v8962_v15  ;;  %v9017_v2 = vld [vmem:[#allocation6 + $0x390] sm:$0xff]   ;;  %v9018_v15 = vld [vmem:[#allocation6 + $0x358] sm:$0xff]  }
 0x3b0   :  { %8674 = vmatprep.subr.bf16.mxu1 %v8963_v3  ;;  %v9019_v3 = vld [vmem:[#allocation6 + $0x3d8] sm:$0xff]  }
 0x3b2   :  { %8653 = vmatpush3.bf16.msra.mxu0 %v8964_v30  ;;  %v9022_v30 = vld [vmem:[#allocation6 + $0x360] sm:$0xff]  }
 0x3b3   :  { %8675 = vmatpush3.bf16.msra.mxu1 %v8965_v11  ;;  %8654 = vmatprep.subr.bf16.mxu0 %v8966_v6  ;;  %v9023_v11 = vld [vmem:[#allocation6 + $0x3e0] sm:$0xff]  }
 0x3b4   :  { %8676 = vmatprep.subr.bf16.mxu1 %v8967_v9  ;;  %v9024_v6 = vld [vmem:[#allocation6 + $0x320] sm:$0xff]  }
 0x3b5   :  { %v9025_v9 = vld [vmem:[#allocation6 + $0x3a0] sm:$0xff]  }
 0x3b6   :  { %8655 = vmatpush3.bf16.msra.mxu0 %v8968_v12  ;;  %v9026_v12 = vld [vmem:[#allocation6 + $0x368] sm:$0xff]  }
 0x3b7   :  { %8677 = vmatpush3.bf16.msra.mxu1 %v8969_v13  ;;  %8656 = vmatprep.subr.bf16.mxu0 %v8970_v17  ;;  %v9027_v13 = vld [vmem:[#allocation6 + $0x3e8] sm:$0xff]  }
 0x3b8   :  { %8678 = vmatprep.subr.bf16.mxu1 %v8971_v18  ;;  %v9028_v17 = vld [vmem:[#allocation6 + $0x328] sm:$0xff]  }
 0x3b9   :  { %v9029_v18 = vld [vmem:[#allocation6 + $0x3a8] sm:$0xff]  }
 0x3ba   :  { %8657 = vmatpush3.bf16.msra.mxu0 %v8972_v19  ;;  %v9030_v19 = vld [vmem:[#allocation6 + $0x370] sm:$0xff]  }
 0x3bb   :  { %8679 = vmatpush3.bf16.msra.mxu1 %v8973_v22  ;;  %8686 = vmatprep.subr.bf16.mxu0 %v8974_v25  ;;  %v9031_v22 = vld [vmem:[#allocation6 + $0x3f0] sm:$0xff]  }
 0x3bc   :  { %8708 = vmatprep.subr.bf16.mxu1 %v8975_v39  ;;  %v9032_v25 = vld [vmem:[#allocation6 + $0x330] sm:$0xff]  }
 0x3bd   :  { %7455 = vmatmul.mubr.bf16.vlgmr.msra.gmra.mrb[20].mxu0 %v9372_v21  ;;  %v8985_v21 = vld [vmem:[#allocation6 + $0x290] sm:$0xff]  }
 0x3be   :  { %7496 = vmatmul.mubr.bf16.vlgmr.msra.gmra.mrb[20].mxu1 %v9374_v24  ;;  %8687 = vmatpush3.bf16.msra.mxu0 %v8976_v23  ;;  %v8987_v24 = vld [vmem:[#allocation6 + $0x2d8] sm:$0xff]   ;;  %v9033_v39 = vld [vmem:[#allocation6 + $0x3b0] sm:$0xff]  }
 0x3bf   :  { %7536 = vmatprep.mubr.bf16.mxu0 %v9416_v36  ;;  %8709 = vmatpush3.bf16.msra.mxu1 %v8977_v26  ;;  %v8989_v36 = vld [vmem:[#allocation6 + $0x298] sm:$0xff]  }
 0x3c0   :  { %7577 = vmatprep.mubr.bf16.mxu1 %v9418_v38  ;;  %8688 = vmatprep.subr.bf16.mxu0 %v8978_v28  ;;  %v8992_v38 = vld [vmem:[#allocation6 + $0x220] sm:$0xff]   ;;  %v9034_v23 = vld [vmem:[#allocation6 + $0x378] sm:$0xff]  }
 0x3c1   :  { %8710 = vmatprep.subr.bf16.mxu1 %v8979_v29  ;;  %v9035_v26 = vld [vmem:[#allocation6 + $0x3f8] sm:$0xff]  }
 0x3c2   :  { %8689 = vmatpush3.bf16.msra.mxu0 %v8980_v32  ;;  %v9036_v28 = vld [vmem:[#allocation6 + $0x338] sm:$0xff]   ;;  %v932_v32 = vrot.slane %v9396_v45, %v899_v62 }
 0x3c3   :  { %8711 = vmatpush3.bf16.msra.mxu1 %v8981_v33  ;;  %8690 = vmatprep.subr.bf16.mxu0 %v8982_v34  ;;  %v9037_v29 = vld [vmem:[#allocation6 + $0x3b8] sm:$0xff]   ;;  %v940_v33 = vrot.slane %v9396_v45, %v907_v0  ;;  %v936_v34 = vrot.slane %v9396_v45, %v903_v1 }
 0x3c4   :  { %8712 = vmatprep.subr.bf16.mxu1 %v8983_v37  ;;  %v944_v37 = vrot.slane %v9396_v45, %v911_v5 }
 0x3c6   :  { %8691 = vmatpush3.bf16.msra.mxu0 %v8984_v40 }
 0x3c7   :  { %8713 = vmatpush3.bf16.msra.mxu1 %v8985_v21  ;;  %8692 = vmatprep.subr.bf16.mxu0 %v8986_v41 }
 0x3c8   :  { %8714 = vmatprep.subr.bf16.mxu1 %v8987_v24 }
 0x3ca   :  { %8693 = vmatpush3.bf16.msra.mxu0 %v8988_v42 }
 0x3cb   :  { %8715 = vmatpush3.bf16.msra.mxu1 %v8989_v36  ;;  %8694 = vmatprep.subr.bf16.mxu0 %v8990_v43 }
 0x3cc   :  { %8716 = vmatprep.subr.bf16.mxu1 %v8991_v44 }
 0x3ce   :  { %8695 = vmatpush3.bf16.msra.mxu0 %v8992_v38 }
 0x3cf   :  { %8717 = vmatpush3.bf16.msra.mxu1 %v8993_v49  ;;  %8696 = vmatprep.subr.bf16.mxu0 %v8994_v46 }
 0x3d0   :  { %8718 = vmatprep.subr.bf16.mxu1 %v8995_v47 }
 0x3d2   :  { %8697 = vmatpush3.bf16.msra.mxu0 %v8996_v48 }
 0x3d3   :  { %8719 = vmatpush3.bf16.msra.mxu1 %v8997_v54  ;;  %8698 = vmatprep.subr.bf16.mxu0 %v8998_v50 }
 0x3d4   :  { %8720 = vmatprep.subr.bf16.mxu1 %v8999_v16 }
 0x3d6   :  { %8699 = vmatpush3.bf16.msra.mxu0 %v9000_v20 }
 0x3d7   :  { %8721 = vmatpush3.bf16.msra.mxu1 %v9001_v51  ;;  %8700 = vmatprep.subr.bf16.mxu0 %v9002_v52 }
 0x3d8   :  { %8722 = vmatprep.subr.bf16.mxu1 %v9003_v4 }
 0x3da   :  { %8701 = vmatpush3.bf16.msra.mxu0 %v9004_v53 }
 0x3db   :  { %8723 = vmatpush3.bf16.msra.mxu1 %v9005_v55  ;;  %8730 = vmatprep.subr.bf16.mxu0 %v9006_v56 }
 0x3dc   :  { %8752 = vmatprep.subr.bf16.mxu1 %v9007_v57 }
 0x3dd   :  { %7537 = vmatmul.mubr.bf16.vlgmr.msra.gmra.mrb[24].mxu0 %v9412_v58  ;;  %v9020_v58 = vld [vmem:[#allocation6 + $0x318] sm:$0xff]  }
 0x3de   :  { %7578 = vmatmul.mubr.bf16.vlgmr.msra.gmra.mrb[24].mxu1 %v9414_v35  ;;  %8731 = vmatpush3.bf16.msra.mxu0 %v9008_v7  ;;  %v9021_v35 = vld [vmem:[#allocation6 + $0x398] sm:$0xff]   ;;  %v8469_v7 = vld [vmem:[#allocation7] ss:$0 sm:$0xff] }
 0x3df   :  { %8753 = vmatpush3.bf16.msra.mxu1 %v9009_v10  ;;  %8732 = vmatprep.subr.bf16.mxu0 %v9010_v60 }
 0x3e0   :  { %8754 = vmatprep.subr.bf16.mxu1 %v9011_v14 }
 0x3e2   :  { %8733 = vmatpush3.bf16.msra.mxu0 %v9012_v61 }
 0x3e3   :  { %8755 = vmatpush3.bf16.msra.mxu1 %v9013_v27  ;;  %8734 = vmatprep.subr.bf16.mxu0 %v9014_v63 }
 0x3e4   :  { %8756 = vmatprep.subr.bf16.mxu1 %v9015_v8 }
 0x3e6   :  { %8735 = vmatpush3.bf16.msra.mxu0 %v9016_v31 }
 0x3e7   :  { %8757 = vmatpush3.bf16.msra.mxu1 %v9017_v2  ;;  %8736 = vmatprep.subr.bf16.mxu0 %v9018_v15 }
 0x3e8   :  { %8758 = vmatprep.subr.bf16.mxu1 %v9019_v3 }
 0x3ea   :  { %8737 = vmatpush3.bf16.msra.mxu0 %v9020_v58 }
 0x3eb   :  { %8759 = vmatpush3.bf16.msra.mxu1 %v9021_v35  ;;  %8738 = vmatprep.subr.bf16.mxu0 %v9022_v30 }
 0x3ec   :  { %8760 = vmatprep.subr.bf16.mxu1 %v9023_v11 }
 0x3ee   :  { %8739 = vmatpush3.bf16.msra.mxu0 %v9024_v6 }
 0x3ef   :  { %8761 = vmatpush3.bf16.msra.mxu1 %v9025_v9  ;;  %8740 = vmatprep.subr.bf16.mxu0 %v9026_v12 }
 0x3f0   :  { %8762 = vmatprep.subr.bf16.mxu1 %v9027_v13 }
 0x3f2   :  { %8741 = vmatpush3.bf16.msra.mxu0 %v9028_v17 }
 0x3f3   :  { %8763 = vmatpush3.bf16.msra.mxu1 %v9029_v18  ;;  %8742 = vmatprep.subr.bf16.mxu0 %v9030_v19 }
 0x3f4   :  { %8764 = vmatprep.subr.bf16.mxu1 %v9031_v22 }
 0x3f6   :  { %8743 = vmatpush3.bf16.msra.mxu0 %v9032_v25 }
 0x3f7   :  { %8765 = vmatpush3.bf16.msra.mxu1 %v9033_v39  ;;  %8744 = vmatprep.subr.bf16.mxu0 %v9034_v23 }
 0x3f8   :  { %8766 = vmatprep.subr.bf16.mxu1 %v9035_v26 }
 0x3fa   :  { %8745 = vmatpush3.bf16.msra.mxu0 %v9036_v28 }
 0x3fb   :  { %8767 = vmatpush3.bf16.msra.mxu1 %v9037_v29 }
 0x450   :  { %v6080_v40 = vpop.f32.mrb[12].mxu0  ;;  %v6252_v41 = vpop.f32.mrb[12].mxu1 }
 0x451   :  { %v8798_v21 = vadd.f32 %v6080_v40, %v932_v32  ;;  %v6082_v24 = vpop.f32.mrb[13].mxu0  ;;  %v8802_v42 = vadd.f32 %v6252_v41, %v940_v33  ;;  %v6254_v43 = vpop.f32.mrb[13].mxu1 }
 0x452   :  { %v8799_v36 = vadd.f32 %v6082_v24, %v936_v34  ;;  %v6084_v62 = vpop.f32.mrb[14].mxu0  ;;  %v8803_v44 = vadd.f32 %v6254_v43, %v944_v37  ;;  %v6256_v49 = vpop.f32.mrb[14].mxu1 }
 0x453   :  { %v8800_v38 = vadd.f32 %v6084_v62, %v932_v32  ;;  %v6086_v0 = vpop.f32.mrb[15].mxu0  ;;  %v8804_v46 = vadd.f32 %v6256_v49, %v940_v33  ;;  %v6258_v48 = vpop.f32.mrb[15].mxu1  ;;  %v6273_v1 = vmax.f32 %v8798_v21, 0.0  ;;  %v6275_v50 = vmax.f32 %v8802_v42, 0.0 }
 0x454   :  { %v8801_v47 = vadd.f32 %v6086_v0, %v936_v34  ;;  %v8805_v59 = vadd.f32 %v6258_v48, %v944_v37  ;;  %v6274_v5 = vmax.f32 %v8799_v36, 0.0  ;;  %v6276_v20 = vmax.f32 %v8803_v44, 0.0 }
 0x455   :  { %v6289_v54 = vmax.f32 %v8800_v38, 0.0  ;;  %v6291_v45 = vmax.f32 %v8804_v46, 0.0 }
 0x456   :  { %v6290_v16 = vmax.f32 %v8801_v47, 0.0  ;;  %v6292_v52 = vmax.f32 %v8805_v59, 0.0 }
 0x457   :  { %v6305_v51 = vpack.c.bf16 %v6289_v54, %v6273_v1  ;;  %v6307_v4 = vpack.c.bf16 %v6291_v45, %v6275_v50 }
 0x458   :  { %v6306_v53 = vpack.c.bf16 %v6290_v16, %v6274_v5  ;;  %v6308_v55 = vpack.c.bf16 %v6292_v52, %v6276_v20 }
 0x45a   :  { %7618 = vmatprep.mubr.bf16.mxu0 %v6306_v53  ;;  %7659 = vmatprep.mubr.bf16.mxu1 %v6308_v55 }
 0x45b   :  { %7619 = vmatmul.mubr.bf16.vlgmr.msra.gmra.mrb[28].mxu0 %v6305_v51  ;;  %7660 = vmatmul.mubr.bf16.vlgmr.msra.gmra.mrb[28].mxu1 %v6307_v4 }
 0x470   :  { %v8614_v56 = vpop.f32.mrb[16].mxu0  ;;  %v8636_v57 = vpop.f32.mrb[16].mxu1 }
 0x471   :  { %v8615_v10 = vpop.f32.mrb[17].mxu0  ;;  %v8637_v14 = vpop.f32.mrb[17].mxu1 }
 0x472   :  { %v8616_v60 = vadd.f32 %v8615_v10, %v8614_v56  ;;  %v8617_v61 = vpop.f32.mrb[18].mxu0  ;;  %v8638_v27 = vadd.f32 %v8637_v14, %v8636_v57  ;;  %v8639_v63 = vpop.f32.mrb[18].mxu1 }
 0x473   :  { %v8618_v8 = vpop.f32.mrb[19].mxu0  ;;  %v8640_v15 = vpop.f32.mrb[19].mxu1 }
 0x474   :  { %v7375_v31 = vadd.f32 %v8616_v60, %v8469_v7  ;;  %v8619_v2 = vadd.f32 %v8618_v8, %v8617_v61  ;;  %v8641_v3 = vadd.f32 %v8640_v15, %v8639_v63 }
 0x476   :  { %v7416_v58 = vadd.f32 %v8638_v27, %v7375_v31  ;;  %v7378_v35 = vadd.f32 %v8619_v2, %v8469_v7 }
 0x478   :  { %v7419_v30 = vadd.f32 %v8641_v3, %v7378_v35 }
 0x490   :  { %v8658_v11 = vpop.f32.mrb[20].mxu0 }
 0x491   :  { %v8680_v6 = vpop.f32.mrb[20].mxu1  ;;  %v8659_v9 = vpop.f32.mrb[21].mxu0 }
 0x492   :  { %v8660_v12 = vadd.f32 %v8659_v9, %v8658_v11  ;;  %v8681_v13 = vpop.f32.mrb[21].mxu1  ;;  %v8661_v17 = vpop.f32.mrb[22].mxu0 }
 0x493   :  { %v8682_v18 = vadd.f32 %v8681_v13, %v8680_v6  ;;  %v8683_v19 = vpop.f32.mrb[22].mxu1  ;;  %v8662_v22 = vpop.f32.mrb[23].mxu0 }
 0x494   :  { %v7457_v25 = vadd.f32 %v8660_v12, %v7416_v58  ;;  %v8663_v39 = vadd.f32 %v8662_v22, %v8661_v17  ;;  %v8684_v23 = vpop.f32.mrb[23].mxu1 }
 0x495   :  { %v8685_v26 = vadd.f32 %v8684_v23, %v8683_v19 }
 0x496   :  { %v7498_v28 = vadd.f32 %v8682_v18, %v7457_v25  ;;  %v7460_v29 = vadd.f32 %v8663_v39, %v7419_v30 }
 0x498   :  { %v7501_v32 = vadd.f32 %v8685_v26, %v7460_v29 }
 0x4b0   :  { %v8702_v33 = vpop.f32.mrb[24].mxu0 }
 0x4b1   :  { %v8724_v34 = vpop.f32.mrb[24].mxu1  ;;  %v8703_v37 = vpop.f32.mrb[25].mxu0 }
 0x4b2   :  { %v8704_v40 = vadd.f32 %v8703_v37, %v8702_v33  ;;  %v8725_v21 = vpop.f32.mrb[25].mxu1  ;;  %v8705_v41 = vpop.f32.mrb[26].mxu0 }
 0x4b3   :  { %v8726_v24 = vadd.f32 %v8725_v21, %v8724_v34  ;;  %v8727_v42 = vpop.f32.mrb[26].mxu1  ;;  %v8706_v36 = vpop.f32.mrb[27].mxu0 }
 0x4b4   :  { %v7539_v43 = vadd.f32 %v8704_v40, %v7498_v28  ;;  %v8707_v62 = vadd.f32 %v8706_v36, %v8705_v41  ;;  %v8728_v44 = vpop.f32.mrb[27].mxu1 }
 0x4b5   :  { %v8729_v38 = vadd.f32 %v8728_v44, %v8727_v42 }
 0x4b6   :  { %v7580_v49 = vadd.f32 %v8726_v24, %v7539_v43  ;;  %v7542_v0 = vadd.f32 %v8707_v62, %v7501_v32 }
 0x4b8   :  { %v7583_v46 = vadd.f32 %v8729_v38, %v7542_v0 }
 0x52e   :  { %v8746_v47 = vpop.f32.mrb[28].mxu0  ;;  %v8768_v48 = vpop.f32.mrb[28].mxu1 }
 0x52f   :  { %v8747_v1 = vpop.f32.mrb[29].mxu0  ;;  %v8769_v59 = vpop.f32.mrb[29].mxu1 }
 0x530   :  { %v8748_v54 = vadd.f32 %v8747_v1, %v8746_v47  ;;  %v8749_v50 = vpop.f32.mrb[30].mxu0  ;;  %v8770_v5 = vadd.f32 %v8769_v59, %v8768_v48  ;;  %v8771_v45 = vpop.f32.mrb[30].mxu1 }
 0x531   :  { %v8750_v16 = vpop.f32.mrb[31].mxu0  ;;  %v8772_v52 = vpop.f32.mrb[31].mxu1 }
 0x532   :  { %v7621_v20 = vadd.f32 %v8748_v54, %v7580_v49  ;;  %v8751_v51 = vadd.f32 %v8750_v16, %v8749_v50  ;;  %v8773_v4 = vadd.f32 %v8772_v52, %v8771_v45 }
 0x534   :  { %v7662_v53 = vadd.f32 %v8770_v5, %v7621_v20  ;;  %v7624_v55 = vadd.f32 %v8751_v51, %v7583_v46 }
 0x536   :  { %7668 = vst [vmem:[%s9453_s5] sm:$0xff] %v7662_v53  ;;  %v7665_v56 = vadd.f32 %v8773_v4, %v7624_v55 }
 0x538   :  { %7669 = vst [vmem:[%s9453_s5 + $0x8] sm:$0xff] %v7665_v56 }
 0x539   :  { %7674 = vsyncpa [#allocation3], 1 }
 0x53a   :  { %7675 = vsyncpa [#allocation5], 1 }
 0x53b   :  { %7676 = vsyncpa [#allocation8], 1 }

// kernel: _forward_impl.1
= control target key start
LH: loop header
LB: loop body
LE: loop exit
PB: predicated region body
PF: predicated region fallthrough
CT: control target
= control target key end

     0   :  { %10 = vsyncpa [#allocation3], 0  ;;  %s9448_s0 = inlined_call_operand.vmem [shape: f32[16,784], index: 0, kind: input, shape index: {}]   ;;  %s9449_s1 = inlined_call_operand.hbm [shape: bf16[784,2048], index: 1, kind: input, shape index: {}]   ;;  %s9450_s2 = inlined_call_operand.hbm [shape: f32[1,2048], index: 2, kind: input, shape index: {}]   ;;  %s9451_s3 = inlined_call_operand.hbm [shape: bf16[2048,128], index: 3, kind: input, shape index: {}]   ;;  %s9452_s4 = inlined_call_operand.hbm [shape: f32[1,128], index: 4, kind: input, shape index: {}]   ;;  %s9453_s5 = inlined_call_operand.vmem [shape: f32[16,128], index: 5, kind: output, shape index: {}]  }
   0x1   :  { %11 = vsyncpa [#allocation5], 0 }
   0x2   :  { %12 = vsyncpa [#allocation8], 0  ;;  %s9133_s18 = smov [#allocation4]   ;;  %s9134_s20 = smov [#allocation2]  }
   0x3   :  { %s33_s19 = sshll.u32 %s9133_s18, 4  ;;  %s20_s21 = sshll.u32 %s9134_s20, 4  ;;  %s34_s19 = int_to_ptr.vmem [resolvable:$true] %s33_s19  ;;  %s9171_s21 = int_to_ptr.vmem [resolvable:$true] %s20_s21 }
   0x4   :  { %s9039_s24 = scalar_lea.hbm %s9450_s2, 256 }
   0x5   :  { %p9040_p0 = scmp.ne.s32.totalorder %s9450_s2, %s9039_s24  ;;  %p9043_p1 = scmp.lt.u32.totalorder %s9039_s24, %s9450_s2 }
   0x7   :  { %p9045_p2 = pnand %p9043_p1, %p9040_p0 }
   0x9   :  { %9048 = shalt.err (!%p9045_p2)
}
   0xa   :  { %s9049_s29 = scalar_lea.vmem %s34_s19, 256  ;;  %p9054_p4 = scmp.lt.s32.totalorder %s34_s19, %s34_s19 }
   0xb   :  { %p9050_p3 = scmp.ne.s32.totalorder %s34_s19, %s9049_s29  ;;  %p9055_p5 = scmp.lt.s32.totalorder %s9049_s29, %s9049_s29 }
   0xd   :  { %p9056_p6 = por %p9055_p5, %p9054_p4 }
   0xf   :  { %p9057_p7 = pnand %p9056_p6, %p9050_p3 }
  0x11   :  { %9060 = shalt.err (!%p9057_p7)
}
  0x12   :  { %36 = dma.hbm_to_vmem [thread:$0]  %s9450_s2, 256, %s34_s19, [#allocation5]  }
  0x13   :  { %s9061_s9 = scalar_lea.hbm %s9449_s1, 100352 }
  0x14   :  { %p9062_p8 = scmp.ne.s32.totalorder %s9449_s1, %s9061_s9  ;;  %p9065_p9 = scmp.lt.u32.totalorder %s9061_s9, %s9449_s1 }
  0x16   :  { %p9067_p10 = pnand %p9065_p9, %p9062_p8 }
  0x18   :  { %9070 = shalt.err (!%p9067_p10)
}
  0x19   :  { %s9071_s14 = scalar_lea.vmem %s9171_s21, 100352  ;;  %p9076_p12 = scmp.lt.s32.totalorder %s9171_s21, %s9171_s21 }
  0x1a   :  { %p9072_p11 = scmp.ne.s32.totalorder %s9171_s21, %s9071_s14  ;;  %p9077_p13 = scmp.lt.s32.totalorder %s9071_s14, %s9071_s14 }
  0x1c   :  { %p9078_p0 = por %p9077_p13, %p9076_p12 }
  0x1e   :  { %p9079_p1 = pnand %p9078_p0, %p9072_p11 }
  0x20   :  { %9082 = shalt.err (!%p9079_p1)
}
  0x21   :  { %s9135_s2 = smov 1024   ;;  %s9136_s15 = smov 64  }
  0x22   :  { %26 = dma.hbm_to_vmem [thread:$0]  %s9449_s1, 100352, %s9171_s21, [#allocation3], %s9135_s2, %s9135_s2, %s9136_s15  }
  0x23   :  { %s9137_s18 = smov [#allocation6]   ;;  %s9138_s20 = smov [#allocation7]  }
  0x24   :  { %s42_s19 = sshll.u32 %s9137_s18, 4  ;;  %s55_s22 = sshll.u32 %s9138_s20, 4  ;;  %s43_s19 = int_to_ptr.vmem [resolvable:$true] %s42_s19  ;;  %s56_s22 = int_to_ptr.vmem [resolvable:$true] %s55_s22 }
  0x25   :  { %s9083_s25 = scalar_lea.hbm %s9451_s3, 16384 }
  0x26   :  { %p9084_p2 = scmp.ne.s32.totalorder %s9451_s3, %s9083_s25  ;;  %p9087_p3 = scmp.lt.u32.totalorder %s9083_s25, %s9451_s3 }
  0x28   :  { %p9089_p4 = pnand %p9087_p3, %p9084_p2 }
  0x2a   :  { %9092 = shalt.err (!%p9089_p4)
}
  0x2b   :  { %s9093_s1 = scalar_lea.vmem %s43_s19, 16384  ;;  %p9098_p6 = scmp.lt.s32.totalorder %s43_s19, %s43_s19 }
  0x2c   :  { %p9094_p5 = scmp.ne.s32.totalorder %s43_s19, %s9093_s1  ;;  %p9099_p7 = scmp.lt.s32.totalorder %s9093_s1, %s9093_s1 }
  0x2e   :  { %p9100_p8 = por %p9099_p7, %p9098_p6 }
  0x30   :  { %p9101_p9 = pnand %p9100_p8, %p9094_p5 }
  0x32   :  { %9104 = shalt.err (!%p9101_p9)
}
  0x33   :  { %s9139_s21 = smov 4   ;;  %s9105_s9 = scalar_lea.hbm %s9452_s4, 16 }
  0x34   :  { %48 = dma.hbm_to_vmem [thread:$0]  %s9451_s3, 16384, %s43_s19, [#allocation5], %s9136_s15, %s9136_s15, %s9139_s21  }
  0x35   :  { %p9106_p10 = scmp.ne.s32.totalorder %s9452_s4, %s9105_s9  ;;  %p9109_p11 = scmp.lt.u32.totalorder %s9105_s9, %s9452_s4 }
  0x37   :  { %p9111_p12 = pnand %p9109_p11, %p9106_p10 }
  0x39   :  { %9114 = shalt.err (!%p9111_p12)
}
  0x3a   :  { %s9115_s14 = scalar_lea.vmem %s56_s22, 16  ;;  %s9119_s2 = scalar_lea.vmem %s56_s22, 32 }
  0x3b   :  { %p9116_p13 = scmp.ne.s32.totalorder %s56_s22, %s9115_s14  ;;  %p9120_p0 = scmp.lt.s32.totalorder %s56_s22, %s56_s22 }
  0x3c   :  { %p9121_p1 = scmp.lt.s32.totalorder %s9119_s2, %s9115_s14 }
  0x3e   :  { %p9122_p2 = por %p9121_p1, %p9120_p0 }
  0x40   :  { %p9123_p3 = pnand %p9122_p2, %p9116_p13 }
  0x42   :  { %9126 = shalt.err (!%p9123_p3)
}
  0x43   :  { %58 = dma.hbm_to_vmem [thread:$0]  %s9452_s4, 16, %s56_s22, [#allocation8]  }
  0x44   :  { %9127 = dma.done.wait [#allocation3], 100352  }
  0x45   :  { %9128 = vsyncadd [#allocation3], 4294866944 }
  0x46   :  { %9129 = dma.done.wait [#allocation5], 16640  }
  0x47   :  { %9130 = vsyncadd [#allocation5], 4294950656 }
  0x48   :  { %9131 = dma.done.wait [#allocation8], 16  }
  0x49   :  { %9132 = vsyncadd [#allocation8], 4294967280  ;;  %v93_v0 = vld [vmem:[#allocation2] sm:$0xff]  ;;  %v94_v2 = vld [vmem:[#allocation2 + $0x8] sm:$0xff]  ;;  %vm4881_vm0 = vcmask 130048  }
  0x4a   :  { %v101_v1 = vld [vmem:[#allocation2 + $0x40] sm:$0xff]  ;;  %v102_v4 = vld [vmem:[#allocation2 + $0x48] sm:$0xff] }
  0x4b   :  { %v7678_v3 = vcombine.high %v93_v0, %v101_v1  ;;  %v7677_v5 = vcombine.low %v93_v0, %v101_v1  ;;  %v109_v6 = vld [vmem:[#allocation2 + $0x80] sm:$0xff]  ;;  %v7680_v8 = vcombine.high %v94_v2, %v102_v4  ;;  %v7679_v9 = vcombine.low %v94_v2, %v102_v4  ;;  %v110_v11 = vld [vmem:[#allocation2 + $0x88] sm:$0xff] }
  0x4c   :  { %v117_v7 = vld [vmem:[#allocation2 + $0xc0] sm:$0xff]  ;;  %v118_v12 = vld [vmem:[#allocation2 + $0xc8] sm:$0xff] }
  0x4d   :  { %v7694_v10 = vcombine.high %v109_v6, %v117_v7  ;;  %v125_v13 = vld [vmem:[#allocation2 + $0x100] sm:$0xff]  ;;  %4885 = vmatprep.subr.bf16.mxu0 %v7678_v3  ;;  %v7696_v14 = vcombine.high %v110_v11, %v118_v12  ;;  %v126_v16 = vld [vmem:[#allocation2 + $0x108] sm:$0xff]  ;;  %5057 = vmatprep.subr.bf16.mxu1 %v7680_v8  ;;  %v7693_v18 = vcombine.low %v109_v6, %v117_v7 }
  0x4e   :  { %v133_v15 = vld [vmem:[#allocation2 + $0x140] sm:$0xff]  ;;  %v134_v17 = vld [vmem:[#allocation2 + $0x148] sm:$0xff]  ;;  %4886 = vmatpush1.bf16.msra.mxu0 %v7677_v5  ;;  %5058 = vmatpush1.bf16.msra.mxu1 %v7679_v9  ;;  %v7695_v19 = vcombine.low %v110_v11, %v118_v12 }
  0x4f   :  { %4887 = vmatprep.subr.bf16.mxu0 %v7694_v10  ;;  %v7710_v20 = vcombine.high %v125_v13, %v133_v15  ;;  %5059 = vmatprep.subr.bf16.mxu1 %v7696_v14  ;;  %v7712_v21 = vcombine.high %v126_v16, %v134_v17  ;;  %v141_v22 = vld [vmem:[#allocation2 + $0x180] sm:$0xff]  ;;  %v142_v24 = vld [vmem:[#allocation2 + $0x188] sm:$0xff]  ;;  %v7709_v26 = vcombine.low %v125_v13, %v133_v15 }
  0x50   :  { %v149_v23 = vld [vmem:[#allocation2 + $0x1c0] sm:$0xff]  ;;  %v150_v25 = vld [vmem:[#allocation2 + $0x1c8] sm:$0xff]  ;;  %v7711_v27 = vcombine.low %v126_v16, %v134_v17 }
  0x51   :  { %v7726_v28 = vcombine.high %v141_v22, %v149_v23  ;;  %v7728_v29 = vcombine.high %v142_v24, %v150_v25  ;;  %v157_v30 = vld [vmem:[#allocation2 + $0x200] sm:$0xff]  ;;  %v158_v32 = vld [vmem:[#allocation2 + $0x208] sm:$0xff]  ;;  %v7725_v34 = vcombine.low %v141_v22, %v149_v23  ;;  %v7727_v35 = vcombine.low %v142_v24, %v150_v25 }
  0x52   :  { %4888 = vmatpush1.bf16.msra.mxu0 %v7693_v18  ;;  %5060 = vmatpush1.bf16.msra.mxu1 %v7695_v19  ;;  %v165_v31 = vld [vmem:[#allocation2 + $0x240] sm:$0xff]  ;;  %v166_v33 = vld [vmem:[#allocation2 + $0x248] sm:$0xff] }
  0x53   :  { %4889 = vmatprep.subr.bf16.mxu0 %v7710_v20  ;;  %5061 = vmatprep.subr.bf16.mxu1 %v7712_v21  ;;  %v7742_v36 = vcombine.high %v157_v30, %v165_v31  ;;  %v7744_v37 = vcombine.high %v158_v32, %v166_v33  ;;  %v173_v38 = vld [vmem:[#allocation2 + $0x280] sm:$0xff]  ;;  %v174_v40 = vld [vmem:[#allocation2 + $0x288] sm:$0xff]  ;;  %v7741_v42 = vcombine.low %v157_v30, %v165_v31 }
  0x54   :  { %v181_v39 = vld [vmem:[#allocation2 + $0x2c0] sm:$0xff]  ;;  %v182_v41 = vld [vmem:[#allocation2 + $0x2c8] sm:$0xff]  ;;  %v7743_v43 = vcombine.low %v158_v32, %v166_v33 }
  0x55   :  { %v7758_v44 = vcombine.high %v173_v38, %v181_v39  ;;  %v7760_v45 = vcombine.high %v174_v40, %v182_v41  ;;  %v189_v46 = vld [vmem:[#allocation2 + $0x300] sm:$0xff]  ;;  %v190_v48 = vld [vmem:[#allocation2 + $0x308] sm:$0xff]  ;;  %v7757_v50 = vcombine.low %v173_v38, %v181_v39  ;;  %v7759_v51 = vcombine.low %v174_v40, %v182_v41 }
  0x56   :  { %4890 = vmatpush1.bf16.msra.mxu0 %v7709_v26  ;;  %5062 = vmatpush1.bf16.msra.mxu1 %v7711_v27  ;;  %v197_v47 = vld [vmem:[#allocation2 + $0x340] sm:$0xff]  ;;  %v198_v49 = vld [vmem:[#allocation2 + $0x348] sm:$0xff] }
  0x57   :  { %4891 = vmatprep.subr.bf16.mxu0 %v7726_v28  ;;  %5063 = vmatprep.subr.bf16.mxu1 %v7728_v29  ;;  %v7774_v52 = vcombine.high %v189_v46, %v197_v47  ;;  %v73_v53 = vld [vmem:[%s9448_s0 + $0x8] sm:$0xff]  ;;  %v80_v54 = vld [vmem:[%s9448_s0 + $0x40] sm:$0xff]  ;;  %v7776_v55 = vcombine.high %v190_v48, %v198_v49  ;;  %v7773_v61 = vcombine.low %v189_v46, %v197_v47 }
  0x58   :  { %v205_v56 = vld [vmem:[#allocation2 + $0x380] sm:$0xff]  ;;  %v9232_v58 = vpack.c.bf16 %v80_v54, %v73_v53  ;;  %v206_v59 = vld [vmem:[#allocation2 + $0x388] sm:$0xff]  ;;  %v7775_v62 = vcombine.low %v190_v48, %v198_v49 }
  0x59   :  { %v213_v57 = vld [vmem:[#allocation2 + $0x3c0] sm:$0xff]  ;;  %v214_v60 = vld [vmem:[#allocation2 + $0x3c8] sm:$0xff] }
  0x5a   :  { %4892 = vmatpush1.bf16.msra.mxu0 %v7725_v34  ;;  %5064 = vmatpush1.bf16.msra.mxu1 %v7727_v35  ;;  %v7790_v63 = vcombine.high %v205_v56, %v213_v57  ;;  %v7792_v0 = vcombine.high %v206_v59, %v214_v60  ;;  %v221_v1 = vld [vmem:[#allocation2 + $0x400] sm:$0xff]  ;;  %v222_v3 = vld [vmem:[#allocation2 + $0x408] sm:$0xff]  ;;  %v7789_v5 = vcombine.low %v205_v56, %v213_v57 }
  0x5b   :  { %4893 = vmatprep.subr.bf16.mxu0 %v7742_v36  ;;  %5065 = vmatprep.subr.bf16.mxu1 %v7744_v37  ;;  %v229_v2 = vld [vmem:[#allocation2 + $0x440] sm:$0xff]  ;;  %v230_v4 = vld [vmem:[#allocation2 + $0x448] sm:$0xff]  ;;  %v7791_v6 = vcombine.low %v206_v59, %v214_v60 }
  0x5c   :  { %4917 = vmatprep.mubr.bf16.mxu0 %v9232_v58  ;;  %5089 = vmatprep.mubr.bf16.mxu1 %v9232_v58  ;;  %v7806_v7 = vcombine.high %v221_v1, %v229_v2  ;;  %v7808_v8 = vcombine.high %v222_v3, %v230_v4  ;;  %v237_v9 = vld [vmem:[#allocation2 + $0x480] sm:$0xff]  ;;  %v238_v11 = vld [vmem:[#allocation2 + $0x488] sm:$0xff]  ;;  %v7805_v13 = vcombine.low %v221_v1, %v229_v2 }
  0x5d   :  { %v245_v10 = vld [vmem:[#allocation2 + $0x4c0] sm:$0xff]  ;;  %v246_v12 = vld [vmem:[#allocation2 + $0x4c8] sm:$0xff]  ;;  %v7807_v14 = vcombine.low %v222_v3, %v230_v4 }
  0x5e   :  { %4894 = vmatpush1.bf16.msra.mxu0 %v7741_v42  ;;  %5066 = vmatpush1.bf16.msra.mxu1 %v7743_v43  ;;  %v7822_v15 = vcombine.high %v237_v9, %v245_v10  ;;  %v7824_v16 = vcombine.high %v238_v11, %v246_v12  ;;  %v253_v17 = vld [vmem:[#allocation2 + $0x500] sm:$0xff]  ;;  %v254_v19 = vld [vmem:[#allocation2 + $0x508] sm:$0xff]  ;;  %v7821_v21 = vcombine.low %v237_v9, %v245_v10 }
  0x5f   :  { %4895 = vmatprep.subr.bf16.mxu0 %v7758_v44  ;;  %5067 = vmatprep.subr.bf16.mxu1 %v7760_v45  ;;  %v261_v18 = vld [vmem:[#allocation2 + $0x540] sm:$0xff]  ;;  %v262_v20 = vld [vmem:[#allocation2 + $0x548] sm:$0xff]  ;;  %v7823_v22 = vcombine.low %v238_v11, %v246_v12 }
  0x60   :  { %v7838_v23 = vcombine.high %v253_v17, %v261_v18  ;;  %v7840_v24 = vcombine.high %v254_v19, %v262_v20  ;;  %v269_v25 = vld [vmem:[#allocation2 + $0x580] sm:$0xff]  ;;  %v270_v27 = vld [vmem:[#allocation2 + $0x588] sm:$0xff]  ;;  %v7837_v29 = vcombine.low %v253_v17, %v261_v18  ;;  %v7839_v30 = vcombine.low %v254_v19, %v262_v20  ;;  %v75_v17 = vld [vmem:[%s9448_s0 + $0x18] sm:$0xff] }
  0x61   :  { %v277_v26 = vld [vmem:[#allocation2 + $0x5c0] sm:$0xff]  ;;  %v278_v28 = vld [vmem:[#allocation2 + $0x5c8] sm:$0xff]  ;;  %v82_v18 = vld [vmem:[%s9448_s0 + $0x50] sm:$0xff] }
  0x62   :  { %4896 = vmatpush1.bf16.msra.mxu0 %v7757_v50  ;;  %5068 = vmatpush1.bf16.msra.mxu1 %v7759_v51  ;;  %v7854_v31 = vcombine.high %v269_v25, %v277_v26  ;;  %v7856_v32 = vcombine.high %v270_v27, %v278_v28  ;;  %v285_v33 = vld [vmem:[#allocation2 + $0x600] sm:$0xff]  ;;  %v286_v35 = vld [vmem:[#allocation2 + $0x608] sm:$0xff]  ;;  %v7853_v37 = vcombine.low %v269_v25, %v277_v26 }
  0x63   :  { %4897 = vmatprep.subr.bf16.mxu0 %v7774_v52  ;;  %5069 = vmatprep.subr.bf16.mxu1 %v7776_v55  ;;  %v293_v34 = vld [vmem:[#allocation2 + $0x640] sm:$0xff]  ;;  %v294_v36 = vld [vmem:[#allocation2 + $0x648] sm:$0xff]  ;;  %v7855_v38 = vcombine.low %v270_v27, %v278_v28  ;;  %v9250_v25 = vpack.c.bf16 %v82_v18, %v75_v17 }
  0x64   :  { %v7870_v39 = vcombine.high %v285_v33, %v293_v34  ;;  %v7872_v40 = vcombine.high %v286_v35, %v294_v36  ;;  %v301_v41 = vld [vmem:[#allocation2 + $0x680] sm:$0xff]  ;;  %v302_v43 = vld [vmem:[#allocation2 + $0x688] sm:$0xff]  ;;  %v7869_v45 = vcombine.low %v285_v33, %v293_v34  ;;  %v7871_v46 = vcombine.low %v286_v35, %v294_v36 }
  0x65   :  { %v309_v42 = vld [vmem:[#allocation2 + $0x6c0] sm:$0xff]  ;;  %v310_v44 = vld [vmem:[#allocation2 + $0x6c8] sm:$0xff] }
  0x66   :  { %4898 = vmatpush1.bf16.msra.mxu0 %v7773_v61  ;;  %5070 = vmatpush1.bf16.msra.mxu1 %v7775_v62  ;;  %v7886_v47 = vcombine.high %v301_v41, %v309_v42  ;;  %v7888_v48 = vcombine.high %v302_v43, %v310_v44  ;;  %v317_v49 = vld [vmem:[#allocation2 + $0x700] sm:$0xff]  ;;  %v318_v51 = vld [vmem:[#allocation2 + $0x708] sm:$0xff]  ;;  %v7885_v53 = vcombine.low %v301_v41, %v309_v42 }
  0x67   :  { %4899 = vmatprep.subr.bf16.mxu0 %v7790_v63  ;;  %5071 = vmatprep.subr.bf16.mxu1 %v7792_v0  ;;  %v325_v50 = vld [vmem:[#allocation2 + $0x740] sm:$0xff]  ;;  %v326_v52 = vld [vmem:[#allocation2 + $0x748] sm:$0xff]  ;;  %v7887_v54 = vcombine.low %v302_v43, %v310_v44 }
  0x68   :  { %v7902_v55 = vcombine.high %v317_v49, %v325_v50  ;;  %v7904_v56 = vcombine.high %v318_v51, %v326_v52  ;;  %v333_v57 = vld [vmem:[#allocation2 + $0x780] sm:$0xff]  ;;  %v334_v60 = vld [vmem:[#allocation2 + $0x788] sm:$0xff]  ;;  %v7901_v62 = vcombine.low %v317_v49, %v325_v50  ;;  %v7903_v63 = vcombine.low %v318_v51, %v326_v52 }
  0x69   :  { %v341_v59 = vld [vmem:[#allocation2 + $0x7c0] sm:$0xff]  ;;  %v342_v61 = vld [vmem:[#allocation2 + $0x7c8] sm:$0xff] }
  0x6a   :  { %4900 = vmatpush1.bf16.msra.mxu0 %v7789_v5  ;;  %5072 = vmatpush1.bf16.msra.mxu1 %v7791_v6  ;;  %v7918_v0 = vcombine.high %v333_v57, %v341_v59  ;;  %v7920_v1 = vcombine.high %v334_v60, %v342_v61  ;;  %v349_v2 = vld [vmem:[#allocation2 + $0x800] sm:$0xff]  ;;  %v350_v4 = vld [vmem:[#allocation2 + $0x808] sm:$0xff]  ;;  %v7917_v6 = vcombine.low %v333_v57, %v341_v59 }
  0x6b   :  { %4901 = vmatprep.subr.bf16.mxu0 %v7806_v7  ;;  %5073 = vmatprep.subr.bf16.mxu1 %v7808_v8  ;;  %v357_v3 = vld [vmem:[#allocation2 + $0x840] sm:$0xff]  ;;  %v358_v5 = vld [vmem:[#allocation2 + $0x848] sm:$0xff]  ;;  %v79_v8 = vld [vmem:[%s9448_s0 + $0x38] sm:$0xff]  ;;  %v7919_v9 = vcombine.low %v334_v60, %v342_v61 }
  0x6c   :  { %v72_v7 = vld [vmem:[%s9448_s0] sm:$0xff]  ;;  %v7934_v10 = vcombine.high %v349_v2, %v357_v3  ;;  %v7936_v11 = vcombine.high %v350_v4, %v358_v5  ;;  %v7933_v19 = vcombine.low %v349_v2, %v357_v3  ;;  %v7935_v20 = vcombine.low %v350_v4, %v358_v5  ;;  %v382_v26 = vld [vmem:[#allocation2 + $0x908] sm:$0xff] }
  0x6d   :  { %v365_v12 = vld [vmem:[#allocation2 + $0x880] sm:$0xff]  ;;  %v390_v27 = vld [vmem:[#allocation2 + $0x948] sm:$0xff] }
  0x6e   :  { %4902 = vmatpush1.bf16.msra.mxu0 %v7805_v13  ;;  %5074 = vmatpush1.bf16.msra.mxu1 %v7807_v14  ;;  %v373_v13 = vld [vmem:[#allocation2 + $0x8c0] sm:$0xff]  ;;  %v366_v14 = vld [vmem:[#allocation2 + $0x888] sm:$0xff] }
  0x6f   :  { %4903 = vmatprep.subr.bf16.mxu0 %v7822_v15  ;;  %5075 = vmatprep.subr.bf16.mxu1 %v7824_v16  ;;  %v9242_v15 = vpack.c.bf16 %v79_v8, %v72_v7  ;;  %v374_v16 = vld [vmem:[#allocation2 + $0x8c8] sm:$0xff]  ;;  %v7949_v28 = vcombine.low %v365_v12, %v373_v13  ;;  %v405_v33 = vld [vmem:[#allocation2 + $0x9c0] sm:$0xff] }
  0x70   :  { %v398_v34 = vld [vmem:[#allocation2 + $0x988] sm:$0xff]  ;;  %v477_v8 = vld [vmem:[#allocation2 + $0xc00] sm:$0xff] }
  0x71   :  { %v406_v35 = vld [vmem:[#allocation2 + $0x9c8] sm:$0xff]  ;;  %v493_v17 = vld [vmem:[#allocation2 + $0xc80] sm:$0xff] }
  0x72   :  { %4904 = vmatpush1.bf16.msra.mxu0 %v7821_v21  ;;  %5076 = vmatpush1.bf16.msra.mxu1 %v7823_v22  ;;  %v7950_v21 = vcombine.high %v365_v12, %v373_v13  ;;  %v7952_v22 = vcombine.high %v366_v14, %v374_v16  ;;  %v414_v41 = vld [vmem:[#allocation2 + $0xa08] sm:$0xff]  ;;  %v7984_v43 = vcombine.high %v398_v34, %v406_v35  ;;  %v501_v18 = vld [vmem:[#allocation2 + $0xcc0] sm:$0xff] }
  0x73   :  { %4905 = vmatprep.subr.bf16.mxu0 %v7838_v23  ;;  %5077 = vmatprep.subr.bf16.mxu1 %v7840_v24  ;;  %v381_v23 = vld [vmem:[#allocation2 + $0x900] sm:$0xff]  ;;  %v422_v42 = vld [vmem:[#allocation2 + $0xa48] sm:$0xff] }
  0x74   :  { %v389_v24 = vld [vmem:[#allocation2 + $0x940] sm:$0xff]  ;;  %v430_v49 = vld [vmem:[#allocation2 + $0xa88] sm:$0xff]  ;;  %v8000_v51 = vcombine.high %v414_v41, %v422_v42 }
  0x75   :  { %v7965_v36 = vcombine.low %v381_v23, %v389_v24  ;;  %v438_v50 = vld [vmem:[#allocation2 + $0xac8] sm:$0xff] }
  0x76   :  { %4906 = vmatpush1.bf16.msra.mxu0 %v7837_v29  ;;  %5078 = vmatpush1.bf16.msra.mxu1 %v7839_v30  ;;  %v7951_v29 = vcombine.low %v366_v14, %v374_v16  ;;  %v7966_v30 = vcombine.high %v381_v23, %v389_v24  ;;  %v446_v57 = vld [vmem:[#allocation2 + $0xb08] sm:$0xff]  ;;  %v8016_v59 = vcombine.high %v430_v49, %v438_v50 }
  0x77   :  { %4907 = vmatprep.subr.bf16.mxu0 %v7854_v31  ;;  %5079 = vmatprep.subr.bf16.mxu1 %v7856_v32  ;;  %v7968_v31 = vcombine.high %v382_v26, %v390_v27  ;;  %v397_v32 = vld [vmem:[#allocation2 + $0x980] sm:$0xff]  ;;  %v454_v60 = vld [vmem:[#allocation2 + $0xb48] sm:$0xff]  ;;  %v8078_v24 = vcombine.high %v493_v17, %v501_v18 }
  0x78   :  { %v7981_v44 = vcombine.low %v397_v32, %v405_v33  ;;  %v462_v2 = vld [vmem:[#allocation2 + $0xb88] sm:$0xff]  ;;  %v8032_v3 = vcombine.high %v446_v57, %v454_v60 }
  0x79   :  { %v470_v4 = vld [vmem:[#allocation2 + $0xbc8] sm:$0xff] }
  0x7a   :  { %4908 = vmatpush1.bf16.msra.mxu0 %v7853_v37  ;;  %5080 = vmatpush1.bf16.msra.mxu1 %v7855_v38  ;;  %v413_v37 = vld [vmem:[#allocation2 + $0xa00] sm:$0xff]  ;;  %v486_v12 = vld [vmem:[#allocation2 + $0xc48] sm:$0xff]  ;;  %v8047_v14 = vcombine.low %v462_v2, %v470_v4 }
  0x7b   :  { %4909 = vmatprep.subr.bf16.mxu0 %v7870_v39  ;;  %5081 = vmatprep.subr.bf16.mxu1 %v7872_v40  ;;  %v421_v38 = vld [vmem:[#allocation2 + $0xa40] sm:$0xff]  ;;  %v7967_v39 = vcombine.low %v382_v26, %v390_v27  ;;  %v7982_v40 = vcombine.high %v397_v32, %v405_v33 }
  0x7c   :  { %v7997_v52 = vcombine.low %v413_v37, %v421_v38  ;;  %v509_v26 = vld [vmem:[#allocation2 + $0xd00] sm:$0xff] }
  0x7d   :  { %v517_v27 = vld [vmem:[#allocation2 + $0xd40] sm:$0xff] }
  0x7e   :  { %4910 = vmatpush1.bf16.msra.mxu0 %v7869_v45  ;;  %5082 = vmatpush1.bf16.msra.mxu1 %v7871_v46  ;;  %v429_v45 = vld [vmem:[#allocation2 + $0xa80] sm:$0xff]  ;;  %v8094_v33 = vcombine.high %v509_v26, %v517_v27 }
  0x7f   :  { %4911 = vmatprep.subr.bf16.mxu0 %v7886_v47  ;;  %5083 = vmatprep.subr.bf16.mxu1 %v7888_v48  ;;  %v437_v46 = vld [vmem:[#allocation2 + $0xac0] sm:$0xff]  ;;  %v7983_v47 = vcombine.low %v398_v34, %v406_v35  ;;  %v7998_v48 = vcombine.high %v413_v37, %v421_v38  ;;  %v534_v38 = vld [vmem:[#allocation2 + $0xdc8] sm:$0xff] }
  0x80   :  { %v8013_v61 = vcombine.low %v429_v45, %v437_v46  ;;  %v525_v34 = vld [vmem:[#allocation2 + $0xd80] sm:$0xff] }
  0x81   :  { %v533_v35 = vld [vmem:[#allocation2 + $0xdc0] sm:$0xff] }
  0x82   :  { %4912 = vmatpush1.bf16.msra.mxu0 %v7885_v53  ;;  %5084 = vmatpush1.bf16.msra.mxu1 %v7887_v54  ;;  %v7999_v53 = vcombine.low %v414_v41, %v422_v42  ;;  %v8014_v54 = vcombine.high %v429_v45, %v437_v46  ;;  %v8110_v41 = vcombine.high %v525_v34, %v533_v35  ;;  %v541_v42 = vld [vmem:[#allocation2 + $0xe00] sm:$0xff]  ;;  %v550_v46 = vld [vmem:[#allocation2 + $0xe48] sm:$0xff] }
  0x83   :  { %4913 = vmatprep.subr.bf16.mxu0 %v7902_v55  ;;  %5085 = vmatprep.subr.bf16.mxu1 %v7904_v56  ;;  %v445_v55 = vld [vmem:[#allocation2 + $0xb00] sm:$0xff] }
  0x84   :  { %v453_v56 = vld [vmem:[#allocation2 + $0xb40] sm:$0xff] }
  0x85   :  { %v8029_v5 = vcombine.low %v445_v55, %v453_v56 }
  0x86   :  { %4914 = vmatpush1.bf16.msra.mxu0 %v7901_v62  ;;  %5086 = vmatpush1.bf16.msra.mxu1 %v7903_v63  ;;  %v8015_v62 = vcombine.low %v430_v49, %v438_v50  ;;  %v8030_v63 = vcombine.high %v445_v55, %v453_v56  ;;  %v557_v50 = vld [vmem:[#allocation2 + $0xe80] sm:$0xff] }
  0x87   :  { %4915 = vmatprep.subr.bf16.mxu0 %v7918_v0  ;;  %5087 = vmatprep.subr.bf16.mxu1 %v7920_v1  ;;  %v461_v0 = vld [vmem:[#allocation2 + $0xb80] sm:$0xff] }
  0x88   :  { %v469_v1 = vld [vmem:[#allocation2 + $0xbc0] sm:$0xff] }
  0x89   :  { %v8046_v7 = vcombine.high %v461_v0, %v469_v1  ;;  %v8045_v13 = vcombine.low %v461_v0, %v469_v1 }
  0x8a   :  { %4916 = vmatpush1.bf16.msra.mxu0 %v7917_v6  ;;  %5088 = vmatpush1.bf16.msra.mxu1 %v7919_v9  ;;  %v8031_v6 = vcombine.low %v446_v57, %v454_v60  ;;  %v485_v9 = vld [vmem:[#allocation2 + $0xc40] sm:$0xff] }
  0x8b   :  { %4928 = vmatprep.subr.bf16.mxu0 %v7934_v10  ;;  %5100 = vmatprep.subr.bf16.mxu1 %v7936_v11  ;;  %v478_v10 = vld [vmem:[#allocation2 + $0xc08] sm:$0xff]  ;;  %v8048_v11 = vcombine.high %v462_v2, %v470_v4  ;;  %v8062_v16 = vcombine.high %v477_v8, %v485_v9  ;;  %v581_v60 = vld [vmem:[#allocation2 + $0xf40] sm:$0xff] }
  0x8c   :  { %v8063_v23 = vcombine.low %v478_v10, %v486_v12  ;;  %v597_v4 = vld [vmem:[#allocation2 + $0xfc0] sm:$0xff] }
  0x8d   :  { %4918 = vmatmul.mubr.bf16.vlgmr.msra.gmra.mrb[0].mxu0 %v9242_v15  ;;  %5090 = vmatmul.mubr.bf16.vlgmr.msra.gmra.mrb[0].mxu1 %v9242_v15 }
  0x8e   :  { %4929 = vmatpush1.bf16.msra.mxu0 %v7933_v19  ;;  %5101 = vmatpush1.bf16.msra.mxu1 %v7935_v20  ;;  %v494_v19 = vld [vmem:[#allocation2 + $0xc88] sm:$0xff]  ;;  %v8064_v20 = vcombine.high %v478_v10, %v486_v12  ;;  %v613_v12 = vld [vmem:[#allocation2 + $0x1040] sm:$0xff] }
  0x8f   :  { %4930 = vmatprep.subr.bf16.mxu0 %v7950_v21  ;;  %5102 = vmatprep.subr.bf16.mxu1 %v7952_v22  ;;  %v502_v21 = vld [vmem:[#allocation2 + $0xcc8] sm:$0xff]  ;;  %v8061_v22 = vcombine.low %v477_v8, %v485_v9  ;;  %v605_v9 = vld [vmem:[#allocation2 + $0x1000] sm:$0xff] }
  0x90   :  { %4960 = vmatprep.mubr.bf16.mxu0 %v9250_v25  ;;  %5132 = vmatprep.mubr.bf16.mxu1 %v9250_v25  ;;  %v8079_v32 = vcombine.low %v494_v19, %v502_v21 }
  0x92   :  { %4931 = vmatpush1.bf16.msra.mxu0 %v7949_v28  ;;  %5103 = vmatpush1.bf16.msra.mxu1 %v7951_v29  ;;  %v510_v28 = vld [vmem:[#allocation2 + $0xd08] sm:$0xff]  ;;  %v8080_v29 = vcombine.high %v494_v19, %v502_v21  ;;  %v629_v21 = vld [vmem:[#allocation2 + $0x10c0] sm:$0xff] }
  0x93   :  { %4932 = vmatprep.subr.bf16.mxu0 %v7966_v30  ;;  %5104 = vmatprep.subr.bf16.mxu1 %v7968_v31  ;;  %v518_v30 = vld [vmem:[#allocation2 + $0xd48] sm:$0xff]  ;;  %v8077_v31 = vcombine.low %v493_v17, %v501_v18  ;;  %v74_v17 = vld [vmem:[%s9448_s0 + $0x10] sm:$0xff] }
  0x94   :  { %v8096_v37 = vcombine.high %v510_v28, %v518_v30  ;;  %v81_v18 = vld [vmem:[%s9448_s0 + $0x48] sm:$0xff] }
  0x96   :  { %4933 = vmatpush1.bf16.msra.mxu0 %v7965_v36  ;;  %5105 = vmatpush1.bf16.msra.mxu1 %v7967_v39  ;;  %v526_v36 = vld [vmem:[#allocation2 + $0xd88] sm:$0xff]  ;;  %v8093_v39 = vcombine.low %v509_v26, %v517_v27 }
  0x97   :  { %4934 = vmatprep.subr.bf16.mxu0 %v7982_v40  ;;  %5106 = vmatprep.subr.bf16.mxu1 %v7984_v43  ;;  %v8095_v40 = vcombine.low %v510_v28, %v518_v30  ;;  %v549_v43 = vld [vmem:[#allocation2 + $0xe40] sm:$0xff]  ;;  %v8112_v45 = vcombine.high %v526_v36, %v534_v38  ;;  %v630_v26 = vld [vmem:[#allocation2 + $0x10c8] sm:$0xff]  ;;  %v9268_v30 = vpack.c.bf16 %v81_v18, %v74_v17 }
  0x98   :  { %v8126_v49 = vcombine.high %v541_v42, %v549_v43  ;;  %v8125_v55 = vcombine.low %v541_v42, %v549_v43  ;;  %v77_v27 = vld [vmem:[%s9448_s0 + $0x28] sm:$0xff]  ;;  %v653_v43 = vld [vmem:[#allocation2 + $0x1180] sm:$0xff] }
  0x99   :  { %v726_v17 = vld [vmem:[#allocation2 + $0x13c8] sm:$0xff] }
  0x9a   :  { %4935 = vmatpush1.bf16.msra.mxu0 %v7981_v44  ;;  %5107 = vmatpush1.bf16.msra.mxu1 %v7983_v47  ;;  %v542_v44 = vld [vmem:[#allocation2 + $0xe08] sm:$0xff]  ;;  %v8109_v47 = vcombine.low %v525_v34, %v533_v35  ;;  %v637_v34 = vld [vmem:[#allocation2 + $0x1100] sm:$0xff] }
  0x9b   :  { %4936 = vmatprep.subr.bf16.mxu0 %v7998_v48  ;;  %5108 = vmatprep.subr.bf16.mxu1 %v8000_v51  ;;  %v8111_v48 = vcombine.low %v526_v36, %v534_v38  ;;  %v565_v51 = vld [vmem:[#allocation2 + $0xec0] sm:$0xff]  ;;  %v8127_v56 = vcombine.low %v542_v44, %v550_v46  ;;  %v638_v36 = vld [vmem:[#allocation2 + $0x1108] sm:$0xff] }
  0x9c   :  { %v8142_v57 = vcombine.high %v557_v50, %v565_v51  ;;  %v8141_v0 = vcombine.low %v557_v50, %v565_v51  ;;  %v645_v35 = vld [vmem:[#allocation2 + $0x1140] sm:$0xff]  ;;  %v646_v38 = vld [vmem:[#allocation2 + $0x1148] sm:$0xff] }
  0x9d   :  { %v8222_v42 = vcombine.high %v637_v34, %v645_v35  ;;  %v669_v51 = vld [vmem:[#allocation2 + $0x1200] sm:$0xff] }
  0x9e   :  { %4937 = vmatpush1.bf16.msra.mxu0 %v7997_v52  ;;  %5109 = vmatpush1.bf16.msra.mxu1 %v7999_v53  ;;  %v558_v52 = vld [vmem:[#allocation2 + $0xe88] sm:$0xff]  ;;  %v8128_v53 = vcombine.high %v542_v44, %v550_v46  ;;  %v661_v44 = vld [vmem:[#allocation2 + $0x11c0] sm:$0xff]  ;;  %v8224_v46 = vcombine.high %v638_v36, %v646_v38 }
  0x9f   :  { %4938 = vmatprep.subr.bf16.mxu0 %v8014_v54  ;;  %5110 = vmatprep.subr.bf16.mxu1 %v8016_v59  ;;  %v566_v54 = vld [vmem:[#allocation2 + $0xec8] sm:$0xff]  ;;  %v573_v59 = vld [vmem:[#allocation2 + $0xf00] sm:$0xff]  ;;  %v8238_v50 = vcombine.high %v653_v43, %v661_v44 }
  0xa0   :  { %v8143_v1 = vcombine.low %v558_v52, %v566_v54  ;;  %v8158_v2 = vcombine.high %v573_v59, %v581_v60  ;;  %v8157_v8 = vcombine.low %v573_v59, %v581_v60  ;;  %v685_v60 = vld [vmem:[#allocation2 + $0x1280] sm:$0xff] }
  0xa2   :  { %4939 = vmatpush1.bf16.msra.mxu0 %v8013_v61  ;;  %5111 = vmatpush1.bf16.msra.mxu1 %v8015_v62  ;;  %v574_v61 = vld [vmem:[#allocation2 + $0xf08] sm:$0xff]  ;;  %v8144_v62 = vcombine.high %v558_v52, %v566_v54  ;;  %v677_v52 = vld [vmem:[#allocation2 + $0x1240] sm:$0xff] }
  0xa3   :  { %4940 = vmatprep.subr.bf16.mxu0 %v8030_v63  ;;  %5112 = vmatprep.subr.bf16.mxu1 %v8032_v3  ;;  %v582_v63 = vld [vmem:[#allocation2 + $0xf48] sm:$0xff]  ;;  %v589_v3 = vld [vmem:[#allocation2 + $0xf80] sm:$0xff]  ;;  %v8254_v59 = vcombine.high %v669_v51, %v677_v52 }
  0xa4   :  { %v8159_v10 = vcombine.low %v574_v61, %v582_v63  ;;  %v8173_v19 = vcombine.low %v589_v3, %v597_v4 }
  0xa6   :  { %4941 = vmatpush1.bf16.msra.mxu0 %v8029_v5  ;;  %5113 = vmatpush1.bf16.msra.mxu1 %v8031_v6  ;;  %v590_v5 = vld [vmem:[#allocation2 + $0xf88] sm:$0xff]  ;;  %v8160_v6 = vcombine.high %v574_v61, %v582_v63  ;;  %v693_v61 = vld [vmem:[#allocation2 + $0x12c0] sm:$0xff] }
  0xa7   :  { %4942 = vmatprep.subr.bf16.mxu0 %v8046_v7  ;;  %5114 = vmatprep.subr.bf16.mxu1 %v8048_v11  ;;  %v598_v7 = vld [vmem:[#allocation2 + $0xfc8] sm:$0xff]  ;;  %v8174_v11 = vcombine.high %v589_v3, %v597_v4  ;;  %v8270_v3 = vcombine.high %v685_v60, %v693_v61  ;;  %v701_v4 = vld [vmem:[#allocation2 + $0x1300] sm:$0xff] }
  0xaa   :  { %4943 = vmatpush1.bf16.msra.mxu0 %v8045_v13  ;;  %5115 = vmatpush1.bf16.msra.mxu1 %v8047_v14  ;;  %v606_v13 = vld [vmem:[#allocation2 + $0x1008] sm:$0xff] }
  0xab   :  { %4944 = vmatprep.subr.bf16.mxu0 %v8062_v16  ;;  %5116 = vmatprep.subr.bf16.mxu1 %v8064_v20  ;;  %v614_v14 = vld [vmem:[#allocation2 + $0x1048] sm:$0xff]  ;;  %v8176_v16 = vcombine.high %v590_v5, %v598_v7  ;;  %v621_v20 = vld [vmem:[#allocation2 + $0x1080] sm:$0xff] }
  0xac   :  { %v8192_v28 = vcombine.high %v606_v13, %v614_v14 }
  0xae   :  { %4945 = vmatpush1.bf16.msra.mxu0 %v8061_v22  ;;  %5117 = vmatpush1.bf16.msra.mxu1 %v8063_v23  ;;  %v8175_v22 = vcombine.low %v590_v5, %v598_v7  ;;  %v8190_v23 = vcombine.high %v605_v9, %v613_v12  ;;  %v709_v5 = vld [vmem:[#allocation2 + $0x1340] sm:$0xff] }
  0xaf   :  { %4946 = vmatprep.subr.bf16.mxu0 %v8078_v24  ;;  %5118 = vmatprep.subr.bf16.mxu1 %v8080_v29  ;;  %v622_v24 = vld [vmem:[#allocation2 + $0x1088] sm:$0xff]  ;;  %v84_v29 = vld [vmem:[%s9448_s0 + $0x60] sm:$0xff]  ;;  %v8285_v18 = vcombine.low %v701_v4, %v709_v5 }
  0xb2   :  { %4947 = vmatpush1.bf16.msra.mxu0 %v8077_v31  ;;  %5119 = vmatpush1.bf16.msra.mxu1 %v8079_v32  ;;  %v8189_v31 = vcombine.low %v605_v9, %v613_v12  ;;  %v8191_v32 = vcombine.low %v606_v13, %v614_v14  ;;  %v8269_v9 = vcombine.low %v685_v60, %v693_v61  ;;  %v717_v12 = vld [vmem:[#allocation2 + $0x1380] sm:$0xff]  ;;  %v718_v14 = vld [vmem:[#allocation2 + $0x1388] sm:$0xff] }
  0xb3   :  { %4948 = vmatprep.subr.bf16.mxu0 %v8094_v33  ;;  %5120 = vmatprep.subr.bf16.mxu1 %v8096_v37  ;;  %v8206_v33 = vcombine.high %v621_v20, %v629_v21  ;;  %v8208_v37 = vcombine.high %v622_v24, %v630_v26  ;;  %v725_v13 = vld [vmem:[#allocation2 + $0x13c0] sm:$0xff]  ;;  %v806_v61 = vld [vmem:[#allocation2 + $0x1648] sm:$0xff] }
  0xb6   :  { %4949 = vmatpush1.bf16.msra.mxu0 %v8093_v39  ;;  %5121 = vmatpush1.bf16.msra.mxu1 %v8095_v40  ;;  %v9270_v39 = vpack.c.bf16 %v84_v29, %v77_v27  ;;  %v8205_v40 = vcombine.low %v621_v20, %v629_v21  ;;  %v8302_v20 = vcombine.high %v717_v12, %v725_v13  ;;  %v733_v21 = vld [vmem:[#allocation2 + $0x1400] sm:$0xff] }
  0xb7   :  { %4950 = vmatprep.subr.bf16.mxu0 %v8110_v41  ;;  %5122 = vmatprep.subr.bf16.mxu1 %v8112_v45  ;;  %v8207_v41 = vcombine.low %v622_v24, %v630_v26  ;;  %v654_v45 = vld [vmem:[#allocation2 + $0x1188] sm:$0xff]  ;;  %v8304_v24 = vcombine.high %v718_v14, %v726_v17  ;;  %v8301_v27 = vcombine.low %v717_v12, %v725_v13 }
  0xb8   :  { %v742_v26 = vld [vmem:[#allocation2 + $0x1448] sm:$0xff] }
  0xb9   :  { %v838_v13 = vld [vmem:[#allocation2 + $0x1748] sm:$0xff] }
  0xba   :  { %4951 = vmatpush1.bf16.msra.mxu0 %v8109_v47  ;;  %5123 = vmatpush1.bf16.msra.mxu1 %v8111_v48  ;;  %v662_v47 = vld [vmem:[#allocation2 + $0x11c8] sm:$0xff]  ;;  %v8221_v48 = vcombine.low %v637_v34, %v645_v35 }
  0xbb   :  { %4952 = vmatprep.subr.bf16.mxu0 %v8126_v49  ;;  %5124 = vmatprep.subr.bf16.mxu1 %v8128_v53  ;;  %v8223_v49 = vcombine.low %v638_v36, %v646_v38  ;;  %v670_v53 = vld [vmem:[#allocation2 + $0x1208] sm:$0xff]  ;;  %v8240_v54 = vcombine.high %v654_v45, %v662_v47 }
  0xbc   :  { %v758_v35 = vld [vmem:[#allocation2 + $0x14c8] sm:$0xff] }
  0xbe   :  { %4953 = vmatpush1.bf16.msra.mxu0 %v8125_v55  ;;  %5125 = vmatpush1.bf16.msra.mxu1 %v8127_v56  ;;  %v678_v55 = vld [vmem:[#allocation2 + $0x1248] sm:$0xff]  ;;  %v8237_v56 = vcombine.low %v653_v43, %v661_v44 }
  0xbf   :  { %4954 = vmatprep.subr.bf16.mxu0 %v8142_v57  ;;  %5126 = vmatprep.subr.bf16.mxu1 %v8144_v62  ;;  %v8239_v57 = vcombine.low %v654_v45, %v662_v47  ;;  %v686_v62 = vld [vmem:[#allocation2 + $0x1288] sm:$0xff]  ;;  %v8256_v63 = vcombine.high %v670_v53, %v678_v55 }
  0xc0   :  { %v774_v44 = vld [vmem:[#allocation2 + $0x1548] sm:$0xff] }
  0xc2   :  { %4955 = vmatpush1.bf16.msra.mxu0 %v8141_v0  ;;  %5127 = vmatpush1.bf16.msra.mxu1 %v8143_v1  ;;  %v694_v0 = vld [vmem:[#allocation2 + $0x12c8] sm:$0xff]  ;;  %v8253_v1 = vcombine.low %v669_v51, %v677_v52 }
  0xc3   :  { %4956 = vmatprep.subr.bf16.mxu0 %v8158_v2  ;;  %5128 = vmatprep.subr.bf16.mxu1 %v8160_v6  ;;  %v8255_v2 = vcombine.low %v670_v53, %v678_v55  ;;  %v702_v6 = vld [vmem:[#allocation2 + $0x1308] sm:$0xff]  ;;  %v8272_v7 = vcombine.high %v686_v62, %v694_v0 }
  0xc4   :  { %v790_v52 = vld [vmem:[#allocation2 + $0x15c8] sm:$0xff] }
  0xc6   :  { %4957 = vmatpush1.bf16.msra.mxu0 %v8157_v8  ;;  %5129 = vmatpush1.bf16.msra.mxu1 %v8159_v10  ;;  %v710_v8 = vld [vmem:[#allocation2 + $0x1348] sm:$0xff]  ;;  %v8271_v10 = vcombine.low %v686_v62, %v694_v0 }
  0xc7   :  { %4958 = vmatprep.subr.bf16.mxu0 %v8174_v11  ;;  %5130 = vmatprep.subr.bf16.mxu1 %v8176_v16  ;;  %v8286_v11 = vcombine.high %v701_v4, %v709_v5  ;;  %v8288_v16 = vcombine.high %v702_v6, %v710_v8  ;;  %v822_v5 = vld [vmem:[#allocation2 + $0x16c8] sm:$0xff] }
  0xca   :  { %4959 = vmatpush1.bf16.msra.mxu0 %v8173_v19  ;;  %5131 = vmatpush1.bf16.msra.mxu1 %v8175_v22  ;;  %v8287_v19 = vcombine.low %v702_v6, %v710_v8  ;;  %v741_v22 = vld [vmem:[#allocation2 + $0x1440] sm:$0xff] }
  0xcb   :  { %4971 = vmatprep.subr.bf16.mxu0 %v8190_v23  ;;  %5143 = vmatprep.subr.bf16.mxu1 %v8192_v28  ;;  %v734_v23 = vld [vmem:[#allocation2 + $0x1408] sm:$0xff]  ;;  %v8303_v28 = vcombine.low %v718_v14, %v726_v17  ;;  %v8318_v29 = vcombine.high %v733_v21, %v741_v22  ;;  %v8317_v36 = vcombine.low %v733_v21, %v741_v22 }
  0xcc   :  { %v8320_v34 = vcombine.high %v734_v23, %v742_v26  ;;  %v854_v22 = vld [vmem:[#allocation2 + $0x17c8] sm:$0xff] }
  0xcd   :  { %4961 = vmatmul.mubr.bf16.vlgmr.msra.gmra.mrb[0].mxu0 %v9268_v30  ;;  %5133 = vmatmul.mubr.bf16.vlgmr.msra.gmra.mrb[0].mxu1 %v9268_v30 }
  0xce   :  { %4972 = vmatpush1.bf16.msra.mxu0 %v8189_v31  ;;  %5144 = vmatpush1.bf16.msra.mxu1 %v8191_v32  ;;  %v749_v31 = vld [vmem:[#allocation2 + $0x1480] sm:$0xff] }
  0xcf   :  { %4973 = vmatprep.subr.bf16.mxu0 %v8206_v33  ;;  %5145 = vmatprep.subr.bf16.mxu1 %v8208_v37  ;;  %v757_v32 = vld [vmem:[#allocation2 + $0x14c0] sm:$0xff]  ;;  %v750_v33 = vld [vmem:[#allocation2 + $0x1488] sm:$0xff]  ;;  %v8319_v37 = vcombine.low %v734_v23, %v742_v26 }
  0xd0   :  { %5003 = vmatprep.mubr.bf16.mxu0 %v9270_v39  ;;  %5175 = vmatprep.mubr.bf16.mxu1 %v9270_v39  ;;  %v8334_v38 = vcombine.high %v749_v31, %v757_v32  ;;  %v8336_v43 = vcombine.high %v750_v33, %v758_v35  ;;  %v8333_v45 = vcombine.low %v749_v31, %v757_v32  ;;  %v76_v32 = vld [vmem:[%s9448_s0 + $0x20] sm:$0xff] }
  0xd2   :  { %4974 = vmatpush1.bf16.msra.mxu0 %v8205_v40  ;;  %5146 = vmatpush1.bf16.msra.mxu1 %v8207_v41  ;;  %v765_v40 = vld [vmem:[#allocation2 + $0x1500] sm:$0xff] }
  0xd3   :  { %4975 = vmatprep.subr.bf16.mxu0 %v8222_v42  ;;  %5147 = vmatprep.subr.bf16.mxu1 %v8224_v46  ;;  %v773_v41 = vld [vmem:[#allocation2 + $0x1540] sm:$0xff]  ;;  %v766_v42 = vld [vmem:[#allocation2 + $0x1508] sm:$0xff]  ;;  %v8335_v46 = vcombine.low %v750_v33, %v758_v35  ;;  %v83_v33 = vld [vmem:[%s9448_s0 + $0x58] sm:$0xff] }
  0xd4   :  { %v8350_v47 = vcombine.high %v765_v40, %v773_v41  ;;  %v8352_v51 = vcombine.high %v766_v42, %v774_v44  ;;  %v8349_v53 = vcombine.low %v765_v40, %v773_v41  ;;  %v103_v40 = vld [vmem:[#allocation2 + $0x50] sm:$0xff] }
  0xd6   :  { %4976 = vmatpush1.bf16.msra.mxu0 %v8221_v48  ;;  %5148 = vmatpush1.bf16.msra.mxu1 %v8223_v49  ;;  %v781_v48 = vld [vmem:[#allocation2 + $0x1580] sm:$0xff] }
  0xd7   :  { %4977 = vmatprep.subr.bf16.mxu0 %v8238_v50  ;;  %5149 = vmatprep.subr.bf16.mxu1 %v8240_v54  ;;  %v789_v49 = vld [vmem:[#allocation2 + $0x15c0] sm:$0xff]  ;;  %v782_v50 = vld [vmem:[#allocation2 + $0x1588] sm:$0xff]  ;;  %v8351_v54 = vcombine.low %v766_v42, %v774_v44  ;;  %v96_v42 = vld [vmem:[#allocation2 + $0x18] sm:$0xff]  ;;  %v9282_v44 = vpack.c.bf16 %v83_v33, %v76_v32 }
  0xd8   :  { %v8366_v55 = vcombine.high %v781_v48, %v789_v49  ;;  %v8368_v60 = vcombine.high %v782_v50, %v790_v52  ;;  %v8365_v62 = vcombine.low %v781_v48, %v789_v49  ;;  %v9140_v49 = vmov 0   ;;  %v191_v33 = vld [vmem:[#allocation2 + $0x310] sm:$0xff] }
  0xda   :  { %4978 = vmatpush1.bf16.msra.mxu0 %v8237_v56  ;;  %5150 = vmatpush1.bf16.msra.mxu1 %v8239_v57  ;;  %v797_v56 = vld [vmem:[#allocation2 + $0x1600] sm:$0xff] }
  0xdb   :  { %4979 = vmatprep.subr.bf16.mxu0 %v8254_v59  ;;  %5151 = vmatprep.subr.bf16.mxu1 %v8256_v63  ;;  %v805_v57 = vld [vmem:[#allocation2 + $0x1640] sm:$0xff]  ;;  %v798_v59 = vld [vmem:[#allocation2 + $0x1608] sm:$0xff]  ;;  %v8367_v63 = vcombine.low %v782_v50, %v790_v52  ;;  %v78_v50 = vld [vmem:[%s9448_s0 + $0x30] sm:$0xff] }
  0xdc   :  { %v8382_v0 = vcombine.high %v797_v56, %v805_v57  ;;  %v8384_v4 = vcombine.high %v798_v59, %v806_v61  ;;  %v8381_v6 = vcombine.low %v797_v56, %v805_v57  ;;  %v111_v52 = vld [vmem:[#allocation2 + $0x90] sm:$0xff]  ;;  %v120_v56 = vld [vmem:[#allocation2 + $0xd8] sm:$0xff] }
  0xde   :  { %4980 = vmatpush1.bf16.msra.mxu0 %v8253_v1  ;;  %5152 = vmatpush1.bf16.msra.mxu1 %v8255_v2  ;;  %v813_v1 = vld [vmem:[#allocation2 + $0x1680] sm:$0xff] }
  0xdf   :  { %4981 = vmatprep.subr.bf16.mxu0 %v8270_v3  ;;  %5153 = vmatprep.subr.bf16.mxu1 %v8272_v7  ;;  %v821_v2 = vld [vmem:[#allocation2 + $0x16c0] sm:$0xff]  ;;  %v814_v3 = vld [vmem:[#allocation2 + $0x1688] sm:$0xff]  ;;  %v8383_v7 = vcombine.low %v798_v59, %v806_v61 }
  0xe0   :  { %v8398_v8 = vcombine.high %v813_v1, %v821_v2  ;;  %v8400_v12 = vcombine.high %v814_v3, %v822_v5  ;;  %v8397_v14 = vcombine.low %v813_v1, %v821_v2  ;;  %v136_v1 = vld [vmem:[#allocation2 + $0x158] sm:$0xff] }
  0xe2   :  { %4982 = vmatpush1.bf16.msra.mxu0 %v8269_v9  ;;  %5154 = vmatpush1.bf16.msra.mxu1 %v8271_v10  ;;  %v829_v9 = vld [vmem:[#allocation2 + $0x1700] sm:$0xff] }
  0xe3   :  { %4983 = vmatprep.subr.bf16.mxu0 %v8286_v11  ;;  %5155 = vmatprep.subr.bf16.mxu1 %v8288_v16  ;;  %v837_v10 = vld [vmem:[#allocation2 + $0x1740] sm:$0xff]  ;;  %v830_v11 = vld [vmem:[#allocation2 + $0x1708] sm:$0xff]  ;;  %v8399_v16 = vcombine.low %v814_v3, %v822_v5 }
  0xe4   :  { %v8414_v17 = vcombine.high %v829_v9, %v837_v10  ;;  %v8416_v21 = vcombine.high %v830_v11, %v838_v13  ;;  %v8413_v23 = vcombine.low %v829_v9, %v837_v10  ;;  %v152_v9 = vld [vmem:[#allocation2 + $0x1d8] sm:$0xff] }
  0xe6   :  { %4984 = vmatpush1.bf16.msra.mxu0 %v8285_v18  ;;  %5156 = vmatpush1.bf16.msra.mxu1 %v8287_v19  ;;  %v845_v18 = vld [vmem:[#allocation2 + $0x1780] sm:$0xff] }
  0xe7   :  { %4985 = vmatprep.subr.bf16.mxu0 %v8302_v20  ;;  %5157 = vmatprep.subr.bf16.mxu1 %v8304_v24  ;;  %v853_v19 = vld [vmem:[#allocation2 + $0x17c0] sm:$0xff]  ;;  %v846_v20 = vld [vmem:[#allocation2 + $0x1788] sm:$0xff]  ;;  %v8415_v24 = vcombine.low %v830_v11, %v838_v13 }
  0xe8   :  { %v8430_v26 = vcombine.high %v845_v18, %v853_v19  ;;  %v8432_v31 = vcombine.high %v846_v20, %v854_v22  ;;  %v8429_v35 = vcombine.low %v845_v18, %v853_v19  ;;  %v168_v18 = vld [vmem:[#allocation2 + $0x258] sm:$0xff] }
  0xea   :  { %4986 = vmatpush1.bf16.msra.mxu0 %v8301_v27  ;;  %5158 = vmatpush1.bf16.msra.mxu1 %v8303_v28  ;;  %v861_v27 = vld [vmem:[#allocation2 + $0x1800] sm:$0xff] }
  0xeb   :  { %4987 = vmatprep.subr.bf16.mxu0 %v8318_v29  ;;  %5159 = vmatprep.subr.bf16.mxu1 %v8320_v34  ;;  %v869_v28 = vld [vmem:[#allocation2 + $0x1840] sm:$0xff]  ;;  %v862_v29 = vld [vmem:[#allocation2 + $0x1808] sm:$0xff] }
  0xec   :  { %v870_v34 = vld [vmem:[#allocation2 + $0x1848] sm:$0xff] }
  0xed   :  { %v8448_v41 = vcombine.high %v862_v29, %v870_v34 }
  0xee   :  { %4988 = vmatpush1.bf16.msra.mxu0 %v8317_v36  ;;  %5160 = vmatpush1.bf16.msra.mxu1 %v8319_v37  ;;  %v8431_v36 = vcombine.low %v846_v20, %v854_v22  ;;  %v8446_v37 = vcombine.high %v861_v27, %v869_v28 }
  0xef   :  { %4989 = vmatprep.subr.bf16.mxu0 %v8334_v38  ;;  %5161 = vmatprep.subr.bf16.mxu1 %v8336_v43  ;;  %v95_v38 = vld [vmem:[#allocation2 + $0x10] sm:$0xff]  ;;  %v104_v43 = vld [vmem:[#allocation2 + $0x58] sm:$0xff] }
  0xf0   :  { %v7684_v48 = vcombine.high %v96_v42, %v104_v43  ;;  %v7681_v57 = vcombine.low %v95_v38, %v103_v40  ;;  %v7683_v59 = vcombine.low %v96_v42, %v104_v43  ;;  %v207_v42 = vld [vmem:[#allocation2 + $0x390] sm:$0xff] }
  0xf1   :  { %v215_v43 = vld [vmem:[#allocation2 + $0x3d0] sm:$0xff] }
  0xf2   :  { %4990 = vmatpush1.bf16.msra.mxu0 %v8333_v45  ;;  %5162 = vmatpush1.bf16.msra.mxu1 %v8335_v46  ;;  %v8445_v45 = vcombine.low %v861_v27, %v869_v28  ;;  %v8447_v46 = vcombine.low %v862_v29, %v870_v34  ;;  %v184_v27 = vld [vmem:[#allocation2 + $0x2d8] sm:$0xff]  ;;  %v199_v34 = vld [vmem:[#allocation2 + $0x350] sm:$0xff] }
  0xf3   :  { %4991 = vmatprep.subr.bf16.mxu0 %v8350_v47  ;;  %5163 = vmatprep.subr.bf16.mxu1 %v8352_v51  ;;  %v7682_v47 = vcombine.high %v95_v38, %v103_v40  ;;  %v85_v51 = vld [vmem:[%s9448_s0 + $0x68] sm:$0xff]  ;;  %v7778_v40 = vcombine.high %v191_v33, %v199_v34 }
  0xf6   :  { %4992 = vmatpush1.bf16.msra.mxu0 %v8349_v53  ;;  %5164 = vmatpush1.bf16.msra.mxu1 %v8351_v54  ;;  %v119_v53 = vld [vmem:[#allocation2 + $0xd0] sm:$0xff]  ;;  %v9294_v54 = vpack.c.bf16 %v85_v51, %v78_v50  ;;  %v7794_v50 = vcombine.high %v207_v42, %v215_v43 }
  0xf7   :  { %4993 = vmatprep.subr.bf16.mxu0 %v8366_v55  ;;  %5165 = vmatprep.subr.bf16.mxu1 %v8368_v60  ;;  %v112_v55 = vld [vmem:[#allocation2 + $0x98] sm:$0xff]  ;;  %v7698_v60 = vcombine.high %v111_v52, %v119_v53  ;;  %v7697_v2 = vcombine.low %v111_v52, %v119_v53  ;;  %v223_v52 = vld [vmem:[#allocation2 + $0x410] sm:$0xff] }
  0xf8   :  { %v7700_v61 = vcombine.high %v112_v55, %v120_v56  ;;  %v7699_v3 = vcombine.low %v112_v55, %v120_v56  ;;  %v231_v53 = vld [vmem:[#allocation2 + $0x450] sm:$0xff]  ;;  %v224_v55 = vld [vmem:[#allocation2 + $0x418] sm:$0xff] }
  0xf9   :  { %v232_v56 = vld [vmem:[#allocation2 + $0x458] sm:$0xff] }
  0xfa   :  { %4994 = vmatpush1.bf16.msra.mxu0 %v8365_v62  ;;  %5166 = vmatpush1.bf16.msra.mxu1 %v8367_v63  ;;  %v127_v62 = vld [vmem:[#allocation2 + $0x110] sm:$0xff] }
  0xfb   :  { %4995 = vmatprep.subr.bf16.mxu0 %v8382_v0  ;;  %5167 = vmatprep.subr.bf16.mxu1 %v8384_v4  ;;  %v135_v63 = vld [vmem:[#allocation2 + $0x150] sm:$0xff]  ;;  %v128_v0 = vld [vmem:[#allocation2 + $0x118] sm:$0xff] }
  0xfc   :  { %v7714_v4 = vcombine.high %v127_v62, %v135_v63  ;;  %v7716_v5 = vcombine.high %v128_v0, %v136_v1  ;;  %v7713_v10 = vcombine.low %v127_v62, %v135_v63  ;;  %v7715_v11 = vcombine.low %v128_v0, %v136_v1  ;;  %v239_v62 = vld [vmem:[#allocation2 + $0x490] sm:$0xff]  ;;  %v240_v0 = vld [vmem:[#allocation2 + $0x498] sm:$0xff] }
  0xfd   :  { %v247_v63 = vld [vmem:[#allocation2 + $0x4d0] sm:$0xff]  ;;  %v248_v1 = vld [vmem:[#allocation2 + $0x4d8] sm:$0xff] }
  0xfe   :  { %4996 = vmatpush1.bf16.msra.mxu0 %v8381_v6  ;;  %5168 = vmatpush1.bf16.msra.mxu1 %v8383_v7  ;;  %v143_v6 = vld [vmem:[#allocation2 + $0x190] sm:$0xff] }
  0xff   :  { %4997 = vmatprep.subr.bf16.mxu0 %v8398_v8  ;;  %5169 = vmatprep.subr.bf16.mxu1 %v8400_v12  ;;  %v151_v7 = vld [vmem:[#allocation2 + $0x1d0] sm:$0xff]  ;;  %v144_v8 = vld [vmem:[#allocation2 + $0x198] sm:$0xff] }
 0x100   :  { %v7730_v12 = vcombine.high %v143_v6, %v151_v7  ;;  %v7732_v13 = vcombine.high %v144_v8, %v152_v9  ;;  %v7729_v19 = vcombine.low %v143_v6, %v151_v7  ;;  %v7731_v20 = vcombine.low %v144_v8, %v152_v9  ;;  %v255_v6 = vld [vmem:[#allocation2 + $0x510] sm:$0xff]  ;;  %v256_v8 = vld [vmem:[#allocation2 + $0x518] sm:$0xff] }
 0x101   :  { %v263_v7 = vld [vmem:[#allocation2 + $0x550] sm:$0xff]  ;;  %v264_v9 = vld [vmem:[#allocation2 + $0x558] sm:$0xff] }
 0x102   :  { %4998 = vmatpush1.bf16.msra.mxu0 %v8397_v14  ;;  %5170 = vmatpush1.bf16.msra.mxu1 %v8399_v16  ;;  %v159_v14 = vld [vmem:[#allocation2 + $0x210] sm:$0xff] }
 0x103   :  { %4999 = vmatprep.subr.bf16.mxu0 %v8414_v17  ;;  %5171 = vmatprep.subr.bf16.mxu1 %v8416_v21  ;;  %v167_v16 = vld [vmem:[#allocation2 + $0x250] sm:$0xff]  ;;  %v160_v17 = vld [vmem:[#allocation2 + $0x218] sm:$0xff] }
 0x104   :  { %v7746_v21 = vcombine.high %v159_v14, %v167_v16  ;;  %v7748_v22 = vcombine.high %v160_v17, %v168_v18  ;;  %v7745_v28 = vcombine.low %v159_v14, %v167_v16  ;;  %v7747_v29 = vcombine.low %v160_v17, %v168_v18  ;;  %v271_v14 = vld [vmem:[#allocation2 + $0x590] sm:$0xff]  ;;  %v272_v17 = vld [vmem:[#allocation2 + $0x598] sm:$0xff] }
 0x105   :  { %v279_v16 = vld [vmem:[#allocation2 + $0x5d0] sm:$0xff]  ;;  %v280_v18 = vld [vmem:[#allocation2 + $0x5d8] sm:$0xff] }
 0x106   :  { %5000 = vmatpush1.bf16.msra.mxu0 %v8413_v23  ;;  %5172 = vmatpush1.bf16.msra.mxu1 %v8415_v24  ;;  %v175_v23 = vld [vmem:[#allocation2 + $0x290] sm:$0xff] }
 0x107   :  { %5001 = vmatprep.subr.bf16.mxu0 %v8430_v26  ;;  %5173 = vmatprep.subr.bf16.mxu1 %v8432_v31  ;;  %v183_v24 = vld [vmem:[#allocation2 + $0x2d0] sm:$0xff]  ;;  %v176_v26 = vld [vmem:[#allocation2 + $0x298] sm:$0xff] }
 0x108   :  { %v7762_v31 = vcombine.high %v175_v23, %v183_v24  ;;  %v7764_v32 = vcombine.high %v176_v26, %v184_v27  ;;  %v7763_v38 = vcombine.low %v176_v26, %v184_v27  ;;  %v288_v26 = vld [vmem:[#allocation2 + $0x618] sm:$0xff] }
 0x109   :  { %v296_v27 = vld [vmem:[#allocation2 + $0x658] sm:$0xff] }
 0x10a   :  { %5002 = vmatpush1.bf16.msra.mxu0 %v8429_v35  ;;  %5174 = vmatpush1.bf16.msra.mxu1 %v8431_v36  ;;  %v192_v35 = vld [vmem:[#allocation2 + $0x318] sm:$0xff] }
 0x10b   :  { %5014 = vmatprep.subr.bf16.mxu0 %v8446_v37  ;;  %5186 = vmatprep.subr.bf16.mxu1 %v8448_v41  ;;  %v200_v36 = vld [vmem:[#allocation2 + $0x358] sm:$0xff]  ;;  %v7761_v37 = vcombine.low %v175_v23, %v183_v24  ;;  %v287_v23 = vld [vmem:[#allocation2 + $0x610] sm:$0xff] }
 0x10c   :  { %v7780_v41 = vcombine.high %v192_v35, %v200_v36  ;;  %v295_v24 = vld [vmem:[#allocation2 + $0x650] sm:$0xff] }
 0x10d   :  { %5004 = vmatmul.mubr.bf16.vlgmr.msra.gmra.mrb[0].mxu0 %v9282_v44  ;;  %5176 = vmatmul.mubr.bf16.vlgmr.msra.gmra.mrb[0].mxu1 %v9282_v44 }
 0x10e   :  { %5015 = vmatpush1.bf16.msra.mxu0 %v8445_v45  ;;  %5187 = vmatpush1.bf16.msra.mxu1 %v8447_v46  ;;  %v208_v45 = vld [vmem:[#allocation2 + $0x398] sm:$0xff] }
 0x10f   :  { %5046 = vmatprep.mubr.bf16.mxu0 %v9140_v49  ;;  %5218 = vmatprep.mubr.bf16.mxu1 %v9140_v49  ;;  %v216_v46 = vld [vmem:[#allocation2 + $0x3d8] sm:$0xff] }
 0x110   :  { %5229 = vmatprep.subr.bf16.mxu0 %v7682_v47  ;;  %5401 = vmatprep.subr.bf16.mxu1 %v7684_v48  ;;  %v7777_v47 = vcombine.low %v191_v33, %v199_v34  ;;  %v7779_v48 = vcombine.low %v192_v35, %v200_v36  ;;  %v7796_v51 = vcombine.high %v208_v45, %v216_v46  ;;  %v303_v33 = vld [vmem:[#allocation2 + $0x690] sm:$0xff]  ;;  %v304_v35 = vld [vmem:[#allocation2 + $0x698] sm:$0xff] }
 0x111   :  { %v311_v34 = vld [vmem:[#allocation2 + $0x6d0] sm:$0xff]  ;;  %v312_v36 = vld [vmem:[#allocation2 + $0x6d8] sm:$0xff] }
 0x119   :  { %8461 = vmatmul.mubr.msk.bf16.vlgmr.msra.gmra.mrb[0].mxu0 %vm4881_vm0, %v9294_v54  ;;  %8462 = vmatmul.mubr.msk.bf16.vlgmr.msra.gmra.mrb[0].mxu1 %vm4881_vm0, %v9294_v54 }
 0x11a   :  { %5230 = vmatpush1.bf16.msra.mxu0 %v7681_v57  ;;  %5402 = vmatpush1.bf16.msra.mxu1 %v7683_v59  ;;  %v7793_v57 = vcombine.low %v207_v42, %v215_v43  ;;  %v7795_v59 = vcombine.low %v208_v45, %v216_v46  ;;  %v319_v42 = vld [vmem:[#allocation2 + $0x710] sm:$0xff]  ;;  %v320_v45 = vld [vmem:[#allocation2 + $0x718] sm:$0xff] }
 0x11b   :  { %5231 = vmatprep.subr.bf16.mxu0 %v7698_v60  ;;  %5403 = vmatprep.subr.bf16.mxu1 %v7700_v61  ;;  %v7810_v60 = vcombine.high %v223_v52, %v231_v53  ;;  %v7812_v61 = vcombine.high %v224_v55, %v232_v56  ;;  %v327_v43 = vld [vmem:[#allocation2 + $0x750] sm:$0xff]  ;;  %v328_v46 = vld [vmem:[#allocation2 + $0x758] sm:$0xff] }
 0x11c   :  { %5261 = vmatprep.mubr.bf16.mxu0 %v9232_v58  ;;  %5433 = vmatprep.mubr.bf16.mxu1 %v9232_v58 }
 0x11e   :  { %5232 = vmatpush1.bf16.msra.mxu0 %v7697_v2  ;;  %5404 = vmatpush1.bf16.msra.mxu1 %v7699_v3  ;;  %v7809_v2 = vcombine.low %v223_v52, %v231_v53  ;;  %v7811_v3 = vcombine.low %v224_v55, %v232_v56  ;;  %v335_v52 = vld [vmem:[#allocation2 + $0x790] sm:$0xff]  ;;  %v336_v55 = vld [vmem:[#allocation2 + $0x798] sm:$0xff] }
 0x11f   :  { %5233 = vmatprep.subr.bf16.mxu0 %v7714_v4  ;;  %5405 = vmatprep.subr.bf16.mxu1 %v7716_v5  ;;  %v7826_v4 = vcombine.high %v239_v62, %v247_v63  ;;  %v7828_v5 = vcombine.high %v240_v0, %v248_v1  ;;  %v343_v53 = vld [vmem:[#allocation2 + $0x7d0] sm:$0xff]  ;;  %v344_v56 = vld [vmem:[#allocation2 + $0x7d8] sm:$0xff] }
 0x122   :  { %5234 = vmatpush1.bf16.msra.mxu0 %v7713_v10  ;;  %5406 = vmatpush1.bf16.msra.mxu1 %v7715_v11  ;;  %v7825_v10 = vcombine.low %v239_v62, %v247_v63  ;;  %v7827_v11 = vcombine.low %v240_v0, %v248_v1  ;;  %v351_v62 = vld [vmem:[#allocation2 + $0x810] sm:$0xff]  ;;  %v352_v0 = vld [vmem:[#allocation2 + $0x818] sm:$0xff] }
 0x123   :  { %5235 = vmatprep.subr.bf16.mxu0 %v7730_v12  ;;  %5407 = vmatprep.subr.bf16.mxu1 %v7732_v13  ;;  %v7842_v12 = vcombine.high %v255_v6, %v263_v7  ;;  %v7844_v13 = vcombine.high %v256_v8, %v264_v9  ;;  %v359_v63 = vld [vmem:[#allocation2 + $0x850] sm:$0xff]  ;;  %v360_v1 = vld [vmem:[#allocation2 + $0x858] sm:$0xff] }
 0x126   :  { %5236 = vmatpush1.bf16.msra.mxu0 %v7729_v19  ;;  %5408 = vmatpush1.bf16.msra.mxu1 %v7731_v20  ;;  %v7841_v19 = vcombine.low %v255_v6, %v263_v7  ;;  %v7843_v20 = vcombine.low %v256_v8, %v264_v9  ;;  %v367_v6 = vld [vmem:[#allocation2 + $0x890] sm:$0xff]  ;;  %v368_v8 = vld [vmem:[#allocation2 + $0x898] sm:$0xff] }
 0x127   :  { %5237 = vmatprep.subr.bf16.mxu0 %v7746_v21  ;;  %5409 = vmatprep.subr.bf16.mxu1 %v7748_v22  ;;  %v7858_v21 = vcombine.high %v271_v14, %v279_v16  ;;  %v7860_v22 = vcombine.high %v272_v17, %v280_v18  ;;  %v375_v7 = vld [vmem:[#allocation2 + $0x8d0] sm:$0xff]  ;;  %v376_v9 = vld [vmem:[#allocation2 + $0x8d8] sm:$0xff] }
 0x12a   :  { %5238 = vmatpush1.bf16.msra.mxu0 %v7745_v28  ;;  %5410 = vmatpush1.bf16.msra.mxu1 %v7747_v29  ;;  %v7857_v28 = vcombine.low %v271_v14, %v279_v16  ;;  %v7859_v29 = vcombine.low %v272_v17, %v280_v18  ;;  %v383_v14 = vld [vmem:[#allocation2 + $0x910] sm:$0xff]  ;;  %v384_v17 = vld [vmem:[#allocation2 + $0x918] sm:$0xff] }
 0x12b   :  { %5239 = vmatprep.subr.bf16.mxu0 %v7762_v31  ;;  %5411 = vmatprep.subr.bf16.mxu1 %v7764_v32  ;;  %v7874_v31 = vcombine.high %v287_v23, %v295_v24  ;;  %v7876_v32 = vcombine.high %v288_v26, %v296_v27  ;;  %v391_v16 = vld [vmem:[#allocation2 + $0x950] sm:$0xff]  ;;  %v392_v18 = vld [vmem:[#allocation2 + $0x958] sm:$0xff] }
 0x12e   :  { %5240 = vmatpush1.bf16.msra.mxu0 %v7761_v37  ;;  %5412 = vmatpush1.bf16.msra.mxu1 %v7763_v38  ;;  %v7873_v37 = vcombine.low %v287_v23, %v295_v24  ;;  %v7875_v38 = vcombine.low %v288_v26, %v296_v27  ;;  %v399_v23 = vld [vmem:[#allocation2 + $0x990] sm:$0xff]  ;;  %v400_v26 = vld [vmem:[#allocation2 + $0x998] sm:$0xff] }
 0x12f   :  { %5241 = vmatprep.subr.bf16.mxu0 %v7778_v40  ;;  %5413 = vmatprep.subr.bf16.mxu1 %v7780_v41  ;;  %v7890_v40 = vcombine.high %v303_v33, %v311_v34  ;;  %v7892_v41 = vcombine.high %v304_v35, %v312_v36  ;;  %v407_v24 = vld [vmem:[#allocation2 + $0x9d0] sm:$0xff]  ;;  %v408_v27 = vld [vmem:[#allocation2 + $0x9d8] sm:$0xff] }
 0x132   :  { %5242 = vmatpush1.bf16.msra.mxu0 %v7777_v47  ;;  %5414 = vmatpush1.bf16.msra.mxu1 %v7779_v48  ;;  %v7889_v47 = vcombine.low %v303_v33, %v311_v34  ;;  %v7891_v48 = vcombine.low %v304_v35, %v312_v36  ;;  %v415_v33 = vld [vmem:[#allocation2 + $0xa10] sm:$0xff]  ;;  %v416_v35 = vld [vmem:[#allocation2 + $0xa18] sm:$0xff] }
 0x133   :  { %5243 = vmatprep.subr.bf16.mxu0 %v7794_v50  ;;  %5415 = vmatprep.subr.bf16.mxu1 %v7796_v51  ;;  %v7906_v50 = vcombine.high %v319_v42, %v327_v43  ;;  %v7908_v51 = vcombine.high %v320_v45, %v328_v46  ;;  %v423_v34 = vld [vmem:[#allocation2 + $0xa50] sm:$0xff]  ;;  %v424_v36 = vld [vmem:[#allocation2 + $0xa58] sm:$0xff] }
 0x136   :  { %5244 = vmatpush1.bf16.msra.mxu0 %v7793_v57  ;;  %5416 = vmatpush1.bf16.msra.mxu1 %v7795_v59  ;;  %v7905_v57 = vcombine.low %v319_v42, %v327_v43  ;;  %v7907_v59 = vcombine.low %v320_v45, %v328_v46  ;;  %v431_v42 = vld [vmem:[#allocation2 + $0xa90] sm:$0xff]  ;;  %v432_v45 = vld [vmem:[#allocation2 + $0xa98] sm:$0xff] }
 0x137   :  { %5245 = vmatprep.subr.bf16.mxu0 %v7810_v60  ;;  %5417 = vmatprep.subr.bf16.mxu1 %v7812_v61  ;;  %v7922_v60 = vcombine.high %v335_v52, %v343_v53  ;;  %v7924_v61 = vcombine.high %v336_v55, %v344_v56  ;;  %v439_v43 = vld [vmem:[#allocation2 + $0xad0] sm:$0xff]  ;;  %v440_v46 = vld [vmem:[#allocation2 + $0xad8] sm:$0xff] }
 0x13a   :  { %5246 = vmatpush1.bf16.msra.mxu0 %v7809_v2  ;;  %5418 = vmatpush1.bf16.msra.mxu1 %v7811_v3  ;;  %v7921_v2 = vcombine.low %v335_v52, %v343_v53  ;;  %v7923_v3 = vcombine.low %v336_v55, %v344_v56  ;;  %v447_v52 = vld [vmem:[#allocation2 + $0xb10] sm:$0xff]  ;;  %v448_v55 = vld [vmem:[#allocation2 + $0xb18] sm:$0xff] }
 0x13b   :  { %5247 = vmatprep.subr.bf16.mxu0 %v7826_v4  ;;  %5419 = vmatprep.subr.bf16.mxu1 %v7828_v5  ;;  %v7938_v4 = vcombine.high %v351_v62, %v359_v63  ;;  %v7940_v5 = vcombine.high %v352_v0, %v360_v1  ;;  %v455_v53 = vld [vmem:[#allocation2 + $0xb50] sm:$0xff]  ;;  %v456_v56 = vld [vmem:[#allocation2 + $0xb58] sm:$0xff] }
 0x13e   :  { %5248 = vmatpush1.bf16.msra.mxu0 %v7825_v10  ;;  %5420 = vmatpush1.bf16.msra.mxu1 %v7827_v11  ;;  %v7937_v10 = vcombine.low %v351_v62, %v359_v63  ;;  %v7939_v11 = vcombine.low %v352_v0, %v360_v1  ;;  %v463_v62 = vld [vmem:[#allocation2 + $0xb90] sm:$0xff]  ;;  %v464_v0 = vld [vmem:[#allocation2 + $0xb98] sm:$0xff] }
 0x13f   :  { %5249 = vmatprep.subr.bf16.mxu0 %v7842_v12  ;;  %5421 = vmatprep.subr.bf16.mxu1 %v7844_v13  ;;  %v7954_v12 = vcombine.high %v367_v6, %v375_v7  ;;  %v7956_v13 = vcombine.high %v368_v8, %v376_v9  ;;  %v471_v63 = vld [vmem:[#allocation2 + $0xbd0] sm:$0xff]  ;;  %v472_v1 = vld [vmem:[#allocation2 + $0xbd8] sm:$0xff] }
 0x142   :  { %5250 = vmatpush1.bf16.msra.mxu0 %v7841_v19  ;;  %5422 = vmatpush1.bf16.msra.mxu1 %v7843_v20  ;;  %v7953_v19 = vcombine.low %v367_v6, %v375_v7  ;;  %v7955_v20 = vcombine.low %v368_v8, %v376_v9  ;;  %v479_v6 = vld [vmem:[#allocation2 + $0xc10] sm:$0xff]  ;;  %v480_v8 = vld [vmem:[#allocation2 + $0xc18] sm:$0xff] }
 0x143   :  { %5251 = vmatprep.subr.bf16.mxu0 %v7858_v21  ;;  %5423 = vmatprep.subr.bf16.mxu1 %v7860_v22  ;;  %v7970_v21 = vcombine.high %v383_v14, %v391_v16  ;;  %v7972_v22 = vcombine.high %v384_v17, %v392_v18  ;;  %v487_v7 = vld [vmem:[#allocation2 + $0xc50] sm:$0xff]  ;;  %v488_v9 = vld [vmem:[#allocation2 + $0xc58] sm:$0xff] }
 0x146   :  { %5252 = vmatpush1.bf16.msra.mxu0 %v7857_v28  ;;  %5424 = vmatpush1.bf16.msra.mxu1 %v7859_v29  ;;  %v7969_v28 = vcombine.low %v383_v14, %v391_v16  ;;  %v7971_v29 = vcombine.low %v384_v17, %v392_v18  ;;  %v495_v14 = vld [vmem:[#allocation2 + $0xc90] sm:$0xff]  ;;  %v496_v17 = vld [vmem:[#allocation2 + $0xc98] sm:$0xff] }
 0x147   :  { %5253 = vmatprep.subr.bf16.mxu0 %v7874_v31  ;;  %5425 = vmatprep.subr.bf16.mxu1 %v7876_v32  ;;  %v7986_v31 = vcombine.high %v399_v23, %v407_v24  ;;  %v7988_v32 = vcombine.high %v400_v26, %v408_v27  ;;  %v503_v16 = vld [vmem:[#allocation2 + $0xcd0] sm:$0xff]  ;;  %v504_v18 = vld [vmem:[#allocation2 + $0xcd8] sm:$0xff] }
 0x14a   :  { %5254 = vmatpush1.bf16.msra.mxu0 %v7873_v37  ;;  %5426 = vmatpush1.bf16.msra.mxu1 %v7875_v38  ;;  %v7985_v37 = vcombine.low %v399_v23, %v407_v24  ;;  %v7987_v38 = vcombine.low %v400_v26, %v408_v27  ;;  %v511_v23 = vld [vmem:[#allocation2 + $0xd10] sm:$0xff]  ;;  %v512_v26 = vld [vmem:[#allocation2 + $0xd18] sm:$0xff] }
 0x14b   :  { %5255 = vmatprep.subr.bf16.mxu0 %v7890_v40  ;;  %5427 = vmatprep.subr.bf16.mxu1 %v7892_v41  ;;  %v8002_v40 = vcombine.high %v415_v33, %v423_v34  ;;  %v8004_v41 = vcombine.high %v416_v35, %v424_v36  ;;  %v519_v24 = vld [vmem:[#allocation2 + $0xd50] sm:$0xff]  ;;  %v520_v27 = vld [vmem:[#allocation2 + $0xd58] sm:$0xff] }
 0x14e   :  { %5256 = vmatpush1.bf16.msra.mxu0 %v7889_v47  ;;  %5428 = vmatpush1.bf16.msra.mxu1 %v7891_v48  ;;  %v8001_v47 = vcombine.low %v415_v33, %v423_v34  ;;  %v8003_v48 = vcombine.low %v416_v35, %v424_v36  ;;  %v527_v33 = vld [vmem:[#allocation2 + $0xd90] sm:$0xff]  ;;  %v528_v35 = vld [vmem:[#allocation2 + $0xd98] sm:$0xff] }
 0x14f   :  { %5257 = vmatprep.subr.bf16.mxu0 %v7906_v50  ;;  %5429 = vmatprep.subr.bf16.mxu1 %v7908_v51  ;;  %v8018_v50 = vcombine.high %v431_v42, %v439_v43  ;;  %v8020_v51 = vcombine.high %v432_v45, %v440_v46  ;;  %v535_v34 = vld [vmem:[#allocation2 + $0xdd0] sm:$0xff]  ;;  %v536_v36 = vld [vmem:[#allocation2 + $0xdd8] sm:$0xff] }
 0x152   :  { %5258 = vmatpush1.bf16.msra.mxu0 %v7905_v57  ;;  %5430 = vmatpush1.bf16.msra.mxu1 %v7907_v59  ;;  %v8017_v57 = vcombine.low %v431_v42, %v439_v43  ;;  %v8019_v59 = vcombine.low %v432_v45, %v440_v46  ;;  %v543_v42 = vld [vmem:[#allocation2 + $0xe10] sm:$0xff]  ;;  %v544_v45 = vld [vmem:[#allocation2 + $0xe18] sm:$0xff] }
 0x153   :  { %5259 = vmatprep.subr.bf16.mxu0 %v7922_v60  ;;  %5431 = vmatprep.subr.bf16.mxu1 %v7924_v61  ;;  %v8034_v60 = vcombine.high %v447_v52, %v455_v53  ;;  %v8036_v61 = vcombine.high %v448_v55, %v456_v56  ;;  %v551_v43 = vld [vmem:[#allocation2 + $0xe50] sm:$0xff]  ;;  %v552_v46 = vld [vmem:[#allocation2 + $0xe58] sm:$0xff] }
 0x156   :  { %5260 = vmatpush1.bf16.msra.mxu0 %v7921_v2  ;;  %5432 = vmatpush1.bf16.msra.mxu1 %v7923_v3  ;;  %v8033_v2 = vcombine.low %v447_v52, %v455_v53  ;;  %v8035_v3 = vcombine.low %v448_v55, %v456_v56  ;;  %v559_v52 = vld [vmem:[#allocation2 + $0xe90] sm:$0xff]  ;;  %v560_v55 = vld [vmem:[#allocation2 + $0xe98] sm:$0xff] }
 0x157   :  { %5272 = vmatprep.subr.bf16.mxu0 %v7938_v4  ;;  %5444 = vmatprep.subr.bf16.mxu1 %v7940_v5  ;;  %v8050_v4 = vcombine.high %v463_v62, %v471_v63  ;;  %v8052_v5 = vcombine.high %v464_v0, %v472_v1  ;;  %v567_v53 = vld [vmem:[#allocation2 + $0xed0] sm:$0xff]  ;;  %v568_v56 = vld [vmem:[#allocation2 + $0xed8] sm:$0xff] }
 0x159   :  { %5262 = vmatmul.mubr.bf16.vlgmr.msra.gmra.mrb[4].mxu0 %v9242_v15  ;;  %5434 = vmatmul.mubr.bf16.vlgmr.msra.gmra.mrb[4].mxu1 %v9242_v15 }
 0x15a   :  { %5273 = vmatpush1.bf16.msra.mxu0 %v7937_v10  ;;  %5445 = vmatpush1.bf16.msra.mxu1 %v7939_v11  ;;  %v8049_v10 = vcombine.low %v463_v62, %v471_v63  ;;  %v8051_v11 = vcombine.low %v464_v0, %v472_v1  ;;  %v575_v62 = vld [vmem:[#allocation2 + $0xf10] sm:$0xff]  ;;  %v576_v0 = vld [vmem:[#allocation2 + $0xf18] sm:$0xff] }
 0x15b   :  { %5274 = vmatprep.subr.bf16.mxu0 %v7954_v12  ;;  %5446 = vmatprep.subr.bf16.mxu1 %v7956_v13  ;;  %v8066_v12 = vcombine.high %v479_v6, %v487_v7  ;;  %v8068_v13 = vcombine.high %v480_v8, %v488_v9  ;;  %v583_v63 = vld [vmem:[#allocation2 + $0xf50] sm:$0xff]  ;;  %v584_v1 = vld [vmem:[#allocation2 + $0xf58] sm:$0xff] }
 0x15c   :  { %5304 = vmatprep.mubr.bf16.mxu0 %v9250_v25  ;;  %5476 = vmatprep.mubr.bf16.mxu1 %v9250_v25 }
 0x15e   :  { %5275 = vmatpush1.bf16.msra.mxu0 %v7953_v19  ;;  %5447 = vmatpush1.bf16.msra.mxu1 %v7955_v20  ;;  %v8065_v19 = vcombine.low %v479_v6, %v487_v7  ;;  %v8067_v20 = vcombine.low %v480_v8, %v488_v9  ;;  %v591_v6 = vld [vmem:[#allocation2 + $0xf90] sm:$0xff]  ;;  %v592_v8 = vld [vmem:[#allocation2 + $0xf98] sm:$0xff] }
 0x15f   :  { %5276 = vmatprep.subr.bf16.mxu0 %v7970_v21  ;;  %5448 = vmatprep.subr.bf16.mxu1 %v7972_v22  ;;  %v8082_v21 = vcombine.high %v495_v14, %v503_v16  ;;  %v8084_v22 = vcombine.high %v496_v17, %v504_v18  ;;  %v599_v7 = vld [vmem:[#allocation2 + $0xfd0] sm:$0xff]  ;;  %v600_v9 = vld [vmem:[#allocation2 + $0xfd8] sm:$0xff] }
 0x162   :  { %5277 = vmatpush1.bf16.msra.mxu0 %v7969_v28  ;;  %5449 = vmatpush1.bf16.msra.mxu1 %v7971_v29  ;;  %v8081_v28 = vcombine.low %v495_v14, %v503_v16  ;;  %v8083_v29 = vcombine.low %v496_v17, %v504_v18  ;;  %v607_v14 = vld [vmem:[#allocation2 + $0x1010] sm:$0xff]  ;;  %v608_v17 = vld [vmem:[#allocation2 + $0x1018] sm:$0xff] }
 0x163   :  { %5278 = vmatprep.subr.bf16.mxu0 %v7986_v31  ;;  %5450 = vmatprep.subr.bf16.mxu1 %v7988_v32  ;;  %v8098_v31 = vcombine.high %v511_v23, %v519_v24  ;;  %v8100_v32 = vcombine.high %v512_v26, %v520_v27  ;;  %v615_v16 = vld [vmem:[#allocation2 + $0x1050] sm:$0xff]  ;;  %v616_v18 = vld [vmem:[#allocation2 + $0x1058] sm:$0xff] }
 0x166   :  { %5279 = vmatpush1.bf16.msra.mxu0 %v7985_v37  ;;  %5451 = vmatpush1.bf16.msra.mxu1 %v7987_v38  ;;  %v8097_v37 = vcombine.low %v511_v23, %v519_v24  ;;  %v8099_v38 = vcombine.low %v512_v26, %v520_v27  ;;  %v623_v23 = vld [vmem:[#allocation2 + $0x1090] sm:$0xff]  ;;  %v624_v26 = vld [vmem:[#allocation2 + $0x1098] sm:$0xff] }
 0x167   :  { %5280 = vmatprep.subr.bf16.mxu0 %v8002_v40  ;;  %5452 = vmatprep.subr.bf16.mxu1 %v8004_v41  ;;  %v8114_v40 = vcombine.high %v527_v33, %v535_v34  ;;  %v8116_v41 = vcombine.high %v528_v35, %v536_v36  ;;  %v631_v24 = vld [vmem:[#allocation2 + $0x10d0] sm:$0xff]  ;;  %v632_v27 = vld [vmem:[#allocation2 + $0x10d8] sm:$0xff] }
 0x16a   :  { %5281 = vmatpush1.bf16.msra.mxu0 %v8001_v47  ;;  %5453 = vmatpush1.bf16.msra.mxu1 %v8003_v48  ;;  %v8113_v47 = vcombine.low %v527_v33, %v535_v34  ;;  %v8115_v48 = vcombine.low %v528_v35, %v536_v36  ;;  %v639_v33 = vld [vmem:[#allocation2 + $0x1110] sm:$0xff]  ;;  %v640_v35 = vld [vmem:[#allocation2 + $0x1118] sm:$0xff] }
 0x16b   :  { %5282 = vmatprep.subr.bf16.mxu0 %v8018_v50  ;;  %5454 = vmatprep.subr.bf16.mxu1 %v8020_v51  ;;  %v8130_v50 = vcombine.high %v543_v42, %v551_v43  ;;  %v8132_v51 = vcombine.high %v544_v45, %v552_v46  ;;  %v647_v34 = vld [vmem:[#allocation2 + $0x1150] sm:$0xff]  ;;  %v648_v36 = vld [vmem:[#allocation2 + $0x1158] sm:$0xff] }
 0x16e   :  { %5283 = vmatpush1.bf16.msra.mxu0 %v8017_v57  ;;  %5455 = vmatpush1.bf16.msra.mxu1 %v8019_v59  ;;  %v8129_v57 = vcombine.low %v543_v42, %v551_v43  ;;  %v8131_v59 = vcombine.low %v544_v45, %v552_v46  ;;  %v655_v42 = vld [vmem:[#allocation2 + $0x1190] sm:$0xff]  ;;  %v656_v45 = vld [vmem:[#allocation2 + $0x1198] sm:$0xff] }
 0x16f   :  { %5284 = vmatprep.subr.bf16.mxu0 %v8034_v60  ;;  %5456 = vmatprep.subr.bf16.mxu1 %v8036_v61  ;;  %v8146_v60 = vcombine.high %v559_v52, %v567_v53  ;;  %v8148_v61 = vcombine.high %v560_v55, %v568_v56  ;;  %v663_v43 = vld [vmem:[#allocation2 + $0x11d0] sm:$0xff]  ;;  %v664_v46 = vld [vmem:[#allocation2 + $0x11d8] sm:$0xff] }
 0x172   :  { %5285 = vmatpush1.bf16.msra.mxu0 %v8033_v2  ;;  %5457 = vmatpush1.bf16.msra.mxu1 %v8035_v3  ;;  %v8145_v2 = vcombine.low %v559_v52, %v567_v53  ;;  %v8147_v3 = vcombine.low %v560_v55, %v568_v56  ;;  %v671_v52 = vld [vmem:[#allocation2 + $0x1210] sm:$0xff]  ;;  %v672_v55 = vld [vmem:[#allocation2 + $0x1218] sm:$0xff] }
 0x173   :  { %5286 = vmatprep.subr.bf16.mxu0 %v8050_v4  ;;  %5458 = vmatprep.subr.bf16.mxu1 %v8052_v5  ;;  %v8162_v4 = vcombine.high %v575_v62, %v583_v63  ;;  %v8164_v5 = vcombine.high %v576_v0, %v584_v1  ;;  %v679_v53 = vld [vmem:[#allocation2 + $0x1250] sm:$0xff]  ;;  %v680_v56 = vld [vmem:[#allocation2 + $0x1258] sm:$0xff] }
 0x176   :  { %5287 = vmatpush1.bf16.msra.mxu0 %v8049_v10  ;;  %5459 = vmatpush1.bf16.msra.mxu1 %v8051_v11  ;;  %v8161_v10 = vcombine.low %v575_v62, %v583_v63  ;;  %v8163_v11 = vcombine.low %v576_v0, %v584_v1  ;;  %v687_v62 = vld [vmem:[#allocation2 + $0x1290] sm:$0xff]  ;;  %v688_v0 = vld [vmem:[#allocation2 + $0x1298] sm:$0xff] }
 0x177   :  { %5288 = vmatprep.subr.bf16.mxu0 %v8066_v12  ;;  %5460 = vmatprep.subr.bf16.mxu1 %v8068_v13  ;;  %v8178_v12 = vcombine.high %v591_v6, %v599_v7  ;;  %v8180_v13 = vcombine.high %v592_v8, %v600_v9  ;;  %v695_v63 = vld [vmem:[#allocation2 + $0x12d0] sm:$0xff]  ;;  %v696_v1 = vld [vmem:[#allocation2 + $0x12d8] sm:$0xff] }
 0x17a   :  { %5289 = vmatpush1.bf16.msra.mxu0 %v8065_v19  ;;  %5461 = vmatpush1.bf16.msra.mxu1 %v8067_v20  ;;  %v8177_v19 = vcombine.low %v591_v6, %v599_v7  ;;  %v8179_v20 = vcombine.low %v592_v8, %v600_v9  ;;  %v703_v6 = vld [vmem:[#allocation2 + $0x1310] sm:$0xff]  ;;  %v704_v8 = vld [vmem:[#allocation2 + $0x1318] sm:$0xff] }
 0x17b   :  { %5290 = vmatprep.subr.bf16.mxu0 %v8082_v21  ;;  %5462 = vmatprep.subr.bf16.mxu1 %v8084_v22  ;;  %v8194_v21 = vcombine.high %v607_v14, %v615_v16  ;;  %v8196_v22 = vcombine.high %v608_v17, %v616_v18  ;;  %v711_v7 = vld [vmem:[#allocation2 + $0x1350] sm:$0xff]  ;;  %v712_v9 = vld [vmem:[#allocation2 + $0x1358] sm:$0xff] }
 0x17e   :  { %5291 = vmatpush1.bf16.msra.mxu0 %v8081_v28  ;;  %5463 = vmatpush1.bf16.msra.mxu1 %v8083_v29  ;;  %v8193_v28 = vcombine.low %v607_v14, %v615_v16  ;;  %v8195_v29 = vcombine.low %v608_v17, %v616_v18  ;;  %v719_v14 = vld [vmem:[#allocation2 + $0x1390] sm:$0xff]  ;;  %v720_v17 = vld [vmem:[#allocation2 + $0x1398] sm:$0xff] }
 0x17f   :  { %5292 = vmatprep.subr.bf16.mxu0 %v8098_v31  ;;  %5464 = vmatprep.subr.bf16.mxu1 %v8100_v32  ;;  %v8210_v31 = vcombine.high %v623_v23, %v631_v24  ;;  %v8212_v32 = vcombine.high %v624_v26, %v632_v27  ;;  %v727_v16 = vld [vmem:[#allocation2 + $0x13d0] sm:$0xff]  ;;  %v728_v18 = vld [vmem:[#allocation2 + $0x13d8] sm:$0xff] }
 0x182   :  { %5293 = vmatpush1.bf16.msra.mxu0 %v8097_v37  ;;  %5465 = vmatpush1.bf16.msra.mxu1 %v8099_v38  ;;  %v8209_v37 = vcombine.low %v623_v23, %v631_v24  ;;  %v8211_v38 = vcombine.low %v624_v26, %v632_v27  ;;  %v735_v23 = vld [vmem:[#allocation2 + $0x1410] sm:$0xff]  ;;  %v736_v26 = vld [vmem:[#allocation2 + $0x1418] sm:$0xff] }
 0x183   :  { %5294 = vmatprep.subr.bf16.mxu0 %v8114_v40  ;;  %5466 = vmatprep.subr.bf16.mxu1 %v8116_v41  ;;  %v8226_v40 = vcombine.high %v639_v33, %v647_v34  ;;  %v8228_v41 = vcombine.high %v640_v35, %v648_v36  ;;  %v743_v24 = vld [vmem:[#allocation2 + $0x1450] sm:$0xff]  ;;  %v744_v27 = vld [vmem:[#allocation2 + $0x1458] sm:$0xff] }
 0x186   :  { %5295 = vmatpush1.bf16.msra.mxu0 %v8113_v47  ;;  %5467 = vmatpush1.bf16.msra.mxu1 %v8115_v48  ;;  %v8225_v47 = vcombine.low %v639_v33, %v647_v34  ;;  %v8227_v48 = vcombine.low %v640_v35, %v648_v36  ;;  %v751_v33 = vld [vmem:[#allocation2 + $0x1490] sm:$0xff]  ;;  %v752_v35 = vld [vmem:[#allocation2 + $0x1498] sm:$0xff] }
 0x187   :  { %5296 = vmatprep.subr.bf16.mxu0 %v8130_v50  ;;  %5468 = vmatprep.subr.bf16.mxu1 %v8132_v51  ;;  %v8242_v50 = vcombine.high %v655_v42, %v663_v43  ;;  %v8244_v51 = vcombine.high %v656_v45, %v664_v46  ;;  %v759_v34 = vld [vmem:[#allocation2 + $0x14d0] sm:$0xff]  ;;  %v760_v36 = vld [vmem:[#allocation2 + $0x14d8] sm:$0xff] }
 0x18a   :  { %5297 = vmatpush1.bf16.msra.mxu0 %v8129_v57  ;;  %5469 = vmatpush1.bf16.msra.mxu1 %v8131_v59  ;;  %v8241_v57 = vcombine.low %v655_v42, %v663_v43  ;;  %v8243_v59 = vcombine.low %v656_v45, %v664_v46  ;;  %v767_v42 = vld [vmem:[#allocation2 + $0x1510] sm:$0xff]  ;;  %v768_v45 = vld [vmem:[#allocation2 + $0x1518] sm:$0xff] }
 0x18b   :  { %5298 = vmatprep.subr.bf16.mxu0 %v8146_v60  ;;  %5470 = vmatprep.subr.bf16.mxu1 %v8148_v61  ;;  %v8258_v60 = vcombine.high %v671_v52, %v679_v53  ;;  %v8260_v61 = vcombine.high %v672_v55, %v680_v56  ;;  %v775_v43 = vld [vmem:[#allocation2 + $0x1550] sm:$0xff]  ;;  %v776_v46 = vld [vmem:[#allocation2 + $0x1558] sm:$0xff] }
 0x18e   :  { %5299 = vmatpush1.bf16.msra.mxu0 %v8145_v2  ;;  %5471 = vmatpush1.bf16.msra.mxu1 %v8147_v3  ;;  %v8257_v2 = vcombine.low %v671_v52, %v679_v53  ;;  %v8259_v3 = vcombine.low %v672_v55, %v680_v56  ;;  %v783_v52 = vld [vmem:[#allocation2 + $0x1590] sm:$0xff]  ;;  %v784_v55 = vld [vmem:[#allocation2 + $0x1598] sm:$0xff] }
 0x18f   :  { %5300 = vmatprep.subr.bf16.mxu0 %v8162_v4  ;;  %5472 = vmatprep.subr.bf16.mxu1 %v8164_v5  ;;  %v8274_v4 = vcombine.high %v687_v62, %v695_v63  ;;  %v8276_v5 = vcombine.high %v688_v0, %v696_v1  ;;  %v791_v53 = vld [vmem:[#allocation2 + $0x15d0] sm:$0xff]  ;;  %v792_v56 = vld [vmem:[#allocation2 + $0x15d8] sm:$0xff] }
 0x192   :  { %5301 = vmatpush1.bf16.msra.mxu0 %v8161_v10  ;;  %5473 = vmatpush1.bf16.msra.mxu1 %v8163_v11  ;;  %v8273_v10 = vcombine.low %v687_v62, %v695_v63  ;;  %v8275_v11 = vcombine.low %v688_v0, %v696_v1  ;;  %v799_v62 = vld [vmem:[#allocation2 + $0x1610] sm:$0xff]  ;;  %v800_v0 = vld [vmem:[#allocation2 + $0x1618] sm:$0xff] }
 0x193   :  { %5302 = vmatprep.subr.bf16.mxu0 %v8178_v12  ;;  %5474 = vmatprep.subr.bf16.mxu1 %v8180_v13  ;;  %v8290_v12 = vcombine.high %v703_v6, %v711_v7  ;;  %v8292_v13 = vcombine.high %v704_v8, %v712_v9  ;;  %v807_v63 = vld [vmem:[#allocation2 + $0x1650] sm:$0xff]  ;;  %v808_v1 = vld [vmem:[#allocation2 + $0x1658] sm:$0xff] }
 0x196   :  { %5303 = vmatpush1.bf16.msra.mxu0 %v8177_v19  ;;  %5475 = vmatpush1.bf16.msra.mxu1 %v8179_v20  ;;  %v8289_v19 = vcombine.low %v703_v6, %v711_v7  ;;  %v8291_v20 = vcombine.low %v704_v8, %v712_v9  ;;  %v815_v6 = vld [vmem:[#allocation2 + $0x1690] sm:$0xff]  ;;  %v816_v8 = vld [vmem:[#allocation2 + $0x1698] sm:$0xff] }
 0x197   :  { %5315 = vmatprep.subr.bf16.mxu0 %v8194_v21  ;;  %5487 = vmatprep.subr.bf16.mxu1 %v8196_v22  ;;  %v8306_v21 = vcombine.high %v719_v14, %v727_v16  ;;  %v8308_v22 = vcombine.high %v720_v17, %v728_v18  ;;  %v823_v7 = vld [vmem:[#allocation2 + $0x16d0] sm:$0xff]  ;;  %v824_v9 = vld [vmem:[#allocation2 + $0x16d8] sm:$0xff] }
 0x199   :  { %5305 = vmatmul.mubr.bf16.vlgmr.msra.gmra.mrb[4].mxu0 %v9268_v30  ;;  %5477 = vmatmul.mubr.bf16.vlgmr.msra.gmra.mrb[4].mxu1 %v9268_v30 }
 0x19a   :  { %5316 = vmatpush1.bf16.msra.mxu0 %v8193_v28  ;;  %5488 = vmatpush1.bf16.msra.mxu1 %v8195_v29  ;;  %v8305_v28 = vcombine.low %v719_v14, %v727_v16  ;;  %v8307_v29 = vcombine.low %v720_v17, %v728_v18  ;;  %v831_v14 = vld [vmem:[#allocation2 + $0x1710] sm:$0xff]  ;;  %v832_v17 = vld [vmem:[#allocation2 + $0x1718] sm:$0xff] }
 0x19b   :  { %5317 = vmatprep.subr.bf16.mxu0 %v8210_v31  ;;  %5489 = vmatprep.subr.bf16.mxu1 %v8212_v32  ;;  %v8322_v31 = vcombine.high %v735_v23, %v743_v24  ;;  %v8324_v32 = vcombine.high %v736_v26, %v744_v27  ;;  %v839_v16 = vld [vmem:[#allocation2 + $0x1750] sm:$0xff]  ;;  %v840_v18 = vld [vmem:[#allocation2 + $0x1758] sm:$0xff] }
 0x19c   :  { %5347 = vmatprep.mubr.bf16.mxu0 %v9270_v39  ;;  %5519 = vmatprep.mubr.bf16.mxu1 %v9270_v39 }
 0x19e   :  { %5318 = vmatpush1.bf16.msra.mxu0 %v8209_v37  ;;  %5490 = vmatpush1.bf16.msra.mxu1 %v8211_v38  ;;  %v8321_v37 = vcombine.low %v735_v23, %v743_v24  ;;  %v8323_v38 = vcombine.low %v736_v26, %v744_v27  ;;  %v847_v23 = vld [vmem:[#allocation2 + $0x1790] sm:$0xff]  ;;  %v848_v26 = vld [vmem:[#allocation2 + $0x1798] sm:$0xff] }
 0x19f   :  { %5319 = vmatprep.subr.bf16.mxu0 %v8226_v40  ;;  %5491 = vmatprep.subr.bf16.mxu1 %v8228_v41  ;;  %v8338_v40 = vcombine.high %v751_v33, %v759_v34  ;;  %v8340_v41 = vcombine.high %v752_v35, %v760_v36  ;;  %v855_v24 = vld [vmem:[#allocation2 + $0x17d0] sm:$0xff]  ;;  %v856_v27 = vld [vmem:[#allocation2 + $0x17d8] sm:$0xff] }
 0x1a2   :  { %5320 = vmatpush1.bf16.msra.mxu0 %v8225_v47  ;;  %5492 = vmatpush1.bf16.msra.mxu1 %v8227_v48  ;;  %v8337_v47 = vcombine.low %v751_v33, %v759_v34  ;;  %v8339_v48 = vcombine.low %v752_v35, %v760_v36  ;;  %v863_v33 = vld [vmem:[#allocation2 + $0x1810] sm:$0xff]  ;;  %v864_v35 = vld [vmem:[#allocation2 + $0x1818] sm:$0xff] }
 0x1a3   :  { %5321 = vmatprep.subr.bf16.mxu0 %v8242_v50  ;;  %5493 = vmatprep.subr.bf16.mxu1 %v8244_v51  ;;  %v8354_v50 = vcombine.high %v767_v42, %v775_v43  ;;  %v8356_v51 = vcombine.high %v768_v45, %v776_v46  ;;  %v871_v34 = vld [vmem:[#allocation2 + $0x1850] sm:$0xff]  ;;  %v872_v36 = vld [vmem:[#allocation2 + $0x1858] sm:$0xff] }
 0x1a6   :  { %5322 = vmatpush1.bf16.msra.mxu0 %v8241_v57  ;;  %5494 = vmatpush1.bf16.msra.mxu1 %v8243_v59  ;;  %v8353_v57 = vcombine.low %v767_v42, %v775_v43  ;;  %v8355_v59 = vcombine.low %v768_v45, %v776_v46  ;;  %v97_v42 = vld [vmem:[#allocation2 + $0x20] sm:$0xff]  ;;  %v8449_v45 = vcombine.low %v863_v33, %v871_v34  ;;  %v98_v46 = vld [vmem:[#allocation2 + $0x28] sm:$0xff] }
 0x1a7   :  { %5323 = vmatprep.subr.bf16.mxu0 %v8258_v60  ;;  %5495 = vmatprep.subr.bf16.mxu1 %v8260_v61  ;;  %v8370_v60 = vcombine.high %v783_v52, %v791_v53  ;;  %v8372_v61 = vcombine.high %v784_v55, %v792_v56  ;;  %v105_v43 = vld [vmem:[#allocation2 + $0x60] sm:$0xff] }
 0x1aa   :  { %5324 = vmatpush1.bf16.msra.mxu0 %v8257_v2  ;;  %5496 = vmatpush1.bf16.msra.mxu1 %v8259_v3  ;;  %v8369_v2 = vcombine.low %v783_v52, %v791_v53  ;;  %v8371_v3 = vcombine.low %v784_v55, %v792_v56  ;;  %v881_v52 = vlaneseq  ;;  %v113_v53 = vld [vmem:[#allocation2 + $0xa0] sm:$0xff]  ;;  %v114_v56 = vld [vmem:[#allocation2 + $0xa8] sm:$0xff] }
 0x1ab   :  { %5325 = vmatprep.subr.bf16.mxu0 %v8274_v4  ;;  %5497 = vmatprep.subr.bf16.mxu1 %v8276_v5  ;;  %v8386_v4 = vcombine.high %v799_v62, %v807_v63  ;;  %v8388_v5 = vcombine.high %v800_v0, %v808_v1  ;;  %v121_v55 = vld [vmem:[#allocation2 + $0xe0] sm:$0xff] }
 0x1ae   :  { %5326 = vmatpush1.bf16.msra.mxu0 %v8273_v10  ;;  %5498 = vmatpush1.bf16.msra.mxu1 %v8275_v11  ;;  %v8385_v10 = vcombine.low %v799_v62, %v807_v63  ;;  %v8387_v11 = vcombine.low %v800_v0, %v808_v1  ;;  %v7702_v62 = vcombine.high %v113_v53, %v121_v55  ;;  %v129_v0 = vld [vmem:[#allocation2 + $0x120] sm:$0xff] }
 0x1af   :  { %5327 = vmatprep.subr.bf16.mxu0 %v8290_v12  ;;  %5499 = vmatprep.subr.bf16.mxu1 %v8292_v13  ;;  %v8402_v12 = vcombine.high %v815_v6, %v823_v7  ;;  %v8404_v13 = vcombine.high %v816_v8, %v824_v9  ;;  %v137_v1 = vld [vmem:[#allocation2 + $0x160] sm:$0xff] }
 0x1b2   :  { %5328 = vmatpush1.bf16.msra.mxu0 %v8289_v19  ;;  %5500 = vmatpush1.bf16.msra.mxu1 %v8291_v20  ;;  %v8401_v19 = vcombine.low %v815_v6, %v823_v7  ;;  %v8403_v20 = vcombine.low %v816_v8, %v824_v9  ;;  %v877_v6 = vld [vmem:[#allocation4] sm:$0xff] }
 0x1b3   :  { %5329 = vmatprep.subr.bf16.mxu0 %v8306_v21  ;;  %5501 = vmatprep.subr.bf16.mxu1 %v8308_v22  ;;  %v8418_v21 = vcombine.high %v831_v14, %v839_v16  ;;  %v8420_v22 = vcombine.high %v832_v17, %v840_v18 }
 0x1b6   :  { %5330 = vmatpush1.bf16.msra.mxu0 %v8305_v28  ;;  %5502 = vmatpush1.bf16.msra.mxu1 %v8307_v29  ;;  %v8417_v28 = vcombine.low %v831_v14, %v839_v16  ;;  %v8419_v29 = vcombine.low %v832_v17, %v840_v18  ;;  %v153_v14 = vld [vmem:[#allocation2 + $0x1e0] sm:$0xff]  ;;  %v146_v17 = vld [vmem:[#allocation2 + $0x1a8] sm:$0xff] }
 0x1b7   :  { %5331 = vmatprep.subr.bf16.mxu0 %v8322_v31  ;;  %5503 = vmatprep.subr.bf16.mxu1 %v8324_v32  ;;  %v8434_v31 = vcombine.high %v847_v23, %v855_v24  ;;  %v8436_v32 = vcombine.high %v848_v26, %v856_v27  ;;  %v154_v18 = vld [vmem:[#allocation2 + $0x1e8] sm:$0xff] }
 0x1ba   :  { %5332 = vmatpush1.bf16.msra.mxu0 %v8321_v37  ;;  %5504 = vmatpush1.bf16.msra.mxu1 %v8323_v38  ;;  %v8433_v37 = vcombine.low %v847_v23, %v855_v24  ;;  %v8435_v38 = vcombine.low %v848_v26, %v856_v27  ;;  %v7736_v27 = vcombine.high %v146_v17, %v154_v18 }
 0x1bb   :  { %5333 = vmatprep.subr.bf16.mxu0 %v8338_v40  ;;  %5505 = vmatprep.subr.bf16.mxu1 %v8340_v41  ;;  %v8450_v40 = vcombine.high %v863_v33, %v871_v34  ;;  %v8452_v41 = vcombine.high %v864_v35, %v872_v36  ;;  %v162_v34 = vld [vmem:[#allocation2 + $0x228] sm:$0xff] }
 0x1be   :  { %5334 = vmatpush1.bf16.msra.mxu0 %v8337_v47  ;;  %5506 = vmatpush1.bf16.msra.mxu1 %v8339_v48  ;;  %v106_v47 = vld [vmem:[#allocation2 + $0x68] sm:$0xff]  ;;  %v8451_v48 = vcombine.low %v864_v35, %v872_v36 }
 0x1bf   :  { %5335 = vmatprep.subr.bf16.mxu0 %v8354_v50  ;;  %5507 = vmatprep.subr.bf16.mxu1 %v8356_v51  ;;  %v7686_v50 = vcombine.high %v97_v42, %v105_v43  ;;  %v7688_v51 = vcombine.high %v98_v46, %v106_v47  ;;  %v170_v35 = vld [vmem:[#allocation2 + $0x268] sm:$0xff] }
 0x1c2   :  { %5336 = vmatpush1.bf16.msra.mxu0 %v8353_v57  ;;  %5508 = vmatpush1.bf16.msra.mxu1 %v8355_v59  ;;  %v122_v57 = vld [vmem:[#allocation2 + $0xe8] sm:$0xff]  ;;  %v9314_v59 = vshrl.u32 %v881_v52, 7 }
 0x1c3   :  { %5337 = vmatprep.subr.bf16.mxu0 %v8370_v60  ;;  %5509 = vmatprep.subr.bf16.mxu1 %v8372_v61  ;;  %v7685_v60 = vcombine.low %v97_v42, %v105_v43  ;;  %v7687_v61 = vcombine.low %v98_v46, %v106_v47  ;;  %v7704_v63 = vcombine.high %v114_v56, %v122_v57 }
 0x1c4   :  { %v891_v7 = vsub.s32 2, %v9314_v59  ;;  %v887_v8 = vsub.s32 1, %v9314_v59  ;;  %v7703_v9 = vcombine.low %v114_v56, %v122_v57  ;;  %v7735_v42 = vcombine.low %v146_v17, %v154_v18  ;;  %v177_v56 = vld [vmem:[#allocation2 + $0x2a0] sm:$0xff] }
 0x1c5   :  { %v185_v57 = vld [vmem:[#allocation2 + $0x2e0] sm:$0xff] }
 0x1c6   :  { %5338 = vmatpush1.bf16.msra.mxu0 %v8369_v2  ;;  %5510 = vmatpush1.bf16.msra.mxu1 %v8371_v3  ;;  %v130_v2 = vld [vmem:[#allocation2 + $0x128] sm:$0xff]  ;;  %v193_v18 = vld [vmem:[#allocation2 + $0x320] sm:$0xff] }
 0x1c7   :  { %5339 = vmatprep.subr.bf16.mxu0 %v8386_v4  ;;  %5511 = vmatprep.subr.bf16.mxu1 %v8388_v5  ;;  %v138_v3 = vld [vmem:[#allocation2 + $0x168] sm:$0xff]  ;;  %v883_v4 = vsub.s32 0, %v9314_v59  ;;  %v7701_v5 = vcombine.low %v113_v53, %v121_v55  ;;  %v7752_v55 = vcombine.high %v162_v34, %v170_v35 }
 0x1c9   :  { %v884_v16 = vrot.slane %v877_v6, %v883_v4 }
 0x1ca   :  { %5340 = vmatpush1.bf16.msra.mxu0 %v8385_v10  ;;  %5512 = vmatpush1.bf16.msra.mxu1 %v8387_v11  ;;  %v7718_v10 = vcombine.high %v129_v0, %v137_v1  ;;  %v895_v11 = vsub.s32 3, %v9314_v59 }
 0x1cb   :  { %5341 = vmatprep.subr.bf16.mxu0 %v8402_v12  ;;  %5513 = vmatprep.subr.bf16.mxu1 %v8404_v13  ;;  %v7720_v12 = vcombine.high %v130_v2, %v138_v3  ;;  %v145_v13 = vld [vmem:[#allocation2 + $0x1a0] sm:$0xff] }
 0x1cc   :  { %v896_v23 = vrot.slane %v877_v6, %v895_v11  ;;  %v7734_v24 = vcombine.high %v145_v13, %v153_v14 }
 0x1ce   :  { %5342 = vmatpush1.bf16.msra.mxu0 %v8401_v19  ;;  %5514 = vmatpush1.bf16.msra.mxu1 %v8403_v20  ;;  %v7717_v19 = vcombine.low %v129_v0, %v137_v1  ;;  %v892_v20 = vrot.slane %v877_v6, %v891_v7  ;;  %v178_v0 = vld [vmem:[#allocation2 + $0x2a8] sm:$0xff] }
 0x1cf   :  { %5343 = vmatprep.subr.bf16.mxu0 %v8418_v21  ;;  %5515 = vmatprep.subr.bf16.mxu1 %v8420_v22  ;;  %v888_v21 = vrot.slane %v877_v6, %v887_v8  ;;  %v7719_v22 = vcombine.low %v130_v2, %v138_v3  ;;  %v186_v1 = vld [vmem:[#allocation2 + $0x2e8] sm:$0xff] }
 0x1d0   :  { %v7768_v17 = vcombine.high %v178_v0, %v186_v1 }
 0x1d2   :  { %5344 = vmatpush1.bf16.msra.mxu0 %v8417_v28  ;;  %5516 = vmatpush1.bf16.msra.mxu1 %v8419_v29  ;;  %v161_v28 = vld [vmem:[#allocation2 + $0x220] sm:$0xff] }
 0x1d3   :  { %5345 = vmatprep.subr.bf16.mxu0 %v8434_v31  ;;  %5517 = vmatprep.subr.bf16.mxu1 %v8436_v32  ;;  %v169_v29 = vld [vmem:[#allocation2 + $0x260] sm:$0xff] }
 0x1d4   :  { %v7749_v53 = vcombine.low %v161_v28, %v169_v29 }
 0x1d6   :  { %5346 = vmatpush1.bf16.msra.mxu0 %v8433_v37  ;;  %5518 = vmatpush1.bf16.msra.mxu1 %v8435_v38 }
 0x1d7   :  { %5358 = vmatprep.subr.bf16.mxu0 %v8450_v40  ;;  %5530 = vmatprep.subr.bf16.mxu1 %v8452_v41  ;;  %v7733_v41 = vcombine.low %v145_v13, %v153_v14  ;;  %v7766_v13 = vcombine.high %v177_v56, %v185_v57 }
 0x1d9   :  { %5348 = vmatmul.mubr.bf16.vlgmr.msra.gmra.mrb[4].mxu0 %v9282_v44  ;;  %5520 = vmatmul.mubr.bf16.vlgmr.msra.gmra.mrb[4].mxu1 %v9282_v44 }
 0x1da   :  { %5359 = vmatpush1.bf16.msra.mxu0 %v8449_v45  ;;  %5531 = vmatpush1.bf16.msra.mxu1 %v8451_v48  ;;  %v7750_v48 = vcombine.high %v161_v28, %v169_v29  ;;  %v209_v28 = vld [vmem:[#allocation2 + $0x3a0] sm:$0xff] }
 0x1db   :  { %5390 = vmatprep.mubr.bf16.mxu0 %v9140_v49  ;;  %5562 = vmatprep.mubr.bf16.mxu1 %v9140_v49  ;;  %v217_v29 = vld [vmem:[#allocation2 + $0x3e0] sm:$0xff] }
 0x1dc   :  { %5573 = vmatprep.subr.bf16.mxu0 %v7686_v50  ;;  %5745 = vmatprep.subr.bf16.mxu1 %v7688_v51 }
 0x1e5   :  { %8463 = vmatmul.mubr.msk.bf16.vlgmr.msra.gmra.mrb[4].mxu0 %vm4881_vm0, %v9294_v54  ;;  %8464 = vmatmul.mubr.msk.bf16.vlgmr.msra.gmra.mrb[4].mxu1 %vm4881_vm0, %v9294_v54 }
 0x1e6   :  { %5574 = vmatpush1.bf16.msra.mxu0 %v7685_v60  ;;  %5746 = vmatpush1.bf16.msra.mxu1 %v7687_v61 }
 0x1e7   :  { %5575 = vmatprep.subr.bf16.mxu0 %v7702_v62  ;;  %5747 = vmatprep.subr.bf16.mxu1 %v7704_v63  ;;  %v7751_v63 = vcombine.low %v162_v34, %v170_v35  ;;  %v7798_v35 = vcombine.high %v209_v28, %v217_v29 }
 0x1e8   :  { %5605 = vmatprep.mubr.bf16.mxu0 %v9232_v58  ;;  %5777 = vmatprep.mubr.bf16.mxu1 %v9232_v58 }
 0x1ea   :  { %5576 = vmatpush1.bf16.msra.mxu0 %v7701_v5  ;;  %5748 = vmatpush1.bf16.msra.mxu1 %v7703_v9 }
 0x1eb   :  { %5577 = vmatprep.subr.bf16.mxu0 %v7718_v10  ;;  %5749 = vmatprep.subr.bf16.mxu1 %v7720_v12 }
 0x1ec   :  { %v5048_v26 = vpop.f32.mrb[0].mxu0  ;;  %v5220_v32 = vpop.f32.mrb[0].mxu1 }
 0x1ed   :  { %v8774_v31 = vadd.f32 %v5048_v26, %v884_v16  ;;  %v5050_v33 = vpop.f32.mrb[1].mxu0  ;;  %v8778_v36 = vadd.f32 %v5220_v32, %v892_v20  ;;  %v5222_v38 = vpop.f32.mrb[1].mxu1  ;;  %v218_v32 = vld [vmem:[#allocation2 + $0x3e8] sm:$0xff] }
 0x1ee   :  { %5578 = vmatpush1.bf16.msra.mxu0 %v7717_v19  ;;  %v8775_v37 = vadd.f32 %v5050_v33, %v888_v21  ;;  %v5052_v40 = vpop.f32.mrb[2].mxu0  ;;  %5750 = vmatpush1.bf16.msra.mxu1 %v7719_v22  ;;  %v8779_v43 = vadd.f32 %v5222_v38, %v896_v23  ;;  %v5224_v46 = vpop.f32.mrb[2].mxu1  ;;  %v201_v19 = vld [vmem:[#allocation2 + $0x360] sm:$0xff]  ;;  %v202_v22 = vld [vmem:[#allocation2 + $0x368] sm:$0xff] }
 0x1ef   :  { %v8776_v45 = vadd.f32 %v5052_v40, %v884_v16  ;;  %v5054_v47 = vpop.f32.mrb[3].mxu0  ;;  %5579 = vmatprep.subr.bf16.mxu0 %v7734_v24  ;;  %v8780_v50 = vadd.f32 %v5224_v46, %v892_v20  ;;  %v5226_v52 = vpop.f32.mrb[3].mxu1  ;;  %5751 = vmatprep.subr.bf16.mxu1 %v7736_v27  ;;  %v6261_v60 = vmax.f32 %v8774_v31, 0.0  ;;  %v6263_v2 = vmax.f32 %v8778_v36, 0.0  ;;  %v210_v31 = vld [vmem:[#allocation2 + $0x3a8] sm:$0xff]  ;;  %v233_v38 = vld [vmem:[#allocation2 + $0x460] sm:$0xff] }
 0x1f0   :  { %v8777_v51 = vadd.f32 %v5054_v47, %v888_v21  ;;  %v8781_v62 = vadd.f32 %v5226_v52, %v896_v23  ;;  %v6262_v3 = vmax.f32 %v8775_v37, 0.0  ;;  %v6264_v9 = vmax.f32 %v8779_v43, 0.0  ;;  %v194_v21 = vld [vmem:[#allocation2 + $0x328] sm:$0xff]  ;;  %v225_v37 = vld [vmem:[#allocation2 + $0x420] sm:$0xff] }
 0x1f1   :  { %v6277_v61 = vmax.f32 %v8776_v45, 0.0  ;;  %v6279_v5 = vmax.f32 %v8780_v50, 0.0  ;;  %v7765_v23 = vcombine.low %v177_v56, %v185_v57  ;;  %v7767_v24 = vcombine.low %v178_v0, %v186_v1  ;;  %v226_v40 = vld [vmem:[#allocation2 + $0x428] sm:$0xff]  ;;  %v241_v47 = vld [vmem:[#allocation2 + $0x4a0] sm:$0xff] }
 0x1f2   :  { %v6278_v6 = vmax.f32 %v8777_v51, 0.0  ;;  %5580 = vmatpush1.bf16.msra.mxu0 %v7733_v41  ;;  %v6280_v12 = vmax.f32 %v8781_v62, 0.0  ;;  %5752 = vmatpush1.bf16.msra.mxu1 %v7735_v42  ;;  %v7782_v26 = vcombine.high %v193_v18, %v201_v19  ;;  %v7784_v27 = vcombine.high %v194_v21, %v202_v22  ;;  %v234_v41 = vld [vmem:[#allocation2 + $0x468] sm:$0xff]  ;;  %v257_v57 = vld [vmem:[#allocation2 + $0x520] sm:$0xff] }
 0x1f3   :  { %v9334_v10 = vpack.c.bf16 %v6277_v61, %v6261_v60  ;;  %5581 = vmatprep.subr.bf16.mxu0 %v7750_v48  ;;  %v9336_v14 = vpack.c.bf16 %v6279_v5, %v6263_v2  ;;  %5753 = vmatprep.subr.bf16.mxu1 %v7752_v55  ;;  %v7781_v33 = vcombine.low %v193_v18, %v201_v19  ;;  %v249_v48 = vld [vmem:[#allocation2 + $0x4e0] sm:$0xff]  ;;  %v242_v50 = vld [vmem:[#allocation2 + $0x4a8] sm:$0xff] }
 0x1f4   :  { %v9338_v16 = vpack.c.bf16 %v6278_v6, %v6262_v3  ;;  %v9340_v20 = vpack.c.bf16 %v6280_v12, %v6264_v9  ;;  %v7783_v34 = vcombine.low %v194_v21, %v202_v22  ;;  %v7800_v36 = vcombine.high %v210_v31, %v218_v32  ;;  %v250_v51 = vld [vmem:[#allocation2 + $0x4e8] sm:$0xff]  ;;  %v265_v60 = vld [vmem:[#allocation2 + $0x560] sm:$0xff] }
 0x1f5   :  { %v7797_v42 = vcombine.low %v209_v28, %v217_v29  ;;  %v7799_v43 = vcombine.low %v210_v31, %v218_v32  ;;  %v7814_v45 = vcombine.high %v225_v37, %v233_v38  ;;  %v7816_v46 = vcombine.high %v226_v40, %v234_v41  ;;  %v258_v61 = vld [vmem:[#allocation2 + $0x528] sm:$0xff]  ;;  %v273_v3 = vld [vmem:[#allocation2 + $0x5a0] sm:$0xff] }
 0x1f6   :  { %5582 = vmatpush1.bf16.msra.mxu0 %v7749_v53  ;;  %5754 = vmatpush1.bf16.msra.mxu1 %v7751_v63  ;;  %v7813_v52 = vcombine.low %v225_v37, %v233_v38  ;;  %v7815_v53 = vcombine.low %v226_v40, %v234_v41  ;;  %v7830_v55 = vcombine.high %v241_v47, %v249_v48  ;;  %v266_v62 = vld [vmem:[#allocation2 + $0x568] sm:$0xff]  ;;  %v281_v5 = vld [vmem:[#allocation2 + $0x5e0] sm:$0xff] }
 0x1f7   :  { %5583 = vmatprep.subr.bf16.mxu0 %v7766_v13  ;;  %5755 = vmatprep.subr.bf16.mxu1 %v7768_v17  ;;  %v7832_v56 = vcombine.high %v242_v50, %v250_v51  ;;  %v7829_v63 = vcombine.low %v241_v47, %v249_v48  ;;  %v7831_v0 = vcombine.low %v242_v50, %v250_v51  ;;  %v274_v6 = vld [vmem:[#allocation2 + $0x5a8] sm:$0xff]  ;;  %v289_v19 = vld [vmem:[#allocation2 + $0x620] sm:$0xff] }
 0x1f8   :  { %v7846_v1 = vcombine.high %v257_v57, %v265_v60  ;;  %v7848_v2 = vcombine.high %v258_v61, %v266_v62  ;;  %v282_v9 = vld [vmem:[#allocation2 + $0x5e8] sm:$0xff]  ;;  %v7845_v12 = vcombine.low %v257_v57, %v265_v60  ;;  %v7847_v13 = vcombine.low %v258_v61, %v266_v62  ;;  %v297_v21 = vld [vmem:[#allocation2 + $0x660] sm:$0xff] }
 0x1f9   :  { %v7862_v17 = vcombine.high %v273_v3, %v281_v5  ;;  %v7864_v18 = vcombine.high %v274_v6, %v282_v9  ;;  %v290_v22 = vld [vmem:[#allocation2 + $0x628] sm:$0xff]  ;;  %v305_v29 = vld [vmem:[#allocation2 + $0x6a0] sm:$0xff] }
 0x1fa   :  { %5584 = vmatpush1.bf16.msra.mxu0 %v7765_v23  ;;  %5756 = vmatpush1.bf16.msra.mxu1 %v7767_v24  ;;  %v298_v23 = vld [vmem:[#allocation2 + $0x668] sm:$0xff]  ;;  %v7861_v24 = vcombine.low %v273_v3, %v281_v5  ;;  %v313_v31 = vld [vmem:[#allocation2 + $0x6e0] sm:$0xff] }
 0x1fb   :  { %5585 = vmatprep.subr.bf16.mxu0 %v7782_v26  ;;  %5757 = vmatprep.subr.bf16.mxu1 %v7784_v27  ;;  %v7863_v26 = vcombine.low %v274_v6, %v282_v9  ;;  %v7878_v27 = vcombine.high %v289_v19, %v297_v21  ;;  %v7880_v28 = vcombine.high %v290_v22, %v298_v23  ;;  %v306_v32 = vld [vmem:[#allocation2 + $0x6a8] sm:$0xff]  ;;  %v321_v38 = vld [vmem:[#allocation2 + $0x720] sm:$0xff] }
 0x1fc   :  { %v329_v40 = vld [vmem:[#allocation2 + $0x760] sm:$0xff]  ;;  %v322_v41 = vld [vmem:[#allocation2 + $0x728] sm:$0xff] }
 0x1fd   :  { %v337_v48 = vld [vmem:[#allocation2 + $0x7a0] sm:$0xff]  ;;  %v338_v51 = vld [vmem:[#allocation2 + $0x7a8] sm:$0xff] }
 0x1fe   :  { %5586 = vmatpush1.bf16.msra.mxu0 %v7781_v33  ;;  %5758 = vmatpush1.bf16.msra.mxu1 %v7783_v34  ;;  %v314_v33 = vld [vmem:[#allocation2 + $0x6e8] sm:$0xff]  ;;  %v7877_v34 = vcombine.low %v289_v19, %v297_v21  ;;  %v345_v50 = vld [vmem:[#allocation2 + $0x7e0] sm:$0xff] }
 0x1ff   :  { %5587 = vmatprep.subr.bf16.mxu0 %v7798_v35  ;;  %5759 = vmatprep.subr.bf16.mxu1 %v7800_v36  ;;  %v7879_v35 = vcombine.low %v290_v22, %v298_v23  ;;  %v7894_v36 = vcombine.high %v305_v29, %v313_v31  ;;  %v7896_v37 = vcombine.high %v306_v32, %v314_v33  ;;  %v353_v60 = vld [vmem:[#allocation2 + $0x820] sm:$0xff]  ;;  %v354_v62 = vld [vmem:[#allocation2 + $0x828] sm:$0xff] }
 0x200   :  { %v361_v61 = vld [vmem:[#allocation2 + $0x860] sm:$0xff]  ;;  %v370_v9 = vld [vmem:[#allocation2 + $0x8a8] sm:$0xff] }
 0x201   :  { %v369_v5 = vld [vmem:[#allocation2 + $0x8a0] sm:$0xff]  ;;  %v386_v23 = vld [vmem:[#allocation2 + $0x928] sm:$0xff] }
 0x202   :  { %5588 = vmatpush1.bf16.msra.mxu0 %v7797_v42  ;;  %5760 = vmatpush1.bf16.msra.mxu1 %v7799_v43  ;;  %v330_v42 = vld [vmem:[#allocation2 + $0x768] sm:$0xff]  ;;  %v7893_v43 = vcombine.low %v305_v29, %v313_v31  ;;  %v377_v6 = vld [vmem:[#allocation2 + $0x8e0] sm:$0xff] }
 0x203   :  { %5589 = vmatprep.subr.bf16.mxu0 %v7814_v45  ;;  %5761 = vmatprep.subr.bf16.mxu1 %v7816_v46  ;;  %v7895_v45 = vcombine.low %v306_v32, %v314_v33  ;;  %v7910_v46 = vcombine.high %v321_v38, %v329_v40  ;;  %v7912_v47 = vcombine.high %v322_v41, %v330_v42  ;;  %v385_v21 = vld [vmem:[#allocation2 + $0x920] sm:$0xff]  ;;  %v402_v33 = vld [vmem:[#allocation2 + $0x9a8] sm:$0xff] }
 0x204   :  { %v393_v22 = vld [vmem:[#allocation2 + $0x960] sm:$0xff] }
 0x205   :  { %v401_v31 = vld [vmem:[#allocation2 + $0x9a0] sm:$0xff] }
 0x206   :  { %5590 = vmatpush1.bf16.msra.mxu0 %v7813_v52  ;;  %5762 = vmatpush1.bf16.msra.mxu1 %v7815_v53  ;;  %v346_v52 = vld [vmem:[#allocation2 + $0x7e8] sm:$0xff]  ;;  %v7909_v53 = vcombine.low %v321_v38, %v329_v40  ;;  %v409_v32 = vld [vmem:[#allocation2 + $0x9e0] sm:$0xff] }
 0x207   :  { %5591 = vmatprep.subr.bf16.mxu0 %v7830_v55  ;;  %5763 = vmatprep.subr.bf16.mxu1 %v7832_v56  ;;  %v7911_v55 = vcombine.low %v322_v41, %v330_v42  ;;  %v7926_v56 = vcombine.high %v337_v48, %v345_v50  ;;  %v7928_v57 = vcombine.high %v338_v51, %v346_v52  ;;  %v417_v40 = vld [vmem:[#allocation2 + $0xa20] sm:$0xff]  ;;  %v418_v42 = vld [vmem:[#allocation2 + $0xa28] sm:$0xff] }
 0x208   :  { %v425_v41 = vld [vmem:[#allocation2 + $0xa60] sm:$0xff] }
 0x20a   :  { %5592 = vmatpush1.bf16.msra.mxu0 %v7829_v63  ;;  %5764 = vmatpush1.bf16.msra.mxu1 %v7831_v0  ;;  %v362_v63 = vld [vmem:[#allocation2 + $0x868] sm:$0xff]  ;;  %v7925_v0 = vcombine.low %v337_v48, %v345_v50  ;;  %v433_v50 = vld [vmem:[#allocation2 + $0xaa0] sm:$0xff] }
 0x20b   :  { %5593 = vmatprep.subr.bf16.mxu0 %v7846_v1  ;;  %5765 = vmatprep.subr.bf16.mxu1 %v7848_v2  ;;  %v7927_v1 = vcombine.low %v338_v51, %v346_v52  ;;  %v7942_v2 = vcombine.high %v353_v60, %v361_v61  ;;  %v7944_v3 = vcombine.high %v354_v62, %v362_v63  ;;  %v441_v51 = vld [vmem:[#allocation2 + $0xae0] sm:$0xff]  ;;  %v434_v52 = vld [vmem:[#allocation2 + $0xaa8] sm:$0xff] }
 0x20e   :  { %5594 = vmatpush1.bf16.msra.mxu0 %v7845_v12  ;;  %5766 = vmatpush1.bf16.msra.mxu1 %v7847_v13  ;;  %v378_v12 = vld [vmem:[#allocation2 + $0x8e8] sm:$0xff]  ;;  %v7941_v13 = vcombine.low %v353_v60, %v361_v61  ;;  %v449_v61 = vld [vmem:[#allocation2 + $0xb20] sm:$0xff] }
 0x20f   :  { %5595 = vmatprep.subr.bf16.mxu0 %v7862_v17  ;;  %5767 = vmatprep.subr.bf16.mxu1 %v7864_v18  ;;  %v7943_v17 = vcombine.low %v354_v62, %v362_v63  ;;  %v7958_v18 = vcombine.high %v369_v5, %v377_v6  ;;  %v7960_v19 = vcombine.high %v370_v9, %v378_v12  ;;  %v457_v62 = vld [vmem:[#allocation2 + $0xb60] sm:$0xff]  ;;  %v450_v63 = vld [vmem:[#allocation2 + $0xb28] sm:$0xff] }
 0x212   :  { %5596 = vmatpush1.bf16.msra.mxu0 %v7861_v24  ;;  %5768 = vmatpush1.bf16.msra.mxu1 %v7863_v26  ;;  %v394_v24 = vld [vmem:[#allocation2 + $0x968] sm:$0xff]  ;;  %v7957_v26 = vcombine.low %v369_v5, %v377_v6  ;;  %v465_v6 = vld [vmem:[#allocation2 + $0xba0] sm:$0xff] }
 0x213   :  { %5597 = vmatprep.subr.bf16.mxu0 %v7878_v27  ;;  %5769 = vmatprep.subr.bf16.mxu1 %v7880_v28  ;;  %v7959_v27 = vcombine.low %v370_v9, %v378_v12  ;;  %v7974_v28 = vcombine.high %v385_v21, %v393_v22  ;;  %v7976_v29 = vcombine.high %v386_v23, %v394_v24  ;;  %v473_v9 = vld [vmem:[#allocation2 + $0xbe0] sm:$0xff]  ;;  %v466_v12 = vld [vmem:[#allocation2 + $0xba8] sm:$0xff] }
 0x216   :  { %5598 = vmatpush1.bf16.msra.mxu0 %v7877_v34  ;;  %5770 = vmatpush1.bf16.msra.mxu1 %v7879_v35  ;;  %v410_v34 = vld [vmem:[#allocation2 + $0x9e8] sm:$0xff]  ;;  %v7973_v35 = vcombine.low %v385_v21, %v393_v22  ;;  %v481_v22 = vld [vmem:[#allocation2 + $0xc20] sm:$0xff] }
 0x217   :  { %5599 = vmatprep.subr.bf16.mxu0 %v7894_v36  ;;  %5771 = vmatprep.subr.bf16.mxu1 %v7896_v37  ;;  %v7975_v36 = vcombine.low %v386_v23, %v394_v24  ;;  %v7990_v37 = vcombine.high %v401_v31, %v409_v32  ;;  %v7992_v38 = vcombine.high %v402_v33, %v410_v34  ;;  %v489_v23 = vld [vmem:[#allocation2 + $0xc60] sm:$0xff]  ;;  %v482_v24 = vld [vmem:[#allocation2 + $0xc28] sm:$0xff] }
 0x21a   :  { %5600 = vmatpush1.bf16.msra.mxu0 %v7893_v43  ;;  %5772 = vmatpush1.bf16.msra.mxu1 %v7895_v45  ;;  %v426_v43 = vld [vmem:[#allocation2 + $0xa68] sm:$0xff]  ;;  %v7989_v45 = vcombine.low %v401_v31, %v409_v32  ;;  %v497_v32 = vld [vmem:[#allocation2 + $0xca0] sm:$0xff] }
 0x21b   :  { %5601 = vmatprep.subr.bf16.mxu0 %v7910_v46  ;;  %5773 = vmatprep.subr.bf16.mxu1 %v7912_v47  ;;  %v7991_v46 = vcombine.low %v402_v33, %v410_v34  ;;  %v8006_v47 = vcombine.high %v417_v40, %v425_v41  ;;  %v8008_v48 = vcombine.high %v418_v42, %v426_v43  ;;  %v505_v33 = vld [vmem:[#allocation2 + $0xce0] sm:$0xff]  ;;  %v498_v34 = vld [vmem:[#allocation2 + $0xca8] sm:$0xff] }
 0x21e   :  { %5602 = vmatpush1.bf16.msra.mxu0 %v7909_v53  ;;  %5774 = vmatpush1.bf16.msra.mxu1 %v7911_v55  ;;  %v442_v53 = vld [vmem:[#allocation2 + $0xae8] sm:$0xff]  ;;  %v8005_v55 = vcombine.low %v417_v40, %v425_v41  ;;  %v513_v41 = vld [vmem:[#allocation2 + $0xd20] sm:$0xff] }
 0x21f   :  { %5603 = vmatprep.subr.bf16.mxu0 %v7926_v56  ;;  %5775 = vmatprep.subr.bf16.mxu1 %v7928_v57  ;;  %v8007_v56 = vcombine.low %v418_v42, %v426_v43  ;;  %v8022_v57 = vcombine.high %v433_v50, %v441_v51  ;;  %v8024_v60 = vcombine.high %v434_v52, %v442_v53  ;;  %v521_v42 = vld [vmem:[#allocation2 + $0xd60] sm:$0xff]  ;;  %v514_v43 = vld [vmem:[#allocation2 + $0xd28] sm:$0xff] }
 0x222   :  { %5604 = vmatpush1.bf16.msra.mxu0 %v7925_v0  ;;  %5776 = vmatpush1.bf16.msra.mxu1 %v7927_v1  ;;  %v458_v0 = vld [vmem:[#allocation2 + $0xb68] sm:$0xff]  ;;  %v8021_v1 = vcombine.low %v433_v50, %v441_v51  ;;  %v529_v51 = vld [vmem:[#allocation2 + $0xda0] sm:$0xff] }
 0x223   :  { %5616 = vmatprep.subr.bf16.mxu0 %v7942_v2  ;;  %5788 = vmatprep.subr.bf16.mxu1 %v7944_v3  ;;  %v8023_v2 = vcombine.low %v434_v52, %v442_v53  ;;  %v8038_v3 = vcombine.high %v449_v61, %v457_v62  ;;  %v8040_v5 = vcombine.high %v450_v63, %v458_v0  ;;  %v537_v52 = vld [vmem:[#allocation2 + $0xde0] sm:$0xff]  ;;  %v530_v53 = vld [vmem:[#allocation2 + $0xda8] sm:$0xff] }
 0x225   :  { %5606 = vmatmul.mubr.bf16.vlgmr.msra.gmra.mrb[8].mxu0 %v9242_v15  ;;  %5778 = vmatmul.mubr.bf16.vlgmr.msra.gmra.mrb[8].mxu1 %v9242_v15 }
 0x226   :  { %5617 = vmatpush1.bf16.msra.mxu0 %v7941_v13  ;;  %5789 = vmatpush1.bf16.msra.mxu1 %v7943_v17  ;;  %v474_v13 = vld [vmem:[#allocation2 + $0xbe8] sm:$0xff]  ;;  %v8037_v17 = vcombine.low %v449_v61, %v457_v62  ;;  %v545_v62 = vld [vmem:[#allocation2 + $0xe20] sm:$0xff] }
 0x227   :  { %5618 = vmatprep.subr.bf16.mxu0 %v7958_v18  ;;  %5790 = vmatprep.subr.bf16.mxu1 %v7960_v19  ;;  %v8039_v18 = vcombine.low %v450_v63, %v458_v0  ;;  %v8054_v19 = vcombine.high %v465_v6, %v473_v9  ;;  %v8056_v21 = vcombine.high %v466_v12, %v474_v13  ;;  %v553_v63 = vld [vmem:[#allocation2 + $0xe60] sm:$0xff]  ;;  %v546_v0 = vld [vmem:[#allocation2 + $0xe28] sm:$0xff] }
 0x228   :  { %5648 = vmatprep.mubr.bf16.mxu0 %v9250_v25  ;;  %5820 = vmatprep.mubr.bf16.mxu1 %v9250_v25 }
 0x22a   :  { %5619 = vmatpush1.bf16.msra.mxu0 %v7957_v26  ;;  %5791 = vmatpush1.bf16.msra.mxu1 %v7959_v27  ;;  %v490_v26 = vld [vmem:[#allocation2 + $0xc68] sm:$0xff]  ;;  %v8053_v27 = vcombine.low %v465_v6, %v473_v9  ;;  %v561_v9 = vld [vmem:[#allocation2 + $0xea0] sm:$0xff] }
 0x22b   :  { %5620 = vmatprep.subr.bf16.mxu0 %v7974_v28  ;;  %5792 = vmatprep.subr.bf16.mxu1 %v7976_v29  ;;  %v8055_v28 = vcombine.low %v466_v12, %v474_v13  ;;  %v8070_v29 = vcombine.high %v481_v22, %v489_v23  ;;  %v8072_v31 = vcombine.high %v482_v24, %v490_v26  ;;  %v569_v12 = vld [vmem:[#allocation2 + $0xee0] sm:$0xff]  ;;  %v562_v13 = vld [vmem:[#allocation2 + $0xea8] sm:$0xff] }
 0x22e   :  { %5621 = vmatpush1.bf16.msra.mxu0 %v7973_v35  ;;  %5793 = vmatpush1.bf16.msra.mxu1 %v7975_v36  ;;  %v506_v35 = vld [vmem:[#allocation2 + $0xce8] sm:$0xff]  ;;  %v8069_v36 = vcombine.low %v481_v22, %v489_v23  ;;  %v577_v23 = vld [vmem:[#allocation2 + $0xf20] sm:$0xff] }
 0x22f   :  { %5622 = vmatprep.subr.bf16.mxu0 %v7990_v37  ;;  %5794 = vmatprep.subr.bf16.mxu1 %v7992_v38  ;;  %v8071_v37 = vcombine.low %v482_v24, %v490_v26  ;;  %v8086_v38 = vcombine.high %v497_v32, %v505_v33  ;;  %v8088_v40 = vcombine.high %v498_v34, %v506_v35  ;;  %v585_v24 = vld [vmem:[#allocation2 + $0xf60] sm:$0xff]  ;;  %v578_v26 = vld [vmem:[#allocation2 + $0xf28] sm:$0xff] }
 0x232   :  { %5623 = vmatpush1.bf16.msra.mxu0 %v7989_v45  ;;  %5795 = vmatpush1.bf16.msra.mxu1 %v7991_v46  ;;  %v522_v45 = vld [vmem:[#allocation2 + $0xd68] sm:$0xff]  ;;  %v8085_v46 = vcombine.low %v497_v32, %v505_v33  ;;  %v593_v33 = vld [vmem:[#allocation2 + $0xfa0] sm:$0xff] }
 0x233   :  { %5624 = vmatprep.subr.bf16.mxu0 %v8006_v47  ;;  %5796 = vmatprep.subr.bf16.mxu1 %v8008_v48  ;;  %v8087_v47 = vcombine.low %v498_v34, %v506_v35  ;;  %v8102_v48 = vcombine.high %v513_v41, %v521_v42  ;;  %v8104_v50 = vcombine.high %v514_v43, %v522_v45  ;;  %v601_v34 = vld [vmem:[#allocation2 + $0xfe0] sm:$0xff]  ;;  %v594_v35 = vld [vmem:[#allocation2 + $0xfa8] sm:$0xff] }
 0x236   :  { %5625 = vmatpush1.bf16.msra.mxu0 %v8005_v55  ;;  %5797 = vmatpush1.bf16.msra.mxu1 %v8007_v56  ;;  %v538_v55 = vld [vmem:[#allocation2 + $0xde8] sm:$0xff]  ;;  %v8101_v56 = vcombine.low %v513_v41, %v521_v42  ;;  %v609_v42 = vld [vmem:[#allocation2 + $0x1020] sm:$0xff] }
 0x237   :  { %5626 = vmatprep.subr.bf16.mxu0 %v8022_v57  ;;  %5798 = vmatprep.subr.bf16.mxu1 %v8024_v60  ;;  %v8103_v57 = vcombine.low %v514_v43, %v522_v45  ;;  %v8118_v60 = vcombine.high %v529_v51, %v537_v52  ;;  %v8120_v61 = vcombine.high %v530_v53, %v538_v55  ;;  %v617_v43 = vld [vmem:[#allocation2 + $0x1060] sm:$0xff]  ;;  %v610_v45 = vld [vmem:[#allocation2 + $0x1028] sm:$0xff] }
 0x23a   :  { %5627 = vmatpush1.bf16.msra.mxu0 %v8021_v1  ;;  %5799 = vmatpush1.bf16.msra.mxu1 %v8023_v2  ;;  %v554_v1 = vld [vmem:[#allocation2 + $0xe68] sm:$0xff]  ;;  %v8117_v2 = vcombine.low %v529_v51, %v537_v52  ;;  %v625_v52 = vld [vmem:[#allocation2 + $0x10a0] sm:$0xff] }
 0x23b   :  { %5628 = vmatprep.subr.bf16.mxu0 %v8038_v3  ;;  %5800 = vmatprep.subr.bf16.mxu1 %v8040_v5  ;;  %v8119_v3 = vcombine.low %v530_v53, %v538_v55  ;;  %v8134_v5 = vcombine.high %v545_v62, %v553_v63  ;;  %v8136_v6 = vcombine.high %v546_v0, %v554_v1  ;;  %v633_v53 = vld [vmem:[#allocation2 + $0x10e0] sm:$0xff]  ;;  %v626_v55 = vld [vmem:[#allocation2 + $0x10a8] sm:$0xff] }
 0x23e   :  { %5629 = vmatpush1.bf16.msra.mxu0 %v8037_v17  ;;  %5801 = vmatpush1.bf16.msra.mxu1 %v8039_v18  ;;  %v570_v17 = vld [vmem:[#allocation2 + $0xee8] sm:$0xff]  ;;  %v8133_v18 = vcombine.low %v545_v62, %v553_v63  ;;  %v641_v63 = vld [vmem:[#allocation2 + $0x1120] sm:$0xff] }
 0x23f   :  { %5630 = vmatprep.subr.bf16.mxu0 %v8054_v19  ;;  %5802 = vmatprep.subr.bf16.mxu1 %v8056_v21  ;;  %v8135_v19 = vcombine.low %v546_v0, %v554_v1  ;;  %v8150_v21 = vcombine.high %v561_v9, %v569_v12  ;;  %v8152_v22 = vcombine.high %v562_v13, %v570_v17  ;;  %v649_v0 = vld [vmem:[#allocation2 + $0x1160] sm:$0xff]  ;;  %v642_v1 = vld [vmem:[#allocation2 + $0x1128] sm:$0xff] }
 0x242   :  { %5631 = vmatpush1.bf16.msra.mxu0 %v8053_v27  ;;  %5803 = vmatpush1.bf16.msra.mxu1 %v8055_v28  ;;  %v586_v27 = vld [vmem:[#allocation2 + $0xf68] sm:$0xff]  ;;  %v8149_v28 = vcombine.low %v561_v9, %v569_v12  ;;  %v657_v12 = vld [vmem:[#allocation2 + $0x11a0] sm:$0xff] }
 0x243   :  { %5632 = vmatprep.subr.bf16.mxu0 %v8070_v29  ;;  %5804 = vmatprep.subr.bf16.mxu1 %v8072_v31  ;;  %v8151_v29 = vcombine.low %v562_v13, %v570_v17  ;;  %v8166_v31 = vcombine.high %v577_v23, %v585_v24  ;;  %v8168_v32 = vcombine.high %v578_v26, %v586_v27  ;;  %v665_v13 = vld [vmem:[#allocation2 + $0x11e0] sm:$0xff]  ;;  %v658_v17 = vld [vmem:[#allocation2 + $0x11a8] sm:$0xff] }
 0x246   :  { %5633 = vmatpush1.bf16.msra.mxu0 %v8069_v36  ;;  %5805 = vmatpush1.bf16.msra.mxu1 %v8071_v37  ;;  %v602_v36 = vld [vmem:[#allocation2 + $0xfe8] sm:$0xff]  ;;  %v8165_v37 = vcombine.low %v577_v23, %v585_v24  ;;  %v673_v24 = vld [vmem:[#allocation2 + $0x1220] sm:$0xff] }
 0x247   :  { %5634 = vmatprep.subr.bf16.mxu0 %v8086_v38  ;;  %5806 = vmatprep.subr.bf16.mxu1 %v8088_v40  ;;  %v8167_v38 = vcombine.low %v578_v26, %v586_v27  ;;  %v8182_v40 = vcombine.high %v593_v33, %v601_v34  ;;  %v8184_v41 = vcombine.high %v594_v35, %v602_v36  ;;  %v681_v26 = vld [vmem:[#allocation2 + $0x1260] sm:$0xff]  ;;  %v674_v27 = vld [vmem:[#allocation2 + $0x1228] sm:$0xff] }
 0x24a   :  { %5635 = vmatpush1.bf16.msra.mxu0 %v8085_v46  ;;  %5807 = vmatpush1.bf16.msra.mxu1 %v8087_v47  ;;  %v618_v46 = vld [vmem:[#allocation2 + $0x1068] sm:$0xff]  ;;  %v8181_v47 = vcombine.low %v593_v33, %v601_v34  ;;  %v689_v34 = vld [vmem:[#allocation2 + $0x12a0] sm:$0xff] }
 0x24b   :  { %5636 = vmatprep.subr.bf16.mxu0 %v8102_v48  ;;  %5808 = vmatprep.subr.bf16.mxu1 %v8104_v50  ;;  %v8183_v48 = vcombine.low %v594_v35, %v602_v36  ;;  %v8198_v50 = vcombine.high %v609_v42, %v617_v43  ;;  %v8200_v51 = vcombine.high %v610_v45, %v618_v46  ;;  %v697_v35 = vld [vmem:[#allocation2 + $0x12e0] sm:$0xff]  ;;  %v690_v36 = vld [vmem:[#allocation2 + $0x12a8] sm:$0xff] }
 0x24e   :  { %5637 = vmatpush1.bf16.msra.mxu0 %v8101_v56  ;;  %5809 = vmatpush1.bf16.msra.mxu1 %v8103_v57  ;;  %v634_v56 = vld [vmem:[#allocation2 + $0x10e8] sm:$0xff]  ;;  %v8197_v57 = vcombine.low %v609_v42, %v617_v43  ;;  %v705_v43 = vld [vmem:[#allocation2 + $0x1320] sm:$0xff] }
 0x24f   :  { %5638 = vmatprep.subr.bf16.mxu0 %v8118_v60  ;;  %5810 = vmatprep.subr.bf16.mxu1 %v8120_v61  ;;  %v8199_v60 = vcombine.low %v610_v45, %v618_v46  ;;  %v8214_v61 = vcombine.high %v625_v52, %v633_v53  ;;  %v8216_v62 = vcombine.high %v626_v55, %v634_v56  ;;  %v713_v45 = vld [vmem:[#allocation2 + $0x1360] sm:$0xff]  ;;  %v706_v46 = vld [vmem:[#allocation2 + $0x1328] sm:$0xff] }
 0x252   :  { %5639 = vmatpush1.bf16.msra.mxu0 %v8117_v2  ;;  %5811 = vmatpush1.bf16.msra.mxu1 %v8119_v3  ;;  %v650_v2 = vld [vmem:[#allocation2 + $0x1168] sm:$0xff]  ;;  %v8213_v3 = vcombine.low %v625_v52, %v633_v53  ;;  %v721_v53 = vld [vmem:[#allocation2 + $0x13a0] sm:$0xff] }
 0x253   :  { %5640 = vmatprep.subr.bf16.mxu0 %v8134_v5  ;;  %5812 = vmatprep.subr.bf16.mxu1 %v8136_v6  ;;  %v8215_v5 = vcombine.low %v626_v55, %v634_v56  ;;  %v8230_v6 = vcombine.high %v641_v63, %v649_v0  ;;  %v8232_v9 = vcombine.high %v642_v1, %v650_v2  ;;  %v729_v55 = vld [vmem:[#allocation2 + $0x13e0] sm:$0xff]  ;;  %v722_v56 = vld [vmem:[#allocation2 + $0x13a8] sm:$0xff] }
 0x256   :  { %5641 = vmatpush1.bf16.msra.mxu0 %v8133_v18  ;;  %5813 = vmatpush1.bf16.msra.mxu1 %v8135_v19  ;;  %v666_v18 = vld [vmem:[#allocation2 + $0x11e8] sm:$0xff]  ;;  %v8229_v19 = vcombine.low %v641_v63, %v649_v0  ;;  %v737_v0 = vld [vmem:[#allocation2 + $0x1420] sm:$0xff] }
 0x257   :  { %5642 = vmatprep.subr.bf16.mxu0 %v8150_v21  ;;  %5814 = vmatprep.subr.bf16.mxu1 %v8152_v22  ;;  %v8231_v21 = vcombine.low %v642_v1, %v650_v2  ;;  %v8246_v22 = vcombine.high %v657_v12, %v665_v13  ;;  %v8248_v23 = vcombine.high %v658_v17, %v666_v18  ;;  %v745_v1 = vld [vmem:[#allocation2 + $0x1460] sm:$0xff]  ;;  %v738_v2 = vld [vmem:[#allocation2 + $0x1428] sm:$0xff] }
 0x25a   :  { %5643 = vmatpush1.bf16.msra.mxu0 %v8149_v28  ;;  %5815 = vmatpush1.bf16.msra.mxu1 %v8151_v29  ;;  %v682_v28 = vld [vmem:[#allocation2 + $0x1268] sm:$0xff]  ;;  %v8245_v29 = vcombine.low %v657_v12, %v665_v13  ;;  %v753_v13 = vld [vmem:[#allocation2 + $0x14a0] sm:$0xff] }
 0x25b   :  { %5644 = vmatprep.subr.bf16.mxu0 %v8166_v31  ;;  %5816 = vmatprep.subr.bf16.mxu1 %v8168_v32  ;;  %v8247_v31 = vcombine.low %v658_v17, %v666_v18  ;;  %v8262_v32 = vcombine.high %v673_v24, %v681_v26  ;;  %v8264_v33 = vcombine.high %v674_v27, %v682_v28  ;;  %v761_v17 = vld [vmem:[#allocation2 + $0x14e0] sm:$0xff]  ;;  %v754_v18 = vld [vmem:[#allocation2 + $0x14a8] sm:$0xff] }
 0x25e   :  { %5645 = vmatpush1.bf16.msra.mxu0 %v8165_v37  ;;  %5817 = vmatpush1.bf16.msra.mxu1 %v8167_v38  ;;  %v698_v37 = vld [vmem:[#allocation2 + $0x12e8] sm:$0xff]  ;;  %v8261_v38 = vcombine.low %v673_v24, %v681_v26  ;;  %v769_v26 = vld [vmem:[#allocation2 + $0x1520] sm:$0xff] }
 0x25f   :  { %5646 = vmatprep.subr.bf16.mxu0 %v8182_v40  ;;  %5818 = vmatprep.subr.bf16.mxu1 %v8184_v41  ;;  %v8263_v40 = vcombine.low %v674_v27, %v682_v28  ;;  %v8278_v41 = vcombine.high %v689_v34, %v697_v35  ;;  %v8280_v42 = vcombine.high %v690_v36, %v698_v37  ;;  %v777_v27 = vld [vmem:[#allocation2 + $0x1560] sm:$0xff]  ;;  %v770_v28 = vld [vmem:[#allocation2 + $0x1528] sm:$0xff] }
 0x262   :  { %5647 = vmatpush1.bf16.msra.mxu0 %v8181_v47  ;;  %5819 = vmatpush1.bf16.msra.mxu1 %v8183_v48  ;;  %v714_v47 = vld [vmem:[#allocation2 + $0x1368] sm:$0xff]  ;;  %v8277_v48 = vcombine.low %v689_v34, %v697_v35  ;;  %v785_v35 = vld [vmem:[#allocation2 + $0x15a0] sm:$0xff] }
 0x263   :  { %5659 = vmatprep.subr.bf16.mxu0 %v8198_v50  ;;  %5831 = vmatprep.subr.bf16.mxu1 %v8200_v51  ;;  %v8279_v50 = vcombine.low %v690_v36, %v698_v37  ;;  %v8294_v51 = vcombine.high %v705_v43, %v713_v45  ;;  %v8296_v52 = vcombine.high %v706_v46, %v714_v47  ;;  %v793_v36 = vld [vmem:[#allocation2 + $0x15e0] sm:$0xff]  ;;  %v786_v37 = vld [vmem:[#allocation2 + $0x15a8] sm:$0xff] }
 0x265   :  { %5649 = vmatmul.mubr.bf16.vlgmr.msra.gmra.mrb[8].mxu0 %v9268_v30  ;;  %5821 = vmatmul.mubr.bf16.vlgmr.msra.gmra.mrb[8].mxu1 %v9268_v30 }
 0x266   :  { %5660 = vmatpush1.bf16.msra.mxu0 %v8197_v57  ;;  %5832 = vmatpush1.bf16.msra.mxu1 %v8199_v60  ;;  %v730_v57 = vld [vmem:[#allocation2 + $0x13e8] sm:$0xff]  ;;  %v8293_v60 = vcombine.low %v705_v43, %v713_v45  ;;  %v801_v45 = vld [vmem:[#allocation2 + $0x1620] sm:$0xff] }
 0x267   :  { %5661 = vmatprep.subr.bf16.mxu0 %v8214_v61  ;;  %5833 = vmatprep.subr.bf16.mxu1 %v8216_v62  ;;  %v8295_v61 = vcombine.low %v706_v46, %v714_v47  ;;  %v8310_v62 = vcombine.high %v721_v53, %v729_v55  ;;  %v8312_v63 = vcombine.high %v722_v56, %v730_v57  ;;  %v809_v46 = vld [vmem:[#allocation2 + $0x1660] sm:$0xff]  ;;  %v802_v47 = vld [vmem:[#allocation2 + $0x1628] sm:$0xff] }
 0x268   :  { %5691 = vmatprep.mubr.bf16.mxu0 %v9270_v39  ;;  %5863 = vmatprep.mubr.bf16.mxu1 %v9270_v39 }
 0x26a   :  { %5662 = vmatpush1.bf16.msra.mxu0 %v8213_v3  ;;  %5834 = vmatpush1.bf16.msra.mxu1 %v8215_v5  ;;  %v746_v3 = vld [vmem:[#allocation2 + $0x1468] sm:$0xff]  ;;  %v8309_v5 = vcombine.low %v721_v53, %v729_v55  ;;  %v817_v55 = vld [vmem:[#allocation2 + $0x16a0] sm:$0xff] }
 0x26b   :  { %5663 = vmatprep.subr.bf16.mxu0 %v8230_v6  ;;  %5835 = vmatprep.subr.bf16.mxu1 %v8232_v9  ;;  %v8311_v6 = vcombine.low %v722_v56, %v730_v57  ;;  %v8326_v9 = vcombine.high %v737_v0, %v745_v1  ;;  %v8328_v12 = vcombine.high %v738_v2, %v746_v3  ;;  %v825_v56 = vld [vmem:[#allocation2 + $0x16e0] sm:$0xff]  ;;  %v818_v57 = vld [vmem:[#allocation2 + $0x16a8] sm:$0xff] }
 0x26e   :  { %5664 = vmatpush1.bf16.msra.mxu0 %v8229_v19  ;;  %5836 = vmatpush1.bf16.msra.mxu1 %v8231_v21  ;;  %v762_v19 = vld [vmem:[#allocation2 + $0x14e8] sm:$0xff]  ;;  %v8325_v21 = vcombine.low %v737_v0, %v745_v1  ;;  %v833_v1 = vld [vmem:[#allocation2 + $0x1720] sm:$0xff] }
 0x26f   :  { %5665 = vmatprep.subr.bf16.mxu0 %v8246_v22  ;;  %5837 = vmatprep.subr.bf16.mxu1 %v8248_v23  ;;  %v8327_v22 = vcombine.low %v738_v2, %v746_v3  ;;  %v8342_v23 = vcombine.high %v753_v13, %v761_v17  ;;  %v8344_v24 = vcombine.high %v754_v18, %v762_v19  ;;  %v841_v2 = vld [vmem:[#allocation2 + $0x1760] sm:$0xff]  ;;  %v834_v3 = vld [vmem:[#allocation2 + $0x1728] sm:$0xff] }
 0x272   :  { %5666 = vmatpush1.bf16.msra.mxu0 %v8245_v29  ;;  %5838 = vmatpush1.bf16.msra.mxu1 %v8247_v31  ;;  %v778_v29 = vld [vmem:[#allocation2 + $0x1568] sm:$0xff]  ;;  %v8341_v31 = vcombine.low %v753_v13, %v761_v17  ;;  %v849_v17 = vld [vmem:[#allocation2 + $0x17a0] sm:$0xff] }
 0x273   :  { %5667 = vmatprep.subr.bf16.mxu0 %v8262_v32  ;;  %5839 = vmatprep.subr.bf16.mxu1 %v8264_v33  ;;  %v8343_v32 = vcombine.low %v754_v18, %v762_v19  ;;  %v8358_v33 = vcombine.high %v769_v26, %v777_v27  ;;  %v8360_v34 = vcombine.high %v770_v28, %v778_v29  ;;  %v857_v18 = vld [vmem:[#allocation2 + $0x17e0] sm:$0xff]  ;;  %v850_v19 = vld [vmem:[#allocation2 + $0x17a8] sm:$0xff] }
 0x276   :  { %5668 = vmatpush1.bf16.msra.mxu0 %v8261_v38  ;;  %5840 = vmatpush1.bf16.msra.mxu1 %v8263_v40  ;;  %v794_v38 = vld [vmem:[#allocation2 + $0x15e8] sm:$0xff]  ;;  %v8357_v40 = vcombine.low %v769_v26, %v777_v27  ;;  %v865_v27 = vld [vmem:[#allocation2 + $0x1820] sm:$0xff] }
 0x277   :  { %5669 = vmatprep.subr.bf16.mxu0 %v8278_v41  ;;  %5841 = vmatprep.subr.bf16.mxu1 %v8280_v42  ;;  %v8359_v41 = vcombine.low %v770_v28, %v778_v29  ;;  %v8374_v42 = vcombine.high %v785_v35, %v793_v36  ;;  %v8376_v43 = vcombine.high %v786_v37, %v794_v38  ;;  %v873_v28 = vld [vmem:[#allocation2 + $0x1860] sm:$0xff]  ;;  %v866_v29 = vld [vmem:[#allocation2 + $0x1828] sm:$0xff] }
 0x27a   :  { %5670 = vmatpush1.bf16.msra.mxu0 %v8277_v48  ;;  %5842 = vmatpush1.bf16.msra.mxu1 %v8279_v50  ;;  %v810_v48 = vld [vmem:[#allocation2 + $0x1668] sm:$0xff]  ;;  %v8373_v50 = vcombine.low %v785_v35, %v793_v36  ;;  %v99_v36 = vld [vmem:[#allocation2 + $0x30] sm:$0xff] }
 0x27b   :  { %5671 = vmatprep.subr.bf16.mxu0 %v8294_v51  ;;  %5843 = vmatprep.subr.bf16.mxu1 %v8296_v52  ;;  %v8375_v51 = vcombine.low %v786_v37, %v794_v38  ;;  %v8390_v52 = vcombine.high %v801_v45, %v809_v46  ;;  %v8392_v53 = vcombine.high %v802_v47, %v810_v48  ;;  %v107_v37 = vld [vmem:[#allocation2 + $0x70] sm:$0xff] }
 0x27c   :  { %v8453_v38 = vcombine.low %v865_v27, %v873_v28 }
 0x27e   :  { %5672 = vmatpush1.bf16.msra.mxu0 %v8293_v60  ;;  %5844 = vmatpush1.bf16.msra.mxu1 %v8295_v61  ;;  %v826_v60 = vld [vmem:[#allocation2 + $0x16e8] sm:$0xff]  ;;  %v8389_v61 = vcombine.low %v801_v45, %v809_v46  ;;  %v115_v46 = vld [vmem:[#allocation2 + $0xb0] sm:$0xff] }
 0x27f   :  { %5673 = vmatprep.subr.bf16.mxu0 %v8310_v62  ;;  %5845 = vmatprep.subr.bf16.mxu1 %v8312_v63  ;;  %v8391_v62 = vcombine.low %v802_v47, %v810_v48  ;;  %v8406_v63 = vcombine.high %v817_v55, %v825_v56  ;;  %v8408_v0 = vcombine.high %v818_v57, %v826_v60  ;;  %v123_v47 = vld [vmem:[#allocation2 + $0xf0] sm:$0xff]  ;;  %v116_v48 = vld [vmem:[#allocation2 + $0xb8] sm:$0xff] }
 0x282   :  { %5674 = vmatpush1.bf16.msra.mxu0 %v8309_v5  ;;  %5846 = vmatpush1.bf16.msra.mxu1 %v8311_v6  ;;  %v842_v5 = vld [vmem:[#allocation2 + $0x1768] sm:$0xff]  ;;  %v8405_v6 = vcombine.low %v817_v55, %v825_v56  ;;  %v131_v56 = vld [vmem:[#allocation2 + $0x130] sm:$0xff] }
 0x283   :  { %5675 = vmatprep.subr.bf16.mxu0 %v8326_v9  ;;  %5847 = vmatprep.subr.bf16.mxu1 %v8328_v12  ;;  %v8407_v9 = vcombine.low %v818_v57, %v826_v60  ;;  %v8422_v12 = vcombine.high %v833_v1, %v841_v2  ;;  %v8424_v13 = vcombine.high %v834_v3, %v842_v5  ;;  %v139_v57 = vld [vmem:[#allocation2 + $0x170] sm:$0xff]  ;;  %v132_v60 = vld [vmem:[#allocation2 + $0x138] sm:$0xff] }
 0x286   :  { %5676 = vmatpush1.bf16.msra.mxu0 %v8325_v21  ;;  %5848 = vmatpush1.bf16.msra.mxu1 %v8327_v22  ;;  %v858_v21 = vld [vmem:[#allocation2 + $0x17e8] sm:$0xff]  ;;  %v8421_v22 = vcombine.low %v833_v1, %v841_v2  ;;  %v903_v1 = vsub.s32 5, %v9314_v59 }
 0x287   :  { %5677 = vmatprep.subr.bf16.mxu0 %v8342_v23  ;;  %5849 = vmatprep.subr.bf16.mxu1 %v8344_v24  ;;  %v8423_v23 = vcombine.low %v834_v3, %v842_v5  ;;  %v8438_v24 = vcombine.high %v849_v17, %v857_v18  ;;  %v8440_v26 = vcombine.high %v850_v19, %v858_v21  ;;  %v911_v5 = vsub.s32 7, %v9314_v59 }
 0x288   :  { %v7722_v3 = vcombine.high %v131_v56, %v139_v57 }
 0x28a   :  { %5678 = vmatpush1.bf16.msra.mxu0 %v8341_v31  ;;  %5850 = vmatpush1.bf16.msra.mxu1 %v8343_v32  ;;  %v874_v31 = vld [vmem:[#allocation2 + $0x1868] sm:$0xff]  ;;  %v8437_v32 = vcombine.low %v849_v17, %v857_v18  ;;  %v148_v18 = vld [vmem:[#allocation2 + $0x1b8] sm:$0xff] }
 0x28b   :  { %5679 = vmatprep.subr.bf16.mxu0 %v8358_v33  ;;  %5851 = vmatprep.subr.bf16.mxu1 %v8360_v34  ;;  %v8439_v33 = vcombine.low %v850_v19, %v858_v21  ;;  %v8454_v34 = vcombine.high %v865_v27, %v873_v28  ;;  %v8456_v35 = vcombine.high %v866_v29, %v874_v31  ;;  %v156_v19 = vld [vmem:[#allocation2 + $0x1f8] sm:$0xff] }
 0x28c   :  { %v7721_v21 = vcombine.low %v131_v56, %v139_v57  ;;  %v179_v57 = vld [vmem:[#allocation2 + $0x2b0] sm:$0xff] }
 0x28e   :  { %5680 = vmatpush1.bf16.msra.mxu0 %v8357_v40  ;;  %5852 = vmatpush1.bf16.msra.mxu1 %v8359_v41  ;;  %v100_v40 = vld [vmem:[#allocation2 + $0x38] sm:$0xff] }
 0x28f   :  { %5681 = vmatprep.subr.bf16.mxu0 %v8374_v42  ;;  %5853 = vmatprep.subr.bf16.mxu1 %v8376_v43  ;;  %v108_v41 = vld [vmem:[#allocation2 + $0x78] sm:$0xff]  ;;  %v8455_v42 = vcombine.low %v866_v29, %v874_v31  ;;  %v7690_v43 = vcombine.high %v99_v36, %v107_v37  ;;  %v7740_v29 = vcombine.high %v148_v18, %v156_v19  ;;  %v163_v31 = vld [vmem:[#allocation2 + $0x230] sm:$0xff] }
 0x290   :  { %v7692_v45 = vcombine.high %v100_v40, %v108_v41 }
 0x292   :  { %5682 = vmatpush1.bf16.msra.mxu0 %v8373_v50  ;;  %5854 = vmatpush1.bf16.msra.mxu1 %v8375_v51  ;;  %v124_v50 = vld [vmem:[#allocation2 + $0xf8] sm:$0xff]  ;;  %v7689_v51 = vcombine.low %v99_v36, %v107_v37 }
 0x293   :  { %5683 = vmatprep.subr.bf16.mxu0 %v8390_v52  ;;  %5855 = vmatprep.subr.bf16.mxu1 %v8392_v53  ;;  %v7691_v52 = vcombine.low %v100_v40, %v108_v41  ;;  %v7706_v53 = vcombine.high %v115_v46, %v123_v47  ;;  %v7708_v55 = vcombine.high %v116_v48, %v124_v50  ;;  %v172_v36 = vld [vmem:[#allocation2 + $0x278] sm:$0xff] }
 0x294   :  { %v7707_v2 = vcombine.low %v116_v48, %v124_v50 }
 0x296   :  { %5684 = vmatpush1.bf16.msra.mxu0 %v8389_v61  ;;  %5856 = vmatpush1.bf16.msra.mxu1 %v8391_v62  ;;  %v140_v61 = vld [vmem:[#allocation2 + $0x178] sm:$0xff]  ;;  %v899_v62 = vsub.s32 4, %v9314_v59 }
 0x297   :  { %5685 = vmatprep.subr.bf16.mxu0 %v8406_v63  ;;  %5857 = vmatprep.subr.bf16.mxu1 %v8408_v0  ;;  %v7705_v63 = vcombine.low %v115_v46, %v123_v47  ;;  %v907_v0 = vsub.s32 6, %v9314_v59 }
 0x29a   :  { %5686 = vmatpush1.bf16.msra.mxu0 %v8405_v6  ;;  %5858 = vmatpush1.bf16.msra.mxu1 %v8407_v9  ;;  %v7724_v6 = vcombine.high %v132_v60, %v140_v61  ;;  %v147_v9 = vld [vmem:[#allocation2 + $0x1b0] sm:$0xff] }
 0x29b   :  { %5687 = vmatprep.subr.bf16.mxu0 %v8422_v12  ;;  %5859 = vmatprep.subr.bf16.mxu1 %v8424_v13  ;;  %v155_v12 = vld [vmem:[#allocation2 + $0x1f0] sm:$0xff]  ;;  %v9038_v13 = vld [vmem:[#allocation4] sm:$0xff] }
 0x29c   :  { %v900_v17 = vrot.slane %v9038_v13, %v899_v62  ;;  %v7738_v27 = vcombine.high %v147_v9, %v155_v12 }
 0x29e   :  { %5688 = vmatpush1.bf16.msra.mxu0 %v8421_v22  ;;  %5860 = vmatpush1.bf16.msra.mxu1 %v8423_v23  ;;  %v908_v22 = vrot.slane %v9038_v13, %v907_v0  ;;  %v904_v23 = vrot.slane %v9038_v13, %v903_v1 }
 0x29f   :  { %5689 = vmatprep.subr.bf16.mxu0 %v8438_v24  ;;  %5861 = vmatprep.subr.bf16.mxu1 %v8440_v26  ;;  %v7723_v24 = vcombine.low %v132_v60, %v140_v61  ;;  %v912_v26 = vrot.slane %v9038_v13, %v911_v5  ;;  %v187_v60 = vld [vmem:[#allocation2 + $0x2f0] sm:$0xff] }
 0x2a2   :  { %5690 = vmatpush1.bf16.msra.mxu0 %v8437_v32  ;;  %5862 = vmatpush1.bf16.msra.mxu1 %v8439_v33 }
 0x2a3   :  { %5702 = vmatprep.subr.bf16.mxu0 %v8454_v34  ;;  %5874 = vmatprep.subr.bf16.mxu1 %v8456_v35  ;;  %v164_v35 = vld [vmem:[#allocation2 + $0x238] sm:$0xff] }
 0x2a4   :  { %v7756_v56 = vcombine.high %v164_v35, %v172_v36 }
 0x2a5   :  { %5692 = vmatmul.mubr.bf16.vlgmr.msra.gmra.mrb[8].mxu0 %v9282_v44  ;;  %5864 = vmatmul.mubr.bf16.vlgmr.msra.gmra.mrb[8].mxu1 %v9282_v44 }
 0x2a6   :  { %5703 = vmatpush1.bf16.msra.mxu0 %v8453_v38  ;;  %5875 = vmatpush1.bf16.msra.mxu1 %v8455_v42  ;;  %v7737_v42 = vcombine.low %v147_v9, %v155_v12  ;;  %v188_v9 = vld [vmem:[#allocation2 + $0x2f8] sm:$0xff] }
 0x2a7   :  { %5734 = vmatprep.mubr.bf16.mxu0 %v9140_v49  ;;  %5906 = vmatprep.mubr.bf16.mxu1 %v9140_v49 }
 0x2a8   :  { %5917 = vmatprep.subr.bf16.mxu0 %v7690_v43  ;;  %6089 = vmatprep.subr.bf16.mxu1 %v7692_v45  ;;  %v7739_v43 = vcombine.low %v148_v18, %v156_v19 }
 0x2b1   :  { %8465 = vmatmul.mubr.msk.bf16.vlgmr.msra.gmra.mrb[8].mxu0 %vm4881_vm0, %v9294_v54  ;;  %8466 = vmatmul.mubr.msk.bf16.vlgmr.msra.gmra.mrb[8].mxu1 %vm4881_vm0, %v9294_v54 }
 0x2b2   :  { %5918 = vmatpush1.bf16.msra.mxu0 %v7689_v51  ;;  %6090 = vmatpush1.bf16.msra.mxu1 %v7691_v52 }
 0x2b3   :  { %5919 = vmatprep.subr.bf16.mxu0 %v7706_v53  ;;  %6091 = vmatprep.subr.bf16.mxu1 %v7708_v55 }
 0x2b4   :  { %5949 = vmatprep.mubr.bf16.mxu0 %v9232_v58  ;;  %6121 = vmatprep.mubr.bf16.mxu1 %v9232_v58  ;;  %v171_v58 = vld [vmem:[#allocation2 + $0x270] sm:$0xff] }
 0x2b5   :  { %v7754_v50 = vcombine.high %v163_v31, %v171_v58  ;;  %v7753_v55 = vcombine.low %v163_v31, %v171_v58  ;;  %v196_v58 = vld [vmem:[#allocation2 + $0x338] sm:$0xff] }
 0x2b6   :  { %5920 = vmatpush1.bf16.msra.mxu0 %v7705_v63  ;;  %6092 = vmatpush1.bf16.msra.mxu1 %v7707_v2 }
 0x2b7   :  { %5921 = vmatprep.subr.bf16.mxu0 %v7722_v3  ;;  %6093 = vmatprep.subr.bf16.mxu1 %v7724_v6  ;;  %v7755_v3 = vcombine.low %v164_v35, %v172_v36  ;;  %v180_v6 = vld [vmem:[#allocation2 + $0x2b8] sm:$0xff] }
 0x2b8   :  { %v5392_v28 = vpop.f32.mrb[4].mxu0  ;;  %v5564_v33 = vpop.f32.mrb[4].mxu1 }
 0x2b9   :  { %v8782_v32 = vadd.f32 %v5392_v28, %v900_v17  ;;  %v5394_v34 = vpop.f32.mrb[5].mxu0  ;;  %v8786_v37 = vadd.f32 %v5564_v33, %v908_v22  ;;  %v5566_v40 = vpop.f32.mrb[5].mxu1  ;;  %v195_v28 = vld [vmem:[#allocation2 + $0x330] sm:$0xff]  ;;  %v7769_v33 = vcombine.low %v179_v57, %v187_v60 }
 0x2ba   :  { %5922 = vmatpush1.bf16.msra.mxu0 %v7721_v21  ;;  %v8783_v38 = vadd.f32 %v5394_v34, %v904_v23  ;;  %v5396_v41 = vpop.f32.mrb[6].mxu0  ;;  %6094 = vmatpush1.bf16.msra.mxu1 %v7723_v24  ;;  %v8787_v45 = vadd.f32 %v5566_v40, %v912_v26  ;;  %v5568_v47 = vpop.f32.mrb[6].mxu1  ;;  %v7771_v34 = vcombine.low %v180_v6, %v188_v9  ;;  %v212_v40 = vld [vmem:[#allocation2 + $0x3b8] sm:$0xff] }
 0x2bb   :  { %v8784_v46 = vadd.f32 %v5396_v41, %v900_v17  ;;  %v5398_v48 = vpop.f32.mrb[7].mxu0  ;;  %5923 = vmatprep.subr.bf16.mxu0 %v7738_v27  ;;  %v8788_v51 = vadd.f32 %v5568_v47, %v908_v22  ;;  %v5570_v53 = vpop.f32.mrb[7].mxu1  ;;  %6095 = vmatprep.subr.bf16.mxu1 %v7740_v29  ;;  %v6265_v61 = vmax.f32 %v8782_v32, 0.0  ;;  %v6267_v12 = vmax.f32 %v8786_v37, 0.0  ;;  %v203_v29 = vld [vmem:[#allocation2 + $0x370] sm:$0xff]  ;;  %v204_v32 = vld [vmem:[#allocation2 + $0x378] sm:$0xff] }
 0x2bc   :  { %v8785_v52 = vadd.f32 %v5398_v48, %v904_v23  ;;  %v8789_v2 = vadd.f32 %v5570_v53, %v912_v26  ;;  %v6266_v13 = vmax.f32 %v8783_v38, 0.0  ;;  %v6268_v19 = vmax.f32 %v8787_v45, 0.0  ;;  %v211_v37 = vld [vmem:[#allocation2 + $0x3b0] sm:$0xff]  ;;  %v220_v41 = vld [vmem:[#allocation2 + $0x3f8] sm:$0xff] }
 0x2bd   :  { %v6281_v63 = vmax.f32 %v8784_v46, 0.0  ;;  %v6283_v17 = vmax.f32 %v8788_v51, 0.0  ;;  %v7770_v23 = vcombine.high %v179_v57, %v187_v60  ;;  %v7772_v26 = vcombine.high %v180_v6, %v188_v9  ;;  %v219_v38 = vld [vmem:[#allocation2 + $0x3f0] sm:$0xff]  ;;  %v236_v51 = vld [vmem:[#allocation2 + $0x478] sm:$0xff] }
 0x2be   :  { %v6282_v18 = vmax.f32 %v8785_v52, 0.0  ;;  %5924 = vmatpush1.bf16.msra.mxu0 %v7737_v42  ;;  %v6284_v22 = vmax.f32 %v8789_v2, 0.0  ;;  %6096 = vmatpush1.bf16.msra.mxu1 %v7739_v43  ;;  %v7786_v35 = vcombine.high %v195_v28, %v203_v29  ;;  %v7788_v36 = vcombine.high %v196_v58, %v204_v32  ;;  %v227_v47 = vld [vmem:[#allocation2 + $0x430] sm:$0xff] }
 0x2bf   :  { %v9372_v21 = vpack.c.bf16 %v6281_v63, %v6265_v61  ;;  %5925 = vmatprep.subr.bf16.mxu0 %v7754_v50  ;;  %v9374_v24 = vpack.c.bf16 %v6283_v17, %v6267_v12  ;;  %6097 = vmatprep.subr.bf16.mxu1 %v7756_v56  ;;  %v7785_v42 = vcombine.low %v195_v28, %v203_v29  ;;  %v235_v48 = vld [vmem:[#allocation2 + $0x470] sm:$0xff]  ;;  %v228_v50 = vld [vmem:[#allocation2 + $0x438] sm:$0xff] }
 0x2c0   :  { %v9376_v27 = vpack.c.bf16 %v6282_v18, %v6266_v13  ;;  %v9378_v31 = vpack.c.bf16 %v6284_v22, %v6268_v19  ;;  %v7787_v43 = vcombine.low %v196_v58, %v204_v32  ;;  %v7802_v45 = vcombine.high %v211_v37, %v219_v38  ;;  %v243_v57 = vld [vmem:[#allocation2 + $0x4b0] sm:$0xff]  ;;  %v244_v61 = vld [vmem:[#allocation2 + $0x4b8] sm:$0xff] }
 0x2c1   :  { %v7804_v46 = vcombine.high %v212_v40, %v220_v41  ;;  %v7801_v52 = vcombine.low %v211_v37, %v219_v38  ;;  %v7803_v53 = vcombine.low %v212_v40, %v220_v41  ;;  %v7820_v56 = vcombine.high %v228_v50, %v236_v51  ;;  %v251_v60 = vld [vmem:[#allocation2 + $0x4f0] sm:$0xff]  ;;  %v252_v63 = vld [vmem:[#allocation2 + $0x4f8] sm:$0xff] }
 0x2c2   :  { %5926 = vmatpush1.bf16.msra.mxu0 %v7753_v55  ;;  %6098 = vmatpush1.bf16.msra.mxu1 %v7755_v3  ;;  %v7818_v55 = vcombine.high %v227_v47, %v235_v48  ;;  %v7817_v2 = vcombine.low %v227_v47, %v235_v48  ;;  %v7819_v3 = vcombine.low %v228_v50, %v236_v51  ;;  %v259_v12 = vld [vmem:[#allocation2 + $0x530] sm:$0xff]  ;;  %v260_v17 = vld [vmem:[#allocation2 + $0x538] sm:$0xff] }
 0x2c3   :  { %5927 = vmatprep.subr.bf16.mxu0 %v7770_v23  ;;  %6099 = vmatprep.subr.bf16.mxu1 %v7772_v26  ;;  %v7834_v6 = vcombine.high %v243_v57, %v251_v60  ;;  %v7836_v9 = vcombine.high %v244_v61, %v252_v63  ;;  %v267_v13 = vld [vmem:[#allocation2 + $0x570] sm:$0xff]  ;;  %v268_v18 = vld [vmem:[#allocation2 + $0x578] sm:$0xff]  ;;  %v7833_v19 = vcombine.low %v243_v57, %v251_v60 }
 0x2c4   :  { %v7835_v22 = vcombine.low %v244_v61, %v252_v63  ;;  %v7850_v23 = vcombine.high %v259_v12, %v267_v13  ;;  %v7852_v26 = vcombine.high %v260_v17, %v268_v18  ;;  %v275_v28 = vld [vmem:[#allocation2 + $0x5b0] sm:$0xff]  ;;  %v276_v58 = vld [vmem:[#allocation2 + $0x5b8] sm:$0xff] }
 0x2c5   :  { %v283_v29 = vld [vmem:[#allocation2 + $0x5f0] sm:$0xff]  ;;  %v284_v32 = vld [vmem:[#allocation2 + $0x5f8] sm:$0xff] }
 0x2c6   :  { %5928 = vmatpush1.bf16.msra.mxu0 %v7769_v33  ;;  %6100 = vmatpush1.bf16.msra.mxu1 %v7771_v34  ;;  %v7849_v33 = vcombine.low %v259_v12, %v267_v13  ;;  %v7851_v34 = vcombine.low %v260_v17, %v268_v18  ;;  %v291_v37 = vld [vmem:[#allocation2 + $0x630] sm:$0xff]  ;;  %v292_v40 = vld [vmem:[#allocation2 + $0x638] sm:$0xff] }
 0x2c7   :  { %5929 = vmatprep.subr.bf16.mxu0 %v7786_v35  ;;  %6101 = vmatprep.subr.bf16.mxu1 %v7788_v36  ;;  %v7866_v35 = vcombine.high %v275_v28, %v283_v29  ;;  %v7868_v36 = vcombine.high %v276_v58, %v284_v32  ;;  %v299_v38 = vld [vmem:[#allocation2 + $0x670] sm:$0xff]  ;;  %v300_v41 = vld [vmem:[#allocation2 + $0x678] sm:$0xff] }
 0x2c8   :  { %v307_v47 = vld [vmem:[#allocation2 + $0x6b0] sm:$0xff]  ;;  %v308_v50 = vld [vmem:[#allocation2 + $0x6b8] sm:$0xff] }
 0x2c9   :  { %v315_v48 = vld [vmem:[#allocation2 + $0x6f0] sm:$0xff]  ;;  %v316_v51 = vld [vmem:[#allocation2 + $0x6f8] sm:$0xff] }
 0x2ca   :  { %5930 = vmatpush1.bf16.msra.mxu0 %v7785_v42  ;;  %6102 = vmatpush1.bf16.msra.mxu1 %v7787_v43  ;;  %v7865_v42 = vcombine.low %v275_v28, %v283_v29  ;;  %v7867_v43 = vcombine.low %v276_v58, %v284_v32  ;;  %v323_v57 = vld [vmem:[#allocation2 + $0x730] sm:$0xff]  ;;  %v324_v61 = vld [vmem:[#allocation2 + $0x738] sm:$0xff] }
 0x2cb   :  { %5931 = vmatprep.subr.bf16.mxu0 %v7802_v45  ;;  %6103 = vmatprep.subr.bf16.mxu1 %v7804_v46  ;;  %v7882_v45 = vcombine.high %v291_v37, %v299_v38  ;;  %v7884_v46 = vcombine.high %v292_v40, %v300_v41  ;;  %v331_v60 = vld [vmem:[#allocation2 + $0x770] sm:$0xff]  ;;  %v332_v63 = vld [vmem:[#allocation2 + $0x778] sm:$0xff] }
 0x2cc   :  { %v339_v12 = vld [vmem:[#allocation2 + $0x7b0] sm:$0xff]  ;;  %v340_v17 = vld [vmem:[#allocation2 + $0x7b8] sm:$0xff] }
 0x2cd   :  { %v347_v13 = vld [vmem:[#allocation2 + $0x7f0] sm:$0xff]  ;;  %v348_v18 = vld [vmem:[#allocation2 + $0x7f8] sm:$0xff] }
 0x2ce   :  { %5932 = vmatpush1.bf16.msra.mxu0 %v7801_v52  ;;  %6104 = vmatpush1.bf16.msra.mxu1 %v7803_v53  ;;  %v7881_v52 = vcombine.low %v291_v37, %v299_v38  ;;  %v7883_v53 = vcombine.low %v292_v40, %v300_v41  ;;  %v355_v28 = vld [vmem:[#allocation2 + $0x830] sm:$0xff]  ;;  %v356_v58 = vld [vmem:[#allocation2 + $0x838] sm:$0xff] }
 0x2cf   :  { %5933 = vmatprep.subr.bf16.mxu0 %v7818_v55  ;;  %6105 = vmatprep.subr.bf16.mxu1 %v7820_v56  ;;  %v7898_v55 = vcombine.high %v307_v47, %v315_v48  ;;  %v7900_v56 = vcombine.high %v308_v50, %v316_v51  ;;  %v363_v29 = vld [vmem:[#allocation2 + $0x870] sm:$0xff]  ;;  %v364_v32 = vld [vmem:[#allocation2 + $0x878] sm:$0xff] }
 0x2d0   :  { %v371_v37 = vld [vmem:[#allocation2 + $0x8b0] sm:$0xff]  ;;  %v372_v40 = vld [vmem:[#allocation2 + $0x8b8] sm:$0xff] }
 0x2d1   :  { %v379_v38 = vld [vmem:[#allocation2 + $0x8f0] sm:$0xff]  ;;  %v380_v41 = vld [vmem:[#allocation2 + $0x8f8] sm:$0xff] }
 0x2d2   :  { %5934 = vmatpush1.bf16.msra.mxu0 %v7817_v2  ;;  %6106 = vmatpush1.bf16.msra.mxu1 %v7819_v3  ;;  %v7897_v2 = vcombine.low %v307_v47, %v315_v48  ;;  %v7899_v3 = vcombine.low %v308_v50, %v316_v51  ;;  %v387_v47 = vld [vmem:[#allocation2 + $0x930] sm:$0xff]  ;;  %v388_v50 = vld [vmem:[#allocation2 + $0x938] sm:$0xff] }
 0x2d3   :  { %5935 = vmatprep.subr.bf16.mxu0 %v7834_v6  ;;  %6107 = vmatprep.subr.bf16.mxu1 %v7836_v9  ;;  %v7914_v6 = vcombine.high %v323_v57, %v331_v60  ;;  %v7916_v9 = vcombine.high %v324_v61, %v332_v63  ;;  %v395_v48 = vld [vmem:[#allocation2 + $0x970] sm:$0xff]  ;;  %v396_v51 = vld [vmem:[#allocation2 + $0x978] sm:$0xff] }
 0x2d6   :  { %5936 = vmatpush1.bf16.msra.mxu0 %v7833_v19  ;;  %6108 = vmatpush1.bf16.msra.mxu1 %v7835_v22  ;;  %v7913_v19 = vcombine.low %v323_v57, %v331_v60  ;;  %v7915_v22 = vcombine.low %v324_v61, %v332_v63  ;;  %v403_v57 = vld [vmem:[#allocation2 + $0x9b0] sm:$0xff]  ;;  %v404_v61 = vld [vmem:[#allocation2 + $0x9b8] sm:$0xff] }
 0x2d7   :  { %5937 = vmatprep.subr.bf16.mxu0 %v7850_v23  ;;  %6109 = vmatprep.subr.bf16.mxu1 %v7852_v26  ;;  %v7930_v23 = vcombine.high %v339_v12, %v347_v13  ;;  %v7932_v26 = vcombine.high %v340_v17, %v348_v18  ;;  %v411_v60 = vld [vmem:[#allocation2 + $0x9f0] sm:$0xff]  ;;  %v412_v63 = vld [vmem:[#allocation2 + $0x9f8] sm:$0xff] }
 0x2da   :  { %5938 = vmatpush1.bf16.msra.mxu0 %v7849_v33  ;;  %6110 = vmatpush1.bf16.msra.mxu1 %v7851_v34  ;;  %v7929_v33 = vcombine.low %v339_v12, %v347_v13  ;;  %v7931_v34 = vcombine.low %v340_v17, %v348_v18  ;;  %v427_v12 = vld [vmem:[#allocation2 + $0xa70] sm:$0xff]  ;;  %v420_v13 = vld [vmem:[#allocation2 + $0xa38] sm:$0xff]  ;;  %v7993_v18 = vcombine.low %v403_v57, %v411_v60 }
 0x2db   :  { %5939 = vmatprep.subr.bf16.mxu0 %v7866_v35  ;;  %6111 = vmatprep.subr.bf16.mxu1 %v7868_v36  ;;  %v7946_v35 = vcombine.high %v355_v28, %v363_v29  ;;  %v7948_v36 = vcombine.high %v356_v58, %v364_v32  ;;  %v428_v17 = vld [vmem:[#allocation2 + $0xa78] sm:$0xff] }
 0x2de   :  { %5940 = vmatpush1.bf16.msra.mxu0 %v7865_v42  ;;  %6112 = vmatpush1.bf16.msra.mxu1 %v7867_v43  ;;  %v7945_v42 = vcombine.low %v355_v28, %v363_v29  ;;  %v7947_v43 = vcombine.low %v356_v58, %v364_v32  ;;  %v436_v28 = vld [vmem:[#allocation2 + $0xab8] sm:$0xff]  ;;  %v8011_v32 = vcombine.low %v420_v13, %v428_v17 }
 0x2df   :  { %5941 = vmatprep.subr.bf16.mxu0 %v7882_v45  ;;  %6113 = vmatprep.subr.bf16.mxu1 %v7884_v46  ;;  %v7962_v45 = vcombine.high %v371_v37, %v379_v38  ;;  %v7964_v46 = vcombine.high %v372_v40, %v380_v41  ;;  %v444_v29 = vld [vmem:[#allocation2 + $0xaf8] sm:$0xff] }
 0x2e2   :  { %5942 = vmatpush1.bf16.msra.mxu0 %v7881_v52  ;;  %6114 = vmatpush1.bf16.msra.mxu1 %v7883_v53  ;;  %v7961_v52 = vcombine.low %v371_v37, %v379_v38  ;;  %v7963_v53 = vcombine.low %v372_v40, %v380_v41  ;;  %v452_v37 = vld [vmem:[#allocation2 + $0xb38] sm:$0xff]  ;;  %v8027_v41 = vcombine.low %v436_v28, %v444_v29 }
 0x2e3   :  { %5943 = vmatprep.subr.bf16.mxu0 %v7898_v55  ;;  %6115 = vmatprep.subr.bf16.mxu1 %v7900_v56  ;;  %v7978_v55 = vcombine.high %v387_v47, %v395_v48  ;;  %v7980_v56 = vcombine.high %v388_v50, %v396_v51  ;;  %v460_v38 = vld [vmem:[#allocation2 + $0xb78] sm:$0xff] }
 0x2e6   :  { %5944 = vmatpush1.bf16.msra.mxu0 %v7897_v2  ;;  %6116 = vmatpush1.bf16.msra.mxu1 %v7899_v3  ;;  %v7977_v2 = vcombine.low %v387_v47, %v395_v48  ;;  %v7994_v3 = vcombine.high %v403_v57, %v411_v60  ;;  %v468_v47 = vld [vmem:[#allocation2 + $0xbb8] sm:$0xff] }
 0x2e7   :  { %5945 = vmatprep.subr.bf16.mxu0 %v7914_v6  ;;  %6117 = vmatprep.subr.bf16.mxu1 %v7916_v9  ;;  %v7996_v6 = vcombine.high %v404_v61, %v412_v63  ;;  %v419_v9 = vld [vmem:[#allocation2 + $0xa30] sm:$0xff]  ;;  %v476_v48 = vld [vmem:[#allocation2 + $0xbf8] sm:$0xff] }
 0x2e8   :  { %v8009_v58 = vcombine.low %v419_v9, %v427_v12  ;;  %v484_v57 = vld [vmem:[#allocation2 + $0xc38] sm:$0xff] }
 0x2e9   :  { %v492_v60 = vld [vmem:[#allocation2 + $0xc78] sm:$0xff] }
 0x2ea   :  { %5946 = vmatpush1.bf16.msra.mxu0 %v7913_v19  ;;  %6118 = vmatpush1.bf16.msra.mxu1 %v7915_v22  ;;  %v7995_v19 = vcombine.low %v404_v61, %v412_v63  ;;  %v8010_v22 = vcombine.high %v419_v9, %v427_v12  ;;  %v8059_v63 = vcombine.low %v468_v47, %v476_v48  ;;  %v500_v9 = vld [vmem:[#allocation2 + $0xcb8] sm:$0xff] }
 0x2eb   :  { %5947 = vmatprep.subr.bf16.mxu0 %v7930_v23  ;;  %6119 = vmatprep.subr.bf16.mxu1 %v7932_v26  ;;  %v435_v23 = vld [vmem:[#allocation2 + $0xab0] sm:$0xff]  ;;  %v508_v12 = vld [vmem:[#allocation2 + $0xcf8] sm:$0xff] }
 0x2ec   :  { %v443_v26 = vld [vmem:[#allocation2 + $0xaf0] sm:$0xff] }
 0x2ed   :  { %v8025_v40 = vcombine.low %v435_v23, %v443_v26 }
 0x2ee   :  { %5948 = vmatpush1.bf16.msra.mxu0 %v7929_v33  ;;  %6120 = vmatpush1.bf16.msra.mxu1 %v7931_v34  ;;  %v8026_v33 = vcombine.high %v435_v23, %v443_v26  ;;  %v8028_v34 = vcombine.high %v436_v28, %v444_v29  ;;  %v516_v23 = vld [vmem:[#allocation2 + $0xd38] sm:$0xff]  ;;  %v8091_v29 = vcombine.low %v500_v9, %v508_v12 }
 0x2ef   :  { %5960 = vmatprep.subr.bf16.mxu0 %v7946_v35  ;;  %6132 = vmatprep.subr.bf16.mxu1 %v7948_v36  ;;  %v451_v35 = vld [vmem:[#allocation2 + $0xb30] sm:$0xff]  ;;  %v524_v26 = vld [vmem:[#allocation2 + $0xd78] sm:$0xff] }
 0x2f0   :  { %v459_v36 = vld [vmem:[#allocation2 + $0xb70] sm:$0xff] }
 0x2f1   :  { %5950 = vmatmul.mubr.bf16.vlgmr.msra.gmra.mrb[12].mxu0 %v9242_v15  ;;  %6122 = vmatmul.mubr.bf16.vlgmr.msra.gmra.mrb[12].mxu1 %v9242_v15  ;;  %v7979_v15 = vcombine.low %v388_v50, %v396_v51  ;;  %v8041_v50 = vcombine.low %v451_v35, %v459_v36  ;;  %v8043_v51 = vcombine.low %v452_v37, %v460_v38 }
 0x2f2   :  { %5961 = vmatpush1.bf16.msra.mxu0 %v7945_v42  ;;  %6133 = vmatpush1.bf16.msra.mxu1 %v7947_v43  ;;  %v8042_v42 = vcombine.high %v451_v35, %v459_v36  ;;  %v8044_v43 = vcombine.high %v452_v37, %v460_v38  ;;  %v532_v35 = vld [vmem:[#allocation2 + $0xdb8] sm:$0xff]  ;;  %v8107_v38 = vcombine.low %v516_v23, %v524_v26 }
 0x2f3   :  { %5962 = vmatprep.subr.bf16.mxu0 %v7962_v45  ;;  %6134 = vmatprep.subr.bf16.mxu1 %v7964_v46  ;;  %v467_v45 = vld [vmem:[#allocation2 + $0xbb0] sm:$0xff]  ;;  %v540_v36 = vld [vmem:[#allocation2 + $0xdf8] sm:$0xff] }
 0x2f4   :  { %5992 = vmatprep.mubr.bf16.mxu0 %v9250_v25  ;;  %6164 = vmatprep.mubr.bf16.mxu1 %v9250_v25  ;;  %v8012_v25 = vcombine.high %v420_v13, %v428_v17  ;;  %v475_v46 = vld [vmem:[#allocation2 + $0xbf0] sm:$0xff]  ;;  %v8075_v17 = vcombine.low %v484_v57, %v492_v60 }
 0x2f5   :  { %v8057_v61 = vcombine.low %v467_v45, %v475_v46 }
 0x2f6   :  { %5963 = vmatpush1.bf16.msra.mxu0 %v7961_v52  ;;  %6135 = vmatpush1.bf16.msra.mxu1 %v7963_v53  ;;  %v8058_v52 = vcombine.high %v467_v45, %v475_v46  ;;  %v8060_v53 = vcombine.high %v468_v47, %v476_v48  ;;  %v548_v45 = vld [vmem:[#allocation2 + $0xe38] sm:$0xff]  ;;  %v8123_v48 = vcombine.low %v532_v35, %v540_v36 }
 0x2f7   :  { %5964 = vmatprep.subr.bf16.mxu0 %v7978_v55  ;;  %6136 = vmatprep.subr.bf16.mxu1 %v7980_v56  ;;  %v483_v55 = vld [vmem:[#allocation2 + $0xc30] sm:$0xff]  ;;  %v556_v46 = vld [vmem:[#allocation2 + $0xe78] sm:$0xff] }
 0x2f8   :  { %v491_v56 = vld [vmem:[#allocation2 + $0xc70] sm:$0xff] }
 0x2f9   :  { %v8073_v13 = vcombine.low %v483_v55, %v491_v56 }
 0x2fa   :  { %5965 = vmatpush1.bf16.msra.mxu0 %v7977_v2  ;;  %6137 = vmatpush1.bf16.msra.mxu1 %v7979_v15  ;;  %v8074_v2 = vcombine.high %v483_v55, %v491_v56  ;;  %v8076_v15 = vcombine.high %v484_v57, %v492_v60  ;;  %v564_v55 = vld [vmem:[#allocation2 + $0xeb8] sm:$0xff]  ;;  %v8139_v60 = vcombine.low %v548_v45, %v556_v46 }
 0x2fb   :  { %5966 = vmatprep.subr.bf16.mxu0 %v7994_v3  ;;  %6138 = vmatprep.subr.bf16.mxu1 %v7996_v6  ;;  %v499_v3 = vld [vmem:[#allocation2 + $0xcb0] sm:$0xff]  ;;  %v572_v56 = vld [vmem:[#allocation2 + $0xef8] sm:$0xff] }
 0x2fc   :  { %v507_v6 = vld [vmem:[#allocation2 + $0xcf0] sm:$0xff] }
 0x2fd   :  { %v8089_v28 = vcombine.low %v499_v3, %v507_v6 }
 0x2fe   :  { %5967 = vmatpush1.bf16.msra.mxu0 %v7993_v18  ;;  %6139 = vmatpush1.bf16.msra.mxu1 %v7995_v19  ;;  %v8090_v18 = vcombine.high %v499_v3, %v507_v6  ;;  %v8092_v19 = vcombine.high %v500_v9, %v508_v12  ;;  %v580_v3 = vld [vmem:[#allocation2 + $0xf38] sm:$0xff]  ;;  %v8155_v12 = vcombine.low %v564_v55, %v572_v56 }
 0x2ff   :  { %5968 = vmatprep.subr.bf16.mxu0 %v8010_v22  ;;  %6140 = vmatprep.subr.bf16.mxu1 %v8012_v25  ;;  %v515_v22 = vld [vmem:[#allocation2 + $0xd30] sm:$0xff]  ;;  %v588_v6 = vld [vmem:[#allocation2 + $0xf78] sm:$0xff] }
 0x300   :  { %v523_v25 = vld [vmem:[#allocation2 + $0xd70] sm:$0xff] }
 0x301   :  { %v8105_v37 = vcombine.low %v515_v22, %v523_v25 }
 0x302   :  { %5969 = vmatpush1.bf16.msra.mxu0 %v8009_v58  ;;  %6141 = vmatpush1.bf16.msra.mxu1 %v8011_v32  ;;  %v8106_v58 = vcombine.high %v515_v22, %v523_v25  ;;  %v8108_v32 = vcombine.high %v516_v23, %v524_v26  ;;  %v596_v22 = vld [vmem:[#allocation2 + $0xfb8] sm:$0xff]  ;;  %v8171_v26 = vcombine.low %v580_v3, %v588_v6 }
 0x303   :  { %5970 = vmatprep.subr.bf16.mxu0 %v8026_v33  ;;  %6142 = vmatprep.subr.bf16.mxu1 %v8028_v34  ;;  %v531_v33 = vld [vmem:[#allocation2 + $0xdb0] sm:$0xff]  ;;  %v604_v25 = vld [vmem:[#allocation2 + $0xff8] sm:$0xff] }
 0x304   :  { %v539_v34 = vld [vmem:[#allocation2 + $0xdf0] sm:$0xff] }
 0x305   :  { %v8121_v47 = vcombine.low %v531_v33, %v539_v34 }
 0x306   :  { %5971 = vmatpush1.bf16.msra.mxu0 %v8025_v40  ;;  %6143 = vmatpush1.bf16.msra.mxu1 %v8027_v41  ;;  %v8122_v40 = vcombine.high %v531_v33, %v539_v34  ;;  %v8124_v41 = vcombine.high %v532_v35, %v540_v36  ;;  %v612_v33 = vld [vmem:[#allocation2 + $0x1038] sm:$0xff]  ;;  %v8187_v36 = vcombine.low %v596_v22, %v604_v25 }
 0x307   :  { %5972 = vmatprep.subr.bf16.mxu0 %v8042_v42  ;;  %6144 = vmatprep.subr.bf16.mxu1 %v8044_v43  ;;  %v547_v42 = vld [vmem:[#allocation2 + $0xe30] sm:$0xff]  ;;  %v620_v34 = vld [vmem:[#allocation2 + $0x1078] sm:$0xff] }
 0x308   :  { %v555_v43 = vld [vmem:[#allocation2 + $0xe70] sm:$0xff] }
 0x309   :  { %v8137_v57 = vcombine.low %v547_v42, %v555_v43 }
 0x30a   :  { %5973 = vmatpush1.bf16.msra.mxu0 %v8041_v50  ;;  %6145 = vmatpush1.bf16.msra.mxu1 %v8043_v51  ;;  %v8138_v50 = vcombine.high %v547_v42, %v555_v43  ;;  %v8140_v51 = vcombine.high %v548_v45, %v556_v46  ;;  %v628_v42 = vld [vmem:[#allocation2 + $0x10b8] sm:$0xff]  ;;  %v8203_v46 = vcombine.low %v612_v33, %v620_v34 }
 0x30b   :  { %5974 = vmatprep.subr.bf16.mxu0 %v8058_v52  ;;  %6146 = vmatprep.subr.bf16.mxu1 %v8060_v53  ;;  %v563_v52 = vld [vmem:[#allocation2 + $0xeb0] sm:$0xff]  ;;  %v636_v43 = vld [vmem:[#allocation2 + $0x10f8] sm:$0xff] }
 0x30c   :  { %v571_v53 = vld [vmem:[#allocation2 + $0xef0] sm:$0xff] }
 0x30d   :  { %v8153_v9 = vcombine.low %v563_v52, %v571_v53 }
 0x30e   :  { %5975 = vmatpush1.bf16.msra.mxu0 %v8057_v61  ;;  %6147 = vmatpush1.bf16.msra.mxu1 %v8059_v63  ;;  %v8154_v61 = vcombine.high %v563_v52, %v571_v53  ;;  %v8156_v63 = vcombine.high %v564_v55, %v572_v56  ;;  %v644_v52 = vld [vmem:[#allocation2 + $0x1138] sm:$0xff]  ;;  %v8219_v56 = vcombine.low %v628_v42, %v636_v43 }
 0x30f   :  { %5976 = vmatprep.subr.bf16.mxu0 %v8074_v2  ;;  %6148 = vmatprep.subr.bf16.mxu1 %v8076_v15  ;;  %v579_v2 = vld [vmem:[#allocation2 + $0xf30] sm:$0xff]  ;;  %v652_v53 = vld [vmem:[#allocation2 + $0x1178] sm:$0xff] }
 0x310   :  { %v587_v15 = vld [vmem:[#allocation2 + $0xf70] sm:$0xff] }
 0x311   :  { %v8169_v23 = vcombine.low %v579_v2, %v587_v15 }
 0x312   :  { %5977 = vmatpush1.bf16.msra.mxu0 %v8073_v13  ;;  %6149 = vmatpush1.bf16.msra.mxu1 %v8075_v17  ;;  %v8170_v13 = vcombine.high %v579_v2, %v587_v15  ;;  %v8172_v17 = vcombine.high %v580_v3, %v588_v6  ;;  %v660_v2 = vld [vmem:[#allocation2 + $0x11b8] sm:$0xff] }
 0x313   :  { %5978 = vmatprep.subr.bf16.mxu0 %v8090_v18  ;;  %6150 = vmatprep.subr.bf16.mxu1 %v8092_v19  ;;  %v595_v18 = vld [vmem:[#allocation2 + $0xfb0] sm:$0xff]  ;;  %v668_v15 = vld [vmem:[#allocation2 + $0x11f8] sm:$0xff] }
 0x314   :  { %v603_v19 = vld [vmem:[#allocation2 + $0xff0] sm:$0xff] }
 0x315   :  { %v8185_v35 = vcombine.low %v595_v18, %v603_v19 }
 0x316   :  { %5979 = vmatpush1.bf16.msra.mxu0 %v8089_v28  ;;  %6151 = vmatpush1.bf16.msra.mxu1 %v8091_v29  ;;  %v8186_v28 = vcombine.high %v595_v18, %v603_v19  ;;  %v8188_v29 = vcombine.high %v596_v22, %v604_v25  ;;  %v684_v18 = vld [vmem:[#allocation2 + $0x1278] sm:$0xff]  ;;  %v8251_v22 = vcombine.low %v660_v2, %v668_v15 }
 0x317   :  { %5980 = vmatprep.subr.bf16.mxu0 %v8106_v58  ;;  %6152 = vmatprep.subr.bf16.mxu1 %v8108_v32  ;;  %v611_v58 = vld [vmem:[#allocation2 + $0x1030] sm:$0xff] }
 0x318   :  { %v619_v32 = vld [vmem:[#allocation2 + $0x1070] sm:$0xff] }
 0x319   :  { %v8201_v45 = vcombine.low %v611_v58, %v619_v32 }
 0x31a   :  { %5981 = vmatpush1.bf16.msra.mxu0 %v8105_v37  ;;  %6153 = vmatpush1.bf16.msra.mxu1 %v8107_v38  ;;  %v8202_v37 = vcombine.high %v611_v58, %v619_v32  ;;  %v8204_v38 = vcombine.high %v612_v33, %v620_v34 }
 0x31b   :  { %5982 = vmatprep.subr.bf16.mxu0 %v8122_v40  ;;  %6154 = vmatprep.subr.bf16.mxu1 %v8124_v41  ;;  %v627_v40 = vld [vmem:[#allocation2 + $0x10b0] sm:$0xff] }
 0x31c   :  { %v635_v41 = vld [vmem:[#allocation2 + $0x10f0] sm:$0xff] }
 0x31d   :  { %v8217_v55 = vcombine.low %v627_v40, %v635_v41 }
 0x31e   :  { %5983 = vmatpush1.bf16.msra.mxu0 %v8121_v47  ;;  %6155 = vmatpush1.bf16.msra.mxu1 %v8123_v48  ;;  %v8218_v47 = vcombine.high %v627_v40, %v635_v41  ;;  %v8220_v48 = vcombine.high %v628_v42, %v636_v43 }
 0x31f   :  { %5984 = vmatprep.subr.bf16.mxu0 %v8138_v50  ;;  %6156 = vmatprep.subr.bf16.mxu1 %v8140_v51  ;;  %v643_v50 = vld [vmem:[#allocation2 + $0x1130] sm:$0xff] }
 0x320   :  { %v651_v51 = vld [vmem:[#allocation2 + $0x1170] sm:$0xff] }
 0x321   :  { %v8233_v3 = vcombine.low %v643_v50, %v651_v51 }
 0x322   :  { %5985 = vmatpush1.bf16.msra.mxu0 %v8137_v57  ;;  %6157 = vmatpush1.bf16.msra.mxu1 %v8139_v60  ;;  %v8234_v57 = vcombine.high %v643_v50, %v651_v51  ;;  %v8236_v60 = vcombine.high %v644_v52, %v652_v53 }
 0x323   :  { %5986 = vmatprep.subr.bf16.mxu0 %v8154_v61  ;;  %6158 = vmatprep.subr.bf16.mxu1 %v8156_v63  ;;  %v659_v61 = vld [vmem:[#allocation2 + $0x11b0] sm:$0xff] }
 0x324   :  { %v667_v63 = vld [vmem:[#allocation2 + $0x11f0] sm:$0xff] }
 0x325   :  { %v8250_v6 = vcombine.high %v659_v61, %v667_v63  ;;  %v8249_v19 = vcombine.low %v659_v61, %v667_v63 }
 0x326   :  { %5987 = vmatpush1.bf16.msra.mxu0 %v8153_v9  ;;  %6159 = vmatpush1.bf16.msra.mxu1 %v8155_v12  ;;  %v8252_v9 = vcombine.high %v660_v2, %v668_v15  ;;  %v675_v12 = vld [vmem:[#allocation2 + $0x1230] sm:$0xff] }
 0x327   :  { %5988 = vmatprep.subr.bf16.mxu0 %v8170_v13  ;;  %6160 = vmatprep.subr.bf16.mxu1 %v8172_v17  ;;  %v683_v13 = vld [vmem:[#allocation2 + $0x1270] sm:$0xff]  ;;  %v676_v17 = vld [vmem:[#allocation2 + $0x1238] sm:$0xff] }
 0x328   :  { %v8266_v25 = vcombine.high %v675_v12, %v683_v13  ;;  %v8265_v58 = vcombine.low %v675_v12, %v683_v13  ;;  %v8267_v32 = vcombine.low %v676_v17, %v684_v18 }
 0x32a   :  { %5989 = vmatpush1.bf16.msra.mxu0 %v8169_v23  ;;  %6161 = vmatpush1.bf16.msra.mxu1 %v8171_v26  ;;  %v691_v23 = vld [vmem:[#allocation2 + $0x12b0] sm:$0xff] }
 0x32b   :  { %5990 = vmatprep.subr.bf16.mxu0 %v8186_v28  ;;  %6162 = vmatprep.subr.bf16.mxu1 %v8188_v29  ;;  %v699_v26 = vld [vmem:[#allocation2 + $0x12f0] sm:$0xff]  ;;  %v692_v28 = vld [vmem:[#allocation2 + $0x12b8] sm:$0xff] }
 0x32c   :  { %v700_v29 = vld [vmem:[#allocation2 + $0x12f8] sm:$0xff]  ;;  %v8282_v33 = vcombine.high %v691_v23, %v699_v26  ;;  %v8281_v40 = vcombine.low %v691_v23, %v699_v26 }
 0x32d   :  { %v8284_v34 = vcombine.high %v692_v28, %v700_v29  ;;  %v8283_v41 = vcombine.low %v692_v28, %v700_v29 }
 0x32e   :  { %5991 = vmatpush1.bf16.msra.mxu0 %v8185_v35  ;;  %6163 = vmatpush1.bf16.msra.mxu1 %v8187_v36  ;;  %v707_v35 = vld [vmem:[#allocation2 + $0x1330] sm:$0xff] }
 0x32f   :  { %6003 = vmatprep.subr.bf16.mxu0 %v8202_v37  ;;  %6175 = vmatprep.subr.bf16.mxu1 %v8204_v38  ;;  %v715_v36 = vld [vmem:[#allocation2 + $0x1370] sm:$0xff]  ;;  %v708_v37 = vld [vmem:[#allocation2 + $0x1338] sm:$0xff] }
 0x330   :  { %v716_v38 = vld [vmem:[#allocation2 + $0x1378] sm:$0xff]  ;;  %v8298_v42 = vcombine.high %v707_v35, %v715_v36  ;;  %v8297_v50 = vcombine.low %v707_v35, %v715_v36 }
 0x331   :  { %5993 = vmatmul.mubr.bf16.vlgmr.msra.gmra.mrb[12].mxu0 %v9268_v30  ;;  %6165 = vmatmul.mubr.bf16.vlgmr.msra.gmra.mrb[12].mxu1 %v9268_v30  ;;  %v8235_v30 = vcombine.low %v644_v52, %v652_v53  ;;  %v8300_v43 = vcombine.high %v708_v37, %v716_v38  ;;  %v8299_v51 = vcombine.low %v708_v37, %v716_v38 }
 0x332   :  { %6004 = vmatpush1.bf16.msra.mxu0 %v8201_v45  ;;  %6176 = vmatpush1.bf16.msra.mxu1 %v8203_v46  ;;  %v723_v45 = vld [vmem:[#allocation2 + $0x13b0] sm:$0xff] }
 0x333   :  { %6005 = vmatprep.subr.bf16.mxu0 %v8218_v47  ;;  %6177 = vmatprep.subr.bf16.mxu1 %v8220_v48  ;;  %v731_v46 = vld [vmem:[#allocation2 + $0x13f0] sm:$0xff]  ;;  %v724_v47 = vld [vmem:[#allocation2 + $0x13b8] sm:$0xff] }
 0x334   :  { %6035 = vmatprep.mubr.bf16.mxu0 %v9270_v39  ;;  %6207 = vmatprep.mubr.bf16.mxu1 %v9270_v39  ;;  %v8268_v39 = vcombine.high %v676_v17, %v684_v18  ;;  %v732_v48 = vld [vmem:[#allocation2 + $0x13f8] sm:$0xff]  ;;  %v8314_v52 = vcombine.high %v723_v45, %v731_v46  ;;  %v8313_v61 = vcombine.low %v723_v45, %v731_v46 }
 0x335   :  { %v8316_v53 = vcombine.high %v724_v47, %v732_v48  ;;  %v8315_v63 = vcombine.low %v724_v47, %v732_v48 }
 0x336   :  { %6006 = vmatpush1.bf16.msra.mxu0 %v8217_v55  ;;  %6178 = vmatpush1.bf16.msra.mxu1 %v8219_v56  ;;  %v739_v55 = vld [vmem:[#allocation2 + $0x1430] sm:$0xff] }
 0x337   :  { %6007 = vmatprep.subr.bf16.mxu0 %v8234_v57  ;;  %6179 = vmatprep.subr.bf16.mxu1 %v8236_v60  ;;  %v747_v56 = vld [vmem:[#allocation2 + $0x1470] sm:$0xff]  ;;  %v740_v57 = vld [vmem:[#allocation2 + $0x1438] sm:$0xff] }
 0x338   :  { %v748_v60 = vld [vmem:[#allocation2 + $0x1478] sm:$0xff]  ;;  %v8330_v2 = vcombine.high %v739_v55, %v747_v56  ;;  %v8329_v12 = vcombine.low %v739_v55, %v747_v56 }
 0x339   :  { %v8332_v15 = vcombine.high %v740_v57, %v748_v60  ;;  %v8331_v13 = vcombine.low %v740_v57, %v748_v60 }
 0x33a   :  { %6008 = vmatpush1.bf16.msra.mxu0 %v8233_v3  ;;  %6180 = vmatpush1.bf16.msra.mxu1 %v8235_v30  ;;  %v755_v3 = vld [vmem:[#allocation2 + $0x14b0] sm:$0xff] }
 0x33b   :  { %6009 = vmatprep.subr.bf16.mxu0 %v8250_v6  ;;  %6181 = vmatprep.subr.bf16.mxu1 %v8252_v9  ;;  %v763_v30 = vld [vmem:[#allocation2 + $0x14f0] sm:$0xff]  ;;  %v756_v6 = vld [vmem:[#allocation2 + $0x14b8] sm:$0xff] }
 0x33c   :  { %v764_v9 = vld [vmem:[#allocation2 + $0x14f8] sm:$0xff]  ;;  %v8346_v17 = vcombine.high %v755_v3, %v763_v30  ;;  %v8345_v23 = vcombine.low %v755_v3, %v763_v30 }
 0x33d   :  { %v8348_v18 = vcombine.high %v756_v6, %v764_v9  ;;  %v8347_v26 = vcombine.low %v756_v6, %v764_v9 }
 0x33e   :  { %6010 = vmatpush1.bf16.msra.mxu0 %v8249_v19  ;;  %6182 = vmatpush1.bf16.msra.mxu1 %v8251_v22  ;;  %v771_v19 = vld [vmem:[#allocation2 + $0x1530] sm:$0xff] }
 0x33f   :  { %6011 = vmatprep.subr.bf16.mxu0 %v8266_v25  ;;  %6183 = vmatprep.subr.bf16.mxu1 %v8268_v39  ;;  %v779_v22 = vld [vmem:[#allocation2 + $0x1570] sm:$0xff]  ;;  %v772_v25 = vld [vmem:[#allocation2 + $0x1538] sm:$0xff] }
 0x340   :  { %v780_v39 = vld [vmem:[#allocation2 + $0x1578] sm:$0xff]  ;;  %v8362_v28 = vcombine.high %v771_v19, %v779_v22  ;;  %v8361_v35 = vcombine.low %v771_v19, %v779_v22 }
 0x341   :  { %v8364_v29 = vcombine.high %v772_v25, %v780_v39  ;;  %v8363_v36 = vcombine.low %v772_v25, %v780_v39 }
 0x342   :  { %6012 = vmatpush1.bf16.msra.mxu0 %v8265_v58  ;;  %6184 = vmatpush1.bf16.msra.mxu1 %v8267_v32  ;;  %v787_v58 = vld [vmem:[#allocation2 + $0x15b0] sm:$0xff] }
 0x343   :  { %6013 = vmatprep.subr.bf16.mxu0 %v8282_v33  ;;  %6185 = vmatprep.subr.bf16.mxu1 %v8284_v34  ;;  %v795_v32 = vld [vmem:[#allocation2 + $0x15f0] sm:$0xff]  ;;  %v788_v33 = vld [vmem:[#allocation2 + $0x15b8] sm:$0xff] }
 0x344   :  { %v796_v34 = vld [vmem:[#allocation2 + $0x15f8] sm:$0xff]  ;;  %v8378_v37 = vcombine.high %v787_v58, %v795_v32  ;;  %v8377_v45 = vcombine.low %v787_v58, %v795_v32 }
 0x345   :  { %v8380_v38 = vcombine.high %v788_v33, %v796_v34  ;;  %v8379_v46 = vcombine.low %v788_v33, %v796_v34 }
 0x346   :  { %6014 = vmatpush1.bf16.msra.mxu0 %v8281_v40  ;;  %6186 = vmatpush1.bf16.msra.mxu1 %v8283_v41  ;;  %v803_v40 = vld [vmem:[#allocation2 + $0x1630] sm:$0xff] }
 0x347   :  { %6015 = vmatprep.subr.bf16.mxu0 %v8298_v42  ;;  %6187 = vmatprep.subr.bf16.mxu1 %v8300_v43  ;;  %v811_v41 = vld [vmem:[#allocation2 + $0x1670] sm:$0xff]  ;;  %v804_v42 = vld [vmem:[#allocation2 + $0x1638] sm:$0xff] }
 0x348   :  { %v812_v43 = vld [vmem:[#allocation2 + $0x1678] sm:$0xff]  ;;  %v8394_v47 = vcombine.high %v803_v40, %v811_v41  ;;  %v8393_v55 = vcombine.low %v803_v40, %v811_v41  ;;  %v8912_v40 = vld [vmem:[#allocation6] sm:$0xff]  }
 0x349   :  { %v8396_v48 = vcombine.high %v804_v42, %v812_v43  ;;  %v8395_v56 = vcombine.low %v804_v42, %v812_v43  ;;  %v8913_v41 = vld [vmem:[#allocation6 + $0x80] sm:$0xff]   ;;  %v8914_v42 = vld [vmem:[#allocation6 + $0x48] sm:$0xff]  }
 0x34a   :  { %6016 = vmatpush1.bf16.msra.mxu0 %v8297_v50  ;;  %6188 = vmatpush1.bf16.msra.mxu1 %v8299_v51  ;;  %v819_v50 = vld [vmem:[#allocation2 + $0x16b0] sm:$0xff]  ;;  %v8915_v43 = vld [vmem:[#allocation6 + $0xc8] sm:$0xff]  }
 0x34b   :  { %6017 = vmatprep.subr.bf16.mxu0 %v8314_v52  ;;  %6189 = vmatprep.subr.bf16.mxu1 %v8316_v53  ;;  %v827_v51 = vld [vmem:[#allocation2 + $0x16f0] sm:$0xff]  ;;  %v820_v52 = vld [vmem:[#allocation2 + $0x16b8] sm:$0xff] }
 0x34c   :  { %v828_v53 = vld [vmem:[#allocation2 + $0x16f8] sm:$0xff]  ;;  %v8410_v57 = vcombine.high %v819_v50, %v827_v51  ;;  %v8409_v3 = vcombine.low %v819_v50, %v827_v51  ;;  %v8920_v50 = vld [vmem:[#allocation6 + $0x10] sm:$0xff]  }
 0x34d   :  { %v8412_v60 = vcombine.high %v820_v52, %v828_v53  ;;  %v8411_v30 = vcombine.low %v820_v52, %v828_v53  ;;  %v8922_v52 = vld [vmem:[#allocation6 + $0x58] sm:$0xff]  }
 0x34e   :  { %6018 = vmatpush1.bf16.msra.mxu0 %v8313_v61  ;;  %6190 = vmatpush1.bf16.msra.mxu1 %v8315_v63  ;;  %v835_v61 = vld [vmem:[#allocation2 + $0x1730] sm:$0xff]  ;;  %v8923_v53 = vld [vmem:[#allocation6 + $0xd8] sm:$0xff]  }
 0x34f   :  { %6019 = vmatprep.subr.bf16.mxu0 %v8330_v2  ;;  %6191 = vmatprep.subr.bf16.mxu1 %v8332_v15  ;;  %v843_v63 = vld [vmem:[#allocation2 + $0x1770] sm:$0xff]  ;;  %v836_v2 = vld [vmem:[#allocation2 + $0x1738] sm:$0xff] }
 0x350   :  { %v844_v15 = vld [vmem:[#allocation2 + $0x1778] sm:$0xff]  ;;  %v8426_v6 = vcombine.high %v835_v61, %v843_v63  ;;  %v8425_v19 = vcombine.low %v835_v61, %v843_v63 }
 0x351   :  { %v8428_v9 = vcombine.high %v836_v2, %v844_v15  ;;  %v8427_v22 = vcombine.low %v836_v2, %v844_v15 }
 0x352   :  { %6020 = vmatpush1.bf16.msra.mxu0 %v8329_v12  ;;  %6192 = vmatpush1.bf16.msra.mxu1 %v8331_v13  ;;  %v851_v12 = vld [vmem:[#allocation2 + $0x17b0] sm:$0xff] }
 0x353   :  { %6021 = vmatprep.subr.bf16.mxu0 %v8346_v17  ;;  %6193 = vmatprep.subr.bf16.mxu1 %v8348_v18  ;;  %v859_v13 = vld [vmem:[#allocation2 + $0x17f0] sm:$0xff]  ;;  %v852_v17 = vld [vmem:[#allocation2 + $0x17b8] sm:$0xff] }
 0x354   :  { %v860_v18 = vld [vmem:[#allocation2 + $0x17f8] sm:$0xff]  ;;  %v8442_v25 = vcombine.high %v851_v12, %v859_v13  ;;  %v8441_v58 = vcombine.low %v851_v12, %v859_v13 }
 0x355   :  { %v8444_v39 = vcombine.high %v852_v17, %v860_v18  ;;  %v8443_v32 = vcombine.low %v852_v17, %v860_v18  ;;  %v8927_v17 = vld [vmem:[#allocation6 + $0xe0] sm:$0xff]  }
 0x356   :  { %6022 = vmatpush1.bf16.msra.mxu0 %v8345_v23  ;;  %6194 = vmatpush1.bf16.msra.mxu1 %v8347_v26  ;;  %v867_v23 = vld [vmem:[#allocation2 + $0x1830] sm:$0xff] }
 0x357   :  { %6023 = vmatprep.subr.bf16.mxu0 %v8362_v28  ;;  %6195 = vmatprep.subr.bf16.mxu1 %v8364_v29  ;;  %v875_v26 = vld [vmem:[#allocation2 + $0x1870] sm:$0xff]  ;;  %v868_v28 = vld [vmem:[#allocation2 + $0x1838] sm:$0xff] }
 0x358   :  { %v876_v29 = vld [vmem:[#allocation2 + $0x1878] sm:$0xff]  ;;  %v8458_v33 = vcombine.high %v867_v23, %v875_v26 }
 0x359   :  { %v8460_v34 = vcombine.high %v868_v28, %v876_v29 }
 0x35a   :  { %6024 = vmatpush1.bf16.msra.mxu0 %v8361_v35  ;;  %6196 = vmatpush1.bf16.msra.mxu1 %v8363_v36  ;;  %v8457_v35 = vcombine.low %v867_v23, %v875_v26  ;;  %v8459_v36 = vcombine.low %v868_v28, %v876_v29  ;;  %v8928_v28 = vld [vmem:[#allocation6 + $0x20] sm:$0xff]  }
 0x35b   :  { %6025 = vmatprep.subr.bf16.mxu0 %v8378_v37  ;;  %6197 = vmatprep.subr.bf16.mxu1 %v8380_v38  ;;  %v8910_v37 = vld [vmem:[#allocation6 + $0x40] sm:$0xff]  }
 0x35c   :  { %v8911_v38 = vld [vmem:[#allocation6 + $0xc0] sm:$0xff]  }
 0x35e   :  { %6026 = vmatpush1.bf16.msra.mxu0 %v8377_v45  ;;  %6198 = vmatpush1.bf16.msra.mxu1 %v8379_v46  ;;  %v9396_v45 = vld [vmem:[#allocation4 + $0x8] sm:$0xff]  ;;  %v8918_v46 = vld [vmem:[#allocation6 + $0x50] sm:$0xff]  }
 0x35f   :  { %6027 = vmatprep.subr.bf16.mxu0 %v8394_v47  ;;  %6199 = vmatprep.subr.bf16.mxu1 %v8396_v48  ;;  %v8919_v47 = vld [vmem:[#allocation6 + $0xd0] sm:$0xff]   ;;  %v916_v48 = vrot.slane %v9396_v45, %v883_v4  ;;  %v928_v51 = vrot.slane %v9396_v45, %v895_v11  ;;  %v8925_v11 = vld [vmem:[#allocation6 + $0x98] sm:$0xff]  }
 0x362   :  { %6028 = vmatpush1.bf16.msra.mxu0 %v8393_v55  ;;  %6200 = vmatpush1.bf16.msra.mxu1 %v8395_v56 }
 0x363   :  { %6029 = vmatprep.subr.bf16.mxu0 %v8410_v57  ;;  %6201 = vmatprep.subr.bf16.mxu1 %v8412_v60 }
 0x366   :  { %6030 = vmatpush1.bf16.msra.mxu0 %v8409_v3  ;;  %6202 = vmatpush1.bf16.msra.mxu1 %v8411_v30 }
 0x367   :  { %6031 = vmatprep.subr.bf16.mxu0 %v8426_v6  ;;  %6203 = vmatprep.subr.bf16.mxu1 %v8428_v9  ;;  %v8926_v6 = vld [vmem:[#allocation6 + $0x60] sm:$0xff]  }
 0x36a   :  { %6032 = vmatpush1.bf16.msra.mxu0 %v8425_v19  ;;  %6204 = vmatpush1.bf16.msra.mxu1 %v8427_v22 }
 0x36b   :  { %6033 = vmatprep.subr.bf16.mxu0 %v8442_v25  ;;  %6205 = vmatprep.subr.bf16.mxu1 %v8444_v39 }
 0x36e   :  { %6034 = vmatpush1.bf16.msra.mxu0 %v8441_v58  ;;  %6206 = vmatpush1.bf16.msra.mxu1 %v8443_v32 }
 0x36f   :  { %6046 = vmatprep.subr.bf16.mxu0 %v8458_v33  ;;  %6218 = vmatprep.subr.bf16.mxu1 %v8460_v34  ;;  %v8929_v33 = vld [vmem:[#allocation6 + $0xa0] sm:$0xff]   ;;  %v8930_v34 = vld [vmem:[#allocation6 + $0x68] sm:$0xff]  }
 0x371   :  { %6036 = vmatmul.mubr.bf16.vlgmr.msra.gmra.mrb[12].mxu0 %v9282_v44  ;;  %6208 = vmatmul.mubr.bf16.vlgmr.msra.gmra.mrb[12].mxu1 %v9282_v44  ;;  %v8916_v44 = vld [vmem:[#allocation6 + $0x8] sm:$0xff]  }
 0x372   :  { %6047 = vmatpush1.bf16.msra.mxu0 %v8457_v35  ;;  %6219 = vmatpush1.bf16.msra.mxu1 %v8459_v36 }
 0x373   :  { %6078 = vmatprep.mubr.bf16.mxu0 %v9140_v49  ;;  %6250 = vmatprep.mubr.bf16.mxu1 %v9140_v49  ;;  %v8917_v49 = vld [vmem:[#allocation6 + $0x88] sm:$0xff]  }
 0x374   :  { %8598 = vmatprep.subr.bf16.mxu0 %v8910_v37  ;;  %8620 = vmatprep.subr.bf16.mxu1 %v8911_v38  ;;  %v8931_v37 = vld [vmem:[#allocation6 + $0xe8] sm:$0xff]  }
 0x37d   :  { %8467 = vmatmul.mubr.msk.bf16.vlgmr.msra.gmra.mrb[12].mxu0 %vm4881_vm0, %v9294_v54  ;;  %8468 = vmatmul.mubr.msk.bf16.vlgmr.msra.gmra.mrb[12].mxu1 %vm4881_vm0, %v9294_v54  ;;  %v924_v54 = vrot.slane %v9396_v45, %v891_v7 }
 0x37e   :  { %8599 = vmatpush3.bf16.msra.mxu0 %v8912_v40  ;;  %8621 = vmatpush3.bf16.msra.mxu1 %v8913_v41  ;;  %v8932_v40 = vld [vmem:[#allocation6 + $0x28] sm:$0xff]  }
 0x37f   :  { %7372 = vmatprep.mubr.bf16.mxu0 %v9338_v16  ;;  %7413 = vmatprep.mubr.bf16.mxu1 %v9340_v20  ;;  %v920_v16 = vrot.slane %v9396_v45, %v887_v8  ;;  %v8921_v20 = vld [vmem:[#allocation6 + $0x90] sm:$0xff]   ;;  %v8924_v8 = vld [vmem:[#allocation6 + $0x18] sm:$0xff]   ;;  %v8933_v41 = vld [vmem:[#allocation6 + $0xa8] sm:$0xff]  }
 0x380   :  { %8600 = vmatprep.subr.bf16.mxu0 %v8914_v42  ;;  %8622 = vmatprep.subr.bf16.mxu1 %v8915_v43  ;;  %v8934_v42 = vld [vmem:[#allocation6 + $0x70] sm:$0xff]  }
 0x381   :  { %v8935_v43 = vld [vmem:[#allocation6 + $0xf0] sm:$0xff]  }
 0x382   :  { %8601 = vmatpush3.bf16.msra.mxu0 %v8916_v44  ;;  %8623 = vmatpush3.bf16.msra.mxu1 %v8917_v49  ;;  %v8936_v44 = vld [vmem:[#allocation6 + $0x30] sm:$0xff]  }
 0x383   :  { %8602 = vmatprep.subr.bf16.mxu0 %v8918_v46  ;;  %8624 = vmatprep.subr.bf16.mxu1 %v8919_v47  ;;  %v8937_v49 = vld [vmem:[#allocation6 + $0xb0] sm:$0xff]   ;;  %v8938_v46 = vld [vmem:[#allocation6 + $0x78] sm:$0xff]  }
 0x384   :  { %v5736_v4 = vpop.f32.mrb[8].mxu0  ;;  %v5908_v56 = vpop.f32.mrb[8].mxu1  ;;  %v8939_v47 = vld [vmem:[#allocation6 + $0xf8] sm:$0xff]  }
 0x385   :  { %v8790_v55 = vadd.f32 %v5736_v4, %v916_v48  ;;  %v5738_v57 = vpop.f32.mrb[9].mxu0  ;;  %v8794_v7 = vadd.f32 %v5908_v56, %v924_v54  ;;  %v5910_v61 = vpop.f32.mrb[9].mxu1  ;;  %v8947_v4 = vld [vmem:[#allocation6 + $0x1c8] sm:$0xff]   ;;  %v8950_v56 = vld [vmem:[#allocation6 + $0x150] sm:$0xff]  }
 0x386   :  { %8603 = vmatpush3.bf16.msra.mxu0 %v8920_v50  ;;  %v8791_v60 = vadd.f32 %v5738_v57, %v920_v16  ;;  %v5740_v63 = vpop.f32.mrb[10].mxu0  ;;  %8625 = vmatpush3.bf16.msra.mxu1 %v8921_v20  ;;  %v8795_v2 = vadd.f32 %v5910_v61, %v928_v51  ;;  %v5912_v3 = vpop.f32.mrb[10].mxu1  ;;  %v8942_v50 = vld [vmem:[#allocation6 + $0x140] sm:$0xff]   ;;  %v8951_v57 = vld [vmem:[#allocation6 + $0x1d0] sm:$0xff]   ;;  %v8956_v61 = vld [vmem:[#allocation6 + $0x118] sm:$0xff]  }
 0x387   :  { %v8792_v15 = vadd.f32 %v5740_v63, %v916_v48  ;;  %v5742_v30 = vpop.f32.mrb[11].mxu0  ;;  %8604 = vmatprep.subr.bf16.mxu0 %v8922_v52  ;;  %v8796_v9 = vadd.f32 %v5912_v3, %v924_v54  ;;  %v5914_v13 = vpop.f32.mrb[11].mxu1  ;;  %8626 = vmatprep.subr.bf16.mxu1 %v8923_v53  ;;  %v6269_v18 = vmax.f32 %v8790_v55, 0.0  ;;  %v6271_v25 = vmax.f32 %v8794_v7, 0.0  ;;  %v8940_v48 = vld [vmem:[#allocation6 + $0x38] sm:$0xff]   ;;  %v8944_v20 = vld [vmem:[#allocation6 + $0x100] sm:$0xff]  }
 0x388   :  { %v8793_v12 = vadd.f32 %v5742_v30, %v920_v16  ;;  %v8797_v22 = vadd.f32 %v5914_v13, %v928_v51  ;;  %v6270_v39 = vmax.f32 %v8791_v60, 0.0  ;;  %v6272_v29 = vmax.f32 %v8795_v2, 0.0  ;;  %v8941_v54 = vld [vmem:[#allocation6 + $0xb8] sm:$0xff]   ;;  %v8943_v16 = vld [vmem:[#allocation6 + $0x1c0] sm:$0xff]   ;;  %v8946_v52 = vld [vmem:[#allocation6 + $0x148] sm:$0xff]  }
 0x389   :  { %v6285_v19 = vmax.f32 %v8792_v15, 0.0  ;;  %v6287_v23 = vmax.f32 %v8796_v9, 0.0  ;;  %v8945_v51 = vld [vmem:[#allocation6 + $0x180] sm:$0xff]   ;;  %v8948_v53 = vld [vmem:[#allocation6 + $0x108] sm:$0xff]   ;;  %v8952_v7 = vld [vmem:[#allocation6 + $0x110] sm:$0xff]  }
 0x38a   :  { %v6286_v26 = vmax.f32 %v8793_v12, 0.0  ;;  %8605 = vmatpush3.bf16.msra.mxu0 %v8924_v8  ;;  %v6288_v32 = vmax.f32 %v8797_v22, 0.0  ;;  %8627 = vmatpush3.bf16.msra.mxu1 %v8925_v11  ;;  %v8949_v55 = vld [vmem:[#allocation6 + $0x188] sm:$0xff]   ;;  %v8954_v60 = vld [vmem:[#allocation6 + $0x158] sm:$0xff]   ;;  %v8958_v63 = vld [vmem:[#allocation6 + $0x160] sm:$0xff]  }
 0x38b   :  { %v9412_v58 = vpack.c.bf16 %v6285_v19, %v6269_v18  ;;  %8606 = vmatprep.subr.bf16.mxu0 %v8926_v6  ;;  %v9414_v35 = vpack.c.bf16 %v6287_v23, %v6271_v25  ;;  %8628 = vmatprep.subr.bf16.mxu1 %v8927_v17  ;;  %v8959_v8 = vld [vmem:[#allocation6 + $0x1e0] sm:$0xff]   ;;  %v8962_v15 = vld [vmem:[#allocation6 + $0x168] sm:$0xff]   ;;  %v8966_v6 = vld [vmem:[#allocation6 + $0x170] sm:$0xff]  }
 0x38c   :  { %v9416_v36 = vpack.c.bf16 %v6286_v26, %v6270_v39  ;;  %v9418_v38 = vpack.c.bf16 %v6288_v32, %v6272_v29  ;;  %v8961_v2 = vld [vmem:[#allocation6 + $0x1a0] sm:$0xff]   ;;  %v8963_v3 = vld [vmem:[#allocation6 + $0x1e8] sm:$0xff]   ;;  %v8967_v9 = vld [vmem:[#allocation6 + $0x1f0] sm:$0xff]  }
 0x38d   :  { %v8964_v30 = vld [vmem:[#allocation6 + $0x128] sm:$0xff]   ;;  %v8968_v12 = vld [vmem:[#allocation6 + $0x130] sm:$0xff]   ;;  %v8970_v17 = vld [vmem:[#allocation6 + $0x178] sm:$0xff]  }
 0x38e   :  { %8607 = vmatpush3.bf16.msra.mxu0 %v8928_v28  ;;  %8629 = vmatpush3.bf16.msra.mxu1 %v8929_v33  ;;  %v8965_v11 = vld [vmem:[#allocation6 + $0x1a8] sm:$0xff]   ;;  %v8969_v13 = vld [vmem:[#allocation6 + $0x1b0] sm:$0xff]   ;;  %v8971_v18 = vld [vmem:[#allocation6 + $0x1f8] sm:$0xff]  }
 0x38f   :  { %8608 = vmatprep.subr.bf16.mxu0 %v8930_v34  ;;  %8630 = vmatprep.subr.bf16.mxu1 %v8931_v37  ;;  %v8972_v19 = vld [vmem:[#allocation6 + $0x138] sm:$0xff]   ;;  %v8974_v25 = vld [vmem:[#allocation6 + $0x240] sm:$0xff]   ;;  %v8978_v28 = vld [vmem:[#allocation6 + $0x248] sm:$0xff]  }
 0x390   :  { %v8973_v22 = vld [vmem:[#allocation6 + $0x1b8] sm:$0xff]   ;;  %v8975_v39 = vld [vmem:[#allocation6 + $0x2c0] sm:$0xff]   ;;  %v8979_v29 = vld [vmem:[#allocation6 + $0x2c8] sm:$0xff]  }
 0x391   :  { %v8976_v23 = vld [vmem:[#allocation6 + $0x200] sm:$0xff]   ;;  %v8980_v32 = vld [vmem:[#allocation6 + $0x208] sm:$0xff]   ;;  %v8982_v34 = vld [vmem:[#allocation6 + $0x250] sm:$0xff]  }
 0x392   :  { %8609 = vmatpush3.bf16.msra.mxu0 %v8932_v40  ;;  %8631 = vmatpush3.bf16.msra.mxu1 %v8933_v41  ;;  %v8977_v26 = vld [vmem:[#allocation6 + $0x280] sm:$0xff]   ;;  %v8981_v33 = vld [vmem:[#allocation6 + $0x288] sm:$0xff]   ;;  %v8983_v37 = vld [vmem:[#allocation6 + $0x2d0] sm:$0xff]  }
 0x393   :  { %8610 = vmatprep.subr.bf16.mxu0 %v8934_v42  ;;  %8632 = vmatprep.subr.bf16.mxu1 %v8935_v43  ;;  %v8984_v40 = vld [vmem:[#allocation6 + $0x210] sm:$0xff]   ;;  %v8986_v41 = vld [vmem:[#allocation6 + $0x258] sm:$0xff]   ;;  %v8990_v43 = vld [vmem:[#allocation6 + $0x260] sm:$0xff]  }
 0x394   :  { %v8988_v42 = vld [vmem:[#allocation6 + $0x218] sm:$0xff]  }
 0x396   :  { %8611 = vmatpush3.bf16.msra.mxu0 %v8936_v44  ;;  %8633 = vmatpush3.bf16.msra.mxu1 %v8937_v49  ;;  %v8991_v44 = vld [vmem:[#allocation6 + $0x2e0] sm:$0xff]  }
 0x397   :  { %8612 = vmatprep.subr.bf16.mxu0 %v8938_v46  ;;  %8634 = vmatprep.subr.bf16.mxu1 %v8939_v47  ;;  %v8993_v49 = vld [vmem:[#allocation6 + $0x2a0] sm:$0xff]   ;;  %v8994_v46 = vld [vmem:[#allocation6 + $0x268] sm:$0xff]  }
 0x398   :  { %v8995_v47 = vld [vmem:[#allocation6 + $0x2e8] sm:$0xff]  }
 0x39a   :  { %8613 = vmatpush3.bf16.msra.mxu0 %v8940_v48  ;;  %8635 = vmatpush3.bf16.msra.mxu1 %v8941_v54  ;;  %v8996_v48 = vld [vmem:[#allocation6 + $0x228] sm:$0xff]  }
 0x39b   :  { %8642 = vmatprep.subr.bf16.mxu0 %v8942_v50  ;;  %8664 = vmatprep.subr.bf16.mxu1 %v8943_v16  ;;  %v8997_v54 = vld [vmem:[#allocation6 + $0x2a8] sm:$0xff]   ;;  %v8998_v50 = vld [vmem:[#allocation6 + $0x270] sm:$0xff]  }
 0x39c   :  { %v8999_v16 = vld [vmem:[#allocation6 + $0x2f0] sm:$0xff]  }
 0x39d   :  { %7373 = vmatmul.mubr.bf16.vlgmr.msra.gmra.mrb[16].mxu0 %v9334_v10  ;;  %7414 = vmatmul.mubr.bf16.vlgmr.msra.gmra.mrb[16].mxu1 %v9336_v14  ;;  %v8953_v10 = vld [vmem:[#allocation6 + $0x190] sm:$0xff]   ;;  %v8955_v14 = vld [vmem:[#allocation6 + $0x1d8] sm:$0xff]  }
 0x39e   :  { %8643 = vmatpush3.bf16.msra.mxu0 %v8944_v20  ;;  %7454 = vmatprep.mubr.bf16.mxu0 %v9376_v27  ;;  %v8957_v27 = vld [vmem:[#allocation6 + $0x198] sm:$0xff]   ;;  %v9000_v20 = vld [vmem:[#allocation6 + $0x230] sm:$0xff]  }
 0x39f   :  { %8665 = vmatpush3.bf16.msra.mxu1 %v8945_v51  ;;  %7495 = vmatprep.mubr.bf16.mxu1 %v9378_v31  ;;  %v8960_v31 = vld [vmem:[#allocation6 + $0x120] sm:$0xff]   ;;  %v9001_v51 = vld [vmem:[#allocation6 + $0x2b0] sm:$0xff]  }
 0x3a0   :  { %8644 = vmatprep.subr.bf16.mxu0 %v8946_v52  ;;  %8666 = vmatprep.subr.bf16.mxu1 %v8947_v4  ;;  %v9002_v52 = vld [vmem:[#allocation6 + $0x278] sm:$0xff]  }
 0x3a1   :  { %v9003_v4 = vld [vmem:[#allocation6 + $0x2f8] sm:$0xff]  }
 0x3a2   :  { %8645 = vmatpush3.bf16.msra.mxu0 %v8948_v53  ;;  %v9004_v53 = vld [vmem:[#allocation6 + $0x238] sm:$0xff]  }
 0x3a3   :  { %8667 = vmatpush3.bf16.msra.mxu1 %v8949_v55  ;;  %8646 = vmatprep.subr.bf16.mxu0 %v8950_v56  ;;  %v9005_v55 = vld [vmem:[#allocation6 + $0x2b8] sm:$0xff]   ;;  %v9006_v56 = vld [vmem:[#allocation6 + $0x340] sm:$0xff]  }
 0x3a4   :  { %8668 = vmatprep.subr.bf16.mxu1 %v8951_v57  ;;  %v9007_v57 = vld [vmem:[#allocation6 + $0x3c0] sm:$0xff]  }
 0x3a6   :  { %8647 = vmatpush3.bf16.msra.mxu0 %v8952_v7  ;;  %v9008_v7 = vld [vmem:[#allocation6 + $0x300] sm:$0xff]  }
 0x3a7   :  { %8669 = vmatpush3.bf16.msra.mxu1 %v8953_v10  ;;  %8648 = vmatprep.subr.bf16.mxu0 %v8954_v60  ;;  %v9009_v10 = vld [vmem:[#allocation6 + $0x380] sm:$0xff]   ;;  %v9010_v60 = vld [vmem:[#allocation6 + $0x348] sm:$0xff]  }
 0x3a8   :  { %8670 = vmatprep.subr.bf16.mxu1 %v8955_v14  ;;  %v9011_v14 = vld [vmem:[#allocation6 + $0x3c8] sm:$0xff]  }
 0x3aa   :  { %8649 = vmatpush3.bf16.msra.mxu0 %v8956_v61  ;;  %v9012_v61 = vld [vmem:[#allocation6 + $0x308] sm:$0xff]  }
 0x3ab   :  { %8671 = vmatpush3.bf16.msra.mxu1 %v8957_v27  ;;  %8650 = vmatprep.subr.bf16.mxu0 %v8958_v63  ;;  %v9013_v27 = vld [vmem:[#allocation6 + $0x388] sm:$0xff]   ;;  %v9014_v63 = vld [vmem:[#allocation6 + $0x350] sm:$0xff]  }
 0x3ac   :  { %8672 = vmatprep.subr.bf16.mxu1 %v8959_v8  ;;  %v9015_v8 = vld [vmem:[#allocation6 + $0x3d0] sm:$0xff]  }
 0x3ae   :  { %8651 = vmatpush3.bf16.msra.mxu0 %v8960_v31  ;;  %v9016_v31 = vld [vmem:[#allocation6 + $0x310] sm:$0xff]  }
 0x3af   :  { %8673 = vmatpush3.bf16.msra.mxu1 %v8961_v2  ;;  %8652 = vmatprep.subr.bf16.mxu0 %v8962_v15  ;;  %v9017_v2 = vld [vmem:[#allocation6 + $0x390] sm:$0xff]   ;;  %v9018_v15 = vld [vmem:[#allocation6 + $0x358] sm:$0xff]  }
 0x3b0   :  { %8674 = vmatprep.subr.bf16.mxu1 %v8963_v3  ;;  %v9019_v3 = vld [vmem:[#allocation6 + $0x3d8] sm:$0xff]  }
 0x3b2   :  { %8653 = vmatpush3.bf16.msra.mxu0 %v8964_v30  ;;  %v9022_v30 = vld [vmem:[#allocation6 + $0x360] sm:$0xff]  }
 0x3b3   :  { %8675 = vmatpush3.bf16.msra.mxu1 %v8965_v11  ;;  %8654 = vmatprep.subr.bf16.mxu0 %v8966_v6  ;;  %v9023_v11 = vld [vmem:[#allocation6 + $0x3e0] sm:$0xff]  }
 0x3b4   :  { %8676 = vmatprep.subr.bf16.mxu1 %v8967_v9  ;;  %v9024_v6 = vld [vmem:[#allocation6 + $0x320] sm:$0xff]  }
 0x3b5   :  { %v9025_v9 = vld [vmem:[#allocation6 + $0x3a0] sm:$0xff]  }
 0x3b6   :  { %8655 = vmatpush3.bf16.msra.mxu0 %v8968_v12  ;;  %v9026_v12 = vld [vmem:[#allocation6 + $0x368] sm:$0xff]  }
 0x3b7   :  { %8677 = vmatpush3.bf16.msra.mxu1 %v8969_v13  ;;  %8656 = vmatprep.subr.bf16.mxu0 %v8970_v17  ;;  %v9027_v13 = vld [vmem:[#allocation6 + $0x3e8] sm:$0xff]  }
 0x3b8   :  { %8678 = vmatprep.subr.bf16.mxu1 %v8971_v18  ;;  %v9028_v17 = vld [vmem:[#allocation6 + $0x328] sm:$0xff]  }
 0x3b9   :  { %v9029_v18 = vld [vmem:[#allocation6 + $0x3a8] sm:$0xff]  }
 0x3ba   :  { %8657 = vmatpush3.bf16.msra.mxu0 %v8972_v19  ;;  %v9030_v19 = vld [vmem:[#allocation6 + $0x370] sm:$0xff]  }
 0x3bb   :  { %8679 = vmatpush3.bf16.msra.mxu1 %v8973_v22  ;;  %8686 = vmatprep.subr.bf16.mxu0 %v8974_v25  ;;  %v9031_v22 = vld [vmem:[#allocation6 + $0x3f0] sm:$0xff]  }
 0x3bc   :  { %8708 = vmatprep.subr.bf16.mxu1 %v8975_v39  ;;  %v9032_v25 = vld [vmem:[#allocation6 + $0x330] sm:$0xff]  }
 0x3bd   :  { %7455 = vmatmul.mubr.bf16.vlgmr.msra.gmra.mrb[20].mxu0 %v9372_v21  ;;  %v8985_v21 = vld [vmem:[#allocation6 + $0x290] sm:$0xff]  }
 0x3be   :  { %7496 = vmatmul.mubr.bf16.vlgmr.msra.gmra.mrb[20].mxu1 %v9374_v24  ;;  %8687 = vmatpush3.bf16.msra.mxu0 %v8976_v23  ;;  %v8987_v24 = vld [vmem:[#allocation6 + $0x2d8] sm:$0xff]   ;;  %v9033_v39 = vld [vmem:[#allocation6 + $0x3b0] sm:$0xff]  }
 0x3bf   :  { %7536 = vmatprep.mubr.bf16.mxu0 %v9416_v36  ;;  %8709 = vmatpush3.bf16.msra.mxu1 %v8977_v26  ;;  %v8989_v36 = vld [vmem:[#allocation6 + $0x298] sm:$0xff]  }
 0x3c0   :  { %7577 = vmatprep.mubr.bf16.mxu1 %v9418_v38  ;;  %8688 = vmatprep.subr.bf16.mxu0 %v8978_v28  ;;  %v8992_v38 = vld [vmem:[#allocation6 + $0x220] sm:$0xff]   ;;  %v9034_v23 = vld [vmem:[#allocation6 + $0x378] sm:$0xff]  }
 0x3c1   :  { %8710 = vmatprep.subr.bf16.mxu1 %v8979_v29  ;;  %v9035_v26 = vld [vmem:[#allocation6 + $0x3f8] sm:$0xff]  }
 0x3c2   :  { %8689 = vmatpush3.bf16.msra.mxu0 %v8980_v32  ;;  %v9036_v28 = vld [vmem:[#allocation6 + $0x338] sm:$0xff]   ;;  %v932_v32 = vrot.slane %v9396_v45, %v899_v62 }
 0x3c3   :  { %8711 = vmatpush3.bf16.msra.mxu1 %v8981_v33  ;;  %8690 = vmatprep.subr.bf16.mxu0 %v8982_v34  ;;  %v9037_v29 = vld [vmem:[#allocation6 + $0x3b8] sm:$0xff]   ;;  %v940_v33 = vrot.slane %v9396_v45, %v907_v0  ;;  %v936_v34 = vrot.slane %v9396_v45, %v903_v1 }
 0x3c4   :  { %8712 = vmatprep.subr.bf16.mxu1 %v8983_v37  ;;  %v944_v37 = vrot.slane %v9396_v45, %v911_v5 }
 0x3c6   :  { %8691 = vmatpush3.bf16.msra.mxu0 %v8984_v40 }
 0x3c7   :  { %8713 = vmatpush3.bf16.msra.mxu1 %v8985_v21  ;;  %8692 = vmatprep.subr.bf16.mxu0 %v8986_v41 }
 0x3c8   :  { %8714 = vmatprep.subr.bf16.mxu1 %v8987_v24 }
 0x3ca   :  { %8693 = vmatpush3.bf16.msra.mxu0 %v8988_v42 }
 0x3cb   :  { %8715 = vmatpush3.bf16.msra.mxu1 %v8989_v36  ;;  %8694 = vmatprep.subr.bf16.mxu0 %v8990_v43 }
 0x3cc   :  { %8716 = vmatprep.subr.bf16.mxu1 %v8991_v44 }
 0x3ce   :  { %8695 = vmatpush3.bf16.msra.mxu0 %v8992_v38 }
 0x3cf   :  { %8717 = vmatpush3.bf16.msra.mxu1 %v8993_v49  ;;  %8696 = vmatprep.subr.bf16.mxu0 %v8994_v46 }
 0x3d0   :  { %8718 = vmatprep.subr.bf16.mxu1 %v8995_v47 }
 0x3d2   :  { %8697 = vmatpush3.bf16.msra.mxu0 %v8996_v48 }
 0x3d3   :  { %8719 = vmatpush3.bf16.msra.mxu1 %v8997_v54  ;;  %8698 = vmatprep.subr.bf16.mxu0 %v8998_v50 }
 0x3d4   :  { %8720 = vmatprep.subr.bf16.mxu1 %v8999_v16 }
 0x3d6   :  { %8699 = vmatpush3.bf16.msra.mxu0 %v9000_v20 }
 0x3d7   :  { %8721 = vmatpush3.bf16.msra.mxu1 %v9001_v51  ;;  %8700 = vmatprep.subr.bf16.mxu0 %v9002_v52 }
 0x3d8   :  { %8722 = vmatprep.subr.bf16.mxu1 %v9003_v4 }
 0x3da   :  { %8701 = vmatpush3.bf16.msra.mxu0 %v9004_v53 }
 0x3db   :  { %8723 = vmatpush3.bf16.msra.mxu1 %v9005_v55  ;;  %8730 = vmatprep.subr.bf16.mxu0 %v9006_v56 }
 0x3dc   :  { %8752 = vmatprep.subr.bf16.mxu1 %v9007_v57 }
 0x3dd   :  { %7537 = vmatmul.mubr.bf16.vlgmr.msra.gmra.mrb[24].mxu0 %v9412_v58  ;;  %v9020_v58 = vld [vmem:[#allocation6 + $0x318] sm:$0xff]  }
 0x3de   :  { %7578 = vmatmul.mubr.bf16.vlgmr.msra.gmra.mrb[24].mxu1 %v9414_v35  ;;  %8731 = vmatpush3.bf16.msra.mxu0 %v9008_v7  ;;  %v9021_v35 = vld [vmem:[#allocation6 + $0x398] sm:$0xff]   ;;  %v8469_v7 = vld [vmem:[#allocation7] ss:$0 sm:$0xff] }
 0x3df   :  { %8753 = vmatpush3.bf16.msra.mxu1 %v9009_v10  ;;  %8732 = vmatprep.subr.bf16.mxu0 %v9010_v60 }
 0x3e0   :  { %8754 = vmatprep.subr.bf16.mxu1 %v9011_v14 }
 0x3e2   :  { %8733 = vmatpush3.bf16.msra.mxu0 %v9012_v61 }
 0x3e3   :  { %8755 = vmatpush3.bf16.msra.mxu1 %v9013_v27  ;;  %8734 = vmatprep.subr.bf16.mxu0 %v9014_v63 }
 0x3e4   :  { %8756 = vmatprep.subr.bf16.mxu1 %v9015_v8 }
 0x3e6   :  { %8735 = vmatpush3.bf16.msra.mxu0 %v9016_v31 }
 0x3e7   :  { %8757 = vmatpush3.bf16.msra.mxu1 %v9017_v2  ;;  %8736 = vmatprep.subr.bf16.mxu0 %v9018_v15 }
 0x3e8   :  { %8758 = vmatprep.subr.bf16.mxu1 %v9019_v3 }
 0x3ea   :  { %8737 = vmatpush3.bf16.msra.mxu0 %v9020_v58 }
 0x3eb   :  { %8759 = vmatpush3.bf16.msra.mxu1 %v9021_v35  ;;  %8738 = vmatprep.subr.bf16.mxu0 %v9022_v30 }
 0x3ec   :  { %8760 = vmatprep.subr.bf16.mxu1 %v9023_v11 }
 0x3ee   :  { %8739 = vmatpush3.bf16.msra.mxu0 %v9024_v6 }
 0x3ef   :  { %8761 = vmatpush3.bf16.msra.mxu1 %v9025_v9  ;;  %8740 = vmatprep.subr.bf16.mxu0 %v9026_v12 }
 0x3f0   :  { %8762 = vmatprep.subr.bf16.mxu1 %v9027_v13 }
 0x3f2   :  { %8741 = vmatpush3.bf16.msra.mxu0 %v9028_v17 }
 0x3f3   :  { %8763 = vmatpush3.bf16.msra.mxu1 %v9029_v18  ;;  %8742 = vmatprep.subr.bf16.mxu0 %v9030_v19 }
 0x3f4   :  { %8764 = vmatprep.subr.bf16.mxu1 %v9031_v22 }
 0x3f6   :  { %8743 = vmatpush3.bf16.msra.mxu0 %v9032_v25 }
 0x3f7   :  { %8765 = vmatpush3.bf16.msra.mxu1 %v9033_v39  ;;  %8744 = vmatprep.subr.bf16.mxu0 %v9034_v23 }
 0x3f8   :  { %8766 = vmatprep.subr.bf16.mxu1 %v9035_v26 }
 0x3fa   :  { %8745 = vmatpush3.bf16.msra.mxu0 %v9036_v28 }
 0x3fb   :  { %8767 = vmatpush3.bf16.msra.mxu1 %v9037_v29 }
 0x450   :  { %v6080_v40 = vpop.f32.mrb[12].mxu0  ;;  %v6252_v41 = vpop.f32.mrb[12].mxu1 }
 0x451   :  { %v8798_v21 = vadd.f32 %v6080_v40, %v932_v32  ;;  %v6082_v24 = vpop.f32.mrb[13].mxu0  ;;  %v8802_v42 = vadd.f32 %v6252_v41, %v940_v33  ;;  %v6254_v43 = vpop.f32.mrb[13].mxu1 }
 0x452   :  { %v8799_v36 = vadd.f32 %v6082_v24, %v936_v34  ;;  %v6084_v62 = vpop.f32.mrb[14].mxu0  ;;  %v8803_v44 = vadd.f32 %v6254_v43, %v944_v37  ;;  %v6256_v49 = vpop.f32.mrb[14].mxu1 }
 0x453   :  { %v8800_v38 = vadd.f32 %v6084_v62, %v932_v32  ;;  %v6086_v0 = vpop.f32.mrb[15].mxu0  ;;  %v8804_v46 = vadd.f32 %v6256_v49, %v940_v33  ;;  %v6258_v48 = vpop.f32.mrb[15].mxu1  ;;  %v6273_v1 = vmax.f32 %v8798_v21, 0.0  ;;  %v6275_v50 = vmax.f32 %v8802_v42, 0.0 }
 0x454   :  { %v8801_v47 = vadd.f32 %v6086_v0, %v936_v34  ;;  %v8805_v59 = vadd.f32 %v6258_v48, %v944_v37  ;;  %v6274_v5 = vmax.f32 %v8799_v36, 0.0  ;;  %v6276_v20 = vmax.f32 %v8803_v44, 0.0 }
 0x455   :  { %v6289_v54 = vmax.f32 %v8800_v38, 0.0  ;;  %v6291_v45 = vmax.f32 %v8804_v46, 0.0 }
 0x456   :  { %v6290_v16 = vmax.f32 %v8801_v47, 0.0  ;;  %v6292_v52 = vmax.f32 %v8805_v59, 0.0 }
 0x457   :  { %v6305_v51 = vpack.c.bf16 %v6289_v54, %v6273_v1  ;;  %v6307_v4 = vpack.c.bf16 %v6291_v45, %v6275_v50 }
 0x458   :  { %v6306_v53 = vpack.c.bf16 %v6290_v16, %v6274_v5  ;;  %v6308_v55 = vpack.c.bf16 %v6292_v52, %v6276_v20 }
 0x45a   :  { %7618 = vmatprep.mubr.bf16.mxu0 %v6306_v53  ;;  %7659 = vmatprep.mubr.bf16.mxu1 %v6308_v55 }
 0x45b   :  { %7619 = vmatmul.mubr.bf16.vlgmr.msra.gmra.mrb[28].mxu0 %v6305_v51  ;;  %7660 = vmatmul.mubr.bf16.vlgmr.msra.gmra.mrb[28].mxu1 %v6307_v4 }
 0x470   :  { %v8614_v56 = vpop.f32.mrb[16].mxu0  ;;  %v8636_v57 = vpop.f32.mrb[16].mxu1 }
 0x471   :  { %v8615_v10 = vpop.f32.mrb[17].mxu0  ;;  %v8637_v14 = vpop.f32.mrb[17].mxu1 }
 0x472   :  { %v8616_v60 = vadd.f32 %v8615_v10, %v8614_v56  ;;  %v8617_v61 = vpop.f32.mrb[18].mxu0  ;;  %v8638_v27 = vadd.f32 %v8637_v14, %v8636_v57  ;;  %v8639_v63 = vpop.f32.mrb[18].mxu1 }
 0x473   :  { %v8618_v8 = vpop.f32.mrb[19].mxu0  ;;  %v8640_v15 = vpop.f32.mrb[19].mxu1 }
 0x474   :  { %v7375_v31 = vadd.f32 %v8616_v60, %v8469_v7  ;;  %v8619_v2 = vadd.f32 %v8618_v8, %v8617_v61  ;;  %v8641_v3 = vadd.f32 %v8640_v15, %v8639_v63 }
 0x476   :  { %v7416_v58 = vadd.f32 %v8638_v27, %v7375_v31  ;;  %v7378_v35 = vadd.f32 %v8619_v2, %v8469_v7 }
 0x478   :  { %v7419_v30 = vadd.f32 %v8641_v3, %v7378_v35 }
 0x490   :  { %v8658_v11 = vpop.f32.mrb[20].mxu0 }
 0x491   :  { %v8680_v6 = vpop.f32.mrb[20].mxu1  ;;  %v8659_v9 = vpop.f32.mrb[21].mxu0 }
 0x492   :  { %v8660_v12 = vadd.f32 %v8659_v9, %v8658_v11  ;;  %v8681_v13 = vpop.f32.mrb[21].mxu1  ;;  %v8661_v17 = vpop.f32.mrb[22].mxu0 }
 0x493   :  { %v8682_v18 = vadd.f32 %v8681_v13, %v8680_v6  ;;  %v8683_v19 = vpop.f32.mrb[22].mxu1  ;;  %v8662_v22 = vpop.f32.mrb[23].mxu0 }
 0x494   :  { %v7457_v25 = vadd.f32 %v8660_v12, %v7416_v58  ;;  %v8663_v39 = vadd.f32 %v8662_v22, %v8661_v17  ;;  %v8684_v23 = vpop.f32.mrb[23].mxu1 }
 0x495   :  { %v8685_v26 = vadd.f32 %v8684_v23, %v8683_v19 }
 0x496   :  { %v7498_v28 = vadd.f32 %v8682_v18, %v7457_v25  ;;  %v7460_v29 = vadd.f32 %v8663_v39, %v7419_v30 }
 0x498   :  { %v7501_v32 = vadd.f32 %v8685_v26, %v7460_v29 }
 0x4b0   :  { %v8702_v33 = vpop.f32.mrb[24].mxu0 }
 0x4b1   :  { %v8724_v34 = vpop.f32.mrb[24].mxu1  ;;  %v8703_v37 = vpop.f32.mrb[25].mxu0 }
 0x4b2   :  { %v8704_v40 = vadd.f32 %v8703_v37, %v8702_v33  ;;  %v8725_v21 = vpop.f32.mrb[25].mxu1  ;;  %v8705_v41 = vpop.f32.mrb[26].mxu0 }
 0x4b3   :  { %v8726_v24 = vadd.f32 %v8725_v21, %v8724_v34  ;;  %v8727_v42 = vpop.f32.mrb[26].mxu1  ;;  %v8706_v36 = vpop.f32.mrb[27].mxu0 }
 0x4b4   :  { %v7539_v43 = vadd.f32 %v8704_v40, %v7498_v28  ;;  %v8707_v62 = vadd.f32 %v8706_v36, %v8705_v41  ;;  %v8728_v44 = vpop.f32.mrb[27].mxu1 }
 0x4b5   :  { %v8729_v38 = vadd.f32 %v8728_v44, %v8727_v42 }
 0x4b6   :  { %v7580_v49 = vadd.f32 %v8726_v24, %v7539_v43  ;;  %v7542_v0 = vadd.f32 %v8707_v62, %v7501_v32 }
 0x4b8   :  { %v7583_v46 = vadd.f32 %v8729_v38, %v7542_v0 }
 0x52e   :  { %v8746_v47 = vpop.f32.mrb[28].mxu0  ;;  %v8768_v48 = vpop.f32.mrb[28].mxu1 }
 0x52f   :  { %v8747_v1 = vpop.f32.mrb[29].mxu0  ;;  %v8769_v59 = vpop.f32.mrb[29].mxu1 }
 0x530   :  { %v8748_v54 = vadd.f32 %v8747_v1, %v8746_v47  ;;  %v8749_v50 = vpop.f32.mrb[30].mxu0  ;;  %v8770_v5 = vadd.f32 %v8769_v59, %v8768_v48  ;;  %v8771_v45 = vpop.f32.mrb[30].mxu1 }
 0x531   :  { %v8750_v16 = vpop.f32.mrb[31].mxu0  ;;  %v8772_v52 = vpop.f32.mrb[31].mxu1 }
 0x532   :  { %v7621_v20 = vadd.f32 %v8748_v54, %v7580_v49  ;;  %v8751_v51 = vadd.f32 %v8750_v16, %v8749_v50  ;;  %v8773_v4 = vadd.f32 %v8772_v52, %v8771_v45 }
 0x534   :  { %v7662_v53 = vadd.f32 %v8770_v5, %v7621_v20  ;;  %v7624_v55 = vadd.f32 %v8751_v51, %v7583_v46 }
 0x536   :  { %7668 = vst [vmem:[%s9453_s5] sm:$0xff] %v7662_v53  ;;  %v7665_v56 = vadd.f32 %v8773_v4, %v7624_v55 }
 0x538   :  { %7669 = vst [vmem:[%s9453_s5 + $0x8] sm:$0xff] %v7665_v56 }
 0x539   :  { %7674 = vsyncpa [#allocation3], 1 }
 0x53a   :  { %7675 = vsyncpa [#allocation5], 1 }
 0x53b   :  { %7676 = vsyncpa [#allocation8], 1 }

</bundles_post_ra>
